<compile_context>
chip_gen: v5e
topology: v5e:2x2
jax: 0.10.0
libtpu: 0.0.40
codegen_flags: <defaults>
</compile_context>

<pallas_src>
import jax
import jax.numpy as jnp
from jax.experimental import pallas as pl
from jax.experimental.pallas import tpu as pltpu


# Tiling constants.
_LANE_W = 512                 # lane-dense last dim: 4 x 128 lanes -> unmasked vst
_ROW_MULT = 32                # row-block multiple covering f32(8)/bf16(16)/int8(32) sublanes
_SMALL_N = 1 << 18            # below ~256K elements plain XLA fusion wins
_PIPELINE_BYTES = 24 << 20    # target double-buffered VMEM footprint (3 arrays x 2 bufs)
_VMEM_LIMIT = 40 << 20        # raise scoped-VMEM limit (v5e default is only 16 MiB)


def _add_kernel(x_ref, y_ref, o_ref):
    # Cast on the VPU (free filler under the DMA/HBM bottleneck), add, store.
    o_ref[...] = x_ref[...].astype(o_ref.dtype) + y_ref[...].astype(o_ref.dtype)


def add_op(x, y):
    """Elementwise add of two same-shaped arrays via a tiled Pallas TPU kernel."""
    assert x.shape == y.shape, "add_op expects same-shaped inputs"

    out_dtype = jnp.result_type(x.dtype, y.dtype)
    orig_shape = x.shape
    n = x.size

    # Fallback: tiny tensors or lane-ragged element counts -> XLA fused add.
    # (Keeps the kernel pad-free; XLA's elementwise add is near-roofline anyway.)
    if n < _SMALL_N or n % _LANE_W != 0:
        return (x + y).astype(out_dtype).reshape(orig_shape)

    rows = n // _LANE_W
    xf = x.reshape(rows, _LANE_W)
    yf = y.reshape(rows, _LANE_W)

    # Dtype-aware block sizing: keep the double-buffered footprint
    # (2 buffers x (x + y + out) blocks) around _PIPELINE_BYTES.
    out_itemsize = jnp.dtype(out_dtype).itemsize
    bytes_per_row = _LANE_W * (xf.dtype.itemsize + yf.dtype.itemsize + out_itemsize)
    tile_rows = _PIPELINE_BYTES // (2 * bytes_per_row)
    tile_rows = max((tile_rows // _ROW_MULT) * _ROW_MULT, _ROW_MULT)
    if tile_rows >= rows:
        tile_rows = rows  # single full-extent block (always a legal block shape)
    grid = (pl.cdiv(rows, tile_rows),)

    cost = pl.CostEstimate(
        flops=n,
        transcendentals=0,
        bytes_accessed=(n * xf.dtype.itemsize
                        + n * yf.dtype.itemsize
                        + n * out_itemsize),
    )

    out = pl.pallas_call(
        _add_kernel,
        out_shape=jax.ShapeDtypeStruct((rows, _LANE_W), out_dtype),
        grid_spec=pltpu.PrefetchScalarGridSpec(
            num_scalar_prefetch=0,
            grid=grid,
            in_specs=[
                pl.BlockSpec((tile_rows, _LANE_W), lambda i: (i, 0)),
                pl.BlockSpec((tile_rows, _LANE_W), lambda i: (i, 0)),
            ],
            out_specs=pl.BlockSpec((tile_rows, _LANE_W), lambda i: (i, 0)),
        ),
        compiler_params=pltpu.CompilerParams(
            # Independent elementwise blocks: shard across TCs on v7x megacore.
            dimension_semantics=("parallel",),
            vmem_limit_bytes=_VMEM_LIMIT,
        ),
        cost_estimate=cost,
    )(xf, yf)

    return out.reshape(orig_shape)


if __name__ == "__main__":
    key = jax.random.PRNGKey(0)
    kx, ky = jax.random.split(key)

    # Small NCHW inputs consistent with the module (exercises the small-size path).
    x = jax.random.normal(kx, (2, 4, 16, 16), dtype=jnp.float32)
    y = jax.random.normal(ky, (2, 4, 16, 16), dtype=jnp.float32)
    out = add_op(x, y)
    jax.block_until_ready(out)
    ref = x + y
    assert out.shape == ref.shape and out.dtype == ref.dtype
    assert jnp.allclose(out, ref, atol=1e-6, rtol=1e-6), "mismatch vs reference"

    # Large size through the Pallas kernel: multi-block grid with a ragged last
    # row-block (rows % tile_rows != 0) to exercise Pallas block masking.
    rows = 2048 + 40
    xb = jax.random.normal(kx, (rows * _LANE_W,), dtype=jnp.float32)
    yb = jax.random.normal(ky, (rows * _LANE_W,), dtype=jnp.float32)
    outb = add_op(xb, yb)
    jax.block_until_ready(outb)
    assert jnp.allclose(outb, xb + yb, atol=1e-6, rtol=1e-6), "mismatch (big)"

    # Mixed precision: promotion now happens on the VPU inside the kernel.
    yb16 = yb.astype(jnp.bfloat16)
    outm = add_op(xb, yb16)
    jax.block_until_ready(outm)
    refm = xb + yb16
    assert outm.dtype == refm.dtype
    assert jnp.allclose(outm, refm, atol=1e-2, rtol=1e-2), "mismatch (mixed dtype)"

    print("KERNEL_OK")
</pallas_src>

<mosaic_0001>
module attributes {stable_mosaic.version = 11 : i64} {
  func.func @_add_kernel(%arg0: i32, %arg1: memref<2048x512xf32, #tpu.memory_space<vmem>>, %arg2: memref<2048x512xf32, #tpu.memory_space<vmem>>, %arg3: memref<2048x512xf32, #tpu.memory_space<vmem>>) attributes {dimension_semantics = [#tpu.dimension_semantics<parallel>], iteration_bounds = array<i64: 2>, scalar_prefetch = 0 : i64, scratch_operands = 0 : i64, tpu.core_type = #tpu.core_type<tc>, window_params = [{transform_indices = @transform_0, window_bounds = array<i64: 2048, 512>}, {transform_indices = @transform_1, window_bounds = array<i64: 2048, 512>}, {transform_indices = @transform_2, window_bounds = array<i64: 2048, 512>}]} {
    %c0 = arith.constant 0 : index
    %c0_0 = arith.constant 0 : index
    %0 = vector.load %arg1[%c0, %c0_0] : memref<2048x512xf32, #tpu.memory_space<vmem>>, vector<2048x512xf32>
    %c0_1 = arith.constant 0 : index
    %c0_2 = arith.constant 0 : index
    %1 = vector.load %arg2[%c0_1, %c0_2] : memref<2048x512xf32, #tpu.memory_space<vmem>>, vector<2048x512xf32>
    %2 = arith.addf %0, %1 : vector<2048x512xf32>
    %c0_3 = arith.constant 0 : index
    %c0_4 = arith.constant 0 : index
    %3 = vector.load %arg3[%c0_3, %c0_4] : memref<2048x512xf32, #tpu.memory_space<vmem>>, vector<2048x512xf32>
    tpu.vector_store %arg3[%c0_3, %c0_4], %2 {strides = array<i32>} : memref<2048x512xf32, #tpu.memory_space<vmem>>, vector<2048x512xf32>,
    return
  }
  func.func @transform_0(%arg0: i32) -> (i32, i32) {
    %c0_i32 = arith.constant 0 : i32
    %c0_i32_0 = arith.constant 0 : i32
    return %arg0, %c0_i32 : i32, i32
  }
  func.func @transform_1(%arg0: i32) -> (i32, i32) {
    %c0_i32 = arith.constant 0 : i32
    %c0_i32_0 = arith.constant 0 : i32
    return %arg0, %c0_i32 : i32, i32
  }
  func.func @transform_2(%arg0: i32) -> (i32, i32) {
    %c0_i32 = arith.constant 0 : i32
    %c0_i32_0 = arith.constant 0 : i32
    return %arg0, %c0_i32 : i32, i32
  }
}

</mosaic_0001>

<bundles_post_ra>
// kernel: tpu_custom_call.1
= control target key start
LH: loop header
LB: loop body
LE: loop exit
PB: predicated region body
PF: predicated region fallthrough
CT: control target
= control target key end

     0   :  { %7 = vsyncpa [#allocation3], 0  ;;  %s8045_s0 = inlined_call_operand.hbm [shape: f32[2088,512], index: 0, kind: input, shape index: {}]   ;;  %s8046_s1 = inlined_call_operand.hbm [shape: f32[2088,512], index: 1, kind: input, shape index: {}]   ;;  %s8047_s2 = inlined_call_operand.hbm [shape: f32[2088,512], index: 2, kind: output, shape index: {}]  }
   0x1   :  { %9 = vsyncpa [#allocation3 + $0x1], 0 }
   0x2   :  { %10 = vsyncpa [#allocation6], 0 }
   0x3   :  { %12 = vsyncpa [#allocation6 + $0x1], 0 }
   0x4   :  { %13 = vsyncpa [#allocation4], 0 }
   0x5   :  { %15 = vsyncpa [#allocation4 + $0x1], 0  ;;  %s4735_s9 = smov 0   ;;  %s4737_s10 = smov 0  }
   0x6   :  { %s4739_s11 = smov 0   ;;  %s4741_s12 = smov 0  }
   0x7 LB: > { %s4756_s13 = sadd.s32 4294967295, %s4709_s12   ;;  %s4459_s14 = sadd.s32 4294967294, %s4709_s12   ;;  %s4709_s12 = sphi %s4741_s12, %s8061_s12   ;;  %s4705_s11 = sphi %s4739_s11, %s8060_s11   ;;  %s4701_s10 = sphi %s4737_s10, %s8059_s10   ;;  %s4697_s9 = sphi %s4735_s9, %s8058_s9  }
   0x8   : > { %s4760_s15 = sadd.s32 1, %s4709_s12   ;;  %s28_s16 = sadd.s32 1, %s4705_s11 }
   0x9   : > { %s25_s17 = ssub.s32 %s4709_s12, %s4760_s15  ;;  %p35_p0 = scmp.ne.s32.totalorder %s4705_s11, %s4701_s10 }
   0xa   : > { %p26_p1 = scmp.eq.s32.totalorder %s25_s17, 0  ;;  %p36_p2 = scmp.eq.s32.totalorder %s4709_s12, 0 }
   0xb   : > { %p41_p3 = scmp.ne.s32.totalorder %s4701_s10, %s4697_s9  ;;  %p42_p4 = scmp.eq.s32.totalorder %s4756_s13, 0 }
   0xc   : > { %s4772_s18 = scalar_select %p26_p1, %s4705_s11, %s28_s16  }
   0xd   : > { %p4774_p5 = por %p36_p2, %p35_p0  ;;  %p4778_p6 = por %p42_p4, %p41_p3 }
   0xe   : > { %p91_p7 = scmp.eq.s32.totalorder %s4756_s13, 1  ;;  %p97_p8 = scmp.eq.s32.totalorder %s4459_s14, 1 }
   0xf   : > { %p8048_p11 = scmp.ge.s32.totalorder %s4709_s12, 2 }
  0x10   : > { %p4783_p9 = por %p91_p7, %p35_p0  ;;  %p4787_p10 = por %p97_p8, %p41_p3 }
  0x11   : > { %113 = sbr.rel (%p8048_p11) target bundleno = 94 (0x5e), region = 16 }
  0x12   : > { %s8052_s22 = scalar_select %p4787_p10, 1, 0 }
  0x16   : > { %116 = sbr.rel (!%p4774_p5) target bundleno = 58 (0x3a), region = 20  ;;  %s117_s23 = sand.u32 (%p4774_p5), 1, %s4705_s11  }
  0x17   : > { %s4463_s24 = sshll.u32 (%p4774_p5), %s4709_s12, 8  ;;  %s4462_s25 = sshll.u32 (%p4774_p5), %s117_s23, 13 }
  0x18   : > { %s123_s26 = ssub.s32 (%p4774_p5), 261, %s4463_s24  ;;  %s4801_s30 = scalar_lea.sflag (%p4774_p5), [#allocation3], %s117_s23 }
  0x19   : > { %p124_p12 = scmp.lt.s32.totalorder (%p4774_p5), %s123_s26, 256  ;;  %s121_s3 = scalar_lea.vmem (%p4774_p5), [#allocation2], %s4462_s25 }
  0x1b   : > { %s8063_s26 = smov (!%p124_p12, %s123_s26), 256 }
  0x1c   : > { %s4495_s27 = sshll.u32 %s8063_s26, 5 }
  0x1d   : > { %s128_s28 = ssub.s32 8192, %s4495_s27 }
  0x1e   : > { %s129_s29 = sshll.u32 %s128_s28, 4 }
  0x1f   : > { %130 = vsyncadd %s4801_s30, %s129_s29  ;;  %p4804_p13 = scmp.ne.s32.totalorder %s4495_s27, 0  ;;  %s4497_s5 = sshll.u32 %s4709_s12, 13 }
  0x20   : > { %s134_s8 = scalar_lea.hbm %s8045_s0, %s4497_s5  ;;  %s4812_s14 = sshll.u32 %s121_s3, 4  ;;  %s139_s14 = int_to_ptr.vmem [resolvable:$true] %s4812_s14 }
  0x21   : > { %s136_s16 = sshll.u32 %s134_s8, 4  ;;  %s4470_s17 = sshll.u32 %s8063_s26, 9  ;;  %s4815_s16 = int_to_ptr.hbm [resolvable:$true] %s136_s16 }
  0x22   : > { %s4550_s23 = sshra.s32 %s4815_s16, 4  ;;  %s4552_s24 = sshrl.u32 %s4470_s17, 4  ;;  %s4551_s23 = int_to_ptr.hbm [resolvable:$true] %s4550_s23 }
  0x23   : > { %s4557_s25 = scalar_lea.hbm %s4551_s23, %s4552_s24  ;;  %s4561_s29 = scalar_lea.hbm %s8045_s0, 8352 }
  0x24   : > { %p4558_p0 = scmp.ne.s32.totalorder %s4551_s23, %s4557_s25  ;;  %p4562_p3 = scmp.lt.s32.totalorder %s4551_s23, %s8045_s0 }
  0x25   : > { %p4563_p4 = scmp.lt.s32.totalorder %s4561_s29, %s4557_s25 }
  0x26   : > { %p4559_p1 = pnand %p4558_p0, %p4804_p13 }
  0x27   : > { %p4564_p7 = por %p4563_p4, %p4562_p3 }
  0x28   : > { %p4560_p2 = pneg %p4559_p1 }
  0x2a   : > { %p4565_p8 = pnand %p4564_p7, %p4560_p2 }
  0x2c   : > { %4568 = shalt.err (!%p4565_p8)
}
  0x2d   : > { %s4569_s6 = sshra.s32 %s139_s14, 4  ;;  %s4711_s8 = smov [#allocation2]   ;;  %s4570_s6 = int_to_ptr.vmem [resolvable:$true] %s4569_s6 }
  0x2e   : > { %s4576_s7 = scalar_lea.vmem %s4570_s6, %s4552_s24  ;;  %s4580_s27 = scalar_lea.vmem %s4711_s8, 16384 }
  0x2f   : > { %p4577_p12 = scmp.ne.s32.totalorder %s4570_s6, %s4576_s7  ;;  %p4582_p11 = scmp.lt.s32.totalorder %s4580_s27, %s4576_s7 }
  0x31   : > { %p4578_p0 = pnand %p4577_p12, %p4804_p13 }
  0x33   : > { %p4579_p1 = pneg %p4578_p0 }
  0x35   : > { %p4584_p10 = pnand %p4582_p11, %p4579_p1 }
  0x37   : > { %4587 = shalt.err (!%p4584_p10)
}
  0x38   : > { %s4712_s23 = smov 512   ;;  %s4713_s25 = smov 32  }
  0x39   : > { %144 = dma.hbm_to_vmem [thread:$0]  (%p4804_p13), %s4815_s16, %s4470_s17, %s139_s14, %s4801_s30, %s4712_s23, %s4712_s23, %s4713_s25  }
  0x3a PF: > { %147 = sbr.rel (!%p4774_p5) target bundleno = 94 (0x5e), region = 24  ;;  %s148_s24 = sand.u32 (%p4774_p5), 1, %s4705_s11  }
  0x3b   : > { %s4472_s28 = sshll.u32 (%p4774_p5), %s4709_s12, 8  ;;  %s4471_s29 = sshll.u32 (%p4774_p5), %s148_s24, 13 }
  0x3c   : > { %s154_s3 = ssub.s32 (%p4774_p5), 261, %s4472_s28  ;;  %s4848_s7 = scalar_lea.sflag (%p4774_p5), [#allocation6], %s148_s24 }
  0x3d   : > { %p155_p10 = scmp.lt.s32.totalorder (%p4774_p5), %s154_s3, 256  ;;  %s152_s26 = scalar_lea.vmem (%p4774_p5), [#allocation5], %s4471_s29 }
  0x3f   : > { %s8065_s3 = smov (!%p155_p10, %s154_s3), 256 }
  0x40   : > { %s4498_s5 = sshll.u32 %s8065_s3, 5 }
  0x41   : > { %s159_s6 = ssub.s32 8192, %s4498_s5 }
  0x42   : > { %s160_s4 = sshll.u32 %s159_s6, 4 }
  0x43   : > { %161 = vsyncadd %s4848_s7, %s160_s4  ;;  %p4851_p5 = scmp.ne.s32.totalorder %s4498_s5, 0  ;;  %s4500_s30 = sshll.u32 %s4709_s12, 13 }
  0x44   : > { %s165_s17 = scalar_lea.hbm %s8046_s1, %s4500_s30  ;;  %s4859_s8 = sshll.u32 %s152_s26, 4  ;;  %s170_s8 = int_to_ptr.vmem [resolvable:$true] %s4859_s8 }
  0x45   : > { %s167_s27 = sshll.u32 %s165_s17, 4  ;;  %s4479_s23 = sshll.u32 %s8065_s3, 9  ;;  %s4862_s27 = int_to_ptr.hbm [resolvable:$true] %s167_s27 }
  0x46   : > { %s4589_s25 = sshra.s32 %s4862_s27, 4  ;;  %s4591_s24 = sshrl.u32 %s4479_s23, 4  ;;  %s4590_s25 = int_to_ptr.hbm [resolvable:$true] %s4589_s25 }
  0x47   : > { %s4596_s28 = scalar_lea.hbm %s4590_s25, %s4591_s24  ;;  %s4600_s6 = scalar_lea.hbm %s8046_s1, 8352 }
  0x48   : > { %p4597_p11 = scmp.ne.s32.totalorder %s4590_s25, %s4596_s28  ;;  %p4601_p3 = scmp.lt.s32.totalorder %s4590_s25, %s8046_s1 }
  0x49   : > { %p4602_p4 = scmp.lt.s32.totalorder %s4600_s6, %s4596_s28 }
  0x4a   : > { %p4598_p13 = pnand %p4597_p11, %p4851_p5 }
  0x4b   : > { %p4603_p7 = por %p4602_p4, %p4601_p3 }
  0x4c   : > { %p4599_p2 = pneg %p4598_p13 }
  0x4e   : > { %p4604_p8 = pnand %p4603_p7, %p4599_p2 }
  0x50   : > { %4607 = shalt.err (!%p4604_p8)
}
  0x51   : > { %s4608_s30 = sshra.s32 %s170_s8, 4  ;;  %s4714_s16 = smov [#allocation5]   ;;  %s4609_s30 = int_to_ptr.vmem [resolvable:$true] %s4608_s30 }
  0x52   : > { %s4615_s14 = scalar_lea.vmem %s4609_s30, %s4591_s24  ;;  %s4619_s17 = scalar_lea.vmem %s4714_s16, 16384 }
  0x53   : > { %p4616_p12 = scmp.ne.s32.totalorder %s4609_s30, %s4615_s14  ;;  %p4621_p10 = scmp.lt.s32.totalorder %s4619_s17, %s4615_s14 }
  0x55   : > { %p4617_p0 = pnand %p4616_p12, %p4851_p5 }
  0x57   : > { %p4618_p1 = pneg %p4617_p0 }
  0x59   : > { %p4623_p11 = pnand %p4621_p10, %p4618_p1 }
  0x5b   : > { %4626 = shalt.err (!%p4623_p11)
}
  0x5c   : > { %s4715_s25 = smov 512   ;;  %s4716_s28 = smov 32  }
  0x5d   : > { %175 = dma.hbm_to_vmem [thread:$0]  (%p4851_p5), %s4862_s27, %s4479_s23, %s170_s8, %s4848_s7, %s4715_s25, %s4715_s25, %s4716_s28  }
  0x5e PF: > { %p4480_p13 = scmp.ge.s32.totalorder %s4709_s12, 1  ;;  %p177_p2 = scmp.lt.s32.totalorder %s4709_s12, 3 }
  0x60   : > { %p178_p3 = pnand %p4480_p13, %p177_p2 }
  0x61   : > { %s4891_s24 = sand.u32 (!%p178_p3), 1, %s4701_s10  }
  0x62   : > { %181 = sbr.rel (%p178_p3) target bundleno = 1165 (0x48d), region = 28  ;;  %s4481_s29 = sshll.u32 (!%p178_p3), %s4891_s24, 13 }
  0x63   : > { %s184_s5 = scalar_lea.sflag (!%p178_p3), [#allocation3], %s4891_s24  ;;  %s4895_s19 = scalar_lea.vmem (!%p178_p3), [#allocation2], %s4481_s29 }
  0x67   : > { %4684 = dma.done.wait (%p4778_p6), %s184_s5, 131072  }
  0x68   : > { %4686 = vsyncadd (%p4778_p6), %s184_s5, 4294836224  ;;  %s194_s3 = scalar_lea.sflag [#allocation6], %s4891_s24  ;;  %s4902_s7 = scalar_lea.vmem [#allocation5], %s4481_s29 }
  0x69   : > { %4688 = dma.done.wait (%p4778_p6), %s194_s3, 131072  }
  0x6a   : > { %4690 = vsyncadd (%p4778_p6), %s194_s3, 4294836224  ;;  %v242_v0 = vld [vmem:[%s4895_s19] sm:$0xff]  ;;  %v243_v2 = vld [vmem:[%s4895_s19 + $0x8] sm:$0xff]  ;;  %s4917_s20 = scalar_lea.vmem [#allocation7], %s4481_s29  ;;  %s4339_s8 = scalar_lea.sflag [#allocation4], %s4891_s24 }
  0x6b   : > { %v1266_v1 = vld [vmem:[%s4902_s7] sm:$0xff]  ;;  %v1267_v4 = vld [vmem:[%s4902_s7 + $0x8] sm:$0xff]  ;;  %v244_v5 = vld [vmem:[%s4895_s19 + $0x10] sm:$0xff]  ;;  %s4485_s27 = sshll.u32 (%p4783_p9), %s4756_s13, 8 }
  0x6c   : > { %v2290_v3 = vadd.f32 %v1266_v1, %v242_v0  ;;  %v1268_v6 = vld [vmem:[%s4902_s7 + $0x10] sm:$0xff]  ;;  %v2291_v7 = vadd.f32 %v1267_v4, %v243_v2  ;;  %v245_v9 = vld [vmem:[%s4895_s19 + $0x18] sm:$0xff]  ;;  %v246_v11 = vld [vmem:[%s4895_s19 + $0x20] sm:$0xff]  ;;  %s4347_s23 = ssub.s32 (%p4783_p9), 261, %s4485_s27 }
  0x6d   : > { %v2292_v8 = vadd.f32 %v1268_v6, %v244_v5  ;;  %v1269_v10 = vld [vmem:[%s4902_s7 + $0x18] sm:$0xff]  ;;  %v1270_v13 = vld [vmem:[%s4902_s7 + $0x20] sm:$0xff]  ;;  %v247_v14 = vld [vmem:[%s4895_s19 + $0x28] sm:$0xff]  ;;  %p4348_p6 = scmp.lt.s32.totalorder (%p4783_p9), %s4347_s23, 256 }
  0x6e   : > { %3314 = vst [vmem:[%s4917_s20] sm:$0xff] %v2290_v3  ;;  %v2293_v12 = vadd.f32 %v1269_v10, %v245_v9  ;;  %v1271_v15 = vld [vmem:[%s4902_s7 + $0x28] sm:$0xff]  ;;  %v2294_v16 = vadd.f32 %v1270_v13, %v246_v11  ;;  %v248_v18 = vld [vmem:[%s4895_s19 + $0x30] sm:$0xff]  ;;  %v249_v20 = vld [vmem:[%s4895_s19 + $0x38] sm:$0xff] }
  0x6f   : > { %3315 = vst [vmem:[%s4917_s20 + $0x8] sm:$0xff] %v2291_v7  ;;  %v2295_v17 = vadd.f32 %v1271_v15, %v247_v14  ;;  %v1272_v19 = vld [vmem:[%s4902_s7 + $0x30] sm:$0xff]  ;;  %v1273_v22 = vld [vmem:[%s4902_s7 + $0x38] sm:$0xff]  ;;  %v250_v23 = vld [vmem:[%s4895_s19 + $0x40] sm:$0xff] }
  0x70   : > { %3316 = vst [vmem:[%s4917_s20 + $0x10] sm:$0xff] %v2292_v8  ;;  %v2296_v21 = vadd.f32 %v1272_v19, %v248_v18  ;;  %v1274_v24 = vld [vmem:[%s4902_s7 + $0x40] sm:$0xff]  ;;  %v2297_v25 = vadd.f32 %v1273_v22, %v249_v20  ;;  %v251_v26 = vld [vmem:[%s4895_s19 + $0x48] sm:$0xff]  ;;  %v252_v28 = vld [vmem:[%s4895_s19 + $0x50] sm:$0xff] }
  0x71   : > { %3317 = vst [vmem:[%s4917_s20 + $0x18] sm:$0xff] %v2293_v12  ;;  %v1275_v27 = vld [vmem:[%s4902_s7 + $0x48] sm:$0xff]  ;;  %v2298_v29 = vadd.f32 %v1274_v24, %v250_v23  ;;  %v1276_v30 = vld [vmem:[%s4902_s7 + $0x50] sm:$0xff]  ;;  %v253_v31 = vld [vmem:[%s4895_s19 + $0x58] sm:$0xff] }
  0x72   : > { %3318 = vst [vmem:[%s4917_s20 + $0x20] sm:$0xff] %v2294_v16  ;;  %v1277_v32 = vld [vmem:[%s4902_s7 + $0x58] sm:$0xff]  ;;  %v2299_v33 = vadd.f32 %v1275_v27, %v251_v26  ;;  %v254_v34 = vld [vmem:[%s4895_s19 + $0x60] sm:$0xff]  ;;  %v2300_v36 = vadd.f32 %v1276_v30, %v252_v28  ;;  %v255_v37 = vld [vmem:[%s4895_s19 + $0x68] sm:$0xff] }
  0x73   : > { %3319 = vst [vmem:[%s4917_s20 + $0x28] sm:$0xff] %v2295_v17  ;;  %v1278_v35 = vld [vmem:[%s4902_s7 + $0x60] sm:$0xff]  ;;  %v1279_v38 = vld [vmem:[%s4902_s7 + $0x68] sm:$0xff]  ;;  %v2301_v39 = vadd.f32 %v1277_v32, %v253_v31  ;;  %v256_v40 = vld [vmem:[%s4895_s19 + $0x70] sm:$0xff] }
  0x74   : > { %3320 = vst [vmem:[%s4917_s20 + $0x30] sm:$0xff] %v2296_v21  ;;  %v1280_v41 = vld [vmem:[%s4902_s7 + $0x70] sm:$0xff]  ;;  %v2302_v42 = vadd.f32 %v1278_v35, %v254_v34  ;;  %v257_v43 = vld [vmem:[%s4895_s19 + $0x78] sm:$0xff]  ;;  %v2303_v45 = vadd.f32 %v1279_v38, %v255_v37  ;;  %v258_v46 = vld [vmem:[%s4895_s19 + $0x80] sm:$0xff] }
  0x75   : > { %3321 = vst [vmem:[%s4917_s20 + $0x38] sm:$0xff] %v2297_v25  ;;  %v1281_v44 = vld [vmem:[%s4902_s7 + $0x78] sm:$0xff]  ;;  %v1282_v47 = vld [vmem:[%s4902_s7 + $0x80] sm:$0xff]  ;;  %v2304_v48 = vadd.f32 %v1280_v41, %v256_v40  ;;  %v259_v49 = vld [vmem:[%s4895_s19 + $0x88] sm:$0xff] }
  0x76   : > { %3322 = vst [vmem:[%s4917_s20 + $0x40] sm:$0xff] %v2298_v29  ;;  %v1283_v50 = vld [vmem:[%s4902_s7 + $0x88] sm:$0xff]  ;;  %v2305_v51 = vadd.f32 %v1281_v44, %v257_v43  ;;  %v260_v52 = vld [vmem:[%s4895_s19 + $0x90] sm:$0xff]  ;;  %v2306_v54 = vadd.f32 %v1282_v47, %v258_v46  ;;  %v261_v55 = vld [vmem:[%s4895_s19 + $0x98] sm:$0xff] }
  0x77   : > { %3323 = vst [vmem:[%s4917_s20 + $0x48] sm:$0xff] %v2299_v33  ;;  %v1284_v53 = vld [vmem:[%s4902_s7 + $0x90] sm:$0xff]  ;;  %v1285_v56 = vld [vmem:[%s4902_s7 + $0x98] sm:$0xff]  ;;  %v2307_v57 = vadd.f32 %v1283_v50, %v259_v49  ;;  %v262_v58 = vld [vmem:[%s4895_s19 + $0xa0] sm:$0xff] }
  0x78   : > { %3324 = vst [vmem:[%s4917_s20 + $0x50] sm:$0xff] %v2300_v36  ;;  %v1286_v59 = vld [vmem:[%s4902_s7 + $0xa0] sm:$0xff]  ;;  %v2308_v60 = vadd.f32 %v1284_v53, %v260_v52  ;;  %v263_v61 = vld [vmem:[%s4895_s19 + $0xa8] sm:$0xff]  ;;  %v2309_v63 = vadd.f32 %v1285_v56, %v261_v55  ;;  %v264_v0 = vld [vmem:[%s4895_s19 + $0xb0] sm:$0xff] }
  0x79   : > { %3325 = vst [vmem:[%s4917_s20 + $0x58] sm:$0xff] %v2301_v39  ;;  %v1287_v62 = vld [vmem:[%s4902_s7 + $0xa8] sm:$0xff]  ;;  %v1288_v1 = vld [vmem:[%s4902_s7 + $0xb0] sm:$0xff]  ;;  %v2310_v2 = vadd.f32 %v1286_v59, %v262_v58  ;;  %v265_v3 = vld [vmem:[%s4895_s19 + $0xb8] sm:$0xff] }
  0x7a   : > { %3326 = vst [vmem:[%s4917_s20 + $0x60] sm:$0xff] %v2302_v42  ;;  %v1289_v4 = vld [vmem:[%s4902_s7 + $0xb8] sm:$0xff]  ;;  %v2311_v5 = vadd.f32 %v1287_v62, %v263_v61  ;;  %v266_v6 = vld [vmem:[%s4895_s19 + $0xc0] sm:$0xff]  ;;  %v2312_v8 = vadd.f32 %v1288_v1, %v264_v0  ;;  %v267_v9 = vld [vmem:[%s4895_s19 + $0xc8] sm:$0xff] }
  0x7b   : > { %3327 = vst [vmem:[%s4917_s20 + $0x68] sm:$0xff] %v2303_v45  ;;  %v1290_v7 = vld [vmem:[%s4902_s7 + $0xc0] sm:$0xff]  ;;  %v1291_v10 = vld [vmem:[%s4902_s7 + $0xc8] sm:$0xff]  ;;  %v2313_v11 = vadd.f32 %v1289_v4, %v265_v3  ;;  %v268_v12 = vld [vmem:[%s4895_s19 + $0xd0] sm:$0xff] }
  0x7c   : > { %3328 = vst [vmem:[%s4917_s20 + $0x70] sm:$0xff] %v2304_v48  ;;  %v1292_v13 = vld [vmem:[%s4902_s7 + $0xd0] sm:$0xff]  ;;  %v2314_v14 = vadd.f32 %v1290_v7, %v266_v6  ;;  %v269_v15 = vld [vmem:[%s4895_s19 + $0xd8] sm:$0xff]  ;;  %v2315_v17 = vadd.f32 %v1291_v10, %v267_v9  ;;  %v270_v18 = vld [vmem:[%s4895_s19 + $0xe0] sm:$0xff] }
  0x7d   : > { %3329 = vst [vmem:[%s4917_s20 + $0x78] sm:$0xff] %v2305_v51  ;;  %v1293_v16 = vld [vmem:[%s4902_s7 + $0xd8] sm:$0xff]  ;;  %v1294_v19 = vld [vmem:[%s4902_s7 + $0xe0] sm:$0xff]  ;;  %v2316_v20 = vadd.f32 %v1292_v13, %v268_v12  ;;  %v271_v21 = vld [vmem:[%s4895_s19 + $0xe8] sm:$0xff] }
  0x7e   : > { %3330 = vst [vmem:[%s4917_s20 + $0x80] sm:$0xff] %v2306_v54  ;;  %v1295_v22 = vld [vmem:[%s4902_s7 + $0xe8] sm:$0xff]  ;;  %v2317_v23 = vadd.f32 %v1293_v16, %v269_v15  ;;  %v272_v24 = vld [vmem:[%s4895_s19 + $0xf0] sm:$0xff]  ;;  %v2318_v26 = vadd.f32 %v1294_v19, %v270_v18  ;;  %v273_v27 = vld [vmem:[%s4895_s19 + $0xf8] sm:$0xff] }
  0x7f   : > { %3331 = vst [vmem:[%s4917_s20 + $0x88] sm:$0xff] %v2307_v57  ;;  %v1296_v25 = vld [vmem:[%s4902_s7 + $0xf0] sm:$0xff]  ;;  %v1297_v28 = vld [vmem:[%s4902_s7 + $0xf8] sm:$0xff]  ;;  %v2319_v29 = vadd.f32 %v1295_v22, %v271_v21  ;;  %v274_v30 = vld [vmem:[%s4895_s19 + $0x100] sm:$0xff] }
  0x80   : > { %3332 = vst [vmem:[%s4917_s20 + $0x90] sm:$0xff] %v2308_v60  ;;  %v1298_v31 = vld [vmem:[%s4902_s7 + $0x100] sm:$0xff]  ;;  %v2320_v32 = vadd.f32 %v1296_v25, %v272_v24  ;;  %v275_v33 = vld [vmem:[%s4895_s19 + $0x108] sm:$0xff]  ;;  %v2321_v35 = vadd.f32 %v1297_v28, %v273_v27  ;;  %v276_v36 = vld [vmem:[%s4895_s19 + $0x110] sm:$0xff] }
  0x81   : > { %3333 = vst [vmem:[%s4917_s20 + $0x98] sm:$0xff] %v2309_v63  ;;  %v1299_v34 = vld [vmem:[%s4902_s7 + $0x108] sm:$0xff]  ;;  %v1300_v37 = vld [vmem:[%s4902_s7 + $0x110] sm:$0xff]  ;;  %v2322_v38 = vadd.f32 %v1298_v31, %v274_v30  ;;  %v277_v39 = vld [vmem:[%s4895_s19 + $0x118] sm:$0xff] }
  0x82   : > { %3334 = vst [vmem:[%s4917_s20 + $0xa0] sm:$0xff] %v2310_v2  ;;  %v1301_v40 = vld [vmem:[%s4902_s7 + $0x118] sm:$0xff]  ;;  %v2323_v41 = vadd.f32 %v1299_v34, %v275_v33  ;;  %v278_v42 = vld [vmem:[%s4895_s19 + $0x120] sm:$0xff]  ;;  %v2324_v44 = vadd.f32 %v1300_v37, %v276_v36  ;;  %v279_v45 = vld [vmem:[%s4895_s19 + $0x128] sm:$0xff] }
  0x83   : > { %3335 = vst [vmem:[%s4917_s20 + $0xa8] sm:$0xff] %v2311_v5  ;;  %v1302_v43 = vld [vmem:[%s4902_s7 + $0x120] sm:$0xff]  ;;  %v1303_v46 = vld [vmem:[%s4902_s7 + $0x128] sm:$0xff]  ;;  %v2325_v47 = vadd.f32 %v1301_v40, %v277_v39  ;;  %v280_v48 = vld [vmem:[%s4895_s19 + $0x130] sm:$0xff] }
  0x84   : > { %3336 = vst [vmem:[%s4917_s20 + $0xb0] sm:$0xff] %v2312_v8  ;;  %v1304_v49 = vld [vmem:[%s4902_s7 + $0x130] sm:$0xff]  ;;  %v2326_v50 = vadd.f32 %v1302_v43, %v278_v42  ;;  %v281_v51 = vld [vmem:[%s4895_s19 + $0x138] sm:$0xff]  ;;  %v2327_v53 = vadd.f32 %v1303_v46, %v279_v45  ;;  %v282_v54 = vld [vmem:[%s4895_s19 + $0x140] sm:$0xff] }
  0x85   : > { %3337 = vst [vmem:[%s4917_s20 + $0xb8] sm:$0xff] %v2313_v11  ;;  %v1305_v52 = vld [vmem:[%s4902_s7 + $0x138] sm:$0xff]  ;;  %v1306_v55 = vld [vmem:[%s4902_s7 + $0x140] sm:$0xff]  ;;  %v2328_v56 = vadd.f32 %v1304_v49, %v280_v48  ;;  %v283_v57 = vld [vmem:[%s4895_s19 + $0x148] sm:$0xff] }
  0x86   : > { %3338 = vst [vmem:[%s4917_s20 + $0xc0] sm:$0xff] %v2314_v14  ;;  %v1307_v58 = vld [vmem:[%s4902_s7 + $0x148] sm:$0xff]  ;;  %v2329_v59 = vadd.f32 %v1305_v52, %v281_v51  ;;  %v284_v60 = vld [vmem:[%s4895_s19 + $0x150] sm:$0xff]  ;;  %v2330_v62 = vadd.f32 %v1306_v55, %v282_v54  ;;  %v285_v63 = vld [vmem:[%s4895_s19 + $0x158] sm:$0xff] }
  0x87   : > { %3339 = vst [vmem:[%s4917_s20 + $0xc8] sm:$0xff] %v2315_v17  ;;  %v1308_v61 = vld [vmem:[%s4902_s7 + $0x150] sm:$0xff]  ;;  %v1309_v0 = vld [vmem:[%s4902_s7 + $0x158] sm:$0xff]  ;;  %v2331_v1 = vadd.f32 %v1307_v58, %v283_v57  ;;  %v286_v2 = vld [vmem:[%s4895_s19 + $0x160] sm:$0xff] }
  0x88   : > { %3340 = vst [vmem:[%s4917_s20 + $0xd0] sm:$0xff] %v2316_v20  ;;  %v1310_v3 = vld [vmem:[%s4902_s7 + $0x160] sm:$0xff]  ;;  %v2332_v4 = vadd.f32 %v1308_v61, %v284_v60  ;;  %v287_v5 = vld [vmem:[%s4895_s19 + $0x168] sm:$0xff]  ;;  %v2333_v7 = vadd.f32 %v1309_v0, %v285_v63  ;;  %v288_v8 = vld [vmem:[%s4895_s19 + $0x170] sm:$0xff] }
  0x89   : > { %3341 = vst [vmem:[%s4917_s20 + $0xd8] sm:$0xff] %v2317_v23  ;;  %v1311_v6 = vld [vmem:[%s4902_s7 + $0x168] sm:$0xff]  ;;  %v1312_v9 = vld [vmem:[%s4902_s7 + $0x170] sm:$0xff]  ;;  %v2334_v10 = vadd.f32 %v1310_v3, %v286_v2  ;;  %v289_v11 = vld [vmem:[%s4895_s19 + $0x178] sm:$0xff] }
  0x8a   : > { %3342 = vst [vmem:[%s4917_s20 + $0xe0] sm:$0xff] %v2318_v26  ;;  %v1313_v12 = vld [vmem:[%s4902_s7 + $0x178] sm:$0xff]  ;;  %v2335_v13 = vadd.f32 %v1311_v6, %v287_v5  ;;  %v290_v14 = vld [vmem:[%s4895_s19 + $0x180] sm:$0xff]  ;;  %v2336_v16 = vadd.f32 %v1312_v9, %v288_v8  ;;  %v291_v17 = vld [vmem:[%s4895_s19 + $0x188] sm:$0xff] }
  0x8b   : > { %3343 = vst [vmem:[%s4917_s20 + $0xe8] sm:$0xff] %v2319_v29  ;;  %v1314_v15 = vld [vmem:[%s4902_s7 + $0x180] sm:$0xff]  ;;  %v1315_v18 = vld [vmem:[%s4902_s7 + $0x188] sm:$0xff]  ;;  %v2337_v19 = vadd.f32 %v1313_v12, %v289_v11  ;;  %v292_v20 = vld [vmem:[%s4895_s19 + $0x190] sm:$0xff] }
  0x8c   : > { %3344 = vst [vmem:[%s4917_s20 + $0xf0] sm:$0xff] %v2320_v32  ;;  %v1316_v21 = vld [vmem:[%s4902_s7 + $0x190] sm:$0xff]  ;;  %v2338_v22 = vadd.f32 %v1314_v15, %v290_v14  ;;  %v293_v23 = vld [vmem:[%s4895_s19 + $0x198] sm:$0xff]  ;;  %v2339_v25 = vadd.f32 %v1315_v18, %v291_v17  ;;  %v294_v26 = vld [vmem:[%s4895_s19 + $0x1a0] sm:$0xff] }
  0x8d   : > { %3345 = vst [vmem:[%s4917_s20 + $0xf8] sm:$0xff] %v2321_v35  ;;  %v1317_v24 = vld [vmem:[%s4902_s7 + $0x198] sm:$0xff]  ;;  %v1318_v27 = vld [vmem:[%s4902_s7 + $0x1a0] sm:$0xff]  ;;  %v2340_v28 = vadd.f32 %v1316_v21, %v292_v20  ;;  %v295_v29 = vld [vmem:[%s4895_s19 + $0x1a8] sm:$0xff] }
  0x8e   : > { %3346 = vst [vmem:[%s4917_s20 + $0x100] sm:$0xff] %v2322_v38  ;;  %v1319_v30 = vld [vmem:[%s4902_s7 + $0x1a8] sm:$0xff]  ;;  %v2341_v31 = vadd.f32 %v1317_v24, %v293_v23  ;;  %v296_v32 = vld [vmem:[%s4895_s19 + $0x1b0] sm:$0xff]  ;;  %v2342_v34 = vadd.f32 %v1318_v27, %v294_v26  ;;  %v297_v35 = vld [vmem:[%s4895_s19 + $0x1b8] sm:$0xff] }
  0x8f   : > { %3347 = vst [vmem:[%s4917_s20 + $0x108] sm:$0xff] %v2323_v41  ;;  %v1320_v33 = vld [vmem:[%s4902_s7 + $0x1b0] sm:$0xff]  ;;  %v1321_v36 = vld [vmem:[%s4902_s7 + $0x1b8] sm:$0xff]  ;;  %v2343_v37 = vadd.f32 %v1319_v30, %v295_v29  ;;  %v298_v38 = vld [vmem:[%s4895_s19 + $0x1c0] sm:$0xff] }
  0x90   : > { %3348 = vst [vmem:[%s4917_s20 + $0x110] sm:$0xff] %v2324_v44  ;;  %v1322_v39 = vld [vmem:[%s4902_s7 + $0x1c0] sm:$0xff]  ;;  %v2344_v40 = vadd.f32 %v1320_v33, %v296_v32  ;;  %v299_v41 = vld [vmem:[%s4895_s19 + $0x1c8] sm:$0xff]  ;;  %v2345_v43 = vadd.f32 %v1321_v36, %v297_v35  ;;  %v300_v44 = vld [vmem:[%s4895_s19 + $0x1d0] sm:$0xff] }
  0x91   : > { %3349 = vst [vmem:[%s4917_s20 + $0x118] sm:$0xff] %v2325_v47  ;;  %v1323_v42 = vld [vmem:[%s4902_s7 + $0x1c8] sm:$0xff]  ;;  %v1324_v45 = vld [vmem:[%s4902_s7 + $0x1d0] sm:$0xff]  ;;  %v2346_v46 = vadd.f32 %v1322_v39, %v298_v38  ;;  %v301_v47 = vld [vmem:[%s4895_s19 + $0x1d8] sm:$0xff] }
  0x92   : > { %3350 = vst [vmem:[%s4917_s20 + $0x120] sm:$0xff] %v2326_v50  ;;  %v1325_v48 = vld [vmem:[%s4902_s7 + $0x1d8] sm:$0xff]  ;;  %v2347_v49 = vadd.f32 %v1323_v42, %v299_v41  ;;  %v302_v50 = vld [vmem:[%s4895_s19 + $0x1e0] sm:$0xff]  ;;  %v2348_v52 = vadd.f32 %v1324_v45, %v300_v44  ;;  %v1327_v54 = vld [vmem:[%s4902_s7 + $0x1e8] sm:$0xff] }
  0x93   : > { %3351 = vst [vmem:[%s4917_s20 + $0x128] sm:$0xff] %v2327_v53  ;;  %v1326_v51 = vld [vmem:[%s4902_s7 + $0x1e0] sm:$0xff]  ;;  %v303_v53 = vld [vmem:[%s4895_s19 + $0x1e8] sm:$0xff]  ;;  %v2349_v55 = vadd.f32 %v1325_v48, %v301_v47  ;;  %v1328_v57 = vld [vmem:[%s4902_s7 + $0x1f0] sm:$0xff] }
  0x94   : > { %3352 = vst [vmem:[%s4917_s20 + $0x130] sm:$0xff] %v2328_v56  ;;  %v304_v56 = vld [vmem:[%s4895_s19 + $0x1f0] sm:$0xff]  ;;  %v2350_v58 = vadd.f32 %v1326_v51, %v302_v50  ;;  %v1329_v60 = vld [vmem:[%s4902_s7 + $0x1f8] sm:$0xff]  ;;  %v2351_v61 = vadd.f32 %v1327_v54, %v303_v53  ;;  %v1330_v63 = vld [vmem:[%s4902_s7 + $0x200] sm:$0xff] }
  0x95   : > { %3353 = vst [vmem:[%s4917_s20 + $0x138] sm:$0xff] %v2329_v59  ;;  %v305_v59 = vld [vmem:[%s4895_s19 + $0x1f8] sm:$0xff]  ;;  %v2352_v0 = vadd.f32 %v1328_v57, %v304_v56  ;;  %v1331_v2 = vld [vmem:[%s4902_s7 + $0x208] sm:$0xff]  ;;  %v1332_v5 = vld [vmem:[%s4902_s7 + $0x210] sm:$0xff] }
  0x96   : > { %3354 = vst [vmem:[%s4917_s20 + $0x140] sm:$0xff] %v2330_v62  ;;  %v306_v62 = vld [vmem:[%s4895_s19 + $0x200] sm:$0xff]  ;;  %v2353_v3 = vadd.f32 %v1329_v60, %v305_v59  ;;  %v1333_v8 = vld [vmem:[%s4902_s7 + $0x218] sm:$0xff]  ;;  %v1335_v14 = vld [vmem:[%s4902_s7 + $0x228] sm:$0xff] }
  0x97   : > { %3355 = vst [vmem:[%s4917_s20 + $0x148] sm:$0xff] %v2331_v1  ;;  %v307_v1 = vld [vmem:[%s4895_s19 + $0x208] sm:$0xff]  ;;  %v2354_v6 = vadd.f32 %v1330_v63, %v306_v62  ;;  %v1334_v11 = vld [vmem:[%s4902_s7 + $0x220] sm:$0xff]  ;;  %v1336_v17 = vld [vmem:[%s4902_s7 + $0x230] sm:$0xff] }
  0x98   : > { %3356 = vst [vmem:[%s4917_s20 + $0x150] sm:$0xff] %v2332_v4  ;;  %v308_v4 = vld [vmem:[%s4895_s19 + $0x210] sm:$0xff]  ;;  %v2355_v9 = vadd.f32 %v1331_v2, %v307_v1  ;;  %v1337_v20 = vld [vmem:[%s4902_s7 + $0x238] sm:$0xff]  ;;  %v1338_v23 = vld [vmem:[%s4902_s7 + $0x240] sm:$0xff] }
  0x99   : > { %3357 = vst [vmem:[%s4917_s20 + $0x158] sm:$0xff] %v2333_v7  ;;  %v309_v7 = vld [vmem:[%s4895_s19 + $0x218] sm:$0xff]  ;;  %v2356_v12 = vadd.f32 %v1332_v5, %v308_v4  ;;  %v1339_v26 = vld [vmem:[%s4902_s7 + $0x248] sm:$0xff]  ;;  %v1340_v29 = vld [vmem:[%s4902_s7 + $0x250] sm:$0xff] }
  0x9a   : > { %3358 = vst [vmem:[%s4917_s20 + $0x160] sm:$0xff] %v2334_v10  ;;  %v310_v10 = vld [vmem:[%s4895_s19 + $0x220] sm:$0xff]  ;;  %v2357_v15 = vadd.f32 %v1333_v8, %v309_v7  ;;  %v1341_v32 = vld [vmem:[%s4902_s7 + $0x258] sm:$0xff]  ;;  %v1343_v38 = vld [vmem:[%s4902_s7 + $0x268] sm:$0xff] }
  0x9b   : > { %3359 = vst [vmem:[%s4917_s20 + $0x168] sm:$0xff] %v2335_v13  ;;  %v311_v13 = vld [vmem:[%s4895_s19 + $0x228] sm:$0xff]  ;;  %v2358_v18 = vadd.f32 %v1334_v11, %v310_v10  ;;  %v1342_v35 = vld [vmem:[%s4902_s7 + $0x260] sm:$0xff]  ;;  %v1344_v41 = vld [vmem:[%s4902_s7 + $0x270] sm:$0xff] }
  0x9c   : > { %3360 = vst [vmem:[%s4917_s20 + $0x170] sm:$0xff] %v2336_v16  ;;  %v312_v16 = vld [vmem:[%s4895_s19 + $0x230] sm:$0xff]  ;;  %v2359_v21 = vadd.f32 %v1335_v14, %v311_v13  ;;  %v1345_v44 = vld [vmem:[%s4902_s7 + $0x278] sm:$0xff]  ;;  %v1346_v47 = vld [vmem:[%s4902_s7 + $0x280] sm:$0xff] }
  0x9d   : > { %3361 = vst [vmem:[%s4917_s20 + $0x178] sm:$0xff] %v2337_v19  ;;  %v313_v19 = vld [vmem:[%s4895_s19 + $0x238] sm:$0xff]  ;;  %v2360_v24 = vadd.f32 %v1336_v17, %v312_v16  ;;  %v1347_v50 = vld [vmem:[%s4902_s7 + $0x288] sm:$0xff]  ;;  %v1348_v53 = vld [vmem:[%s4902_s7 + $0x290] sm:$0xff] }
  0x9e   : > { %3362 = vst [vmem:[%s4917_s20 + $0x180] sm:$0xff] %v2338_v22  ;;  %v314_v22 = vld [vmem:[%s4895_s19 + $0x240] sm:$0xff]  ;;  %v2361_v27 = vadd.f32 %v1337_v20, %v313_v19  ;;  %v1349_v56 = vld [vmem:[%s4902_s7 + $0x298] sm:$0xff]  ;;  %v1351_v62 = vld [vmem:[%s4902_s7 + $0x2a8] sm:$0xff] }
  0x9f   : > { %3363 = vst [vmem:[%s4917_s20 + $0x188] sm:$0xff] %v2339_v25  ;;  %v315_v25 = vld [vmem:[%s4895_s19 + $0x248] sm:$0xff]  ;;  %v2362_v30 = vadd.f32 %v1338_v23, %v314_v22  ;;  %v1350_v59 = vld [vmem:[%s4902_s7 + $0x2a0] sm:$0xff]  ;;  %v1352_v1 = vld [vmem:[%s4902_s7 + $0x2b0] sm:$0xff] }
  0xa0   : > { %3364 = vst [vmem:[%s4917_s20 + $0x190] sm:$0xff] %v2340_v28  ;;  %v316_v28 = vld [vmem:[%s4895_s19 + $0x250] sm:$0xff]  ;;  %v2363_v33 = vadd.f32 %v1339_v26, %v315_v25  ;;  %v1353_v4 = vld [vmem:[%s4902_s7 + $0x2b8] sm:$0xff]  ;;  %v1354_v7 = vld [vmem:[%s4902_s7 + $0x2c0] sm:$0xff] }
  0xa1   : > { %3365 = vst [vmem:[%s4917_s20 + $0x198] sm:$0xff] %v2341_v31  ;;  %v317_v31 = vld [vmem:[%s4895_s19 + $0x258] sm:$0xff]  ;;  %v2364_v36 = vadd.f32 %v1340_v29, %v316_v28  ;;  %v1355_v10 = vld [vmem:[%s4902_s7 + $0x2c8] sm:$0xff]  ;;  %v1356_v13 = vld [vmem:[%s4902_s7 + $0x2d0] sm:$0xff] }
  0xa2   : > { %3366 = vst [vmem:[%s4917_s20 + $0x1a0] sm:$0xff] %v2342_v34  ;;  %v318_v34 = vld [vmem:[%s4895_s19 + $0x260] sm:$0xff]  ;;  %v2365_v39 = vadd.f32 %v1341_v32, %v317_v31  ;;  %v1357_v16 = vld [vmem:[%s4902_s7 + $0x2d8] sm:$0xff]  ;;  %v1359_v22 = vld [vmem:[%s4902_s7 + $0x2e8] sm:$0xff] }
  0xa3   : > { %3367 = vst [vmem:[%s4917_s20 + $0x1a8] sm:$0xff] %v2343_v37  ;;  %v319_v37 = vld [vmem:[%s4895_s19 + $0x268] sm:$0xff]  ;;  %v2366_v42 = vadd.f32 %v1342_v35, %v318_v34  ;;  %v1358_v19 = vld [vmem:[%s4902_s7 + $0x2e0] sm:$0xff]  ;;  %v1360_v25 = vld [vmem:[%s4902_s7 + $0x2f0] sm:$0xff] }
  0xa4   : > { %3368 = vst [vmem:[%s4917_s20 + $0x1b0] sm:$0xff] %v2344_v40  ;;  %v320_v40 = vld [vmem:[%s4895_s19 + $0x270] sm:$0xff]  ;;  %v2367_v45 = vadd.f32 %v1343_v38, %v319_v37  ;;  %v1361_v28 = vld [vmem:[%s4902_s7 + $0x2f8] sm:$0xff]  ;;  %v1362_v31 = vld [vmem:[%s4902_s7 + $0x300] sm:$0xff] }
  0xa5   : > { %3369 = vst [vmem:[%s4917_s20 + $0x1b8] sm:$0xff] %v2345_v43  ;;  %v321_v43 = vld [vmem:[%s4895_s19 + $0x278] sm:$0xff]  ;;  %v2368_v48 = vadd.f32 %v1344_v41, %v320_v40  ;;  %v1363_v34 = vld [vmem:[%s4902_s7 + $0x308] sm:$0xff]  ;;  %v1364_v37 = vld [vmem:[%s4902_s7 + $0x310] sm:$0xff] }
  0xa6   : > { %3370 = vst [vmem:[%s4917_s20 + $0x1c0] sm:$0xff] %v2346_v46  ;;  %v322_v46 = vld [vmem:[%s4895_s19 + $0x280] sm:$0xff]  ;;  %v2369_v51 = vadd.f32 %v1345_v44, %v321_v43  ;;  %v1365_v40 = vld [vmem:[%s4902_s7 + $0x318] sm:$0xff] }
  0xa7   : > { %3371 = vst [vmem:[%s4917_s20 + $0x1c8] sm:$0xff] %v2347_v49  ;;  %v323_v49 = vld [vmem:[%s4895_s19 + $0x288] sm:$0xff]  ;;  %v2370_v54 = vadd.f32 %v1346_v47, %v322_v46  ;;  %v1366_v43 = vld [vmem:[%s4902_s7 + $0x320] sm:$0xff] }
  0xa8   : > { %3372 = vst [vmem:[%s4917_s20 + $0x1d0] sm:$0xff] %v2348_v52  ;;  %v324_v52 = vld [vmem:[%s4895_s19 + $0x290] sm:$0xff]  ;;  %v2371_v57 = vadd.f32 %v1347_v50, %v323_v49  ;;  %v1367_v46 = vld [vmem:[%s4902_s7 + $0x328] sm:$0xff] }
  0xa9   : > { %3373 = vst [vmem:[%s4917_s20 + $0x1d8] sm:$0xff] %v2349_v55  ;;  %v325_v55 = vld [vmem:[%s4895_s19 + $0x298] sm:$0xff]  ;;  %v2372_v60 = vadd.f32 %v1348_v53, %v324_v52  ;;  %v1368_v49 = vld [vmem:[%s4902_s7 + $0x330] sm:$0xff] }
  0xaa   : > { %3374 = vst [vmem:[%s4917_s20 + $0x1e0] sm:$0xff] %v2350_v58  ;;  %v326_v58 = vld [vmem:[%s4895_s19 + $0x2a0] sm:$0xff]  ;;  %v2373_v63 = vadd.f32 %v1349_v56, %v325_v55  ;;  %v1369_v52 = vld [vmem:[%s4902_s7 + $0x338] sm:$0xff] }
  0xab   : > { %3375 = vst [vmem:[%s4917_s20 + $0x1e8] sm:$0xff] %v2351_v61  ;;  %v327_v61 = vld [vmem:[%s4895_s19 + $0x2a8] sm:$0xff]  ;;  %v2374_v2 = vadd.f32 %v1350_v59, %v326_v58  ;;  %v1370_v55 = vld [vmem:[%s4902_s7 + $0x340] sm:$0xff] }
  0xac   : > { %3376 = vst [vmem:[%s4917_s20 + $0x1f0] sm:$0xff] %v2352_v0  ;;  %v328_v0 = vld [vmem:[%s4895_s19 + $0x2b0] sm:$0xff]  ;;  %v2375_v5 = vadd.f32 %v1351_v62, %v327_v61  ;;  %v1371_v58 = vld [vmem:[%s4902_s7 + $0x348] sm:$0xff] }
  0xad   : > { %3377 = vst [vmem:[%s4917_s20 + $0x1f8] sm:$0xff] %v2353_v3  ;;  %v329_v3 = vld [vmem:[%s4895_s19 + $0x2b8] sm:$0xff]  ;;  %v2376_v8 = vadd.f32 %v1352_v1, %v328_v0  ;;  %v1372_v61 = vld [vmem:[%s4902_s7 + $0x350] sm:$0xff] }
  0xae   : > { %3378 = vst [vmem:[%s4917_s20 + $0x200] sm:$0xff] %v2354_v6  ;;  %v330_v6 = vld [vmem:[%s4895_s19 + $0x2c0] sm:$0xff]  ;;  %v2377_v11 = vadd.f32 %v1353_v4, %v329_v3  ;;  %v1373_v0 = vld [vmem:[%s4902_s7 + $0x358] sm:$0xff] }
  0xaf   : > { %3379 = vst [vmem:[%s4917_s20 + $0x208] sm:$0xff] %v2355_v9  ;;  %v331_v9 = vld [vmem:[%s4895_s19 + $0x2c8] sm:$0xff]  ;;  %v2378_v14 = vadd.f32 %v1354_v7, %v330_v6  ;;  %v1374_v3 = vld [vmem:[%s4902_s7 + $0x360] sm:$0xff] }
  0xb0   : > { %3380 = vst [vmem:[%s4917_s20 + $0x210] sm:$0xff] %v2356_v12  ;;  %v332_v12 = vld [vmem:[%s4895_s19 + $0x2d0] sm:$0xff]  ;;  %v2379_v17 = vadd.f32 %v1355_v10, %v331_v9  ;;  %v1375_v6 = vld [vmem:[%s4902_s7 + $0x368] sm:$0xff] }
  0xb1   : > { %3381 = vst [vmem:[%s4917_s20 + $0x218] sm:$0xff] %v2357_v15  ;;  %v333_v15 = vld [vmem:[%s4895_s19 + $0x2d8] sm:$0xff]  ;;  %v2380_v20 = vadd.f32 %v1356_v13, %v332_v12  ;;  %v1376_v9 = vld [vmem:[%s4902_s7 + $0x370] sm:$0xff] }
  0xb2   : > { %3382 = vst [vmem:[%s4917_s20 + $0x220] sm:$0xff] %v2358_v18  ;;  %v334_v18 = vld [vmem:[%s4895_s19 + $0x2e0] sm:$0xff]  ;;  %v2381_v23 = vadd.f32 %v1357_v16, %v333_v15  ;;  %v1377_v12 = vld [vmem:[%s4902_s7 + $0x378] sm:$0xff] }
  0xb3   : > { %3383 = vst [vmem:[%s4917_s20 + $0x228] sm:$0xff] %v2359_v21  ;;  %v335_v21 = vld [vmem:[%s4895_s19 + $0x2e8] sm:$0xff]  ;;  %v2382_v26 = vadd.f32 %v1358_v19, %v334_v18  ;;  %v1378_v15 = vld [vmem:[%s4902_s7 + $0x380] sm:$0xff] }
  0xb4   : > { %3384 = vst [vmem:[%s4917_s20 + $0x230] sm:$0xff] %v2360_v24  ;;  %v336_v24 = vld [vmem:[%s4895_s19 + $0x2f0] sm:$0xff]  ;;  %v2383_v29 = vadd.f32 %v1359_v22, %v335_v21  ;;  %v1379_v18 = vld [vmem:[%s4902_s7 + $0x388] sm:$0xff] }
  0xb5   : > { %3385 = vst [vmem:[%s4917_s20 + $0x238] sm:$0xff] %v2361_v27  ;;  %v337_v27 = vld [vmem:[%s4895_s19 + $0x2f8] sm:$0xff]  ;;  %v2384_v32 = vadd.f32 %v1360_v25, %v336_v24  ;;  %v1380_v21 = vld [vmem:[%s4902_s7 + $0x390] sm:$0xff] }
  0xb6   : > { %3386 = vst [vmem:[%s4917_s20 + $0x240] sm:$0xff] %v2362_v30  ;;  %v338_v30 = vld [vmem:[%s4895_s19 + $0x300] sm:$0xff]  ;;  %v2385_v35 = vadd.f32 %v1361_v28, %v337_v27  ;;  %v1381_v24 = vld [vmem:[%s4902_s7 + $0x398] sm:$0xff] }
  0xb7   : > { %3387 = vst [vmem:[%s4917_s20 + $0x248] sm:$0xff] %v2363_v33  ;;  %v339_v33 = vld [vmem:[%s4895_s19 + $0x308] sm:$0xff]  ;;  %v2386_v38 = vadd.f32 %v1362_v31, %v338_v30  ;;  %v1382_v27 = vld [vmem:[%s4902_s7 + $0x3a0] sm:$0xff] }
  0xb8   : > { %3388 = vst [vmem:[%s4917_s20 + $0x250] sm:$0xff] %v2364_v36  ;;  %v340_v36 = vld [vmem:[%s4895_s19 + $0x310] sm:$0xff]  ;;  %v2387_v41 = vadd.f32 %v1363_v34, %v339_v33  ;;  %v1383_v30 = vld [vmem:[%s4902_s7 + $0x3a8] sm:$0xff] }
  0xb9   : > { %3389 = vst [vmem:[%s4917_s20 + $0x258] sm:$0xff] %v2365_v39  ;;  %v341_v39 = vld [vmem:[%s4895_s19 + $0x318] sm:$0xff]  ;;  %v2388_v44 = vadd.f32 %v1364_v37, %v340_v36  ;;  %v1384_v33 = vld [vmem:[%s4902_s7 + $0x3b0] sm:$0xff] }
  0xba   : > { %3390 = vst [vmem:[%s4917_s20 + $0x260] sm:$0xff] %v2366_v42  ;;  %v342_v42 = vld [vmem:[%s4895_s19 + $0x320] sm:$0xff]  ;;  %v2389_v47 = vadd.f32 %v1365_v40, %v341_v39  ;;  %v1385_v36 = vld [vmem:[%s4902_s7 + $0x3b8] sm:$0xff] }
  0xbb   : > { %3391 = vst [vmem:[%s4917_s20 + $0x268] sm:$0xff] %v2367_v45  ;;  %v343_v45 = vld [vmem:[%s4895_s19 + $0x328] sm:$0xff]  ;;  %v2390_v50 = vadd.f32 %v1366_v43, %v342_v42  ;;  %v1386_v39 = vld [vmem:[%s4902_s7 + $0x3c0] sm:$0xff] }
  0xbc   : > { %3392 = vst [vmem:[%s4917_s20 + $0x270] sm:$0xff] %v2368_v48  ;;  %v344_v48 = vld [vmem:[%s4895_s19 + $0x330] sm:$0xff]  ;;  %v2391_v53 = vadd.f32 %v1367_v46, %v343_v45  ;;  %v1387_v42 = vld [vmem:[%s4902_s7 + $0x3c8] sm:$0xff] }
  0xbd   : > { %3393 = vst [vmem:[%s4917_s20 + $0x278] sm:$0xff] %v2369_v51  ;;  %v345_v51 = vld [vmem:[%s4895_s19 + $0x338] sm:$0xff]  ;;  %v2392_v56 = vadd.f32 %v1368_v49, %v344_v48  ;;  %v1388_v45 = vld [vmem:[%s4902_s7 + $0x3d0] sm:$0xff] }
  0xbe   : > { %3394 = vst [vmem:[%s4917_s20 + $0x280] sm:$0xff] %v2370_v54  ;;  %v346_v54 = vld [vmem:[%s4895_s19 + $0x340] sm:$0xff]  ;;  %v2393_v59 = vadd.f32 %v1369_v52, %v345_v51  ;;  %v1389_v48 = vld [vmem:[%s4902_s7 + $0x3d8] sm:$0xff] }
  0xbf   : > { %3395 = vst [vmem:[%s4917_s20 + $0x288] sm:$0xff] %v2371_v57  ;;  %v347_v57 = vld [vmem:[%s4895_s19 + $0x348] sm:$0xff]  ;;  %v2394_v62 = vadd.f32 %v1370_v55, %v346_v54  ;;  %v1390_v51 = vld [vmem:[%s4902_s7 + $0x3e0] sm:$0xff] }
  0xc0   : > { %3396 = vst [vmem:[%s4917_s20 + $0x290] sm:$0xff] %v2372_v60  ;;  %v348_v60 = vld [vmem:[%s4895_s19 + $0x350] sm:$0xff]  ;;  %v2395_v1 = vadd.f32 %v1371_v58, %v347_v57  ;;  %v1391_v54 = vld [vmem:[%s4902_s7 + $0x3e8] sm:$0xff] }
  0xc1   : > { %3397 = vst [vmem:[%s4917_s20 + $0x298] sm:$0xff] %v2373_v63  ;;  %v349_v63 = vld [vmem:[%s4895_s19 + $0x358] sm:$0xff]  ;;  %v2396_v4 = vadd.f32 %v1372_v61, %v348_v60  ;;  %v1392_v57 = vld [vmem:[%s4902_s7 + $0x3f0] sm:$0xff] }
  0xc2   : > { %3398 = vst [vmem:[%s4917_s20 + $0x2a0] sm:$0xff] %v2374_v2  ;;  %v350_v2 = vld [vmem:[%s4895_s19 + $0x360] sm:$0xff]  ;;  %v2397_v7 = vadd.f32 %v1373_v0, %v349_v63  ;;  %v1393_v60 = vld [vmem:[%s4902_s7 + $0x3f8] sm:$0xff] }
  0xc3   : > { %3399 = vst [vmem:[%s4917_s20 + $0x2a8] sm:$0xff] %v2375_v5  ;;  %v351_v5 = vld [vmem:[%s4895_s19 + $0x368] sm:$0xff]  ;;  %v2398_v10 = vadd.f32 %v1374_v3, %v350_v2  ;;  %v1394_v63 = vld [vmem:[%s4902_s7 + $0x400] sm:$0xff] }
  0xc4   : > { %3400 = vst [vmem:[%s4917_s20 + $0x2b0] sm:$0xff] %v2376_v8  ;;  %v352_v8 = vld [vmem:[%s4895_s19 + $0x370] sm:$0xff]  ;;  %v2399_v13 = vadd.f32 %v1375_v6, %v351_v5  ;;  %v1395_v2 = vld [vmem:[%s4902_s7 + $0x408] sm:$0xff] }
  0xc5   : > { %3401 = vst [vmem:[%s4917_s20 + $0x2b8] sm:$0xff] %v2377_v11  ;;  %v353_v11 = vld [vmem:[%s4895_s19 + $0x378] sm:$0xff]  ;;  %v2400_v16 = vadd.f32 %v1376_v9, %v352_v8  ;;  %v1396_v5 = vld [vmem:[%s4902_s7 + $0x410] sm:$0xff] }
  0xc6   : > { %3402 = vst [vmem:[%s4917_s20 + $0x2c0] sm:$0xff] %v2378_v14  ;;  %v354_v14 = vld [vmem:[%s4895_s19 + $0x380] sm:$0xff]  ;;  %v2401_v19 = vadd.f32 %v1377_v12, %v353_v11  ;;  %v1397_v8 = vld [vmem:[%s4902_s7 + $0x418] sm:$0xff] }
  0xc7   : > { %3403 = vst [vmem:[%s4917_s20 + $0x2c8] sm:$0xff] %v2379_v17  ;;  %v355_v17 = vld [vmem:[%s4895_s19 + $0x388] sm:$0xff]  ;;  %v2402_v22 = vadd.f32 %v1378_v15, %v354_v14  ;;  %v1398_v11 = vld [vmem:[%s4902_s7 + $0x420] sm:$0xff] }
  0xc8   : > { %3404 = vst [vmem:[%s4917_s20 + $0x2d0] sm:$0xff] %v2380_v20  ;;  %v356_v20 = vld [vmem:[%s4895_s19 + $0x390] sm:$0xff]  ;;  %v2403_v25 = vadd.f32 %v1379_v18, %v355_v17  ;;  %v1399_v14 = vld [vmem:[%s4902_s7 + $0x428] sm:$0xff] }
  0xc9   : > { %3405 = vst [vmem:[%s4917_s20 + $0x2d8] sm:$0xff] %v2381_v23  ;;  %v357_v23 = vld [vmem:[%s4895_s19 + $0x398] sm:$0xff]  ;;  %v2404_v28 = vadd.f32 %v1380_v21, %v356_v20  ;;  %v1400_v17 = vld [vmem:[%s4902_s7 + $0x430] sm:$0xff] }
  0xca   : > { %3406 = vst [vmem:[%s4917_s20 + $0x2e0] sm:$0xff] %v2382_v26  ;;  %v358_v26 = vld [vmem:[%s4895_s19 + $0x3a0] sm:$0xff]  ;;  %v2405_v31 = vadd.f32 %v1381_v24, %v357_v23  ;;  %v1401_v20 = vld [vmem:[%s4902_s7 + $0x438] sm:$0xff] }
  0xcb   : > { %3407 = vst [vmem:[%s4917_s20 + $0x2e8] sm:$0xff] %v2383_v29  ;;  %v359_v29 = vld [vmem:[%s4895_s19 + $0x3a8] sm:$0xff]  ;;  %v2406_v34 = vadd.f32 %v1382_v27, %v358_v26  ;;  %v1402_v23 = vld [vmem:[%s4902_s7 + $0x440] sm:$0xff] }
  0xcc   : > { %3408 = vst [vmem:[%s4917_s20 + $0x2f0] sm:$0xff] %v2384_v32  ;;  %v360_v32 = vld [vmem:[%s4895_s19 + $0x3b0] sm:$0xff]  ;;  %v2407_v37 = vadd.f32 %v1383_v30, %v359_v29  ;;  %v1403_v26 = vld [vmem:[%s4902_s7 + $0x448] sm:$0xff] }
  0xcd   : > { %3409 = vst [vmem:[%s4917_s20 + $0x2f8] sm:$0xff] %v2385_v35  ;;  %v361_v35 = vld [vmem:[%s4895_s19 + $0x3b8] sm:$0xff]  ;;  %v2408_v40 = vadd.f32 %v1384_v33, %v360_v32  ;;  %v1404_v29 = vld [vmem:[%s4902_s7 + $0x450] sm:$0xff] }
  0xce   : > { %3410 = vst [vmem:[%s4917_s20 + $0x300] sm:$0xff] %v2386_v38  ;;  %v362_v38 = vld [vmem:[%s4895_s19 + $0x3c0] sm:$0xff]  ;;  %v2409_v43 = vadd.f32 %v1385_v36, %v361_v35  ;;  %v1405_v32 = vld [vmem:[%s4902_s7 + $0x458] sm:$0xff] }
  0xcf   : > { %3411 = vst [vmem:[%s4917_s20 + $0x308] sm:$0xff] %v2387_v41  ;;  %v363_v41 = vld [vmem:[%s4895_s19 + $0x3c8] sm:$0xff]  ;;  %v2410_v46 = vadd.f32 %v1386_v39, %v362_v38  ;;  %v1406_v35 = vld [vmem:[%s4902_s7 + $0x460] sm:$0xff] }
  0xd0   : > { %3412 = vst [vmem:[%s4917_s20 + $0x310] sm:$0xff] %v2388_v44  ;;  %v364_v44 = vld [vmem:[%s4895_s19 + $0x3d0] sm:$0xff]  ;;  %v2411_v49 = vadd.f32 %v1387_v42, %v363_v41  ;;  %v1407_v38 = vld [vmem:[%s4902_s7 + $0x468] sm:$0xff] }
  0xd1   : > { %3413 = vst [vmem:[%s4917_s20 + $0x318] sm:$0xff] %v2389_v47  ;;  %v365_v47 = vld [vmem:[%s4895_s19 + $0x3d8] sm:$0xff]  ;;  %v2412_v52 = vadd.f32 %v1388_v45, %v364_v44  ;;  %v1408_v41 = vld [vmem:[%s4902_s7 + $0x470] sm:$0xff] }
  0xd2   : > { %3414 = vst [vmem:[%s4917_s20 + $0x320] sm:$0xff] %v2390_v50  ;;  %v366_v50 = vld [vmem:[%s4895_s19 + $0x3e0] sm:$0xff]  ;;  %v2413_v55 = vadd.f32 %v1389_v48, %v365_v47  ;;  %v1409_v44 = vld [vmem:[%s4902_s7 + $0x478] sm:$0xff] }
  0xd3   : > { %3415 = vst [vmem:[%s4917_s20 + $0x328] sm:$0xff] %v2391_v53  ;;  %v367_v53 = vld [vmem:[%s4895_s19 + $0x3e8] sm:$0xff]  ;;  %v2414_v58 = vadd.f32 %v1390_v51, %v366_v50  ;;  %v1410_v47 = vld [vmem:[%s4902_s7 + $0x480] sm:$0xff] }
  0xd4   : > { %3416 = vst [vmem:[%s4917_s20 + $0x330] sm:$0xff] %v2392_v56  ;;  %v368_v56 = vld [vmem:[%s4895_s19 + $0x3f0] sm:$0xff]  ;;  %v2415_v61 = vadd.f32 %v1391_v54, %v367_v53  ;;  %v1411_v50 = vld [vmem:[%s4902_s7 + $0x488] sm:$0xff] }
  0xd5   : > { %3417 = vst [vmem:[%s4917_s20 + $0x338] sm:$0xff] %v2393_v59  ;;  %v369_v59 = vld [vmem:[%s4895_s19 + $0x3f8] sm:$0xff]  ;;  %v2416_v0 = vadd.f32 %v1392_v57, %v368_v56  ;;  %v1412_v53 = vld [vmem:[%s4902_s7 + $0x490] sm:$0xff] }
  0xd6   : > { %3418 = vst [vmem:[%s4917_s20 + $0x340] sm:$0xff] %v2394_v62  ;;  %v370_v62 = vld [vmem:[%s4895_s19 + $0x400] sm:$0xff]  ;;  %v2417_v3 = vadd.f32 %v1393_v60, %v369_v59  ;;  %v1413_v56 = vld [vmem:[%s4902_s7 + $0x498] sm:$0xff] }
  0xd7   : > { %3419 = vst [vmem:[%s4917_s20 + $0x348] sm:$0xff] %v2395_v1  ;;  %v371_v1 = vld [vmem:[%s4895_s19 + $0x408] sm:$0xff]  ;;  %v2418_v6 = vadd.f32 %v1394_v63, %v370_v62  ;;  %v1414_v59 = vld [vmem:[%s4902_s7 + $0x4a0] sm:$0xff] }
  0xd8   : > { %3420 = vst [vmem:[%s4917_s20 + $0x350] sm:$0xff] %v2396_v4  ;;  %v372_v4 = vld [vmem:[%s4895_s19 + $0x410] sm:$0xff]  ;;  %v2419_v9 = vadd.f32 %v1395_v2, %v371_v1  ;;  %v1415_v62 = vld [vmem:[%s4902_s7 + $0x4a8] sm:$0xff] }
  0xd9   : > { %3421 = vst [vmem:[%s4917_s20 + $0x358] sm:$0xff] %v2397_v7  ;;  %v373_v7 = vld [vmem:[%s4895_s19 + $0x418] sm:$0xff]  ;;  %v2420_v12 = vadd.f32 %v1396_v5, %v372_v4  ;;  %v1416_v1 = vld [vmem:[%s4902_s7 + $0x4b0] sm:$0xff] }
  0xda   : > { %3422 = vst [vmem:[%s4917_s20 + $0x360] sm:$0xff] %v2398_v10  ;;  %v374_v10 = vld [vmem:[%s4895_s19 + $0x420] sm:$0xff]  ;;  %v2421_v15 = vadd.f32 %v1397_v8, %v373_v7  ;;  %v1417_v4 = vld [vmem:[%s4902_s7 + $0x4b8] sm:$0xff] }
  0xdb   : > { %3423 = vst [vmem:[%s4917_s20 + $0x368] sm:$0xff] %v2399_v13  ;;  %v375_v13 = vld [vmem:[%s4895_s19 + $0x428] sm:$0xff]  ;;  %v2422_v18 = vadd.f32 %v1398_v11, %v374_v10  ;;  %v1418_v7 = vld [vmem:[%s4902_s7 + $0x4c0] sm:$0xff] }
  0xdc   : > { %3424 = vst [vmem:[%s4917_s20 + $0x370] sm:$0xff] %v2400_v16  ;;  %v376_v16 = vld [vmem:[%s4895_s19 + $0x430] sm:$0xff]  ;;  %v2423_v21 = vadd.f32 %v1399_v14, %v375_v13  ;;  %v1419_v10 = vld [vmem:[%s4902_s7 + $0x4c8] sm:$0xff] }
  0xdd   : > { %3425 = vst [vmem:[%s4917_s20 + $0x378] sm:$0xff] %v2401_v19  ;;  %v377_v19 = vld [vmem:[%s4895_s19 + $0x438] sm:$0xff]  ;;  %v2424_v24 = vadd.f32 %v1400_v17, %v376_v16  ;;  %v1420_v13 = vld [vmem:[%s4902_s7 + $0x4d0] sm:$0xff] }
  0xde   : > { %3426 = vst [vmem:[%s4917_s20 + $0x380] sm:$0xff] %v2402_v22  ;;  %v378_v22 = vld [vmem:[%s4895_s19 + $0x440] sm:$0xff]  ;;  %v2425_v27 = vadd.f32 %v1401_v20, %v377_v19  ;;  %v1421_v16 = vld [vmem:[%s4902_s7 + $0x4d8] sm:$0xff] }
  0xdf   : > { %3427 = vst [vmem:[%s4917_s20 + $0x388] sm:$0xff] %v2403_v25  ;;  %v379_v25 = vld [vmem:[%s4895_s19 + $0x448] sm:$0xff]  ;;  %v2426_v30 = vadd.f32 %v1402_v23, %v378_v22  ;;  %v1422_v19 = vld [vmem:[%s4902_s7 + $0x4e0] sm:$0xff] }
  0xe0   : > { %3428 = vst [vmem:[%s4917_s20 + $0x390] sm:$0xff] %v2404_v28  ;;  %v380_v28 = vld [vmem:[%s4895_s19 + $0x450] sm:$0xff]  ;;  %v2427_v33 = vadd.f32 %v1403_v26, %v379_v25  ;;  %v1423_v22 = vld [vmem:[%s4902_s7 + $0x4e8] sm:$0xff] }
  0xe1   : > { %3429 = vst [vmem:[%s4917_s20 + $0x398] sm:$0xff] %v2405_v31  ;;  %v381_v31 = vld [vmem:[%s4895_s19 + $0x458] sm:$0xff]  ;;  %v2428_v36 = vadd.f32 %v1404_v29, %v380_v28  ;;  %v1424_v25 = vld [vmem:[%s4902_s7 + $0x4f0] sm:$0xff] }
  0xe2   : > { %3430 = vst [vmem:[%s4917_s20 + $0x3a0] sm:$0xff] %v2406_v34  ;;  %v382_v34 = vld [vmem:[%s4895_s19 + $0x460] sm:$0xff]  ;;  %v2429_v39 = vadd.f32 %v1405_v32, %v381_v31  ;;  %v1425_v28 = vld [vmem:[%s4902_s7 + $0x4f8] sm:$0xff] }
  0xe3   : > { %3431 = vst [vmem:[%s4917_s20 + $0x3a8] sm:$0xff] %v2407_v37  ;;  %v383_v37 = vld [vmem:[%s4895_s19 + $0x468] sm:$0xff]  ;;  %v2430_v42 = vadd.f32 %v1406_v35, %v382_v34  ;;  %v1426_v31 = vld [vmem:[%s4902_s7 + $0x500] sm:$0xff] }
  0xe4   : > { %3432 = vst [vmem:[%s4917_s20 + $0x3b0] sm:$0xff] %v2408_v40  ;;  %v384_v40 = vld [vmem:[%s4895_s19 + $0x470] sm:$0xff]  ;;  %v2431_v45 = vadd.f32 %v1407_v38, %v383_v37  ;;  %v1427_v34 = vld [vmem:[%s4902_s7 + $0x508] sm:$0xff] }
  0xe5   : > { %3433 = vst [vmem:[%s4917_s20 + $0x3b8] sm:$0xff] %v2409_v43  ;;  %v385_v43 = vld [vmem:[%s4895_s19 + $0x478] sm:$0xff]  ;;  %v2432_v48 = vadd.f32 %v1408_v41, %v384_v40  ;;  %v1428_v37 = vld [vmem:[%s4902_s7 + $0x510] sm:$0xff] }
  0xe6   : > { %3434 = vst [vmem:[%s4917_s20 + $0x3c0] sm:$0xff] %v2410_v46  ;;  %v386_v46 = vld [vmem:[%s4895_s19 + $0x480] sm:$0xff]  ;;  %v2433_v51 = vadd.f32 %v1409_v44, %v385_v43  ;;  %v1429_v40 = vld [vmem:[%s4902_s7 + $0x518] sm:$0xff] }
  0xe7   : > { %3435 = vst [vmem:[%s4917_s20 + $0x3c8] sm:$0xff] %v2411_v49  ;;  %v387_v49 = vld [vmem:[%s4895_s19 + $0x488] sm:$0xff]  ;;  %v2434_v54 = vadd.f32 %v1410_v47, %v386_v46  ;;  %v1430_v43 = vld [vmem:[%s4902_s7 + $0x520] sm:$0xff] }
  0xe8   : > { %3436 = vst [vmem:[%s4917_s20 + $0x3d0] sm:$0xff] %v2412_v52  ;;  %v388_v52 = vld [vmem:[%s4895_s19 + $0x490] sm:$0xff]  ;;  %v2435_v57 = vadd.f32 %v1411_v50, %v387_v49  ;;  %v1431_v46 = vld [vmem:[%s4902_s7 + $0x528] sm:$0xff] }
  0xe9   : > { %3437 = vst [vmem:[%s4917_s20 + $0x3d8] sm:$0xff] %v2413_v55  ;;  %v389_v55 = vld [vmem:[%s4895_s19 + $0x498] sm:$0xff]  ;;  %v2436_v60 = vadd.f32 %v1412_v53, %v388_v52  ;;  %v1432_v49 = vld [vmem:[%s4902_s7 + $0x530] sm:$0xff] }
  0xea   : > { %3438 = vst [vmem:[%s4917_s20 + $0x3e0] sm:$0xff] %v2414_v58  ;;  %v390_v58 = vld [vmem:[%s4895_s19 + $0x4a0] sm:$0xff]  ;;  %v2437_v63 = vadd.f32 %v1413_v56, %v389_v55  ;;  %v1433_v52 = vld [vmem:[%s4902_s7 + $0x538] sm:$0xff] }
  0xeb   : > { %3439 = vst [vmem:[%s4917_s20 + $0x3e8] sm:$0xff] %v2415_v61  ;;  %v391_v61 = vld [vmem:[%s4895_s19 + $0x4a8] sm:$0xff]  ;;  %v2438_v2 = vadd.f32 %v1414_v59, %v390_v58  ;;  %v1434_v55 = vld [vmem:[%s4902_s7 + $0x540] sm:$0xff] }
  0xec   : > { %3440 = vst [vmem:[%s4917_s20 + $0x3f0] sm:$0xff] %v2416_v0  ;;  %v392_v0 = vld [vmem:[%s4895_s19 + $0x4b0] sm:$0xff]  ;;  %v2439_v5 = vadd.f32 %v1415_v62, %v391_v61  ;;  %v1435_v58 = vld [vmem:[%s4902_s7 + $0x548] sm:$0xff] }
  0xed   : > { %3441 = vst [vmem:[%s4917_s20 + $0x3f8] sm:$0xff] %v2417_v3  ;;  %v393_v3 = vld [vmem:[%s4895_s19 + $0x4b8] sm:$0xff]  ;;  %v2440_v8 = vadd.f32 %v1416_v1, %v392_v0  ;;  %v1436_v61 = vld [vmem:[%s4902_s7 + $0x550] sm:$0xff] }
  0xee   : > { %3442 = vst [vmem:[%s4917_s20 + $0x400] sm:$0xff] %v2418_v6  ;;  %v394_v6 = vld [vmem:[%s4895_s19 + $0x4c0] sm:$0xff]  ;;  %v2441_v11 = vadd.f32 %v1417_v4, %v393_v3  ;;  %v1437_v0 = vld [vmem:[%s4902_s7 + $0x558] sm:$0xff] }
  0xef   : > { %3443 = vst [vmem:[%s4917_s20 + $0x408] sm:$0xff] %v2419_v9  ;;  %v395_v9 = vld [vmem:[%s4895_s19 + $0x4c8] sm:$0xff]  ;;  %v2442_v14 = vadd.f32 %v1418_v7, %v394_v6  ;;  %v1438_v3 = vld [vmem:[%s4902_s7 + $0x560] sm:$0xff] }
  0xf0   : > { %3444 = vst [vmem:[%s4917_s20 + $0x410] sm:$0xff] %v2420_v12  ;;  %v396_v12 = vld [vmem:[%s4895_s19 + $0x4d0] sm:$0xff]  ;;  %v2443_v17 = vadd.f32 %v1419_v10, %v395_v9  ;;  %v1439_v6 = vld [vmem:[%s4902_s7 + $0x568] sm:$0xff] }
  0xf1   : > { %3445 = vst [vmem:[%s4917_s20 + $0x418] sm:$0xff] %v2421_v15  ;;  %v397_v15 = vld [vmem:[%s4895_s19 + $0x4d8] sm:$0xff]  ;;  %v2444_v20 = vadd.f32 %v1420_v13, %v396_v12  ;;  %v1440_v9 = vld [vmem:[%s4902_s7 + $0x570] sm:$0xff] }
  0xf2   : > { %3446 = vst [vmem:[%s4917_s20 + $0x420] sm:$0xff] %v2422_v18  ;;  %v398_v18 = vld [vmem:[%s4895_s19 + $0x4e0] sm:$0xff]  ;;  %v2445_v23 = vadd.f32 %v1421_v16, %v397_v15  ;;  %v1441_v12 = vld [vmem:[%s4902_s7 + $0x578] sm:$0xff] }
  0xf3   : > { %3447 = vst [vmem:[%s4917_s20 + $0x428] sm:$0xff] %v2423_v21  ;;  %v399_v21 = vld [vmem:[%s4895_s19 + $0x4e8] sm:$0xff]  ;;  %v2446_v26 = vadd.f32 %v1422_v19, %v398_v18  ;;  %v1442_v15 = vld [vmem:[%s4902_s7 + $0x580] sm:$0xff] }
  0xf4   : > { %3448 = vst [vmem:[%s4917_s20 + $0x430] sm:$0xff] %v2424_v24  ;;  %v400_v24 = vld [vmem:[%s4895_s19 + $0x4f0] sm:$0xff]  ;;  %v2447_v29 = vadd.f32 %v1423_v22, %v399_v21  ;;  %v1443_v18 = vld [vmem:[%s4902_s7 + $0x588] sm:$0xff] }
  0xf5   : > { %3449 = vst [vmem:[%s4917_s20 + $0x438] sm:$0xff] %v2425_v27  ;;  %v401_v27 = vld [vmem:[%s4895_s19 + $0x4f8] sm:$0xff]  ;;  %v2448_v32 = vadd.f32 %v1424_v25, %v400_v24  ;;  %v1444_v21 = vld [vmem:[%s4902_s7 + $0x590] sm:$0xff] }
  0xf6   : > { %3450 = vst [vmem:[%s4917_s20 + $0x440] sm:$0xff] %v2426_v30  ;;  %v402_v30 = vld [vmem:[%s4895_s19 + $0x500] sm:$0xff]  ;;  %v2449_v35 = vadd.f32 %v1425_v28, %v401_v27  ;;  %v1445_v24 = vld [vmem:[%s4902_s7 + $0x598] sm:$0xff] }
  0xf7   : > { %3451 = vst [vmem:[%s4917_s20 + $0x448] sm:$0xff] %v2427_v33  ;;  %v403_v33 = vld [vmem:[%s4895_s19 + $0x508] sm:$0xff]  ;;  %v2450_v38 = vadd.f32 %v1426_v31, %v402_v30  ;;  %v1446_v27 = vld [vmem:[%s4902_s7 + $0x5a0] sm:$0xff] }
  0xf8   : > { %3452 = vst [vmem:[%s4917_s20 + $0x450] sm:$0xff] %v2428_v36  ;;  %v404_v36 = vld [vmem:[%s4895_s19 + $0x510] sm:$0xff]  ;;  %v2451_v41 = vadd.f32 %v1427_v34, %v403_v33  ;;  %v1447_v30 = vld [vmem:[%s4902_s7 + $0x5a8] sm:$0xff] }
  0xf9   : > { %3453 = vst [vmem:[%s4917_s20 + $0x458] sm:$0xff] %v2429_v39  ;;  %v405_v39 = vld [vmem:[%s4895_s19 + $0x518] sm:$0xff]  ;;  %v2452_v44 = vadd.f32 %v1428_v37, %v404_v36  ;;  %v1448_v33 = vld [vmem:[%s4902_s7 + $0x5b0] sm:$0xff] }
  0xfa   : > { %3454 = vst [vmem:[%s4917_s20 + $0x460] sm:$0xff] %v2430_v42  ;;  %v406_v42 = vld [vmem:[%s4895_s19 + $0x520] sm:$0xff]  ;;  %v2453_v47 = vadd.f32 %v1429_v40, %v405_v39  ;;  %v1449_v36 = vld [vmem:[%s4902_s7 + $0x5b8] sm:$0xff] }
  0xfb   : > { %3455 = vst [vmem:[%s4917_s20 + $0x468] sm:$0xff] %v2431_v45  ;;  %v407_v45 = vld [vmem:[%s4895_s19 + $0x528] sm:$0xff]  ;;  %v2454_v50 = vadd.f32 %v1430_v43, %v406_v42  ;;  %v1450_v39 = vld [vmem:[%s4902_s7 + $0x5c0] sm:$0xff] }
  0xfc   : > { %3456 = vst [vmem:[%s4917_s20 + $0x470] sm:$0xff] %v2432_v48  ;;  %v408_v48 = vld [vmem:[%s4895_s19 + $0x530] sm:$0xff]  ;;  %v2455_v53 = vadd.f32 %v1431_v46, %v407_v45  ;;  %v1451_v42 = vld [vmem:[%s4902_s7 + $0x5c8] sm:$0xff] }
  0xfd   : > { %3457 = vst [vmem:[%s4917_s20 + $0x478] sm:$0xff] %v2433_v51  ;;  %v409_v51 = vld [vmem:[%s4895_s19 + $0x538] sm:$0xff]  ;;  %v2456_v56 = vadd.f32 %v1432_v49, %v408_v48  ;;  %v1452_v45 = vld [vmem:[%s4902_s7 + $0x5d0] sm:$0xff] }
  0xfe   : > { %3458 = vst [vmem:[%s4917_s20 + $0x480] sm:$0xff] %v2434_v54  ;;  %v410_v54 = vld [vmem:[%s4895_s19 + $0x540] sm:$0xff]  ;;  %v2457_v59 = vadd.f32 %v1433_v52, %v409_v51  ;;  %v1453_v48 = vld [vmem:[%s4902_s7 + $0x5d8] sm:$0xff] }
  0xff   : > { %3459 = vst [vmem:[%s4917_s20 + $0x488] sm:$0xff] %v2435_v57  ;;  %v411_v57 = vld [vmem:[%s4895_s19 + $0x548] sm:$0xff]  ;;  %v2458_v62 = vadd.f32 %v1434_v55, %v410_v54  ;;  %v1454_v51 = vld [vmem:[%s4902_s7 + $0x5e0] sm:$0xff] }
 0x100   : > { %3460 = vst [vmem:[%s4917_s20 + $0x490] sm:$0xff] %v2436_v60  ;;  %v412_v60 = vld [vmem:[%s4895_s19 + $0x550] sm:$0xff]  ;;  %v2459_v1 = vadd.f32 %v1435_v58, %v411_v57  ;;  %v1455_v54 = vld [vmem:[%s4902_s7 + $0x5e8] sm:$0xff] }
 0x101   : > { %3461 = vst [vmem:[%s4917_s20 + $0x498] sm:$0xff] %v2437_v63  ;;  %v413_v63 = vld [vmem:[%s4895_s19 + $0x558] sm:$0xff]  ;;  %v2460_v4 = vadd.f32 %v1436_v61, %v412_v60  ;;  %v1456_v57 = vld [vmem:[%s4902_s7 + $0x5f0] sm:$0xff] }
 0x102   : > { %3462 = vst [vmem:[%s4917_s20 + $0x4a0] sm:$0xff] %v2438_v2  ;;  %v414_v2 = vld [vmem:[%s4895_s19 + $0x560] sm:$0xff]  ;;  %v2461_v7 = vadd.f32 %v1437_v0, %v413_v63  ;;  %v1457_v60 = vld [vmem:[%s4902_s7 + $0x5f8] sm:$0xff] }
 0x103   : > { %3463 = vst [vmem:[%s4917_s20 + $0x4a8] sm:$0xff] %v2439_v5  ;;  %v415_v5 = vld [vmem:[%s4895_s19 + $0x568] sm:$0xff]  ;;  %v2462_v10 = vadd.f32 %v1438_v3, %v414_v2  ;;  %v1458_v63 = vld [vmem:[%s4902_s7 + $0x600] sm:$0xff] }
 0x104   : > { %3464 = vst [vmem:[%s4917_s20 + $0x4b0] sm:$0xff] %v2440_v8  ;;  %v416_v8 = vld [vmem:[%s4895_s19 + $0x570] sm:$0xff]  ;;  %v2463_v13 = vadd.f32 %v1439_v6, %v415_v5  ;;  %v1459_v2 = vld [vmem:[%s4902_s7 + $0x608] sm:$0xff] }
 0x105   : > { %3465 = vst [vmem:[%s4917_s20 + $0x4b8] sm:$0xff] %v2441_v11  ;;  %v417_v11 = vld [vmem:[%s4895_s19 + $0x578] sm:$0xff]  ;;  %v2464_v16 = vadd.f32 %v1440_v9, %v416_v8  ;;  %v1460_v5 = vld [vmem:[%s4902_s7 + $0x610] sm:$0xff] }
 0x106   : > { %3466 = vst [vmem:[%s4917_s20 + $0x4c0] sm:$0xff] %v2442_v14  ;;  %v418_v14 = vld [vmem:[%s4895_s19 + $0x580] sm:$0xff]  ;;  %v2465_v19 = vadd.f32 %v1441_v12, %v417_v11  ;;  %v1461_v8 = vld [vmem:[%s4902_s7 + $0x618] sm:$0xff] }
 0x107   : > { %3467 = vst [vmem:[%s4917_s20 + $0x4c8] sm:$0xff] %v2443_v17  ;;  %v419_v17 = vld [vmem:[%s4895_s19 + $0x588] sm:$0xff]  ;;  %v2466_v22 = vadd.f32 %v1442_v15, %v418_v14  ;;  %v1462_v11 = vld [vmem:[%s4902_s7 + $0x620] sm:$0xff] }
 0x108   : > { %3468 = vst [vmem:[%s4917_s20 + $0x4d0] sm:$0xff] %v2444_v20  ;;  %v420_v20 = vld [vmem:[%s4895_s19 + $0x590] sm:$0xff]  ;;  %v2467_v25 = vadd.f32 %v1443_v18, %v419_v17  ;;  %v1463_v14 = vld [vmem:[%s4902_s7 + $0x628] sm:$0xff] }
 0x109   : > { %3469 = vst [vmem:[%s4917_s20 + $0x4d8] sm:$0xff] %v2445_v23  ;;  %v421_v23 = vld [vmem:[%s4895_s19 + $0x598] sm:$0xff]  ;;  %v2468_v28 = vadd.f32 %v1444_v21, %v420_v20  ;;  %v1464_v17 = vld [vmem:[%s4902_s7 + $0x630] sm:$0xff] }
 0x10a   : > { %3470 = vst [vmem:[%s4917_s20 + $0x4e0] sm:$0xff] %v2446_v26  ;;  %v422_v26 = vld [vmem:[%s4895_s19 + $0x5a0] sm:$0xff]  ;;  %v2469_v31 = vadd.f32 %v1445_v24, %v421_v23  ;;  %v1465_v20 = vld [vmem:[%s4902_s7 + $0x638] sm:$0xff] }
 0x10b   : > { %3471 = vst [vmem:[%s4917_s20 + $0x4e8] sm:$0xff] %v2447_v29  ;;  %v423_v29 = vld [vmem:[%s4895_s19 + $0x5a8] sm:$0xff]  ;;  %v2470_v34 = vadd.f32 %v1446_v27, %v422_v26  ;;  %v1466_v23 = vld [vmem:[%s4902_s7 + $0x640] sm:$0xff] }
 0x10c   : > { %3472 = vst [vmem:[%s4917_s20 + $0x4f0] sm:$0xff] %v2448_v32  ;;  %v424_v32 = vld [vmem:[%s4895_s19 + $0x5b0] sm:$0xff]  ;;  %v2471_v37 = vadd.f32 %v1447_v30, %v423_v29  ;;  %v1467_v26 = vld [vmem:[%s4902_s7 + $0x648] sm:$0xff] }
 0x10d   : > { %3473 = vst [vmem:[%s4917_s20 + $0x4f8] sm:$0xff] %v2449_v35  ;;  %v425_v35 = vld [vmem:[%s4895_s19 + $0x5b8] sm:$0xff]  ;;  %v2472_v40 = vadd.f32 %v1448_v33, %v424_v32  ;;  %v1468_v29 = vld [vmem:[%s4902_s7 + $0x650] sm:$0xff] }
 0x10e   : > { %3474 = vst [vmem:[%s4917_s20 + $0x500] sm:$0xff] %v2450_v38  ;;  %v426_v38 = vld [vmem:[%s4895_s19 + $0x5c0] sm:$0xff]  ;;  %v2473_v43 = vadd.f32 %v1449_v36, %v425_v35  ;;  %v1469_v32 = vld [vmem:[%s4902_s7 + $0x658] sm:$0xff] }
 0x10f   : > { %3475 = vst [vmem:[%s4917_s20 + $0x508] sm:$0xff] %v2451_v41  ;;  %v427_v41 = vld [vmem:[%s4895_s19 + $0x5c8] sm:$0xff]  ;;  %v2474_v46 = vadd.f32 %v1450_v39, %v426_v38  ;;  %v1470_v35 = vld [vmem:[%s4902_s7 + $0x660] sm:$0xff] }
 0x110   : > { %3476 = vst [vmem:[%s4917_s20 + $0x510] sm:$0xff] %v2452_v44  ;;  %v428_v44 = vld [vmem:[%s4895_s19 + $0x5d0] sm:$0xff]  ;;  %v2475_v49 = vadd.f32 %v1451_v42, %v427_v41  ;;  %v1471_v38 = vld [vmem:[%s4902_s7 + $0x668] sm:$0xff] }
 0x111   : > { %3477 = vst [vmem:[%s4917_s20 + $0x518] sm:$0xff] %v2453_v47  ;;  %v429_v47 = vld [vmem:[%s4895_s19 + $0x5d8] sm:$0xff]  ;;  %v2476_v52 = vadd.f32 %v1452_v45, %v428_v44  ;;  %v1472_v41 = vld [vmem:[%s4902_s7 + $0x670] sm:$0xff] }
 0x112   : > { %3478 = vst [vmem:[%s4917_s20 + $0x520] sm:$0xff] %v2454_v50  ;;  %v430_v50 = vld [vmem:[%s4895_s19 + $0x5e0] sm:$0xff]  ;;  %v2477_v55 = vadd.f32 %v1453_v48, %v429_v47  ;;  %v1473_v44 = vld [vmem:[%s4902_s7 + $0x678] sm:$0xff] }
 0x113   : > { %3479 = vst [vmem:[%s4917_s20 + $0x528] sm:$0xff] %v2455_v53  ;;  %v431_v53 = vld [vmem:[%s4895_s19 + $0x5e8] sm:$0xff]  ;;  %v2478_v58 = vadd.f32 %v1454_v51, %v430_v50  ;;  %v1474_v47 = vld [vmem:[%s4902_s7 + $0x680] sm:$0xff] }
 0x114   : > { %3480 = vst [vmem:[%s4917_s20 + $0x530] sm:$0xff] %v2456_v56  ;;  %v432_v56 = vld [vmem:[%s4895_s19 + $0x5f0] sm:$0xff]  ;;  %v2479_v61 = vadd.f32 %v1455_v54, %v431_v53  ;;  %v1475_v50 = vld [vmem:[%s4902_s7 + $0x688] sm:$0xff] }
 0x115   : > { %3481 = vst [vmem:[%s4917_s20 + $0x538] sm:$0xff] %v2457_v59  ;;  %v433_v59 = vld [vmem:[%s4895_s19 + $0x5f8] sm:$0xff]  ;;  %v2480_v0 = vadd.f32 %v1456_v57, %v432_v56  ;;  %v1476_v53 = vld [vmem:[%s4902_s7 + $0x690] sm:$0xff] }
 0x116   : > { %3482 = vst [vmem:[%s4917_s20 + $0x540] sm:$0xff] %v2458_v62  ;;  %v434_v62 = vld [vmem:[%s4895_s19 + $0x600] sm:$0xff]  ;;  %v2481_v3 = vadd.f32 %v1457_v60, %v433_v59  ;;  %v1477_v56 = vld [vmem:[%s4902_s7 + $0x698] sm:$0xff] }
 0x117   : > { %3483 = vst [vmem:[%s4917_s20 + $0x548] sm:$0xff] %v2459_v1  ;;  %v435_v1 = vld [vmem:[%s4895_s19 + $0x608] sm:$0xff]  ;;  %v2482_v6 = vadd.f32 %v1458_v63, %v434_v62  ;;  %v1478_v59 = vld [vmem:[%s4902_s7 + $0x6a0] sm:$0xff] }
 0x118   : > { %3484 = vst [vmem:[%s4917_s20 + $0x550] sm:$0xff] %v2460_v4  ;;  %v436_v4 = vld [vmem:[%s4895_s19 + $0x610] sm:$0xff]  ;;  %v2483_v9 = vadd.f32 %v1459_v2, %v435_v1  ;;  %v1479_v62 = vld [vmem:[%s4902_s7 + $0x6a8] sm:$0xff] }
 0x119   : > { %3485 = vst [vmem:[%s4917_s20 + $0x558] sm:$0xff] %v2461_v7  ;;  %v437_v7 = vld [vmem:[%s4895_s19 + $0x618] sm:$0xff]  ;;  %v2484_v12 = vadd.f32 %v1460_v5, %v436_v4  ;;  %v1480_v1 = vld [vmem:[%s4902_s7 + $0x6b0] sm:$0xff] }
 0x11a   : > { %3486 = vst [vmem:[%s4917_s20 + $0x560] sm:$0xff] %v2462_v10  ;;  %v438_v10 = vld [vmem:[%s4895_s19 + $0x620] sm:$0xff]  ;;  %v2485_v15 = vadd.f32 %v1461_v8, %v437_v7  ;;  %v1481_v4 = vld [vmem:[%s4902_s7 + $0x6b8] sm:$0xff] }
 0x11b   : > { %3487 = vst [vmem:[%s4917_s20 + $0x568] sm:$0xff] %v2463_v13  ;;  %v439_v13 = vld [vmem:[%s4895_s19 + $0x628] sm:$0xff]  ;;  %v2486_v18 = vadd.f32 %v1462_v11, %v438_v10  ;;  %v1482_v7 = vld [vmem:[%s4902_s7 + $0x6c0] sm:$0xff] }
 0x11c   : > { %3488 = vst [vmem:[%s4917_s20 + $0x570] sm:$0xff] %v2464_v16  ;;  %v440_v16 = vld [vmem:[%s4895_s19 + $0x630] sm:$0xff]  ;;  %v2487_v21 = vadd.f32 %v1463_v14, %v439_v13  ;;  %v1483_v10 = vld [vmem:[%s4902_s7 + $0x6c8] sm:$0xff] }
 0x11d   : > { %3489 = vst [vmem:[%s4917_s20 + $0x578] sm:$0xff] %v2465_v19  ;;  %v441_v19 = vld [vmem:[%s4895_s19 + $0x638] sm:$0xff]  ;;  %v2488_v24 = vadd.f32 %v1464_v17, %v440_v16  ;;  %v1484_v13 = vld [vmem:[%s4902_s7 + $0x6d0] sm:$0xff] }
 0x11e   : > { %3490 = vst [vmem:[%s4917_s20 + $0x580] sm:$0xff] %v2466_v22  ;;  %v442_v22 = vld [vmem:[%s4895_s19 + $0x640] sm:$0xff]  ;;  %v2489_v27 = vadd.f32 %v1465_v20, %v441_v19  ;;  %v1485_v16 = vld [vmem:[%s4902_s7 + $0x6d8] sm:$0xff] }
 0x11f   : > { %3491 = vst [vmem:[%s4917_s20 + $0x588] sm:$0xff] %v2467_v25  ;;  %v443_v25 = vld [vmem:[%s4895_s19 + $0x648] sm:$0xff]  ;;  %v2490_v30 = vadd.f32 %v1466_v23, %v442_v22  ;;  %v1486_v19 = vld [vmem:[%s4902_s7 + $0x6e0] sm:$0xff] }
 0x120   : > { %3492 = vst [vmem:[%s4917_s20 + $0x590] sm:$0xff] %v2468_v28  ;;  %v444_v28 = vld [vmem:[%s4895_s19 + $0x650] sm:$0xff]  ;;  %v2491_v33 = vadd.f32 %v1467_v26, %v443_v25  ;;  %v1487_v22 = vld [vmem:[%s4902_s7 + $0x6e8] sm:$0xff] }
 0x121   : > { %3493 = vst [vmem:[%s4917_s20 + $0x598] sm:$0xff] %v2469_v31  ;;  %v445_v31 = vld [vmem:[%s4895_s19 + $0x658] sm:$0xff]  ;;  %v2492_v36 = vadd.f32 %v1468_v29, %v444_v28  ;;  %v1488_v25 = vld [vmem:[%s4902_s7 + $0x6f0] sm:$0xff] }
 0x122   : > { %3494 = vst [vmem:[%s4917_s20 + $0x5a0] sm:$0xff] %v2470_v34  ;;  %v446_v34 = vld [vmem:[%s4895_s19 + $0x660] sm:$0xff]  ;;  %v2493_v39 = vadd.f32 %v1469_v32, %v445_v31  ;;  %v1489_v28 = vld [vmem:[%s4902_s7 + $0x6f8] sm:$0xff] }
 0x123   : > { %3495 = vst [vmem:[%s4917_s20 + $0x5a8] sm:$0xff] %v2471_v37  ;;  %v447_v37 = vld [vmem:[%s4895_s19 + $0x668] sm:$0xff]  ;;  %v2494_v42 = vadd.f32 %v1470_v35, %v446_v34  ;;  %v1490_v31 = vld [vmem:[%s4902_s7 + $0x700] sm:$0xff] }
 0x124   : > { %3496 = vst [vmem:[%s4917_s20 + $0x5b0] sm:$0xff] %v2472_v40  ;;  %v448_v40 = vld [vmem:[%s4895_s19 + $0x670] sm:$0xff]  ;;  %v2495_v45 = vadd.f32 %v1471_v38, %v447_v37  ;;  %v1491_v34 = vld [vmem:[%s4902_s7 + $0x708] sm:$0xff] }
 0x125   : > { %3497 = vst [vmem:[%s4917_s20 + $0x5b8] sm:$0xff] %v2473_v43  ;;  %v449_v43 = vld [vmem:[%s4895_s19 + $0x678] sm:$0xff]  ;;  %v2496_v48 = vadd.f32 %v1472_v41, %v448_v40  ;;  %v1492_v37 = vld [vmem:[%s4902_s7 + $0x710] sm:$0xff] }
 0x126   : > { %3498 = vst [vmem:[%s4917_s20 + $0x5c0] sm:$0xff] %v2474_v46  ;;  %v450_v46 = vld [vmem:[%s4895_s19 + $0x680] sm:$0xff]  ;;  %v2497_v51 = vadd.f32 %v1473_v44, %v449_v43  ;;  %v1493_v40 = vld [vmem:[%s4902_s7 + $0x718] sm:$0xff] }
 0x127   : > { %3499 = vst [vmem:[%s4917_s20 + $0x5c8] sm:$0xff] %v2475_v49  ;;  %v451_v49 = vld [vmem:[%s4895_s19 + $0x688] sm:$0xff]  ;;  %v2498_v54 = vadd.f32 %v1474_v47, %v450_v46  ;;  %v1494_v43 = vld [vmem:[%s4902_s7 + $0x720] sm:$0xff] }
 0x128   : > { %3500 = vst [vmem:[%s4917_s20 + $0x5d0] sm:$0xff] %v2476_v52  ;;  %v452_v52 = vld [vmem:[%s4895_s19 + $0x690] sm:$0xff]  ;;  %v2499_v57 = vadd.f32 %v1475_v50, %v451_v49  ;;  %v1495_v46 = vld [vmem:[%s4902_s7 + $0x728] sm:$0xff] }
 0x129   : > { %3501 = vst [vmem:[%s4917_s20 + $0x5d8] sm:$0xff] %v2477_v55  ;;  %v453_v55 = vld [vmem:[%s4895_s19 + $0x698] sm:$0xff]  ;;  %v2500_v60 = vadd.f32 %v1476_v53, %v452_v52  ;;  %v1496_v49 = vld [vmem:[%s4902_s7 + $0x730] sm:$0xff] }
 0x12a   : > { %3502 = vst [vmem:[%s4917_s20 + $0x5e0] sm:$0xff] %v2478_v58  ;;  %v454_v58 = vld [vmem:[%s4895_s19 + $0x6a0] sm:$0xff]  ;;  %v2501_v63 = vadd.f32 %v1477_v56, %v453_v55  ;;  %v1497_v52 = vld [vmem:[%s4902_s7 + $0x738] sm:$0xff] }
 0x12b   : > { %3503 = vst [vmem:[%s4917_s20 + $0x5e8] sm:$0xff] %v2479_v61  ;;  %v455_v61 = vld [vmem:[%s4895_s19 + $0x6a8] sm:$0xff]  ;;  %v2502_v2 = vadd.f32 %v1478_v59, %v454_v58  ;;  %v1498_v55 = vld [vmem:[%s4902_s7 + $0x740] sm:$0xff] }
 0x12c   : > { %3504 = vst [vmem:[%s4917_s20 + $0x5f0] sm:$0xff] %v2480_v0  ;;  %v456_v0 = vld [vmem:[%s4895_s19 + $0x6b0] sm:$0xff]  ;;  %v2503_v5 = vadd.f32 %v1479_v62, %v455_v61  ;;  %v1499_v58 = vld [vmem:[%s4902_s7 + $0x748] sm:$0xff] }
 0x12d   : > { %3505 = vst [vmem:[%s4917_s20 + $0x5f8] sm:$0xff] %v2481_v3  ;;  %v457_v3 = vld [vmem:[%s4895_s19 + $0x6b8] sm:$0xff]  ;;  %v2504_v8 = vadd.f32 %v1480_v1, %v456_v0  ;;  %v1500_v61 = vld [vmem:[%s4902_s7 + $0x750] sm:$0xff] }
 0x12e   : > { %3506 = vst [vmem:[%s4917_s20 + $0x600] sm:$0xff] %v2482_v6  ;;  %v458_v6 = vld [vmem:[%s4895_s19 + $0x6c0] sm:$0xff]  ;;  %v2505_v11 = vadd.f32 %v1481_v4, %v457_v3  ;;  %v1501_v0 = vld [vmem:[%s4902_s7 + $0x758] sm:$0xff] }
 0x12f   : > { %3507 = vst [vmem:[%s4917_s20 + $0x608] sm:$0xff] %v2483_v9  ;;  %v459_v9 = vld [vmem:[%s4895_s19 + $0x6c8] sm:$0xff]  ;;  %v2506_v14 = vadd.f32 %v1482_v7, %v458_v6  ;;  %v1502_v3 = vld [vmem:[%s4902_s7 + $0x760] sm:$0xff] }
 0x130   : > { %3508 = vst [vmem:[%s4917_s20 + $0x610] sm:$0xff] %v2484_v12  ;;  %v460_v12 = vld [vmem:[%s4895_s19 + $0x6d0] sm:$0xff]  ;;  %v2507_v17 = vadd.f32 %v1483_v10, %v459_v9  ;;  %v1503_v6 = vld [vmem:[%s4902_s7 + $0x768] sm:$0xff] }
 0x131   : > { %3509 = vst [vmem:[%s4917_s20 + $0x618] sm:$0xff] %v2485_v15  ;;  %v461_v15 = vld [vmem:[%s4895_s19 + $0x6d8] sm:$0xff]  ;;  %v2508_v20 = vadd.f32 %v1484_v13, %v460_v12  ;;  %v1504_v9 = vld [vmem:[%s4902_s7 + $0x770] sm:$0xff] }
 0x132   : > { %3510 = vst [vmem:[%s4917_s20 + $0x620] sm:$0xff] %v2486_v18  ;;  %v462_v18 = vld [vmem:[%s4895_s19 + $0x6e0] sm:$0xff]  ;;  %v2509_v23 = vadd.f32 %v1485_v16, %v461_v15  ;;  %v1505_v12 = vld [vmem:[%s4902_s7 + $0x778] sm:$0xff] }
 0x133   : > { %3511 = vst [vmem:[%s4917_s20 + $0x628] sm:$0xff] %v2487_v21  ;;  %v463_v21 = vld [vmem:[%s4895_s19 + $0x6e8] sm:$0xff]  ;;  %v2510_v26 = vadd.f32 %v1486_v19, %v462_v18  ;;  %v1506_v15 = vld [vmem:[%s4902_s7 + $0x780] sm:$0xff] }
 0x134   : > { %3512 = vst [vmem:[%s4917_s20 + $0x630] sm:$0xff] %v2488_v24  ;;  %v464_v24 = vld [vmem:[%s4895_s19 + $0x6f0] sm:$0xff]  ;;  %v2511_v29 = vadd.f32 %v1487_v22, %v463_v21  ;;  %v1507_v18 = vld [vmem:[%s4902_s7 + $0x788] sm:$0xff] }
 0x135   : > { %3513 = vst [vmem:[%s4917_s20 + $0x638] sm:$0xff] %v2489_v27  ;;  %v465_v27 = vld [vmem:[%s4895_s19 + $0x6f8] sm:$0xff]  ;;  %v2512_v32 = vadd.f32 %v1488_v25, %v464_v24  ;;  %v1508_v21 = vld [vmem:[%s4902_s7 + $0x790] sm:$0xff] }
 0x136   : > { %3514 = vst [vmem:[%s4917_s20 + $0x640] sm:$0xff] %v2490_v30  ;;  %v466_v30 = vld [vmem:[%s4895_s19 + $0x700] sm:$0xff]  ;;  %v2513_v35 = vadd.f32 %v1489_v28, %v465_v27  ;;  %v1509_v24 = vld [vmem:[%s4902_s7 + $0x798] sm:$0xff] }
 0x137   : > { %3515 = vst [vmem:[%s4917_s20 + $0x648] sm:$0xff] %v2491_v33  ;;  %v467_v33 = vld [vmem:[%s4895_s19 + $0x708] sm:$0xff]  ;;  %v2514_v38 = vadd.f32 %v1490_v31, %v466_v30  ;;  %v1510_v27 = vld [vmem:[%s4902_s7 + $0x7a0] sm:$0xff] }
 0x138   : > { %3516 = vst [vmem:[%s4917_s20 + $0x650] sm:$0xff] %v2492_v36  ;;  %v468_v36 = vld [vmem:[%s4895_s19 + $0x710] sm:$0xff]  ;;  %v2515_v41 = vadd.f32 %v1491_v34, %v467_v33  ;;  %v1511_v30 = vld [vmem:[%s4902_s7 + $0x7a8] sm:$0xff] }
 0x139   : > { %3517 = vst [vmem:[%s4917_s20 + $0x658] sm:$0xff] %v2493_v39  ;;  %v469_v39 = vld [vmem:[%s4895_s19 + $0x718] sm:$0xff]  ;;  %v2516_v44 = vadd.f32 %v1492_v37, %v468_v36  ;;  %v1512_v33 = vld [vmem:[%s4902_s7 + $0x7b0] sm:$0xff] }
 0x13a   : > { %3518 = vst [vmem:[%s4917_s20 + $0x660] sm:$0xff] %v2494_v42  ;;  %v470_v42 = vld [vmem:[%s4895_s19 + $0x720] sm:$0xff]  ;;  %v2517_v47 = vadd.f32 %v1493_v40, %v469_v39  ;;  %v1513_v36 = vld [vmem:[%s4902_s7 + $0x7b8] sm:$0xff] }
 0x13b   : > { %3519 = vst [vmem:[%s4917_s20 + $0x668] sm:$0xff] %v2495_v45  ;;  %v471_v45 = vld [vmem:[%s4895_s19 + $0x728] sm:$0xff]  ;;  %v2518_v50 = vadd.f32 %v1494_v43, %v470_v42  ;;  %v1514_v39 = vld [vmem:[%s4902_s7 + $0x7c0] sm:$0xff] }
 0x13c   : > { %3520 = vst [vmem:[%s4917_s20 + $0x670] sm:$0xff] %v2496_v48  ;;  %v472_v48 = vld [vmem:[%s4895_s19 + $0x730] sm:$0xff]  ;;  %v2519_v53 = vadd.f32 %v1495_v46, %v471_v45  ;;  %v1515_v42 = vld [vmem:[%s4902_s7 + $0x7c8] sm:$0xff] }
 0x13d   : > { %3521 = vst [vmem:[%s4917_s20 + $0x678] sm:$0xff] %v2497_v51  ;;  %v473_v51 = vld [vmem:[%s4895_s19 + $0x738] sm:$0xff]  ;;  %v2520_v56 = vadd.f32 %v1496_v49, %v472_v48  ;;  %v1516_v45 = vld [vmem:[%s4902_s7 + $0x7d0] sm:$0xff] }
 0x13e   : > { %3522 = vst [vmem:[%s4917_s20 + $0x680] sm:$0xff] %v2498_v54  ;;  %v474_v54 = vld [vmem:[%s4895_s19 + $0x740] sm:$0xff]  ;;  %v2521_v59 = vadd.f32 %v1497_v52, %v473_v51  ;;  %v1517_v48 = vld [vmem:[%s4902_s7 + $0x7d8] sm:$0xff] }
 0x13f   : > { %3523 = vst [vmem:[%s4917_s20 + $0x688] sm:$0xff] %v2499_v57  ;;  %v475_v57 = vld [vmem:[%s4895_s19 + $0x748] sm:$0xff]  ;;  %v2522_v62 = vadd.f32 %v1498_v55, %v474_v54  ;;  %v1518_v51 = vld [vmem:[%s4902_s7 + $0x7e0] sm:$0xff] }
 0x140   : > { %3524 = vst [vmem:[%s4917_s20 + $0x690] sm:$0xff] %v2500_v60  ;;  %v476_v60 = vld [vmem:[%s4895_s19 + $0x750] sm:$0xff]  ;;  %v2523_v1 = vadd.f32 %v1499_v58, %v475_v57  ;;  %v1519_v54 = vld [vmem:[%s4902_s7 + $0x7e8] sm:$0xff] }
 0x141   : > { %3525 = vst [vmem:[%s4917_s20 + $0x698] sm:$0xff] %v2501_v63  ;;  %v477_v63 = vld [vmem:[%s4895_s19 + $0x758] sm:$0xff]  ;;  %v2524_v4 = vadd.f32 %v1500_v61, %v476_v60  ;;  %v1520_v57 = vld [vmem:[%s4902_s7 + $0x7f0] sm:$0xff] }
 0x142   : > { %3526 = vst [vmem:[%s4917_s20 + $0x6a0] sm:$0xff] %v2502_v2  ;;  %v478_v2 = vld [vmem:[%s4895_s19 + $0x760] sm:$0xff]  ;;  %v2525_v7 = vadd.f32 %v1501_v0, %v477_v63  ;;  %v1521_v60 = vld [vmem:[%s4902_s7 + $0x7f8] sm:$0xff] }
 0x143   : > { %3527 = vst [vmem:[%s4917_s20 + $0x6a8] sm:$0xff] %v2503_v5  ;;  %v479_v5 = vld [vmem:[%s4895_s19 + $0x768] sm:$0xff]  ;;  %v2526_v10 = vadd.f32 %v1502_v3, %v478_v2  ;;  %v1522_v63 = vld [vmem:[%s4902_s7 + $0x800] sm:$0xff] }
 0x144   : > { %3528 = vst [vmem:[%s4917_s20 + $0x6b0] sm:$0xff] %v2504_v8  ;;  %v480_v8 = vld [vmem:[%s4895_s19 + $0x770] sm:$0xff]  ;;  %v2527_v13 = vadd.f32 %v1503_v6, %v479_v5  ;;  %v1523_v2 = vld [vmem:[%s4902_s7 + $0x808] sm:$0xff] }
 0x145   : > { %3529 = vst [vmem:[%s4917_s20 + $0x6b8] sm:$0xff] %v2505_v11  ;;  %v481_v11 = vld [vmem:[%s4895_s19 + $0x778] sm:$0xff]  ;;  %v2528_v16 = vadd.f32 %v1504_v9, %v480_v8  ;;  %v1524_v5 = vld [vmem:[%s4902_s7 + $0x810] sm:$0xff] }
 0x146   : > { %3530 = vst [vmem:[%s4917_s20 + $0x6c0] sm:$0xff] %v2506_v14  ;;  %v482_v14 = vld [vmem:[%s4895_s19 + $0x780] sm:$0xff]  ;;  %v2529_v19 = vadd.f32 %v1505_v12, %v481_v11  ;;  %v1525_v8 = vld [vmem:[%s4902_s7 + $0x818] sm:$0xff] }
 0x147   : > { %3531 = vst [vmem:[%s4917_s20 + $0x6c8] sm:$0xff] %v2507_v17  ;;  %v483_v17 = vld [vmem:[%s4895_s19 + $0x788] sm:$0xff]  ;;  %v2530_v22 = vadd.f32 %v1506_v15, %v482_v14  ;;  %v1526_v11 = vld [vmem:[%s4902_s7 + $0x820] sm:$0xff] }
 0x148   : > { %3532 = vst [vmem:[%s4917_s20 + $0x6d0] sm:$0xff] %v2508_v20  ;;  %v484_v20 = vld [vmem:[%s4895_s19 + $0x790] sm:$0xff]  ;;  %v2531_v25 = vadd.f32 %v1507_v18, %v483_v17  ;;  %v1527_v14 = vld [vmem:[%s4902_s7 + $0x828] sm:$0xff] }
 0x149   : > { %3533 = vst [vmem:[%s4917_s20 + $0x6d8] sm:$0xff] %v2509_v23  ;;  %v485_v23 = vld [vmem:[%s4895_s19 + $0x798] sm:$0xff]  ;;  %v2532_v28 = vadd.f32 %v1508_v21, %v484_v20  ;;  %v1528_v17 = vld [vmem:[%s4902_s7 + $0x830] sm:$0xff] }
 0x14a   : > { %3534 = vst [vmem:[%s4917_s20 + $0x6e0] sm:$0xff] %v2510_v26  ;;  %v486_v26 = vld [vmem:[%s4895_s19 + $0x7a0] sm:$0xff]  ;;  %v2533_v31 = vadd.f32 %v1509_v24, %v485_v23  ;;  %v1529_v20 = vld [vmem:[%s4902_s7 + $0x838] sm:$0xff] }
 0x14b   : > { %3535 = vst [vmem:[%s4917_s20 + $0x6e8] sm:$0xff] %v2511_v29  ;;  %v487_v29 = vld [vmem:[%s4895_s19 + $0x7a8] sm:$0xff]  ;;  %v2534_v34 = vadd.f32 %v1510_v27, %v486_v26  ;;  %v1530_v23 = vld [vmem:[%s4902_s7 + $0x840] sm:$0xff] }
 0x14c   : > { %3536 = vst [vmem:[%s4917_s20 + $0x6f0] sm:$0xff] %v2512_v32  ;;  %v488_v32 = vld [vmem:[%s4895_s19 + $0x7b0] sm:$0xff]  ;;  %v2535_v37 = vadd.f32 %v1511_v30, %v487_v29  ;;  %v1531_v26 = vld [vmem:[%s4902_s7 + $0x848] sm:$0xff] }
 0x14d   : > { %3537 = vst [vmem:[%s4917_s20 + $0x6f8] sm:$0xff] %v2513_v35  ;;  %v489_v35 = vld [vmem:[%s4895_s19 + $0x7b8] sm:$0xff]  ;;  %v2536_v40 = vadd.f32 %v1512_v33, %v488_v32  ;;  %v1532_v29 = vld [vmem:[%s4902_s7 + $0x850] sm:$0xff] }
 0x14e   : > { %3538 = vst [vmem:[%s4917_s20 + $0x700] sm:$0xff] %v2514_v38  ;;  %v490_v38 = vld [vmem:[%s4895_s19 + $0x7c0] sm:$0xff]  ;;  %v2537_v43 = vadd.f32 %v1513_v36, %v489_v35  ;;  %v1533_v32 = vld [vmem:[%s4902_s7 + $0x858] sm:$0xff] }
 0x14f   : > { %3539 = vst [vmem:[%s4917_s20 + $0x708] sm:$0xff] %v2515_v41  ;;  %v491_v41 = vld [vmem:[%s4895_s19 + $0x7c8] sm:$0xff]  ;;  %v2538_v46 = vadd.f32 %v1514_v39, %v490_v38  ;;  %v1534_v35 = vld [vmem:[%s4902_s7 + $0x860] sm:$0xff] }
 0x150   : > { %3540 = vst [vmem:[%s4917_s20 + $0x710] sm:$0xff] %v2516_v44  ;;  %v492_v44 = vld [vmem:[%s4895_s19 + $0x7d0] sm:$0xff]  ;;  %v2539_v49 = vadd.f32 %v1515_v42, %v491_v41  ;;  %v1535_v38 = vld [vmem:[%s4902_s7 + $0x868] sm:$0xff] }
 0x151   : > { %3541 = vst [vmem:[%s4917_s20 + $0x718] sm:$0xff] %v2517_v47  ;;  %v493_v47 = vld [vmem:[%s4895_s19 + $0x7d8] sm:$0xff]  ;;  %v2540_v52 = vadd.f32 %v1516_v45, %v492_v44  ;;  %v1536_v41 = vld [vmem:[%s4902_s7 + $0x870] sm:$0xff] }
 0x152   : > { %3542 = vst [vmem:[%s4917_s20 + $0x720] sm:$0xff] %v2518_v50  ;;  %v494_v50 = vld [vmem:[%s4895_s19 + $0x7e0] sm:$0xff]  ;;  %v2541_v55 = vadd.f32 %v1517_v48, %v493_v47  ;;  %v1537_v44 = vld [vmem:[%s4902_s7 + $0x878] sm:$0xff] }
 0x153   : > { %3543 = vst [vmem:[%s4917_s20 + $0x728] sm:$0xff] %v2519_v53  ;;  %v495_v53 = vld [vmem:[%s4895_s19 + $0x7e8] sm:$0xff]  ;;  %v2542_v58 = vadd.f32 %v1518_v51, %v494_v50  ;;  %v1538_v47 = vld [vmem:[%s4902_s7 + $0x880] sm:$0xff] }
 0x154   : > { %3544 = vst [vmem:[%s4917_s20 + $0x730] sm:$0xff] %v2520_v56  ;;  %v496_v56 = vld [vmem:[%s4895_s19 + $0x7f0] sm:$0xff]  ;;  %v2543_v61 = vadd.f32 %v1519_v54, %v495_v53  ;;  %v1539_v50 = vld [vmem:[%s4902_s7 + $0x888] sm:$0xff] }
 0x155   : > { %3545 = vst [vmem:[%s4917_s20 + $0x738] sm:$0xff] %v2521_v59  ;;  %v497_v59 = vld [vmem:[%s4895_s19 + $0x7f8] sm:$0xff]  ;;  %v2544_v0 = vadd.f32 %v1520_v57, %v496_v56  ;;  %v1540_v53 = vld [vmem:[%s4902_s7 + $0x890] sm:$0xff] }
 0x156   : > { %3546 = vst [vmem:[%s4917_s20 + $0x740] sm:$0xff] %v2522_v62  ;;  %v498_v62 = vld [vmem:[%s4895_s19 + $0x800] sm:$0xff]  ;;  %v2545_v3 = vadd.f32 %v1521_v60, %v497_v59  ;;  %v1541_v56 = vld [vmem:[%s4902_s7 + $0x898] sm:$0xff] }
 0x157   : > { %3547 = vst [vmem:[%s4917_s20 + $0x748] sm:$0xff] %v2523_v1  ;;  %v499_v1 = vld [vmem:[%s4895_s19 + $0x808] sm:$0xff]  ;;  %v2546_v6 = vadd.f32 %v1522_v63, %v498_v62  ;;  %v1542_v59 = vld [vmem:[%s4902_s7 + $0x8a0] sm:$0xff] }
 0x158   : > { %3548 = vst [vmem:[%s4917_s20 + $0x750] sm:$0xff] %v2524_v4  ;;  %v500_v4 = vld [vmem:[%s4895_s19 + $0x810] sm:$0xff]  ;;  %v2547_v9 = vadd.f32 %v1523_v2, %v499_v1  ;;  %v1543_v62 = vld [vmem:[%s4902_s7 + $0x8a8] sm:$0xff] }
 0x159   : > { %3549 = vst [vmem:[%s4917_s20 + $0x758] sm:$0xff] %v2525_v7  ;;  %v501_v7 = vld [vmem:[%s4895_s19 + $0x818] sm:$0xff]  ;;  %v2548_v12 = vadd.f32 %v1524_v5, %v500_v4  ;;  %v1544_v1 = vld [vmem:[%s4902_s7 + $0x8b0] sm:$0xff] }
 0x15a   : > { %3550 = vst [vmem:[%s4917_s20 + $0x760] sm:$0xff] %v2526_v10  ;;  %v502_v10 = vld [vmem:[%s4895_s19 + $0x820] sm:$0xff]  ;;  %v2549_v15 = vadd.f32 %v1525_v8, %v501_v7  ;;  %v1545_v4 = vld [vmem:[%s4902_s7 + $0x8b8] sm:$0xff] }
 0x15b   : > { %3551 = vst [vmem:[%s4917_s20 + $0x768] sm:$0xff] %v2527_v13  ;;  %v503_v13 = vld [vmem:[%s4895_s19 + $0x828] sm:$0xff]  ;;  %v2550_v18 = vadd.f32 %v1526_v11, %v502_v10  ;;  %v1546_v7 = vld [vmem:[%s4902_s7 + $0x8c0] sm:$0xff] }
 0x15c   : > { %3552 = vst [vmem:[%s4917_s20 + $0x770] sm:$0xff] %v2528_v16  ;;  %v504_v16 = vld [vmem:[%s4895_s19 + $0x830] sm:$0xff]  ;;  %v2551_v21 = vadd.f32 %v1527_v14, %v503_v13  ;;  %v1547_v10 = vld [vmem:[%s4902_s7 + $0x8c8] sm:$0xff] }
 0x15d   : > { %3553 = vst [vmem:[%s4917_s20 + $0x778] sm:$0xff] %v2529_v19  ;;  %v505_v19 = vld [vmem:[%s4895_s19 + $0x838] sm:$0xff]  ;;  %v2552_v24 = vadd.f32 %v1528_v17, %v504_v16  ;;  %v1548_v13 = vld [vmem:[%s4902_s7 + $0x8d0] sm:$0xff] }
 0x15e   : > { %3554 = vst [vmem:[%s4917_s20 + $0x780] sm:$0xff] %v2530_v22  ;;  %v506_v22 = vld [vmem:[%s4895_s19 + $0x840] sm:$0xff]  ;;  %v2553_v27 = vadd.f32 %v1529_v20, %v505_v19  ;;  %v1549_v16 = vld [vmem:[%s4902_s7 + $0x8d8] sm:$0xff] }
 0x15f   : > { %3555 = vst [vmem:[%s4917_s20 + $0x788] sm:$0xff] %v2531_v25  ;;  %v507_v25 = vld [vmem:[%s4895_s19 + $0x848] sm:$0xff]  ;;  %v2554_v30 = vadd.f32 %v1530_v23, %v506_v22  ;;  %v1550_v19 = vld [vmem:[%s4902_s7 + $0x8e0] sm:$0xff] }
 0x160   : > { %3556 = vst [vmem:[%s4917_s20 + $0x790] sm:$0xff] %v2532_v28  ;;  %v508_v28 = vld [vmem:[%s4895_s19 + $0x850] sm:$0xff]  ;;  %v2555_v33 = vadd.f32 %v1531_v26, %v507_v25  ;;  %v1551_v22 = vld [vmem:[%s4902_s7 + $0x8e8] sm:$0xff] }
 0x161   : > { %3557 = vst [vmem:[%s4917_s20 + $0x798] sm:$0xff] %v2533_v31  ;;  %v509_v31 = vld [vmem:[%s4895_s19 + $0x858] sm:$0xff]  ;;  %v2556_v36 = vadd.f32 %v1532_v29, %v508_v28  ;;  %v1552_v25 = vld [vmem:[%s4902_s7 + $0x8f0] sm:$0xff] }
 0x162   : > { %3558 = vst [vmem:[%s4917_s20 + $0x7a0] sm:$0xff] %v2534_v34  ;;  %v510_v34 = vld [vmem:[%s4895_s19 + $0x860] sm:$0xff]  ;;  %v2557_v39 = vadd.f32 %v1533_v32, %v509_v31  ;;  %v1553_v28 = vld [vmem:[%s4902_s7 + $0x8f8] sm:$0xff] }
 0x163   : > { %3559 = vst [vmem:[%s4917_s20 + $0x7a8] sm:$0xff] %v2535_v37  ;;  %v511_v37 = vld [vmem:[%s4895_s19 + $0x868] sm:$0xff]  ;;  %v2558_v42 = vadd.f32 %v1534_v35, %v510_v34  ;;  %v1554_v31 = vld [vmem:[%s4902_s7 + $0x900] sm:$0xff] }
 0x164   : > { %3560 = vst [vmem:[%s4917_s20 + $0x7b0] sm:$0xff] %v2536_v40  ;;  %v512_v40 = vld [vmem:[%s4895_s19 + $0x870] sm:$0xff]  ;;  %v2559_v45 = vadd.f32 %v1535_v38, %v511_v37  ;;  %v1555_v34 = vld [vmem:[%s4902_s7 + $0x908] sm:$0xff] }
 0x165   : > { %3561 = vst [vmem:[%s4917_s20 + $0x7b8] sm:$0xff] %v2537_v43  ;;  %v513_v43 = vld [vmem:[%s4895_s19 + $0x878] sm:$0xff]  ;;  %v2560_v48 = vadd.f32 %v1536_v41, %v512_v40  ;;  %v1556_v37 = vld [vmem:[%s4902_s7 + $0x910] sm:$0xff] }
 0x166   : > { %3562 = vst [vmem:[%s4917_s20 + $0x7c0] sm:$0xff] %v2538_v46  ;;  %v514_v46 = vld [vmem:[%s4895_s19 + $0x880] sm:$0xff]  ;;  %v2561_v51 = vadd.f32 %v1537_v44, %v513_v43  ;;  %v1557_v40 = vld [vmem:[%s4902_s7 + $0x918] sm:$0xff] }
 0x167   : > { %3563 = vst [vmem:[%s4917_s20 + $0x7c8] sm:$0xff] %v2539_v49  ;;  %v515_v49 = vld [vmem:[%s4895_s19 + $0x888] sm:$0xff]  ;;  %v2562_v54 = vadd.f32 %v1538_v47, %v514_v46  ;;  %v1558_v43 = vld [vmem:[%s4902_s7 + $0x920] sm:$0xff] }
 0x168   : > { %3564 = vst [vmem:[%s4917_s20 + $0x7d0] sm:$0xff] %v2540_v52  ;;  %v516_v52 = vld [vmem:[%s4895_s19 + $0x890] sm:$0xff]  ;;  %v2563_v57 = vadd.f32 %v1539_v50, %v515_v49  ;;  %v1559_v46 = vld [vmem:[%s4902_s7 + $0x928] sm:$0xff] }
 0x169   : > { %3565 = vst [vmem:[%s4917_s20 + $0x7d8] sm:$0xff] %v2541_v55  ;;  %v517_v55 = vld [vmem:[%s4895_s19 + $0x898] sm:$0xff]  ;;  %v2564_v60 = vadd.f32 %v1540_v53, %v516_v52  ;;  %v1560_v49 = vld [vmem:[%s4902_s7 + $0x930] sm:$0xff] }
 0x16a   : > { %3566 = vst [vmem:[%s4917_s20 + $0x7e0] sm:$0xff] %v2542_v58  ;;  %v518_v58 = vld [vmem:[%s4895_s19 + $0x8a0] sm:$0xff]  ;;  %v2565_v63 = vadd.f32 %v1541_v56, %v517_v55  ;;  %v1561_v52 = vld [vmem:[%s4902_s7 + $0x938] sm:$0xff] }
 0x16b   : > { %3567 = vst [vmem:[%s4917_s20 + $0x7e8] sm:$0xff] %v2543_v61  ;;  %v519_v61 = vld [vmem:[%s4895_s19 + $0x8a8] sm:$0xff]  ;;  %v2566_v2 = vadd.f32 %v1542_v59, %v518_v58  ;;  %v1562_v55 = vld [vmem:[%s4902_s7 + $0x940] sm:$0xff] }
 0x16c   : > { %3568 = vst [vmem:[%s4917_s20 + $0x7f0] sm:$0xff] %v2544_v0  ;;  %v520_v0 = vld [vmem:[%s4895_s19 + $0x8b0] sm:$0xff]  ;;  %v2567_v5 = vadd.f32 %v1543_v62, %v519_v61  ;;  %v1563_v58 = vld [vmem:[%s4902_s7 + $0x948] sm:$0xff] }
 0x16d   : > { %3569 = vst [vmem:[%s4917_s20 + $0x7f8] sm:$0xff] %v2545_v3  ;;  %v521_v3 = vld [vmem:[%s4895_s19 + $0x8b8] sm:$0xff]  ;;  %v2568_v8 = vadd.f32 %v1544_v1, %v520_v0  ;;  %v1564_v61 = vld [vmem:[%s4902_s7 + $0x950] sm:$0xff] }
 0x16e   : > { %3570 = vst [vmem:[%s4917_s20 + $0x800] sm:$0xff] %v2546_v6  ;;  %v522_v6 = vld [vmem:[%s4895_s19 + $0x8c0] sm:$0xff]  ;;  %v2569_v11 = vadd.f32 %v1545_v4, %v521_v3  ;;  %v1565_v0 = vld [vmem:[%s4902_s7 + $0x958] sm:$0xff] }
 0x16f   : > { %3571 = vst [vmem:[%s4917_s20 + $0x808] sm:$0xff] %v2547_v9  ;;  %v523_v9 = vld [vmem:[%s4895_s19 + $0x8c8] sm:$0xff]  ;;  %v2570_v14 = vadd.f32 %v1546_v7, %v522_v6  ;;  %v1566_v3 = vld [vmem:[%s4902_s7 + $0x960] sm:$0xff] }
 0x170   : > { %3572 = vst [vmem:[%s4917_s20 + $0x810] sm:$0xff] %v2548_v12  ;;  %v524_v12 = vld [vmem:[%s4895_s19 + $0x8d0] sm:$0xff]  ;;  %v2571_v17 = vadd.f32 %v1547_v10, %v523_v9  ;;  %v1567_v6 = vld [vmem:[%s4902_s7 + $0x968] sm:$0xff] }
 0x171   : > { %3573 = vst [vmem:[%s4917_s20 + $0x818] sm:$0xff] %v2549_v15  ;;  %v525_v15 = vld [vmem:[%s4895_s19 + $0x8d8] sm:$0xff]  ;;  %v2572_v20 = vadd.f32 %v1548_v13, %v524_v12  ;;  %v1568_v9 = vld [vmem:[%s4902_s7 + $0x970] sm:$0xff] }
 0x172   : > { %3574 = vst [vmem:[%s4917_s20 + $0x820] sm:$0xff] %v2550_v18  ;;  %v526_v18 = vld [vmem:[%s4895_s19 + $0x8e0] sm:$0xff]  ;;  %v2573_v23 = vadd.f32 %v1549_v16, %v525_v15  ;;  %v1569_v12 = vld [vmem:[%s4902_s7 + $0x978] sm:$0xff] }
 0x173   : > { %3575 = vst [vmem:[%s4917_s20 + $0x828] sm:$0xff] %v2551_v21  ;;  %v527_v21 = vld [vmem:[%s4895_s19 + $0x8e8] sm:$0xff]  ;;  %v2574_v26 = vadd.f32 %v1550_v19, %v526_v18  ;;  %v1570_v15 = vld [vmem:[%s4902_s7 + $0x980] sm:$0xff] }
 0x174   : > { %3576 = vst [vmem:[%s4917_s20 + $0x830] sm:$0xff] %v2552_v24  ;;  %v528_v24 = vld [vmem:[%s4895_s19 + $0x8f0] sm:$0xff]  ;;  %v2575_v29 = vadd.f32 %v1551_v22, %v527_v21  ;;  %v1571_v18 = vld [vmem:[%s4902_s7 + $0x988] sm:$0xff] }
 0x175   : > { %3577 = vst [vmem:[%s4917_s20 + $0x838] sm:$0xff] %v2553_v27  ;;  %v529_v27 = vld [vmem:[%s4895_s19 + $0x8f8] sm:$0xff]  ;;  %v2576_v32 = vadd.f32 %v1552_v25, %v528_v24  ;;  %v1572_v21 = vld [vmem:[%s4902_s7 + $0x990] sm:$0xff] }
 0x176   : > { %3578 = vst [vmem:[%s4917_s20 + $0x840] sm:$0xff] %v2554_v30  ;;  %v530_v30 = vld [vmem:[%s4895_s19 + $0x900] sm:$0xff]  ;;  %v2577_v35 = vadd.f32 %v1553_v28, %v529_v27  ;;  %v1573_v24 = vld [vmem:[%s4902_s7 + $0x998] sm:$0xff] }
 0x177   : > { %3579 = vst [vmem:[%s4917_s20 + $0x848] sm:$0xff] %v2555_v33  ;;  %v531_v33 = vld [vmem:[%s4895_s19 + $0x908] sm:$0xff]  ;;  %v2578_v38 = vadd.f32 %v1554_v31, %v530_v30  ;;  %v1574_v27 = vld [vmem:[%s4902_s7 + $0x9a0] sm:$0xff] }
 0x178   : > { %3580 = vst [vmem:[%s4917_s20 + $0x850] sm:$0xff] %v2556_v36  ;;  %v532_v36 = vld [vmem:[%s4895_s19 + $0x910] sm:$0xff]  ;;  %v2579_v41 = vadd.f32 %v1555_v34, %v531_v33  ;;  %v1575_v30 = vld [vmem:[%s4902_s7 + $0x9a8] sm:$0xff] }
 0x179   : > { %3581 = vst [vmem:[%s4917_s20 + $0x858] sm:$0xff] %v2557_v39  ;;  %v533_v39 = vld [vmem:[%s4895_s19 + $0x918] sm:$0xff]  ;;  %v2580_v44 = vadd.f32 %v1556_v37, %v532_v36  ;;  %v1576_v33 = vld [vmem:[%s4902_s7 + $0x9b0] sm:$0xff] }
 0x17a   : > { %3582 = vst [vmem:[%s4917_s20 + $0x860] sm:$0xff] %v2558_v42  ;;  %v534_v42 = vld [vmem:[%s4895_s19 + $0x920] sm:$0xff]  ;;  %v2581_v47 = vadd.f32 %v1557_v40, %v533_v39  ;;  %v1577_v36 = vld [vmem:[%s4902_s7 + $0x9b8] sm:$0xff] }
 0x17b   : > { %3583 = vst [vmem:[%s4917_s20 + $0x868] sm:$0xff] %v2559_v45  ;;  %v535_v45 = vld [vmem:[%s4895_s19 + $0x928] sm:$0xff]  ;;  %v2582_v50 = vadd.f32 %v1558_v43, %v534_v42  ;;  %v1578_v39 = vld [vmem:[%s4902_s7 + $0x9c0] sm:$0xff] }
 0x17c   : > { %3584 = vst [vmem:[%s4917_s20 + $0x870] sm:$0xff] %v2560_v48  ;;  %v536_v48 = vld [vmem:[%s4895_s19 + $0x930] sm:$0xff]  ;;  %v2583_v53 = vadd.f32 %v1559_v46, %v535_v45  ;;  %v1579_v42 = vld [vmem:[%s4902_s7 + $0x9c8] sm:$0xff] }
 0x17d   : > { %3585 = vst [vmem:[%s4917_s20 + $0x878] sm:$0xff] %v2561_v51  ;;  %v537_v51 = vld [vmem:[%s4895_s19 + $0x938] sm:$0xff]  ;;  %v2584_v56 = vadd.f32 %v1560_v49, %v536_v48  ;;  %v1580_v45 = vld [vmem:[%s4902_s7 + $0x9d0] sm:$0xff] }
 0x17e   : > { %3586 = vst [vmem:[%s4917_s20 + $0x880] sm:$0xff] %v2562_v54  ;;  %v538_v54 = vld [vmem:[%s4895_s19 + $0x940] sm:$0xff]  ;;  %v2585_v59 = vadd.f32 %v1561_v52, %v537_v51  ;;  %v1581_v48 = vld [vmem:[%s4902_s7 + $0x9d8] sm:$0xff] }
 0x17f   : > { %3587 = vst [vmem:[%s4917_s20 + $0x888] sm:$0xff] %v2563_v57  ;;  %v539_v57 = vld [vmem:[%s4895_s19 + $0x948] sm:$0xff]  ;;  %v2586_v62 = vadd.f32 %v1562_v55, %v538_v54  ;;  %v1582_v51 = vld [vmem:[%s4902_s7 + $0x9e0] sm:$0xff] }
 0x180   : > { %3588 = vst [vmem:[%s4917_s20 + $0x890] sm:$0xff] %v2564_v60  ;;  %v540_v60 = vld [vmem:[%s4895_s19 + $0x950] sm:$0xff]  ;;  %v2587_v1 = vadd.f32 %v1563_v58, %v539_v57  ;;  %v1583_v54 = vld [vmem:[%s4902_s7 + $0x9e8] sm:$0xff] }
 0x181   : > { %3589 = vst [vmem:[%s4917_s20 + $0x898] sm:$0xff] %v2565_v63  ;;  %v541_v63 = vld [vmem:[%s4895_s19 + $0x958] sm:$0xff]  ;;  %v2588_v4 = vadd.f32 %v1564_v61, %v540_v60  ;;  %v1584_v57 = vld [vmem:[%s4902_s7 + $0x9f0] sm:$0xff] }
 0x182   : > { %3590 = vst [vmem:[%s4917_s20 + $0x8a0] sm:$0xff] %v2566_v2  ;;  %v542_v2 = vld [vmem:[%s4895_s19 + $0x960] sm:$0xff]  ;;  %v2589_v7 = vadd.f32 %v1565_v0, %v541_v63  ;;  %v1585_v60 = vld [vmem:[%s4902_s7 + $0x9f8] sm:$0xff] }
 0x183   : > { %3591 = vst [vmem:[%s4917_s20 + $0x8a8] sm:$0xff] %v2567_v5  ;;  %v543_v5 = vld [vmem:[%s4895_s19 + $0x968] sm:$0xff]  ;;  %v2590_v10 = vadd.f32 %v1566_v3, %v542_v2  ;;  %v1586_v63 = vld [vmem:[%s4902_s7 + $0xa00] sm:$0xff] }
 0x184   : > { %3592 = vst [vmem:[%s4917_s20 + $0x8b0] sm:$0xff] %v2568_v8  ;;  %v544_v8 = vld [vmem:[%s4895_s19 + $0x970] sm:$0xff]  ;;  %v2591_v13 = vadd.f32 %v1567_v6, %v543_v5  ;;  %v1587_v2 = vld [vmem:[%s4902_s7 + $0xa08] sm:$0xff] }
 0x185   : > { %3593 = vst [vmem:[%s4917_s20 + $0x8b8] sm:$0xff] %v2569_v11  ;;  %v545_v11 = vld [vmem:[%s4895_s19 + $0x978] sm:$0xff]  ;;  %v2592_v16 = vadd.f32 %v1568_v9, %v544_v8  ;;  %v1588_v5 = vld [vmem:[%s4902_s7 + $0xa10] sm:$0xff] }
 0x186   : > { %3594 = vst [vmem:[%s4917_s20 + $0x8c0] sm:$0xff] %v2570_v14  ;;  %v546_v14 = vld [vmem:[%s4895_s19 + $0x980] sm:$0xff]  ;;  %v2593_v19 = vadd.f32 %v1569_v12, %v545_v11  ;;  %v1589_v8 = vld [vmem:[%s4902_s7 + $0xa18] sm:$0xff] }
 0x187   : > { %3595 = vst [vmem:[%s4917_s20 + $0x8c8] sm:$0xff] %v2571_v17  ;;  %v547_v17 = vld [vmem:[%s4895_s19 + $0x988] sm:$0xff]  ;;  %v2594_v22 = vadd.f32 %v1570_v15, %v546_v14  ;;  %v1590_v11 = vld [vmem:[%s4902_s7 + $0xa20] sm:$0xff] }
 0x188   : > { %3596 = vst [vmem:[%s4917_s20 + $0x8d0] sm:$0xff] %v2572_v20  ;;  %v548_v20 = vld [vmem:[%s4895_s19 + $0x990] sm:$0xff]  ;;  %v2595_v25 = vadd.f32 %v1571_v18, %v547_v17  ;;  %v1591_v14 = vld [vmem:[%s4902_s7 + $0xa28] sm:$0xff] }
 0x189   : > { %3597 = vst [vmem:[%s4917_s20 + $0x8d8] sm:$0xff] %v2573_v23  ;;  %v549_v23 = vld [vmem:[%s4895_s19 + $0x998] sm:$0xff]  ;;  %v2596_v28 = vadd.f32 %v1572_v21, %v548_v20  ;;  %v1592_v17 = vld [vmem:[%s4902_s7 + $0xa30] sm:$0xff] }
 0x18a   : > { %3598 = vst [vmem:[%s4917_s20 + $0x8e0] sm:$0xff] %v2574_v26  ;;  %v550_v26 = vld [vmem:[%s4895_s19 + $0x9a0] sm:$0xff]  ;;  %v2597_v31 = vadd.f32 %v1573_v24, %v549_v23  ;;  %v1593_v20 = vld [vmem:[%s4902_s7 + $0xa38] sm:$0xff] }
 0x18b   : > { %3599 = vst [vmem:[%s4917_s20 + $0x8e8] sm:$0xff] %v2575_v29  ;;  %v551_v29 = vld [vmem:[%s4895_s19 + $0x9a8] sm:$0xff]  ;;  %v2598_v34 = vadd.f32 %v1574_v27, %v550_v26  ;;  %v1594_v23 = vld [vmem:[%s4902_s7 + $0xa40] sm:$0xff] }
 0x18c   : > { %3600 = vst [vmem:[%s4917_s20 + $0x8f0] sm:$0xff] %v2576_v32  ;;  %v552_v32 = vld [vmem:[%s4895_s19 + $0x9b0] sm:$0xff]  ;;  %v2599_v37 = vadd.f32 %v1575_v30, %v551_v29  ;;  %v1595_v26 = vld [vmem:[%s4902_s7 + $0xa48] sm:$0xff] }
 0x18d   : > { %3601 = vst [vmem:[%s4917_s20 + $0x8f8] sm:$0xff] %v2577_v35  ;;  %v553_v35 = vld [vmem:[%s4895_s19 + $0x9b8] sm:$0xff]  ;;  %v2600_v40 = vadd.f32 %v1576_v33, %v552_v32  ;;  %v1596_v29 = vld [vmem:[%s4902_s7 + $0xa50] sm:$0xff] }
 0x18e   : > { %3602 = vst [vmem:[%s4917_s20 + $0x900] sm:$0xff] %v2578_v38  ;;  %v554_v38 = vld [vmem:[%s4895_s19 + $0x9c0] sm:$0xff]  ;;  %v2601_v43 = vadd.f32 %v1577_v36, %v553_v35  ;;  %v1597_v32 = vld [vmem:[%s4902_s7 + $0xa58] sm:$0xff] }
 0x18f   : > { %3603 = vst [vmem:[%s4917_s20 + $0x908] sm:$0xff] %v2579_v41  ;;  %v555_v41 = vld [vmem:[%s4895_s19 + $0x9c8] sm:$0xff]  ;;  %v2602_v46 = vadd.f32 %v1578_v39, %v554_v38  ;;  %v1598_v35 = vld [vmem:[%s4902_s7 + $0xa60] sm:$0xff] }
 0x190   : > { %3604 = vst [vmem:[%s4917_s20 + $0x910] sm:$0xff] %v2580_v44  ;;  %v556_v44 = vld [vmem:[%s4895_s19 + $0x9d0] sm:$0xff]  ;;  %v2603_v49 = vadd.f32 %v1579_v42, %v555_v41  ;;  %v1599_v38 = vld [vmem:[%s4902_s7 + $0xa68] sm:$0xff] }
 0x191   : > { %3605 = vst [vmem:[%s4917_s20 + $0x918] sm:$0xff] %v2581_v47  ;;  %v557_v47 = vld [vmem:[%s4895_s19 + $0x9d8] sm:$0xff]  ;;  %v2604_v52 = vadd.f32 %v1580_v45, %v556_v44  ;;  %v1600_v41 = vld [vmem:[%s4902_s7 + $0xa70] sm:$0xff] }
 0x192   : > { %3606 = vst [vmem:[%s4917_s20 + $0x920] sm:$0xff] %v2582_v50  ;;  %v558_v50 = vld [vmem:[%s4895_s19 + $0x9e0] sm:$0xff]  ;;  %v2605_v55 = vadd.f32 %v1581_v48, %v557_v47  ;;  %v1601_v44 = vld [vmem:[%s4902_s7 + $0xa78] sm:$0xff] }
 0x193   : > { %3607 = vst [vmem:[%s4917_s20 + $0x928] sm:$0xff] %v2583_v53  ;;  %v559_v53 = vld [vmem:[%s4895_s19 + $0x9e8] sm:$0xff]  ;;  %v2606_v58 = vadd.f32 %v1582_v51, %v558_v50  ;;  %v1602_v47 = vld [vmem:[%s4902_s7 + $0xa80] sm:$0xff] }
 0x194   : > { %3608 = vst [vmem:[%s4917_s20 + $0x930] sm:$0xff] %v2584_v56  ;;  %v560_v56 = vld [vmem:[%s4895_s19 + $0x9f0] sm:$0xff]  ;;  %v2607_v61 = vadd.f32 %v1583_v54, %v559_v53  ;;  %v1603_v50 = vld [vmem:[%s4902_s7 + $0xa88] sm:$0xff] }
 0x195   : > { %3609 = vst [vmem:[%s4917_s20 + $0x938] sm:$0xff] %v2585_v59  ;;  %v561_v59 = vld [vmem:[%s4895_s19 + $0x9f8] sm:$0xff]  ;;  %v2608_v0 = vadd.f32 %v1584_v57, %v560_v56  ;;  %v1604_v53 = vld [vmem:[%s4902_s7 + $0xa90] sm:$0xff] }
 0x196   : > { %3610 = vst [vmem:[%s4917_s20 + $0x940] sm:$0xff] %v2586_v62  ;;  %v562_v62 = vld [vmem:[%s4895_s19 + $0xa00] sm:$0xff]  ;;  %v2609_v3 = vadd.f32 %v1585_v60, %v561_v59  ;;  %v1605_v56 = vld [vmem:[%s4902_s7 + $0xa98] sm:$0xff] }
 0x197   : > { %3611 = vst [vmem:[%s4917_s20 + $0x948] sm:$0xff] %v2587_v1  ;;  %v563_v1 = vld [vmem:[%s4895_s19 + $0xa08] sm:$0xff]  ;;  %v2610_v6 = vadd.f32 %v1586_v63, %v562_v62  ;;  %v1606_v59 = vld [vmem:[%s4902_s7 + $0xaa0] sm:$0xff] }
 0x198   : > { %3612 = vst [vmem:[%s4917_s20 + $0x950] sm:$0xff] %v2588_v4  ;;  %v564_v4 = vld [vmem:[%s4895_s19 + $0xa10] sm:$0xff]  ;;  %v2611_v9 = vadd.f32 %v1587_v2, %v563_v1  ;;  %v1607_v62 = vld [vmem:[%s4902_s7 + $0xaa8] sm:$0xff] }
 0x199   : > { %3613 = vst [vmem:[%s4917_s20 + $0x958] sm:$0xff] %v2589_v7  ;;  %v565_v7 = vld [vmem:[%s4895_s19 + $0xa18] sm:$0xff]  ;;  %v2612_v12 = vadd.f32 %v1588_v5, %v564_v4  ;;  %v1608_v1 = vld [vmem:[%s4902_s7 + $0xab0] sm:$0xff] }
 0x19a   : > { %3614 = vst [vmem:[%s4917_s20 + $0x960] sm:$0xff] %v2590_v10  ;;  %v566_v10 = vld [vmem:[%s4895_s19 + $0xa20] sm:$0xff]  ;;  %v2613_v15 = vadd.f32 %v1589_v8, %v565_v7  ;;  %v1609_v4 = vld [vmem:[%s4902_s7 + $0xab8] sm:$0xff] }
 0x19b   : > { %3615 = vst [vmem:[%s4917_s20 + $0x968] sm:$0xff] %v2591_v13  ;;  %v567_v13 = vld [vmem:[%s4895_s19 + $0xa28] sm:$0xff]  ;;  %v2614_v18 = vadd.f32 %v1590_v11, %v566_v10  ;;  %v1610_v7 = vld [vmem:[%s4902_s7 + $0xac0] sm:$0xff] }
 0x19c   : > { %3616 = vst [vmem:[%s4917_s20 + $0x970] sm:$0xff] %v2592_v16  ;;  %v568_v16 = vld [vmem:[%s4895_s19 + $0xa30] sm:$0xff]  ;;  %v2615_v21 = vadd.f32 %v1591_v14, %v567_v13  ;;  %v1611_v10 = vld [vmem:[%s4902_s7 + $0xac8] sm:$0xff] }
 0x19d   : > { %3617 = vst [vmem:[%s4917_s20 + $0x978] sm:$0xff] %v2593_v19  ;;  %v569_v19 = vld [vmem:[%s4895_s19 + $0xa38] sm:$0xff]  ;;  %v2616_v24 = vadd.f32 %v1592_v17, %v568_v16  ;;  %v1612_v13 = vld [vmem:[%s4902_s7 + $0xad0] sm:$0xff] }
 0x19e   : > { %3618 = vst [vmem:[%s4917_s20 + $0x980] sm:$0xff] %v2594_v22  ;;  %v570_v22 = vld [vmem:[%s4895_s19 + $0xa40] sm:$0xff]  ;;  %v2617_v27 = vadd.f32 %v1593_v20, %v569_v19  ;;  %v1613_v16 = vld [vmem:[%s4902_s7 + $0xad8] sm:$0xff] }
 0x19f   : > { %3619 = vst [vmem:[%s4917_s20 + $0x988] sm:$0xff] %v2595_v25  ;;  %v571_v25 = vld [vmem:[%s4895_s19 + $0xa48] sm:$0xff]  ;;  %v2618_v30 = vadd.f32 %v1594_v23, %v570_v22  ;;  %v1614_v19 = vld [vmem:[%s4902_s7 + $0xae0] sm:$0xff] }
 0x1a0   : > { %3620 = vst [vmem:[%s4917_s20 + $0x990] sm:$0xff] %v2596_v28  ;;  %v572_v28 = vld [vmem:[%s4895_s19 + $0xa50] sm:$0xff]  ;;  %v2619_v33 = vadd.f32 %v1595_v26, %v571_v25  ;;  %v1615_v22 = vld [vmem:[%s4902_s7 + $0xae8] sm:$0xff] }
 0x1a1   : > { %3621 = vst [vmem:[%s4917_s20 + $0x998] sm:$0xff] %v2597_v31  ;;  %v573_v31 = vld [vmem:[%s4895_s19 + $0xa58] sm:$0xff]  ;;  %v2620_v36 = vadd.f32 %v1596_v29, %v572_v28  ;;  %v1616_v25 = vld [vmem:[%s4902_s7 + $0xaf0] sm:$0xff] }
 0x1a2   : > { %3622 = vst [vmem:[%s4917_s20 + $0x9a0] sm:$0xff] %v2598_v34  ;;  %v574_v34 = vld [vmem:[%s4895_s19 + $0xa60] sm:$0xff]  ;;  %v2621_v39 = vadd.f32 %v1597_v32, %v573_v31  ;;  %v1617_v28 = vld [vmem:[%s4902_s7 + $0xaf8] sm:$0xff] }
 0x1a3   : > { %3623 = vst [vmem:[%s4917_s20 + $0x9a8] sm:$0xff] %v2599_v37  ;;  %v575_v37 = vld [vmem:[%s4895_s19 + $0xa68] sm:$0xff]  ;;  %v2622_v42 = vadd.f32 %v1598_v35, %v574_v34  ;;  %v1618_v31 = vld [vmem:[%s4902_s7 + $0xb00] sm:$0xff] }
 0x1a4   : > { %3624 = vst [vmem:[%s4917_s20 + $0x9b0] sm:$0xff] %v2600_v40  ;;  %v576_v40 = vld [vmem:[%s4895_s19 + $0xa70] sm:$0xff]  ;;  %v2623_v45 = vadd.f32 %v1599_v38, %v575_v37  ;;  %v1619_v34 = vld [vmem:[%s4902_s7 + $0xb08] sm:$0xff] }
 0x1a5   : > { %3625 = vst [vmem:[%s4917_s20 + $0x9b8] sm:$0xff] %v2601_v43  ;;  %v577_v43 = vld [vmem:[%s4895_s19 + $0xa78] sm:$0xff]  ;;  %v2624_v48 = vadd.f32 %v1600_v41, %v576_v40  ;;  %v1620_v37 = vld [vmem:[%s4902_s7 + $0xb10] sm:$0xff] }
 0x1a6   : > { %3626 = vst [vmem:[%s4917_s20 + $0x9c0] sm:$0xff] %v2602_v46  ;;  %v578_v46 = vld [vmem:[%s4895_s19 + $0xa80] sm:$0xff]  ;;  %v2625_v51 = vadd.f32 %v1601_v44, %v577_v43  ;;  %v1621_v40 = vld [vmem:[%s4902_s7 + $0xb18] sm:$0xff] }
 0x1a7   : > { %3627 = vst [vmem:[%s4917_s20 + $0x9c8] sm:$0xff] %v2603_v49  ;;  %v579_v49 = vld [vmem:[%s4895_s19 + $0xa88] sm:$0xff]  ;;  %v2626_v54 = vadd.f32 %v1602_v47, %v578_v46  ;;  %v1622_v43 = vld [vmem:[%s4902_s7 + $0xb20] sm:$0xff] }
 0x1a8   : > { %3628 = vst [vmem:[%s4917_s20 + $0x9d0] sm:$0xff] %v2604_v52  ;;  %v580_v52 = vld [vmem:[%s4895_s19 + $0xa90] sm:$0xff]  ;;  %v2627_v57 = vadd.f32 %v1603_v50, %v579_v49  ;;  %v1623_v46 = vld [vmem:[%s4902_s7 + $0xb28] sm:$0xff] }
 0x1a9   : > { %3629 = vst [vmem:[%s4917_s20 + $0x9d8] sm:$0xff] %v2605_v55  ;;  %v581_v55 = vld [vmem:[%s4895_s19 + $0xa98] sm:$0xff]  ;;  %v2628_v60 = vadd.f32 %v1604_v53, %v580_v52  ;;  %v1624_v49 = vld [vmem:[%s4902_s7 + $0xb30] sm:$0xff] }
 0x1aa   : > { %3630 = vst [vmem:[%s4917_s20 + $0x9e0] sm:$0xff] %v2606_v58  ;;  %v582_v58 = vld [vmem:[%s4895_s19 + $0xaa0] sm:$0xff]  ;;  %v2629_v63 = vadd.f32 %v1605_v56, %v581_v55  ;;  %v1625_v52 = vld [vmem:[%s4902_s7 + $0xb38] sm:$0xff] }
 0x1ab   : > { %3631 = vst [vmem:[%s4917_s20 + $0x9e8] sm:$0xff] %v2607_v61  ;;  %v583_v61 = vld [vmem:[%s4895_s19 + $0xaa8] sm:$0xff]  ;;  %v2630_v2 = vadd.f32 %v1606_v59, %v582_v58  ;;  %v1626_v55 = vld [vmem:[%s4902_s7 + $0xb40] sm:$0xff] }
 0x1ac   : > { %3632 = vst [vmem:[%s4917_s20 + $0x9f0] sm:$0xff] %v2608_v0  ;;  %v584_v0 = vld [vmem:[%s4895_s19 + $0xab0] sm:$0xff]  ;;  %v2631_v5 = vadd.f32 %v1607_v62, %v583_v61  ;;  %v1627_v58 = vld [vmem:[%s4902_s7 + $0xb48] sm:$0xff] }
 0x1ad   : > { %3633 = vst [vmem:[%s4917_s20 + $0x9f8] sm:$0xff] %v2609_v3  ;;  %v585_v3 = vld [vmem:[%s4895_s19 + $0xab8] sm:$0xff]  ;;  %v2632_v8 = vadd.f32 %v1608_v1, %v584_v0  ;;  %v1628_v61 = vld [vmem:[%s4902_s7 + $0xb50] sm:$0xff] }
 0x1ae   : > { %3634 = vst [vmem:[%s4917_s20 + $0xa00] sm:$0xff] %v2610_v6  ;;  %v586_v6 = vld [vmem:[%s4895_s19 + $0xac0] sm:$0xff]  ;;  %v2633_v11 = vadd.f32 %v1609_v4, %v585_v3  ;;  %v1629_v0 = vld [vmem:[%s4902_s7 + $0xb58] sm:$0xff] }
 0x1af   : > { %3635 = vst [vmem:[%s4917_s20 + $0xa08] sm:$0xff] %v2611_v9  ;;  %v587_v9 = vld [vmem:[%s4895_s19 + $0xac8] sm:$0xff]  ;;  %v2634_v14 = vadd.f32 %v1610_v7, %v586_v6  ;;  %v1630_v3 = vld [vmem:[%s4902_s7 + $0xb60] sm:$0xff] }
 0x1b0   : > { %3636 = vst [vmem:[%s4917_s20 + $0xa10] sm:$0xff] %v2612_v12  ;;  %v588_v12 = vld [vmem:[%s4895_s19 + $0xad0] sm:$0xff]  ;;  %v2635_v17 = vadd.f32 %v1611_v10, %v587_v9  ;;  %v1631_v6 = vld [vmem:[%s4902_s7 + $0xb68] sm:$0xff] }
 0x1b1   : > { %3637 = vst [vmem:[%s4917_s20 + $0xa18] sm:$0xff] %v2613_v15  ;;  %v589_v15 = vld [vmem:[%s4895_s19 + $0xad8] sm:$0xff]  ;;  %v2636_v20 = vadd.f32 %v1612_v13, %v588_v12  ;;  %v1632_v9 = vld [vmem:[%s4902_s7 + $0xb70] sm:$0xff] }
 0x1b2   : > { %3638 = vst [vmem:[%s4917_s20 + $0xa20] sm:$0xff] %v2614_v18  ;;  %v590_v18 = vld [vmem:[%s4895_s19 + $0xae0] sm:$0xff]  ;;  %v2637_v23 = vadd.f32 %v1613_v16, %v589_v15  ;;  %v1633_v12 = vld [vmem:[%s4902_s7 + $0xb78] sm:$0xff] }
 0x1b3   : > { %3639 = vst [vmem:[%s4917_s20 + $0xa28] sm:$0xff] %v2615_v21  ;;  %v591_v21 = vld [vmem:[%s4895_s19 + $0xae8] sm:$0xff]  ;;  %v2638_v26 = vadd.f32 %v1614_v19, %v590_v18  ;;  %v1634_v15 = vld [vmem:[%s4902_s7 + $0xb80] sm:$0xff] }
 0x1b4   : > { %3640 = vst [vmem:[%s4917_s20 + $0xa30] sm:$0xff] %v2616_v24  ;;  %v592_v24 = vld [vmem:[%s4895_s19 + $0xaf0] sm:$0xff]  ;;  %v2639_v29 = vadd.f32 %v1615_v22, %v591_v21  ;;  %v1635_v18 = vld [vmem:[%s4902_s7 + $0xb88] sm:$0xff] }
 0x1b5   : > { %3641 = vst [vmem:[%s4917_s20 + $0xa38] sm:$0xff] %v2617_v27  ;;  %v593_v27 = vld [vmem:[%s4895_s19 + $0xaf8] sm:$0xff]  ;;  %v2640_v32 = vadd.f32 %v1616_v25, %v592_v24  ;;  %v1636_v21 = vld [vmem:[%s4902_s7 + $0xb90] sm:$0xff] }
 0x1b6   : > { %3642 = vst [vmem:[%s4917_s20 + $0xa40] sm:$0xff] %v2618_v30  ;;  %v594_v30 = vld [vmem:[%s4895_s19 + $0xb00] sm:$0xff]  ;;  %v2641_v35 = vadd.f32 %v1617_v28, %v593_v27  ;;  %v1637_v24 = vld [vmem:[%s4902_s7 + $0xb98] sm:$0xff] }
 0x1b7   : > { %3643 = vst [vmem:[%s4917_s20 + $0xa48] sm:$0xff] %v2619_v33  ;;  %v595_v33 = vld [vmem:[%s4895_s19 + $0xb08] sm:$0xff]  ;;  %v2642_v38 = vadd.f32 %v1618_v31, %v594_v30  ;;  %v1638_v27 = vld [vmem:[%s4902_s7 + $0xba0] sm:$0xff] }
 0x1b8   : > { %3644 = vst [vmem:[%s4917_s20 + $0xa50] sm:$0xff] %v2620_v36  ;;  %v596_v36 = vld [vmem:[%s4895_s19 + $0xb10] sm:$0xff]  ;;  %v2643_v41 = vadd.f32 %v1619_v34, %v595_v33  ;;  %v1639_v30 = vld [vmem:[%s4902_s7 + $0xba8] sm:$0xff] }
 0x1b9   : > { %3645 = vst [vmem:[%s4917_s20 + $0xa58] sm:$0xff] %v2621_v39  ;;  %v597_v39 = vld [vmem:[%s4895_s19 + $0xb18] sm:$0xff]  ;;  %v2644_v44 = vadd.f32 %v1620_v37, %v596_v36  ;;  %v1640_v33 = vld [vmem:[%s4902_s7 + $0xbb0] sm:$0xff] }
 0x1ba   : > { %3646 = vst [vmem:[%s4917_s20 + $0xa60] sm:$0xff] %v2622_v42  ;;  %v598_v42 = vld [vmem:[%s4895_s19 + $0xb20] sm:$0xff]  ;;  %v2645_v47 = vadd.f32 %v1621_v40, %v597_v39  ;;  %v1641_v36 = vld [vmem:[%s4902_s7 + $0xbb8] sm:$0xff] }
 0x1bb   : > { %3647 = vst [vmem:[%s4917_s20 + $0xa68] sm:$0xff] %v2623_v45  ;;  %v599_v45 = vld [vmem:[%s4895_s19 + $0xb28] sm:$0xff]  ;;  %v2646_v50 = vadd.f32 %v1622_v43, %v598_v42  ;;  %v1642_v39 = vld [vmem:[%s4902_s7 + $0xbc0] sm:$0xff] }
 0x1bc   : > { %3648 = vst [vmem:[%s4917_s20 + $0xa70] sm:$0xff] %v2624_v48  ;;  %v600_v48 = vld [vmem:[%s4895_s19 + $0xb30] sm:$0xff]  ;;  %v2647_v53 = vadd.f32 %v1623_v46, %v599_v45  ;;  %v1643_v42 = vld [vmem:[%s4902_s7 + $0xbc8] sm:$0xff] }
 0x1bd   : > { %3649 = vst [vmem:[%s4917_s20 + $0xa78] sm:$0xff] %v2625_v51  ;;  %v601_v51 = vld [vmem:[%s4895_s19 + $0xb38] sm:$0xff]  ;;  %v2648_v56 = vadd.f32 %v1624_v49, %v600_v48  ;;  %v1644_v45 = vld [vmem:[%s4902_s7 + $0xbd0] sm:$0xff] }
 0x1be   : > { %3650 = vst [vmem:[%s4917_s20 + $0xa80] sm:$0xff] %v2626_v54  ;;  %v602_v54 = vld [vmem:[%s4895_s19 + $0xb40] sm:$0xff]  ;;  %v2649_v59 = vadd.f32 %v1625_v52, %v601_v51  ;;  %v1645_v48 = vld [vmem:[%s4902_s7 + $0xbd8] sm:$0xff] }
 0x1bf   : > { %3651 = vst [vmem:[%s4917_s20 + $0xa88] sm:$0xff] %v2627_v57  ;;  %v603_v57 = vld [vmem:[%s4895_s19 + $0xb48] sm:$0xff]  ;;  %v2650_v62 = vadd.f32 %v1626_v55, %v602_v54  ;;  %v1646_v51 = vld [vmem:[%s4902_s7 + $0xbe0] sm:$0xff] }
 0x1c0   : > { %3652 = vst [vmem:[%s4917_s20 + $0xa90] sm:$0xff] %v2628_v60  ;;  %v604_v60 = vld [vmem:[%s4895_s19 + $0xb50] sm:$0xff]  ;;  %v2651_v1 = vadd.f32 %v1627_v58, %v603_v57  ;;  %v1647_v54 = vld [vmem:[%s4902_s7 + $0xbe8] sm:$0xff] }
 0x1c1   : > { %3653 = vst [vmem:[%s4917_s20 + $0xa98] sm:$0xff] %v2629_v63  ;;  %v605_v63 = vld [vmem:[%s4895_s19 + $0xb58] sm:$0xff]  ;;  %v2652_v4 = vadd.f32 %v1628_v61, %v604_v60  ;;  %v1648_v57 = vld [vmem:[%s4902_s7 + $0xbf0] sm:$0xff] }
 0x1c2   : > { %3654 = vst [vmem:[%s4917_s20 + $0xaa0] sm:$0xff] %v2630_v2  ;;  %v606_v2 = vld [vmem:[%s4895_s19 + $0xb60] sm:$0xff]  ;;  %v2653_v7 = vadd.f32 %v1629_v0, %v605_v63  ;;  %v1649_v60 = vld [vmem:[%s4902_s7 + $0xbf8] sm:$0xff] }
 0x1c3   : > { %3655 = vst [vmem:[%s4917_s20 + $0xaa8] sm:$0xff] %v2631_v5  ;;  %v607_v5 = vld [vmem:[%s4895_s19 + $0xb68] sm:$0xff]  ;;  %v2654_v10 = vadd.f32 %v1630_v3, %v606_v2  ;;  %v1650_v63 = vld [vmem:[%s4902_s7 + $0xc00] sm:$0xff] }
 0x1c4   : > { %3656 = vst [vmem:[%s4917_s20 + $0xab0] sm:$0xff] %v2632_v8  ;;  %v608_v8 = vld [vmem:[%s4895_s19 + $0xb70] sm:$0xff]  ;;  %v2655_v13 = vadd.f32 %v1631_v6, %v607_v5  ;;  %v1651_v2 = vld [vmem:[%s4902_s7 + $0xc08] sm:$0xff] }
 0x1c5   : > { %3657 = vst [vmem:[%s4917_s20 + $0xab8] sm:$0xff] %v2633_v11  ;;  %v609_v11 = vld [vmem:[%s4895_s19 + $0xb78] sm:$0xff]  ;;  %v2656_v16 = vadd.f32 %v1632_v9, %v608_v8  ;;  %v1652_v5 = vld [vmem:[%s4902_s7 + $0xc10] sm:$0xff] }
 0x1c6   : > { %3658 = vst [vmem:[%s4917_s20 + $0xac0] sm:$0xff] %v2634_v14  ;;  %v610_v14 = vld [vmem:[%s4895_s19 + $0xb80] sm:$0xff]  ;;  %v2657_v19 = vadd.f32 %v1633_v12, %v609_v11  ;;  %v1653_v8 = vld [vmem:[%s4902_s7 + $0xc18] sm:$0xff] }
 0x1c7   : > { %3659 = vst [vmem:[%s4917_s20 + $0xac8] sm:$0xff] %v2635_v17  ;;  %v611_v17 = vld [vmem:[%s4895_s19 + $0xb88] sm:$0xff]  ;;  %v2658_v22 = vadd.f32 %v1634_v15, %v610_v14  ;;  %v1654_v11 = vld [vmem:[%s4902_s7 + $0xc20] sm:$0xff] }
 0x1c8   : > { %3660 = vst [vmem:[%s4917_s20 + $0xad0] sm:$0xff] %v2636_v20  ;;  %v612_v20 = vld [vmem:[%s4895_s19 + $0xb90] sm:$0xff]  ;;  %v2659_v25 = vadd.f32 %v1635_v18, %v611_v17  ;;  %v1655_v14 = vld [vmem:[%s4902_s7 + $0xc28] sm:$0xff] }
 0x1c9   : > { %3661 = vst [vmem:[%s4917_s20 + $0xad8] sm:$0xff] %v2637_v23  ;;  %v613_v23 = vld [vmem:[%s4895_s19 + $0xb98] sm:$0xff]  ;;  %v2660_v28 = vadd.f32 %v1636_v21, %v612_v20  ;;  %v1656_v17 = vld [vmem:[%s4902_s7 + $0xc30] sm:$0xff] }
 0x1ca   : > { %3662 = vst [vmem:[%s4917_s20 + $0xae0] sm:$0xff] %v2638_v26  ;;  %v614_v26 = vld [vmem:[%s4895_s19 + $0xba0] sm:$0xff]  ;;  %v2661_v31 = vadd.f32 %v1637_v24, %v613_v23  ;;  %v1657_v20 = vld [vmem:[%s4902_s7 + $0xc38] sm:$0xff] }
 0x1cb   : > { %3663 = vst [vmem:[%s4917_s20 + $0xae8] sm:$0xff] %v2639_v29  ;;  %v615_v29 = vld [vmem:[%s4895_s19 + $0xba8] sm:$0xff]  ;;  %v2662_v34 = vadd.f32 %v1638_v27, %v614_v26  ;;  %v1658_v23 = vld [vmem:[%s4902_s7 + $0xc40] sm:$0xff] }
 0x1cc   : > { %3664 = vst [vmem:[%s4917_s20 + $0xaf0] sm:$0xff] %v2640_v32  ;;  %v616_v32 = vld [vmem:[%s4895_s19 + $0xbb0] sm:$0xff]  ;;  %v2663_v37 = vadd.f32 %v1639_v30, %v615_v29  ;;  %v1659_v26 = vld [vmem:[%s4902_s7 + $0xc48] sm:$0xff] }
 0x1cd   : > { %3665 = vst [vmem:[%s4917_s20 + $0xaf8] sm:$0xff] %v2641_v35  ;;  %v617_v35 = vld [vmem:[%s4895_s19 + $0xbb8] sm:$0xff]  ;;  %v2664_v40 = vadd.f32 %v1640_v33, %v616_v32  ;;  %v1660_v29 = vld [vmem:[%s4902_s7 + $0xc50] sm:$0xff] }
 0x1ce   : > { %3666 = vst [vmem:[%s4917_s20 + $0xb00] sm:$0xff] %v2642_v38  ;;  %v618_v38 = vld [vmem:[%s4895_s19 + $0xbc0] sm:$0xff]  ;;  %v2665_v43 = vadd.f32 %v1641_v36, %v617_v35  ;;  %v1661_v32 = vld [vmem:[%s4902_s7 + $0xc58] sm:$0xff] }
 0x1cf   : > { %3667 = vst [vmem:[%s4917_s20 + $0xb08] sm:$0xff] %v2643_v41  ;;  %v619_v41 = vld [vmem:[%s4895_s19 + $0xbc8] sm:$0xff]  ;;  %v2666_v46 = vadd.f32 %v1642_v39, %v618_v38  ;;  %v1662_v35 = vld [vmem:[%s4902_s7 + $0xc60] sm:$0xff] }
 0x1d0   : > { %3668 = vst [vmem:[%s4917_s20 + $0xb10] sm:$0xff] %v2644_v44  ;;  %v620_v44 = vld [vmem:[%s4895_s19 + $0xbd0] sm:$0xff]  ;;  %v2667_v49 = vadd.f32 %v1643_v42, %v619_v41  ;;  %v1663_v38 = vld [vmem:[%s4902_s7 + $0xc68] sm:$0xff] }
 0x1d1   : > { %3669 = vst [vmem:[%s4917_s20 + $0xb18] sm:$0xff] %v2645_v47  ;;  %v621_v47 = vld [vmem:[%s4895_s19 + $0xbd8] sm:$0xff]  ;;  %v2668_v52 = vadd.f32 %v1644_v45, %v620_v44  ;;  %v1664_v41 = vld [vmem:[%s4902_s7 + $0xc70] sm:$0xff] }
 0x1d2   : > { %3670 = vst [vmem:[%s4917_s20 + $0xb20] sm:$0xff] %v2646_v50  ;;  %v622_v50 = vld [vmem:[%s4895_s19 + $0xbe0] sm:$0xff]  ;;  %v2669_v55 = vadd.f32 %v1645_v48, %v621_v47  ;;  %v1665_v44 = vld [vmem:[%s4902_s7 + $0xc78] sm:$0xff] }
 0x1d3   : > { %3671 = vst [vmem:[%s4917_s20 + $0xb28] sm:$0xff] %v2647_v53  ;;  %v623_v53 = vld [vmem:[%s4895_s19 + $0xbe8] sm:$0xff]  ;;  %v2670_v58 = vadd.f32 %v1646_v51, %v622_v50  ;;  %v1666_v47 = vld [vmem:[%s4902_s7 + $0xc80] sm:$0xff] }
 0x1d4   : > { %3672 = vst [vmem:[%s4917_s20 + $0xb30] sm:$0xff] %v2648_v56  ;;  %v624_v56 = vld [vmem:[%s4895_s19 + $0xbf0] sm:$0xff]  ;;  %v2671_v61 = vadd.f32 %v1647_v54, %v623_v53  ;;  %v1667_v50 = vld [vmem:[%s4902_s7 + $0xc88] sm:$0xff] }
 0x1d5   : > { %3673 = vst [vmem:[%s4917_s20 + $0xb38] sm:$0xff] %v2649_v59  ;;  %v625_v59 = vld [vmem:[%s4895_s19 + $0xbf8] sm:$0xff]  ;;  %v2672_v0 = vadd.f32 %v1648_v57, %v624_v56  ;;  %v1668_v53 = vld [vmem:[%s4902_s7 + $0xc90] sm:$0xff] }
 0x1d6   : > { %3674 = vst [vmem:[%s4917_s20 + $0xb40] sm:$0xff] %v2650_v62  ;;  %v626_v62 = vld [vmem:[%s4895_s19 + $0xc00] sm:$0xff]  ;;  %v2673_v3 = vadd.f32 %v1649_v60, %v625_v59  ;;  %v1669_v56 = vld [vmem:[%s4902_s7 + $0xc98] sm:$0xff] }
 0x1d7   : > { %3675 = vst [vmem:[%s4917_s20 + $0xb48] sm:$0xff] %v2651_v1  ;;  %v627_v1 = vld [vmem:[%s4895_s19 + $0xc08] sm:$0xff]  ;;  %v2674_v6 = vadd.f32 %v1650_v63, %v626_v62  ;;  %v1670_v59 = vld [vmem:[%s4902_s7 + $0xca0] sm:$0xff] }
 0x1d8   : > { %3676 = vst [vmem:[%s4917_s20 + $0xb50] sm:$0xff] %v2652_v4  ;;  %v628_v4 = vld [vmem:[%s4895_s19 + $0xc10] sm:$0xff]  ;;  %v2675_v9 = vadd.f32 %v1651_v2, %v627_v1  ;;  %v1671_v62 = vld [vmem:[%s4902_s7 + $0xca8] sm:$0xff] }
 0x1d9   : > { %3677 = vst [vmem:[%s4917_s20 + $0xb58] sm:$0xff] %v2653_v7  ;;  %v629_v7 = vld [vmem:[%s4895_s19 + $0xc18] sm:$0xff]  ;;  %v2676_v12 = vadd.f32 %v1652_v5, %v628_v4  ;;  %v1672_v1 = vld [vmem:[%s4902_s7 + $0xcb0] sm:$0xff] }
 0x1da   : > { %3678 = vst [vmem:[%s4917_s20 + $0xb60] sm:$0xff] %v2654_v10  ;;  %v630_v10 = vld [vmem:[%s4895_s19 + $0xc20] sm:$0xff]  ;;  %v2677_v15 = vadd.f32 %v1653_v8, %v629_v7  ;;  %v1673_v4 = vld [vmem:[%s4902_s7 + $0xcb8] sm:$0xff] }
 0x1db   : > { %3679 = vst [vmem:[%s4917_s20 + $0xb68] sm:$0xff] %v2655_v13  ;;  %v631_v13 = vld [vmem:[%s4895_s19 + $0xc28] sm:$0xff]  ;;  %v2678_v18 = vadd.f32 %v1654_v11, %v630_v10  ;;  %v1674_v7 = vld [vmem:[%s4902_s7 + $0xcc0] sm:$0xff] }
 0x1dc   : > { %3680 = vst [vmem:[%s4917_s20 + $0xb70] sm:$0xff] %v2656_v16  ;;  %v632_v16 = vld [vmem:[%s4895_s19 + $0xc30] sm:$0xff]  ;;  %v2679_v21 = vadd.f32 %v1655_v14, %v631_v13  ;;  %v1675_v10 = vld [vmem:[%s4902_s7 + $0xcc8] sm:$0xff] }
 0x1dd   : > { %3681 = vst [vmem:[%s4917_s20 + $0xb78] sm:$0xff] %v2657_v19  ;;  %v633_v19 = vld [vmem:[%s4895_s19 + $0xc38] sm:$0xff]  ;;  %v2680_v24 = vadd.f32 %v1656_v17, %v632_v16  ;;  %v1676_v13 = vld [vmem:[%s4902_s7 + $0xcd0] sm:$0xff] }
 0x1de   : > { %3682 = vst [vmem:[%s4917_s20 + $0xb80] sm:$0xff] %v2658_v22  ;;  %v634_v22 = vld [vmem:[%s4895_s19 + $0xc40] sm:$0xff]  ;;  %v2681_v27 = vadd.f32 %v1657_v20, %v633_v19  ;;  %v1677_v16 = vld [vmem:[%s4902_s7 + $0xcd8] sm:$0xff] }
 0x1df   : > { %3683 = vst [vmem:[%s4917_s20 + $0xb88] sm:$0xff] %v2659_v25  ;;  %v635_v25 = vld [vmem:[%s4895_s19 + $0xc48] sm:$0xff]  ;;  %v2682_v30 = vadd.f32 %v1658_v23, %v634_v22  ;;  %v1678_v19 = vld [vmem:[%s4902_s7 + $0xce0] sm:$0xff] }
 0x1e0   : > { %3684 = vst [vmem:[%s4917_s20 + $0xb90] sm:$0xff] %v2660_v28  ;;  %v636_v28 = vld [vmem:[%s4895_s19 + $0xc50] sm:$0xff]  ;;  %v2683_v33 = vadd.f32 %v1659_v26, %v635_v25  ;;  %v1679_v22 = vld [vmem:[%s4902_s7 + $0xce8] sm:$0xff] }
 0x1e1   : > { %3685 = vst [vmem:[%s4917_s20 + $0xb98] sm:$0xff] %v2661_v31  ;;  %v637_v31 = vld [vmem:[%s4895_s19 + $0xc58] sm:$0xff]  ;;  %v2684_v36 = vadd.f32 %v1660_v29, %v636_v28  ;;  %v1680_v25 = vld [vmem:[%s4902_s7 + $0xcf0] sm:$0xff] }
 0x1e2   : > { %3686 = vst [vmem:[%s4917_s20 + $0xba0] sm:$0xff] %v2662_v34  ;;  %v638_v34 = vld [vmem:[%s4895_s19 + $0xc60] sm:$0xff]  ;;  %v2685_v39 = vadd.f32 %v1661_v32, %v637_v31  ;;  %v1681_v28 = vld [vmem:[%s4902_s7 + $0xcf8] sm:$0xff] }
 0x1e3   : > { %3687 = vst [vmem:[%s4917_s20 + $0xba8] sm:$0xff] %v2663_v37  ;;  %v639_v37 = vld [vmem:[%s4895_s19 + $0xc68] sm:$0xff]  ;;  %v2686_v42 = vadd.f32 %v1662_v35, %v638_v34  ;;  %v1682_v31 = vld [vmem:[%s4902_s7 + $0xd00] sm:$0xff] }
 0x1e4   : > { %3688 = vst [vmem:[%s4917_s20 + $0xbb0] sm:$0xff] %v2664_v40  ;;  %v640_v40 = vld [vmem:[%s4895_s19 + $0xc70] sm:$0xff]  ;;  %v2687_v45 = vadd.f32 %v1663_v38, %v639_v37  ;;  %v1683_v34 = vld [vmem:[%s4902_s7 + $0xd08] sm:$0xff] }
 0x1e5   : > { %3689 = vst [vmem:[%s4917_s20 + $0xbb8] sm:$0xff] %v2665_v43  ;;  %v641_v43 = vld [vmem:[%s4895_s19 + $0xc78] sm:$0xff]  ;;  %v2688_v48 = vadd.f32 %v1664_v41, %v640_v40  ;;  %v1684_v37 = vld [vmem:[%s4902_s7 + $0xd10] sm:$0xff] }
 0x1e6   : > { %3690 = vst [vmem:[%s4917_s20 + $0xbc0] sm:$0xff] %v2666_v46  ;;  %v642_v46 = vld [vmem:[%s4895_s19 + $0xc80] sm:$0xff]  ;;  %v2689_v51 = vadd.f32 %v1665_v44, %v641_v43  ;;  %v1685_v40 = vld [vmem:[%s4902_s7 + $0xd18] sm:$0xff] }
 0x1e7   : > { %3691 = vst [vmem:[%s4917_s20 + $0xbc8] sm:$0xff] %v2667_v49  ;;  %v643_v49 = vld [vmem:[%s4895_s19 + $0xc88] sm:$0xff]  ;;  %v2690_v54 = vadd.f32 %v1666_v47, %v642_v46  ;;  %v1686_v43 = vld [vmem:[%s4902_s7 + $0xd20] sm:$0xff] }
 0x1e8   : > { %3692 = vst [vmem:[%s4917_s20 + $0xbd0] sm:$0xff] %v2668_v52  ;;  %v644_v52 = vld [vmem:[%s4895_s19 + $0xc90] sm:$0xff]  ;;  %v2691_v57 = vadd.f32 %v1667_v50, %v643_v49  ;;  %v1687_v46 = vld [vmem:[%s4902_s7 + $0xd28] sm:$0xff] }
 0x1e9   : > { %3693 = vst [vmem:[%s4917_s20 + $0xbd8] sm:$0xff] %v2669_v55  ;;  %v645_v55 = vld [vmem:[%s4895_s19 + $0xc98] sm:$0xff]  ;;  %v2692_v60 = vadd.f32 %v1668_v53, %v644_v52  ;;  %v1688_v49 = vld [vmem:[%s4902_s7 + $0xd30] sm:$0xff] }
 0x1ea   : > { %3694 = vst [vmem:[%s4917_s20 + $0xbe0] sm:$0xff] %v2670_v58  ;;  %v646_v58 = vld [vmem:[%s4895_s19 + $0xca0] sm:$0xff]  ;;  %v2693_v63 = vadd.f32 %v1669_v56, %v645_v55  ;;  %v1689_v52 = vld [vmem:[%s4902_s7 + $0xd38] sm:$0xff] }
 0x1eb   : > { %3695 = vst [vmem:[%s4917_s20 + $0xbe8] sm:$0xff] %v2671_v61  ;;  %v647_v61 = vld [vmem:[%s4895_s19 + $0xca8] sm:$0xff]  ;;  %v2694_v2 = vadd.f32 %v1670_v59, %v646_v58  ;;  %v1690_v55 = vld [vmem:[%s4902_s7 + $0xd40] sm:$0xff] }
 0x1ec   : > { %3696 = vst [vmem:[%s4917_s20 + $0xbf0] sm:$0xff] %v2672_v0  ;;  %v648_v0 = vld [vmem:[%s4895_s19 + $0xcb0] sm:$0xff]  ;;  %v2695_v5 = vadd.f32 %v1671_v62, %v647_v61  ;;  %v1691_v58 = vld [vmem:[%s4902_s7 + $0xd48] sm:$0xff] }
 0x1ed   : > { %3697 = vst [vmem:[%s4917_s20 + $0xbf8] sm:$0xff] %v2673_v3  ;;  %v649_v3 = vld [vmem:[%s4895_s19 + $0xcb8] sm:$0xff]  ;;  %v2696_v8 = vadd.f32 %v1672_v1, %v648_v0  ;;  %v1692_v61 = vld [vmem:[%s4902_s7 + $0xd50] sm:$0xff] }
 0x1ee   : > { %3698 = vst [vmem:[%s4917_s20 + $0xc00] sm:$0xff] %v2674_v6  ;;  %v650_v6 = vld [vmem:[%s4895_s19 + $0xcc0] sm:$0xff]  ;;  %v2697_v11 = vadd.f32 %v1673_v4, %v649_v3  ;;  %v1693_v0 = vld [vmem:[%s4902_s7 + $0xd58] sm:$0xff] }
 0x1ef   : > { %3699 = vst [vmem:[%s4917_s20 + $0xc08] sm:$0xff] %v2675_v9  ;;  %v651_v9 = vld [vmem:[%s4895_s19 + $0xcc8] sm:$0xff]  ;;  %v2698_v14 = vadd.f32 %v1674_v7, %v650_v6  ;;  %v1694_v3 = vld [vmem:[%s4902_s7 + $0xd60] sm:$0xff] }
 0x1f0   : > { %3700 = vst [vmem:[%s4917_s20 + $0xc10] sm:$0xff] %v2676_v12  ;;  %v652_v12 = vld [vmem:[%s4895_s19 + $0xcd0] sm:$0xff]  ;;  %v2699_v17 = vadd.f32 %v1675_v10, %v651_v9  ;;  %v1695_v6 = vld [vmem:[%s4902_s7 + $0xd68] sm:$0xff] }
 0x1f1   : > { %3701 = vst [vmem:[%s4917_s20 + $0xc18] sm:$0xff] %v2677_v15  ;;  %v653_v15 = vld [vmem:[%s4895_s19 + $0xcd8] sm:$0xff]  ;;  %v2700_v20 = vadd.f32 %v1676_v13, %v652_v12  ;;  %v1696_v9 = vld [vmem:[%s4902_s7 + $0xd70] sm:$0xff] }
 0x1f2   : > { %3702 = vst [vmem:[%s4917_s20 + $0xc20] sm:$0xff] %v2678_v18  ;;  %v654_v18 = vld [vmem:[%s4895_s19 + $0xce0] sm:$0xff]  ;;  %v2701_v23 = vadd.f32 %v1677_v16, %v653_v15  ;;  %v1697_v12 = vld [vmem:[%s4902_s7 + $0xd78] sm:$0xff] }
 0x1f3   : > { %3703 = vst [vmem:[%s4917_s20 + $0xc28] sm:$0xff] %v2679_v21  ;;  %v655_v21 = vld [vmem:[%s4895_s19 + $0xce8] sm:$0xff]  ;;  %v2702_v26 = vadd.f32 %v1678_v19, %v654_v18  ;;  %v1698_v15 = vld [vmem:[%s4902_s7 + $0xd80] sm:$0xff] }
 0x1f4   : > { %3704 = vst [vmem:[%s4917_s20 + $0xc30] sm:$0xff] %v2680_v24  ;;  %v656_v24 = vld [vmem:[%s4895_s19 + $0xcf0] sm:$0xff]  ;;  %v2703_v29 = vadd.f32 %v1679_v22, %v655_v21  ;;  %v1699_v18 = vld [vmem:[%s4902_s7 + $0xd88] sm:$0xff] }
 0x1f5   : > { %3705 = vst [vmem:[%s4917_s20 + $0xc38] sm:$0xff] %v2681_v27  ;;  %v657_v27 = vld [vmem:[%s4895_s19 + $0xcf8] sm:$0xff]  ;;  %v2704_v32 = vadd.f32 %v1680_v25, %v656_v24  ;;  %v1700_v21 = vld [vmem:[%s4902_s7 + $0xd90] sm:$0xff] }
 0x1f6   : > { %3706 = vst [vmem:[%s4917_s20 + $0xc40] sm:$0xff] %v2682_v30  ;;  %v658_v30 = vld [vmem:[%s4895_s19 + $0xd00] sm:$0xff]  ;;  %v2705_v35 = vadd.f32 %v1681_v28, %v657_v27  ;;  %v1701_v24 = vld [vmem:[%s4902_s7 + $0xd98] sm:$0xff] }
 0x1f7   : > { %3707 = vst [vmem:[%s4917_s20 + $0xc48] sm:$0xff] %v2683_v33  ;;  %v659_v33 = vld [vmem:[%s4895_s19 + $0xd08] sm:$0xff]  ;;  %v2706_v38 = vadd.f32 %v1682_v31, %v658_v30  ;;  %v1702_v27 = vld [vmem:[%s4902_s7 + $0xda0] sm:$0xff] }
 0x1f8   : > { %3708 = vst [vmem:[%s4917_s20 + $0xc50] sm:$0xff] %v2684_v36  ;;  %v660_v36 = vld [vmem:[%s4895_s19 + $0xd10] sm:$0xff]  ;;  %v2707_v41 = vadd.f32 %v1683_v34, %v659_v33  ;;  %v1703_v30 = vld [vmem:[%s4902_s7 + $0xda8] sm:$0xff] }
 0x1f9   : > { %3709 = vst [vmem:[%s4917_s20 + $0xc58] sm:$0xff] %v2685_v39  ;;  %v661_v39 = vld [vmem:[%s4895_s19 + $0xd18] sm:$0xff]  ;;  %v2708_v44 = vadd.f32 %v1684_v37, %v660_v36  ;;  %v1704_v33 = vld [vmem:[%s4902_s7 + $0xdb0] sm:$0xff] }
 0x1fa   : > { %3710 = vst [vmem:[%s4917_s20 + $0xc60] sm:$0xff] %v2686_v42  ;;  %v662_v42 = vld [vmem:[%s4895_s19 + $0xd20] sm:$0xff]  ;;  %v2709_v47 = vadd.f32 %v1685_v40, %v661_v39  ;;  %v1705_v36 = vld [vmem:[%s4902_s7 + $0xdb8] sm:$0xff] }
 0x1fb   : > { %3711 = vst [vmem:[%s4917_s20 + $0xc68] sm:$0xff] %v2687_v45  ;;  %v663_v45 = vld [vmem:[%s4895_s19 + $0xd28] sm:$0xff]  ;;  %v2710_v50 = vadd.f32 %v1686_v43, %v662_v42  ;;  %v1706_v39 = vld [vmem:[%s4902_s7 + $0xdc0] sm:$0xff] }
 0x1fc   : > { %3712 = vst [vmem:[%s4917_s20 + $0xc70] sm:$0xff] %v2688_v48  ;;  %v664_v48 = vld [vmem:[%s4895_s19 + $0xd30] sm:$0xff]  ;;  %v2711_v53 = vadd.f32 %v1687_v46, %v663_v45  ;;  %v1707_v42 = vld [vmem:[%s4902_s7 + $0xdc8] sm:$0xff] }
 0x1fd   : > { %3713 = vst [vmem:[%s4917_s20 + $0xc78] sm:$0xff] %v2689_v51  ;;  %v665_v51 = vld [vmem:[%s4895_s19 + $0xd38] sm:$0xff]  ;;  %v2712_v56 = vadd.f32 %v1688_v49, %v664_v48  ;;  %v1708_v45 = vld [vmem:[%s4902_s7 + $0xdd0] sm:$0xff] }
 0x1fe   : > { %3714 = vst [vmem:[%s4917_s20 + $0xc80] sm:$0xff] %v2690_v54  ;;  %v666_v54 = vld [vmem:[%s4895_s19 + $0xd40] sm:$0xff]  ;;  %v2713_v59 = vadd.f32 %v1689_v52, %v665_v51  ;;  %v1709_v48 = vld [vmem:[%s4902_s7 + $0xdd8] sm:$0xff] }
 0x1ff   : > { %3715 = vst [vmem:[%s4917_s20 + $0xc88] sm:$0xff] %v2691_v57  ;;  %v667_v57 = vld [vmem:[%s4895_s19 + $0xd48] sm:$0xff]  ;;  %v2714_v62 = vadd.f32 %v1690_v55, %v666_v54  ;;  %v1710_v51 = vld [vmem:[%s4902_s7 + $0xde0] sm:$0xff] }
 0x200   : > { %3716 = vst [vmem:[%s4917_s20 + $0xc90] sm:$0xff] %v2692_v60  ;;  %v668_v60 = vld [vmem:[%s4895_s19 + $0xd50] sm:$0xff]  ;;  %v2715_v1 = vadd.f32 %v1691_v58, %v667_v57  ;;  %v1711_v54 = vld [vmem:[%s4902_s7 + $0xde8] sm:$0xff] }
 0x201   : > { %3717 = vst [vmem:[%s4917_s20 + $0xc98] sm:$0xff] %v2693_v63  ;;  %v669_v63 = vld [vmem:[%s4895_s19 + $0xd58] sm:$0xff]  ;;  %v2716_v4 = vadd.f32 %v1692_v61, %v668_v60  ;;  %v1712_v57 = vld [vmem:[%s4902_s7 + $0xdf0] sm:$0xff] }
 0x202   : > { %3718 = vst [vmem:[%s4917_s20 + $0xca0] sm:$0xff] %v2694_v2  ;;  %v670_v2 = vld [vmem:[%s4895_s19 + $0xd60] sm:$0xff]  ;;  %v2717_v7 = vadd.f32 %v1693_v0, %v669_v63  ;;  %v1713_v60 = vld [vmem:[%s4902_s7 + $0xdf8] sm:$0xff] }
 0x203   : > { %3719 = vst [vmem:[%s4917_s20 + $0xca8] sm:$0xff] %v2695_v5  ;;  %v671_v5 = vld [vmem:[%s4895_s19 + $0xd68] sm:$0xff]  ;;  %v2718_v10 = vadd.f32 %v1694_v3, %v670_v2  ;;  %v1714_v63 = vld [vmem:[%s4902_s7 + $0xe00] sm:$0xff] }
 0x204   : > { %3720 = vst [vmem:[%s4917_s20 + $0xcb0] sm:$0xff] %v2696_v8  ;;  %v672_v8 = vld [vmem:[%s4895_s19 + $0xd70] sm:$0xff]  ;;  %v2719_v13 = vadd.f32 %v1695_v6, %v671_v5  ;;  %v1715_v2 = vld [vmem:[%s4902_s7 + $0xe08] sm:$0xff] }
 0x205   : > { %3721 = vst [vmem:[%s4917_s20 + $0xcb8] sm:$0xff] %v2697_v11  ;;  %v673_v11 = vld [vmem:[%s4895_s19 + $0xd78] sm:$0xff]  ;;  %v2720_v16 = vadd.f32 %v1696_v9, %v672_v8  ;;  %v1716_v5 = vld [vmem:[%s4902_s7 + $0xe10] sm:$0xff] }
 0x206   : > { %3722 = vst [vmem:[%s4917_s20 + $0xcc0] sm:$0xff] %v2698_v14  ;;  %v674_v14 = vld [vmem:[%s4895_s19 + $0xd80] sm:$0xff]  ;;  %v2721_v19 = vadd.f32 %v1697_v12, %v673_v11  ;;  %v1717_v8 = vld [vmem:[%s4902_s7 + $0xe18] sm:$0xff] }
 0x207   : > { %3723 = vst [vmem:[%s4917_s20 + $0xcc8] sm:$0xff] %v2699_v17  ;;  %v675_v17 = vld [vmem:[%s4895_s19 + $0xd88] sm:$0xff]  ;;  %v2722_v22 = vadd.f32 %v1698_v15, %v674_v14  ;;  %v1718_v11 = vld [vmem:[%s4902_s7 + $0xe20] sm:$0xff] }
 0x208   : > { %3724 = vst [vmem:[%s4917_s20 + $0xcd0] sm:$0xff] %v2700_v20  ;;  %v676_v20 = vld [vmem:[%s4895_s19 + $0xd90] sm:$0xff]  ;;  %v2723_v25 = vadd.f32 %v1699_v18, %v675_v17  ;;  %v1719_v14 = vld [vmem:[%s4902_s7 + $0xe28] sm:$0xff] }
 0x209   : > { %3725 = vst [vmem:[%s4917_s20 + $0xcd8] sm:$0xff] %v2701_v23  ;;  %v677_v23 = vld [vmem:[%s4895_s19 + $0xd98] sm:$0xff]  ;;  %v2724_v28 = vadd.f32 %v1700_v21, %v676_v20  ;;  %v1720_v17 = vld [vmem:[%s4902_s7 + $0xe30] sm:$0xff] }
 0x20a   : > { %3726 = vst [vmem:[%s4917_s20 + $0xce0] sm:$0xff] %v2702_v26  ;;  %v678_v26 = vld [vmem:[%s4895_s19 + $0xda0] sm:$0xff]  ;;  %v2725_v31 = vadd.f32 %v1701_v24, %v677_v23  ;;  %v1721_v20 = vld [vmem:[%s4902_s7 + $0xe38] sm:$0xff] }
 0x20b   : > { %3727 = vst [vmem:[%s4917_s20 + $0xce8] sm:$0xff] %v2703_v29  ;;  %v679_v29 = vld [vmem:[%s4895_s19 + $0xda8] sm:$0xff]  ;;  %v2726_v34 = vadd.f32 %v1702_v27, %v678_v26  ;;  %v1722_v23 = vld [vmem:[%s4902_s7 + $0xe40] sm:$0xff] }
 0x20c   : > { %3728 = vst [vmem:[%s4917_s20 + $0xcf0] sm:$0xff] %v2704_v32  ;;  %v680_v32 = vld [vmem:[%s4895_s19 + $0xdb0] sm:$0xff]  ;;  %v2727_v37 = vadd.f32 %v1703_v30, %v679_v29  ;;  %v1723_v26 = vld [vmem:[%s4902_s7 + $0xe48] sm:$0xff] }
 0x20d   : > { %3729 = vst [vmem:[%s4917_s20 + $0xcf8] sm:$0xff] %v2705_v35  ;;  %v681_v35 = vld [vmem:[%s4895_s19 + $0xdb8] sm:$0xff]  ;;  %v2728_v40 = vadd.f32 %v1704_v33, %v680_v32  ;;  %v1724_v29 = vld [vmem:[%s4902_s7 + $0xe50] sm:$0xff] }
 0x20e   : > { %3730 = vst [vmem:[%s4917_s20 + $0xd00] sm:$0xff] %v2706_v38  ;;  %v682_v38 = vld [vmem:[%s4895_s19 + $0xdc0] sm:$0xff]  ;;  %v2729_v43 = vadd.f32 %v1705_v36, %v681_v35  ;;  %v1725_v32 = vld [vmem:[%s4902_s7 + $0xe58] sm:$0xff] }
 0x20f   : > { %3731 = vst [vmem:[%s4917_s20 + $0xd08] sm:$0xff] %v2707_v41  ;;  %v683_v41 = vld [vmem:[%s4895_s19 + $0xdc8] sm:$0xff]  ;;  %v2730_v46 = vadd.f32 %v1706_v39, %v682_v38  ;;  %v1726_v35 = vld [vmem:[%s4902_s7 + $0xe60] sm:$0xff] }
 0x210   : > { %3732 = vst [vmem:[%s4917_s20 + $0xd10] sm:$0xff] %v2708_v44  ;;  %v684_v44 = vld [vmem:[%s4895_s19 + $0xdd0] sm:$0xff]  ;;  %v2731_v49 = vadd.f32 %v1707_v42, %v683_v41  ;;  %v1727_v38 = vld [vmem:[%s4902_s7 + $0xe68] sm:$0xff] }
 0x211   : > { %3733 = vst [vmem:[%s4917_s20 + $0xd18] sm:$0xff] %v2709_v47  ;;  %v685_v47 = vld [vmem:[%s4895_s19 + $0xdd8] sm:$0xff]  ;;  %v2732_v52 = vadd.f32 %v1708_v45, %v684_v44  ;;  %v1728_v41 = vld [vmem:[%s4902_s7 + $0xe70] sm:$0xff] }
 0x212   : > { %3734 = vst [vmem:[%s4917_s20 + $0xd20] sm:$0xff] %v2710_v50  ;;  %v686_v50 = vld [vmem:[%s4895_s19 + $0xde0] sm:$0xff]  ;;  %v2733_v55 = vadd.f32 %v1709_v48, %v685_v47  ;;  %v1729_v44 = vld [vmem:[%s4902_s7 + $0xe78] sm:$0xff] }
 0x213   : > { %3735 = vst [vmem:[%s4917_s20 + $0xd28] sm:$0xff] %v2711_v53  ;;  %v687_v53 = vld [vmem:[%s4895_s19 + $0xde8] sm:$0xff]  ;;  %v2734_v58 = vadd.f32 %v1710_v51, %v686_v50  ;;  %v1730_v47 = vld [vmem:[%s4902_s7 + $0xe80] sm:$0xff] }
 0x214   : > { %3736 = vst [vmem:[%s4917_s20 + $0xd30] sm:$0xff] %v2712_v56  ;;  %v688_v56 = vld [vmem:[%s4895_s19 + $0xdf0] sm:$0xff]  ;;  %v2735_v61 = vadd.f32 %v1711_v54, %v687_v53  ;;  %v1731_v50 = vld [vmem:[%s4902_s7 + $0xe88] sm:$0xff] }
 0x215   : > { %3737 = vst [vmem:[%s4917_s20 + $0xd38] sm:$0xff] %v2713_v59  ;;  %v689_v59 = vld [vmem:[%s4895_s19 + $0xdf8] sm:$0xff]  ;;  %v2736_v0 = vadd.f32 %v1712_v57, %v688_v56  ;;  %v1732_v53 = vld [vmem:[%s4902_s7 + $0xe90] sm:$0xff] }
 0x216   : > { %3738 = vst [vmem:[%s4917_s20 + $0xd40] sm:$0xff] %v2714_v62  ;;  %v690_v62 = vld [vmem:[%s4895_s19 + $0xe00] sm:$0xff]  ;;  %v2737_v3 = vadd.f32 %v1713_v60, %v689_v59  ;;  %v1733_v56 = vld [vmem:[%s4902_s7 + $0xe98] sm:$0xff] }
 0x217   : > { %3739 = vst [vmem:[%s4917_s20 + $0xd48] sm:$0xff] %v2715_v1  ;;  %v691_v1 = vld [vmem:[%s4895_s19 + $0xe08] sm:$0xff]  ;;  %v2738_v6 = vadd.f32 %v1714_v63, %v690_v62  ;;  %v1734_v59 = vld [vmem:[%s4902_s7 + $0xea0] sm:$0xff] }
 0x218   : > { %3740 = vst [vmem:[%s4917_s20 + $0xd50] sm:$0xff] %v2716_v4  ;;  %v692_v4 = vld [vmem:[%s4895_s19 + $0xe10] sm:$0xff]  ;;  %v2739_v9 = vadd.f32 %v1715_v2, %v691_v1  ;;  %v1735_v62 = vld [vmem:[%s4902_s7 + $0xea8] sm:$0xff] }
 0x219   : > { %3741 = vst [vmem:[%s4917_s20 + $0xd58] sm:$0xff] %v2717_v7  ;;  %v693_v7 = vld [vmem:[%s4895_s19 + $0xe18] sm:$0xff]  ;;  %v2740_v12 = vadd.f32 %v1716_v5, %v692_v4  ;;  %v1736_v1 = vld [vmem:[%s4902_s7 + $0xeb0] sm:$0xff] }
 0x21a   : > { %3742 = vst [vmem:[%s4917_s20 + $0xd60] sm:$0xff] %v2718_v10  ;;  %v694_v10 = vld [vmem:[%s4895_s19 + $0xe20] sm:$0xff]  ;;  %v2741_v15 = vadd.f32 %v1717_v8, %v693_v7  ;;  %v1737_v4 = vld [vmem:[%s4902_s7 + $0xeb8] sm:$0xff] }
 0x21b   : > { %3743 = vst [vmem:[%s4917_s20 + $0xd68] sm:$0xff] %v2719_v13  ;;  %v695_v13 = vld [vmem:[%s4895_s19 + $0xe28] sm:$0xff]  ;;  %v2742_v18 = vadd.f32 %v1718_v11, %v694_v10  ;;  %v1738_v7 = vld [vmem:[%s4902_s7 + $0xec0] sm:$0xff] }
 0x21c   : > { %3744 = vst [vmem:[%s4917_s20 + $0xd70] sm:$0xff] %v2720_v16  ;;  %v696_v16 = vld [vmem:[%s4895_s19 + $0xe30] sm:$0xff]  ;;  %v2743_v21 = vadd.f32 %v1719_v14, %v695_v13  ;;  %v1739_v10 = vld [vmem:[%s4902_s7 + $0xec8] sm:$0xff] }
 0x21d   : > { %3745 = vst [vmem:[%s4917_s20 + $0xd78] sm:$0xff] %v2721_v19  ;;  %v697_v19 = vld [vmem:[%s4895_s19 + $0xe38] sm:$0xff]  ;;  %v2744_v24 = vadd.f32 %v1720_v17, %v696_v16  ;;  %v1740_v13 = vld [vmem:[%s4902_s7 + $0xed0] sm:$0xff] }
 0x21e   : > { %3746 = vst [vmem:[%s4917_s20 + $0xd80] sm:$0xff] %v2722_v22  ;;  %v698_v22 = vld [vmem:[%s4895_s19 + $0xe40] sm:$0xff]  ;;  %v2745_v27 = vadd.f32 %v1721_v20, %v697_v19  ;;  %v1741_v16 = vld [vmem:[%s4902_s7 + $0xed8] sm:$0xff] }
 0x21f   : > { %3747 = vst [vmem:[%s4917_s20 + $0xd88] sm:$0xff] %v2723_v25  ;;  %v699_v25 = vld [vmem:[%s4895_s19 + $0xe48] sm:$0xff]  ;;  %v2746_v30 = vadd.f32 %v1722_v23, %v698_v22  ;;  %v1742_v19 = vld [vmem:[%s4902_s7 + $0xee0] sm:$0xff] }
 0x220   : > { %3748 = vst [vmem:[%s4917_s20 + $0xd90] sm:$0xff] %v2724_v28  ;;  %v700_v28 = vld [vmem:[%s4895_s19 + $0xe50] sm:$0xff]  ;;  %v2747_v33 = vadd.f32 %v1723_v26, %v699_v25  ;;  %v1743_v22 = vld [vmem:[%s4902_s7 + $0xee8] sm:$0xff] }
 0x221   : > { %3749 = vst [vmem:[%s4917_s20 + $0xd98] sm:$0xff] %v2725_v31  ;;  %v701_v31 = vld [vmem:[%s4895_s19 + $0xe58] sm:$0xff]  ;;  %v2748_v36 = vadd.f32 %v1724_v29, %v700_v28  ;;  %v1744_v25 = vld [vmem:[%s4902_s7 + $0xef0] sm:$0xff] }
 0x222   : > { %3750 = vst [vmem:[%s4917_s20 + $0xda0] sm:$0xff] %v2726_v34  ;;  %v702_v34 = vld [vmem:[%s4895_s19 + $0xe60] sm:$0xff]  ;;  %v2749_v39 = vadd.f32 %v1725_v32, %v701_v31  ;;  %v1745_v28 = vld [vmem:[%s4902_s7 + $0xef8] sm:$0xff] }
 0x223   : > { %3751 = vst [vmem:[%s4917_s20 + $0xda8] sm:$0xff] %v2727_v37  ;;  %v703_v37 = vld [vmem:[%s4895_s19 + $0xe68] sm:$0xff]  ;;  %v2750_v42 = vadd.f32 %v1726_v35, %v702_v34  ;;  %v1746_v31 = vld [vmem:[%s4902_s7 + $0xf00] sm:$0xff] }
 0x224   : > { %3752 = vst [vmem:[%s4917_s20 + $0xdb0] sm:$0xff] %v2728_v40  ;;  %v704_v40 = vld [vmem:[%s4895_s19 + $0xe70] sm:$0xff]  ;;  %v2751_v45 = vadd.f32 %v1727_v38, %v703_v37  ;;  %v1747_v34 = vld [vmem:[%s4902_s7 + $0xf08] sm:$0xff] }
 0x225   : > { %3753 = vst [vmem:[%s4917_s20 + $0xdb8] sm:$0xff] %v2729_v43  ;;  %v705_v43 = vld [vmem:[%s4895_s19 + $0xe78] sm:$0xff]  ;;  %v2752_v48 = vadd.f32 %v1728_v41, %v704_v40  ;;  %v1748_v37 = vld [vmem:[%s4902_s7 + $0xf10] sm:$0xff] }
 0x226   : > { %3754 = vst [vmem:[%s4917_s20 + $0xdc0] sm:$0xff] %v2730_v46  ;;  %v706_v46 = vld [vmem:[%s4895_s19 + $0xe80] sm:$0xff]  ;;  %v2753_v51 = vadd.f32 %v1729_v44, %v705_v43  ;;  %v1749_v40 = vld [vmem:[%s4902_s7 + $0xf18] sm:$0xff] }
 0x227   : > { %3755 = vst [vmem:[%s4917_s20 + $0xdc8] sm:$0xff] %v2731_v49  ;;  %v707_v49 = vld [vmem:[%s4895_s19 + $0xe88] sm:$0xff]  ;;  %v2754_v54 = vadd.f32 %v1730_v47, %v706_v46  ;;  %v1750_v43 = vld [vmem:[%s4902_s7 + $0xf20] sm:$0xff] }
 0x228   : > { %3756 = vst [vmem:[%s4917_s20 + $0xdd0] sm:$0xff] %v2732_v52  ;;  %v708_v52 = vld [vmem:[%s4895_s19 + $0xe90] sm:$0xff]  ;;  %v2755_v57 = vadd.f32 %v1731_v50, %v707_v49  ;;  %v1751_v46 = vld [vmem:[%s4902_s7 + $0xf28] sm:$0xff] }
 0x229   : > { %3757 = vst [vmem:[%s4917_s20 + $0xdd8] sm:$0xff] %v2733_v55  ;;  %v709_v55 = vld [vmem:[%s4895_s19 + $0xe98] sm:$0xff]  ;;  %v2756_v60 = vadd.f32 %v1732_v53, %v708_v52  ;;  %v1752_v49 = vld [vmem:[%s4902_s7 + $0xf30] sm:$0xff] }
 0x22a   : > { %3758 = vst [vmem:[%s4917_s20 + $0xde0] sm:$0xff] %v2734_v58  ;;  %v710_v58 = vld [vmem:[%s4895_s19 + $0xea0] sm:$0xff]  ;;  %v2757_v63 = vadd.f32 %v1733_v56, %v709_v55  ;;  %v1753_v52 = vld [vmem:[%s4902_s7 + $0xf38] sm:$0xff] }
 0x22b   : > { %3759 = vst [vmem:[%s4917_s20 + $0xde8] sm:$0xff] %v2735_v61  ;;  %v711_v61 = vld [vmem:[%s4895_s19 + $0xea8] sm:$0xff]  ;;  %v2758_v2 = vadd.f32 %v1734_v59, %v710_v58  ;;  %v1754_v55 = vld [vmem:[%s4902_s7 + $0xf40] sm:$0xff] }
 0x22c   : > { %3760 = vst [vmem:[%s4917_s20 + $0xdf0] sm:$0xff] %v2736_v0  ;;  %v712_v0 = vld [vmem:[%s4895_s19 + $0xeb0] sm:$0xff]  ;;  %v2759_v5 = vadd.f32 %v1735_v62, %v711_v61  ;;  %v1755_v58 = vld [vmem:[%s4902_s7 + $0xf48] sm:$0xff] }
 0x22d   : > { %3761 = vst [vmem:[%s4917_s20 + $0xdf8] sm:$0xff] %v2737_v3  ;;  %v713_v3 = vld [vmem:[%s4895_s19 + $0xeb8] sm:$0xff]  ;;  %v2760_v8 = vadd.f32 %v1736_v1, %v712_v0  ;;  %v1756_v61 = vld [vmem:[%s4902_s7 + $0xf50] sm:$0xff] }
 0x22e   : > { %3762 = vst [vmem:[%s4917_s20 + $0xe00] sm:$0xff] %v2738_v6  ;;  %v714_v6 = vld [vmem:[%s4895_s19 + $0xec0] sm:$0xff]  ;;  %v2761_v11 = vadd.f32 %v1737_v4, %v713_v3  ;;  %v1757_v0 = vld [vmem:[%s4902_s7 + $0xf58] sm:$0xff] }
 0x22f   : > { %3763 = vst [vmem:[%s4917_s20 + $0xe08] sm:$0xff] %v2739_v9  ;;  %v715_v9 = vld [vmem:[%s4895_s19 + $0xec8] sm:$0xff]  ;;  %v2762_v14 = vadd.f32 %v1738_v7, %v714_v6  ;;  %v1758_v3 = vld [vmem:[%s4902_s7 + $0xf60] sm:$0xff] }
 0x230   : > { %3764 = vst [vmem:[%s4917_s20 + $0xe10] sm:$0xff] %v2740_v12  ;;  %v716_v12 = vld [vmem:[%s4895_s19 + $0xed0] sm:$0xff]  ;;  %v2763_v17 = vadd.f32 %v1739_v10, %v715_v9  ;;  %v1759_v6 = vld [vmem:[%s4902_s7 + $0xf68] sm:$0xff] }
 0x231   : > { %3765 = vst [vmem:[%s4917_s20 + $0xe18] sm:$0xff] %v2741_v15  ;;  %v717_v15 = vld [vmem:[%s4895_s19 + $0xed8] sm:$0xff]  ;;  %v2764_v20 = vadd.f32 %v1740_v13, %v716_v12  ;;  %v1760_v9 = vld [vmem:[%s4902_s7 + $0xf70] sm:$0xff] }
 0x232   : > { %3766 = vst [vmem:[%s4917_s20 + $0xe20] sm:$0xff] %v2742_v18  ;;  %v718_v18 = vld [vmem:[%s4895_s19 + $0xee0] sm:$0xff]  ;;  %v2765_v23 = vadd.f32 %v1741_v16, %v717_v15  ;;  %v1761_v12 = vld [vmem:[%s4902_s7 + $0xf78] sm:$0xff] }
 0x233   : > { %3767 = vst [vmem:[%s4917_s20 + $0xe28] sm:$0xff] %v2743_v21  ;;  %v719_v21 = vld [vmem:[%s4895_s19 + $0xee8] sm:$0xff]  ;;  %v2766_v26 = vadd.f32 %v1742_v19, %v718_v18  ;;  %v1762_v15 = vld [vmem:[%s4902_s7 + $0xf80] sm:$0xff] }
 0x234   : > { %3768 = vst [vmem:[%s4917_s20 + $0xe30] sm:$0xff] %v2744_v24  ;;  %v720_v24 = vld [vmem:[%s4895_s19 + $0xef0] sm:$0xff]  ;;  %v2767_v29 = vadd.f32 %v1743_v22, %v719_v21  ;;  %v1763_v18 = vld [vmem:[%s4902_s7 + $0xf88] sm:$0xff] }
 0x235   : > { %3769 = vst [vmem:[%s4917_s20 + $0xe38] sm:$0xff] %v2745_v27  ;;  %v721_v27 = vld [vmem:[%s4895_s19 + $0xef8] sm:$0xff]  ;;  %v2768_v32 = vadd.f32 %v1744_v25, %v720_v24  ;;  %v1764_v21 = vld [vmem:[%s4902_s7 + $0xf90] sm:$0xff] }
 0x236   : > { %3770 = vst [vmem:[%s4917_s20 + $0xe40] sm:$0xff] %v2746_v30  ;;  %v722_v30 = vld [vmem:[%s4895_s19 + $0xf00] sm:$0xff]  ;;  %v2769_v35 = vadd.f32 %v1745_v28, %v721_v27  ;;  %v1765_v24 = vld [vmem:[%s4902_s7 + $0xf98] sm:$0xff] }
 0x237   : > { %3771 = vst [vmem:[%s4917_s20 + $0xe48] sm:$0xff] %v2747_v33  ;;  %v723_v33 = vld [vmem:[%s4895_s19 + $0xf08] sm:$0xff]  ;;  %v2770_v38 = vadd.f32 %v1746_v31, %v722_v30  ;;  %v1766_v27 = vld [vmem:[%s4902_s7 + $0xfa0] sm:$0xff] }
 0x238   : > { %3772 = vst [vmem:[%s4917_s20 + $0xe50] sm:$0xff] %v2748_v36  ;;  %v724_v36 = vld [vmem:[%s4895_s19 + $0xf10] sm:$0xff]  ;;  %v2771_v41 = vadd.f32 %v1747_v34, %v723_v33  ;;  %v1767_v30 = vld [vmem:[%s4902_s7 + $0xfa8] sm:$0xff] }
 0x239   : > { %3773 = vst [vmem:[%s4917_s20 + $0xe58] sm:$0xff] %v2749_v39  ;;  %v725_v39 = vld [vmem:[%s4895_s19 + $0xf18] sm:$0xff]  ;;  %v2772_v44 = vadd.f32 %v1748_v37, %v724_v36  ;;  %v1768_v33 = vld [vmem:[%s4902_s7 + $0xfb0] sm:$0xff] }
 0x23a   : > { %3774 = vst [vmem:[%s4917_s20 + $0xe60] sm:$0xff] %v2750_v42  ;;  %v726_v42 = vld [vmem:[%s4895_s19 + $0xf20] sm:$0xff]  ;;  %v2773_v47 = vadd.f32 %v1749_v40, %v725_v39  ;;  %v1769_v36 = vld [vmem:[%s4902_s7 + $0xfb8] sm:$0xff] }
 0x23b   : > { %3775 = vst [vmem:[%s4917_s20 + $0xe68] sm:$0xff] %v2751_v45  ;;  %v727_v45 = vld [vmem:[%s4895_s19 + $0xf28] sm:$0xff]  ;;  %v2774_v50 = vadd.f32 %v1750_v43, %v726_v42  ;;  %v1770_v39 = vld [vmem:[%s4902_s7 + $0xfc0] sm:$0xff] }
 0x23c   : > { %3776 = vst [vmem:[%s4917_s20 + $0xe70] sm:$0xff] %v2752_v48  ;;  %v728_v48 = vld [vmem:[%s4895_s19 + $0xf30] sm:$0xff]  ;;  %v2775_v53 = vadd.f32 %v1751_v46, %v727_v45  ;;  %v1771_v42 = vld [vmem:[%s4902_s7 + $0xfc8] sm:$0xff] }
 0x23d   : > { %3777 = vst [vmem:[%s4917_s20 + $0xe78] sm:$0xff] %v2753_v51  ;;  %v729_v51 = vld [vmem:[%s4895_s19 + $0xf38] sm:$0xff]  ;;  %v2776_v56 = vadd.f32 %v1752_v49, %v728_v48  ;;  %v1772_v45 = vld [vmem:[%s4902_s7 + $0xfd0] sm:$0xff] }
 0x23e   : > { %3778 = vst [vmem:[%s4917_s20 + $0xe80] sm:$0xff] %v2754_v54  ;;  %v730_v54 = vld [vmem:[%s4895_s19 + $0xf40] sm:$0xff]  ;;  %v2777_v59 = vadd.f32 %v1753_v52, %v729_v51  ;;  %v1773_v48 = vld [vmem:[%s4902_s7 + $0xfd8] sm:$0xff] }
 0x23f   : > { %3779 = vst [vmem:[%s4917_s20 + $0xe88] sm:$0xff] %v2755_v57  ;;  %v731_v57 = vld [vmem:[%s4895_s19 + $0xf48] sm:$0xff]  ;;  %v2778_v62 = vadd.f32 %v1754_v55, %v730_v54  ;;  %v1774_v51 = vld [vmem:[%s4902_s7 + $0xfe0] sm:$0xff] }
 0x240   : > { %3780 = vst [vmem:[%s4917_s20 + $0xe90] sm:$0xff] %v2756_v60  ;;  %v732_v60 = vld [vmem:[%s4895_s19 + $0xf50] sm:$0xff]  ;;  %v2779_v1 = vadd.f32 %v1755_v58, %v731_v57  ;;  %v1775_v54 = vld [vmem:[%s4902_s7 + $0xfe8] sm:$0xff] }
 0x241   : > { %3781 = vst [vmem:[%s4917_s20 + $0xe98] sm:$0xff] %v2757_v63  ;;  %v733_v63 = vld [vmem:[%s4895_s19 + $0xf58] sm:$0xff]  ;;  %v2780_v4 = vadd.f32 %v1756_v61, %v732_v60  ;;  %v1776_v57 = vld [vmem:[%s4902_s7 + $0xff0] sm:$0xff] }
 0x242   : > { %3782 = vst [vmem:[%s4917_s20 + $0xea0] sm:$0xff] %v2758_v2  ;;  %v734_v2 = vld [vmem:[%s4895_s19 + $0xf60] sm:$0xff]  ;;  %v2781_v7 = vadd.f32 %v1757_v0, %v733_v63  ;;  %v1777_v60 = vld [vmem:[%s4902_s7 + $0xff8] sm:$0xff] }
 0x243   : > { %3783 = vst [vmem:[%s4917_s20 + $0xea8] sm:$0xff] %v2759_v5  ;;  %v735_v5 = vld [vmem:[%s4895_s19 + $0xf68] sm:$0xff]  ;;  %v2782_v10 = vadd.f32 %v1758_v3, %v734_v2  ;;  %v1778_v63 = vld [vmem:[%s4902_s7 + $0x1000] sm:$0xff] }
 0x244   : > { %3784 = vst [vmem:[%s4917_s20 + $0xeb0] sm:$0xff] %v2760_v8  ;;  %v736_v8 = vld [vmem:[%s4895_s19 + $0xf70] sm:$0xff]  ;;  %v2783_v13 = vadd.f32 %v1759_v6, %v735_v5  ;;  %v1779_v2 = vld [vmem:[%s4902_s7 + $0x1008] sm:$0xff] }
 0x245   : > { %3785 = vst [vmem:[%s4917_s20 + $0xeb8] sm:$0xff] %v2761_v11  ;;  %v737_v11 = vld [vmem:[%s4895_s19 + $0xf78] sm:$0xff]  ;;  %v2784_v16 = vadd.f32 %v1760_v9, %v736_v8  ;;  %v1780_v5 = vld [vmem:[%s4902_s7 + $0x1010] sm:$0xff] }
 0x246   : > { %3786 = vst [vmem:[%s4917_s20 + $0xec0] sm:$0xff] %v2762_v14  ;;  %v738_v14 = vld [vmem:[%s4895_s19 + $0xf80] sm:$0xff]  ;;  %v2785_v19 = vadd.f32 %v1761_v12, %v737_v11  ;;  %v1781_v8 = vld [vmem:[%s4902_s7 + $0x1018] sm:$0xff] }
 0x247   : > { %3787 = vst [vmem:[%s4917_s20 + $0xec8] sm:$0xff] %v2763_v17  ;;  %v739_v17 = vld [vmem:[%s4895_s19 + $0xf88] sm:$0xff]  ;;  %v2786_v22 = vadd.f32 %v1762_v15, %v738_v14  ;;  %v1782_v11 = vld [vmem:[%s4902_s7 + $0x1020] sm:$0xff] }
 0x248   : > { %3788 = vst [vmem:[%s4917_s20 + $0xed0] sm:$0xff] %v2764_v20  ;;  %v740_v20 = vld [vmem:[%s4895_s19 + $0xf90] sm:$0xff]  ;;  %v2787_v25 = vadd.f32 %v1763_v18, %v739_v17  ;;  %v1783_v14 = vld [vmem:[%s4902_s7 + $0x1028] sm:$0xff] }
 0x249   : > { %3789 = vst [vmem:[%s4917_s20 + $0xed8] sm:$0xff] %v2765_v23  ;;  %v741_v23 = vld [vmem:[%s4895_s19 + $0xf98] sm:$0xff]  ;;  %v2788_v28 = vadd.f32 %v1764_v21, %v740_v20  ;;  %v1784_v17 = vld [vmem:[%s4902_s7 + $0x1030] sm:$0xff] }
 0x24a   : > { %3790 = vst [vmem:[%s4917_s20 + $0xee0] sm:$0xff] %v2766_v26  ;;  %v742_v26 = vld [vmem:[%s4895_s19 + $0xfa0] sm:$0xff]  ;;  %v2789_v31 = vadd.f32 %v1765_v24, %v741_v23  ;;  %v1785_v20 = vld [vmem:[%s4902_s7 + $0x1038] sm:$0xff] }
 0x24b   : > { %3791 = vst [vmem:[%s4917_s20 + $0xee8] sm:$0xff] %v2767_v29  ;;  %v743_v29 = vld [vmem:[%s4895_s19 + $0xfa8] sm:$0xff]  ;;  %v2790_v34 = vadd.f32 %v1766_v27, %v742_v26  ;;  %v1786_v23 = vld [vmem:[%s4902_s7 + $0x1040] sm:$0xff] }
 0x24c   : > { %3792 = vst [vmem:[%s4917_s20 + $0xef0] sm:$0xff] %v2768_v32  ;;  %v744_v32 = vld [vmem:[%s4895_s19 + $0xfb0] sm:$0xff]  ;;  %v2791_v37 = vadd.f32 %v1767_v30, %v743_v29  ;;  %v1787_v26 = vld [vmem:[%s4902_s7 + $0x1048] sm:$0xff] }
 0x24d   : > { %3793 = vst [vmem:[%s4917_s20 + $0xef8] sm:$0xff] %v2769_v35  ;;  %v745_v35 = vld [vmem:[%s4895_s19 + $0xfb8] sm:$0xff]  ;;  %v2792_v40 = vadd.f32 %v1768_v33, %v744_v32  ;;  %v1788_v29 = vld [vmem:[%s4902_s7 + $0x1050] sm:$0xff] }
 0x24e   : > { %3794 = vst [vmem:[%s4917_s20 + $0xf00] sm:$0xff] %v2770_v38  ;;  %v746_v38 = vld [vmem:[%s4895_s19 + $0xfc0] sm:$0xff]  ;;  %v2793_v43 = vadd.f32 %v1769_v36, %v745_v35  ;;  %v1789_v32 = vld [vmem:[%s4902_s7 + $0x1058] sm:$0xff] }
 0x24f   : > { %3795 = vst [vmem:[%s4917_s20 + $0xf08] sm:$0xff] %v2771_v41  ;;  %v747_v41 = vld [vmem:[%s4895_s19 + $0xfc8] sm:$0xff]  ;;  %v2794_v46 = vadd.f32 %v1770_v39, %v746_v38  ;;  %v1790_v35 = vld [vmem:[%s4902_s7 + $0x1060] sm:$0xff] }
 0x250   : > { %3796 = vst [vmem:[%s4917_s20 + $0xf10] sm:$0xff] %v2772_v44  ;;  %v748_v44 = vld [vmem:[%s4895_s19 + $0xfd0] sm:$0xff]  ;;  %v2795_v49 = vadd.f32 %v1771_v42, %v747_v41  ;;  %v1791_v38 = vld [vmem:[%s4902_s7 + $0x1068] sm:$0xff] }
 0x251   : > { %3797 = vst [vmem:[%s4917_s20 + $0xf18] sm:$0xff] %v2773_v47  ;;  %v749_v47 = vld [vmem:[%s4895_s19 + $0xfd8] sm:$0xff]  ;;  %v2796_v52 = vadd.f32 %v1772_v45, %v748_v44  ;;  %v1792_v41 = vld [vmem:[%s4902_s7 + $0x1070] sm:$0xff] }
 0x252   : > { %3798 = vst [vmem:[%s4917_s20 + $0xf20] sm:$0xff] %v2774_v50  ;;  %v750_v50 = vld [vmem:[%s4895_s19 + $0xfe0] sm:$0xff]  ;;  %v2797_v55 = vadd.f32 %v1773_v48, %v749_v47  ;;  %v1793_v44 = vld [vmem:[%s4902_s7 + $0x1078] sm:$0xff] }
 0x253   : > { %3799 = vst [vmem:[%s4917_s20 + $0xf28] sm:$0xff] %v2775_v53  ;;  %v751_v53 = vld [vmem:[%s4895_s19 + $0xfe8] sm:$0xff]  ;;  %v2798_v58 = vadd.f32 %v1774_v51, %v750_v50  ;;  %v1794_v47 = vld [vmem:[%s4902_s7 + $0x1080] sm:$0xff] }
 0x254   : > { %3800 = vst [vmem:[%s4917_s20 + $0xf30] sm:$0xff] %v2776_v56  ;;  %v752_v56 = vld [vmem:[%s4895_s19 + $0xff0] sm:$0xff]  ;;  %v2799_v61 = vadd.f32 %v1775_v54, %v751_v53  ;;  %v1795_v50 = vld [vmem:[%s4902_s7 + $0x1088] sm:$0xff] }
 0x255   : > { %3801 = vst [vmem:[%s4917_s20 + $0xf38] sm:$0xff] %v2777_v59  ;;  %v753_v59 = vld [vmem:[%s4895_s19 + $0xff8] sm:$0xff]  ;;  %v2800_v0 = vadd.f32 %v1776_v57, %v752_v56  ;;  %v1796_v53 = vld [vmem:[%s4902_s7 + $0x1090] sm:$0xff] }
 0x256   : > { %3802 = vst [vmem:[%s4917_s20 + $0xf40] sm:$0xff] %v2778_v62  ;;  %v754_v62 = vld [vmem:[%s4895_s19 + $0x1000] sm:$0xff]  ;;  %v2801_v3 = vadd.f32 %v1777_v60, %v753_v59  ;;  %v1797_v56 = vld [vmem:[%s4902_s7 + $0x1098] sm:$0xff] }
 0x257   : > { %3803 = vst [vmem:[%s4917_s20 + $0xf48] sm:$0xff] %v2779_v1  ;;  %v755_v1 = vld [vmem:[%s4895_s19 + $0x1008] sm:$0xff]  ;;  %v2802_v6 = vadd.f32 %v1778_v63, %v754_v62  ;;  %v1798_v59 = vld [vmem:[%s4902_s7 + $0x10a0] sm:$0xff] }
 0x258   : > { %3804 = vst [vmem:[%s4917_s20 + $0xf50] sm:$0xff] %v2780_v4  ;;  %v756_v4 = vld [vmem:[%s4895_s19 + $0x1010] sm:$0xff]  ;;  %v2803_v9 = vadd.f32 %v1779_v2, %v755_v1  ;;  %v1799_v62 = vld [vmem:[%s4902_s7 + $0x10a8] sm:$0xff] }
 0x259   : > { %3805 = vst [vmem:[%s4917_s20 + $0xf58] sm:$0xff] %v2781_v7  ;;  %v757_v7 = vld [vmem:[%s4895_s19 + $0x1018] sm:$0xff]  ;;  %v2804_v12 = vadd.f32 %v1780_v5, %v756_v4  ;;  %v1800_v1 = vld [vmem:[%s4902_s7 + $0x10b0] sm:$0xff] }
 0x25a   : > { %3806 = vst [vmem:[%s4917_s20 + $0xf60] sm:$0xff] %v2782_v10  ;;  %v758_v10 = vld [vmem:[%s4895_s19 + $0x1020] sm:$0xff]  ;;  %v2805_v15 = vadd.f32 %v1781_v8, %v757_v7  ;;  %v1801_v4 = vld [vmem:[%s4902_s7 + $0x10b8] sm:$0xff] }
 0x25b   : > { %3807 = vst [vmem:[%s4917_s20 + $0xf68] sm:$0xff] %v2783_v13  ;;  %v759_v13 = vld [vmem:[%s4895_s19 + $0x1028] sm:$0xff]  ;;  %v2806_v18 = vadd.f32 %v1782_v11, %v758_v10  ;;  %v1802_v7 = vld [vmem:[%s4902_s7 + $0x10c0] sm:$0xff] }
 0x25c   : > { %3808 = vst [vmem:[%s4917_s20 + $0xf70] sm:$0xff] %v2784_v16  ;;  %v760_v16 = vld [vmem:[%s4895_s19 + $0x1030] sm:$0xff]  ;;  %v2807_v21 = vadd.f32 %v1783_v14, %v759_v13  ;;  %v1803_v10 = vld [vmem:[%s4902_s7 + $0x10c8] sm:$0xff] }
 0x25d   : > { %3809 = vst [vmem:[%s4917_s20 + $0xf78] sm:$0xff] %v2785_v19  ;;  %v761_v19 = vld [vmem:[%s4895_s19 + $0x1038] sm:$0xff]  ;;  %v2808_v24 = vadd.f32 %v1784_v17, %v760_v16  ;;  %v1804_v13 = vld [vmem:[%s4902_s7 + $0x10d0] sm:$0xff] }
 0x25e   : > { %3810 = vst [vmem:[%s4917_s20 + $0xf80] sm:$0xff] %v2786_v22  ;;  %v762_v22 = vld [vmem:[%s4895_s19 + $0x1040] sm:$0xff]  ;;  %v2809_v27 = vadd.f32 %v1785_v20, %v761_v19  ;;  %v1805_v16 = vld [vmem:[%s4902_s7 + $0x10d8] sm:$0xff] }
 0x25f   : > { %3811 = vst [vmem:[%s4917_s20 + $0xf88] sm:$0xff] %v2787_v25  ;;  %v763_v25 = vld [vmem:[%s4895_s19 + $0x1048] sm:$0xff]  ;;  %v2810_v30 = vadd.f32 %v1786_v23, %v762_v22  ;;  %v1806_v19 = vld [vmem:[%s4902_s7 + $0x10e0] sm:$0xff] }
 0x260   : > { %3812 = vst [vmem:[%s4917_s20 + $0xf90] sm:$0xff] %v2788_v28  ;;  %v764_v28 = vld [vmem:[%s4895_s19 + $0x1050] sm:$0xff]  ;;  %v2811_v33 = vadd.f32 %v1787_v26, %v763_v25  ;;  %v1807_v22 = vld [vmem:[%s4902_s7 + $0x10e8] sm:$0xff] }
 0x261   : > { %3813 = vst [vmem:[%s4917_s20 + $0xf98] sm:$0xff] %v2789_v31  ;;  %v765_v31 = vld [vmem:[%s4895_s19 + $0x1058] sm:$0xff]  ;;  %v2812_v36 = vadd.f32 %v1788_v29, %v764_v28  ;;  %v1808_v25 = vld [vmem:[%s4902_s7 + $0x10f0] sm:$0xff] }
 0x262   : > { %3814 = vst [vmem:[%s4917_s20 + $0xfa0] sm:$0xff] %v2790_v34  ;;  %v766_v34 = vld [vmem:[%s4895_s19 + $0x1060] sm:$0xff]  ;;  %v2813_v39 = vadd.f32 %v1789_v32, %v765_v31  ;;  %v1809_v28 = vld [vmem:[%s4902_s7 + $0x10f8] sm:$0xff] }
 0x263   : > { %3815 = vst [vmem:[%s4917_s20 + $0xfa8] sm:$0xff] %v2791_v37  ;;  %v767_v37 = vld [vmem:[%s4895_s19 + $0x1068] sm:$0xff]  ;;  %v2814_v42 = vadd.f32 %v1790_v35, %v766_v34  ;;  %v1810_v31 = vld [vmem:[%s4902_s7 + $0x1100] sm:$0xff] }
 0x264   : > { %3816 = vst [vmem:[%s4917_s20 + $0xfb0] sm:$0xff] %v2792_v40  ;;  %v768_v40 = vld [vmem:[%s4895_s19 + $0x1070] sm:$0xff]  ;;  %v2815_v45 = vadd.f32 %v1791_v38, %v767_v37  ;;  %v1811_v34 = vld [vmem:[%s4902_s7 + $0x1108] sm:$0xff] }
 0x265   : > { %3817 = vst [vmem:[%s4917_s20 + $0xfb8] sm:$0xff] %v2793_v43  ;;  %v769_v43 = vld [vmem:[%s4895_s19 + $0x1078] sm:$0xff]  ;;  %v2816_v48 = vadd.f32 %v1792_v41, %v768_v40  ;;  %v1812_v37 = vld [vmem:[%s4902_s7 + $0x1110] sm:$0xff] }
 0x266   : > { %3818 = vst [vmem:[%s4917_s20 + $0xfc0] sm:$0xff] %v2794_v46  ;;  %v770_v46 = vld [vmem:[%s4895_s19 + $0x1080] sm:$0xff]  ;;  %v2817_v51 = vadd.f32 %v1793_v44, %v769_v43  ;;  %v1813_v40 = vld [vmem:[%s4902_s7 + $0x1118] sm:$0xff] }
 0x267   : > { %3819 = vst [vmem:[%s4917_s20 + $0xfc8] sm:$0xff] %v2795_v49  ;;  %v771_v49 = vld [vmem:[%s4895_s19 + $0x1088] sm:$0xff]  ;;  %v2818_v54 = vadd.f32 %v1794_v47, %v770_v46  ;;  %v1814_v43 = vld [vmem:[%s4902_s7 + $0x1120] sm:$0xff] }
 0x268   : > { %3820 = vst [vmem:[%s4917_s20 + $0xfd0] sm:$0xff] %v2796_v52  ;;  %v772_v52 = vld [vmem:[%s4895_s19 + $0x1090] sm:$0xff]  ;;  %v2819_v57 = vadd.f32 %v1795_v50, %v771_v49  ;;  %v1815_v46 = vld [vmem:[%s4902_s7 + $0x1128] sm:$0xff] }
 0x269   : > { %3821 = vst [vmem:[%s4917_s20 + $0xfd8] sm:$0xff] %v2797_v55  ;;  %v773_v55 = vld [vmem:[%s4895_s19 + $0x1098] sm:$0xff]  ;;  %v2820_v60 = vadd.f32 %v1796_v53, %v772_v52  ;;  %v1816_v49 = vld [vmem:[%s4902_s7 + $0x1130] sm:$0xff] }
 0x26a   : > { %3822 = vst [vmem:[%s4917_s20 + $0xfe0] sm:$0xff] %v2798_v58  ;;  %v774_v58 = vld [vmem:[%s4895_s19 + $0x10a0] sm:$0xff]  ;;  %v2821_v63 = vadd.f32 %v1797_v56, %v773_v55  ;;  %v1817_v52 = vld [vmem:[%s4902_s7 + $0x1138] sm:$0xff] }
 0x26b   : > { %3823 = vst [vmem:[%s4917_s20 + $0xfe8] sm:$0xff] %v2799_v61  ;;  %v775_v61 = vld [vmem:[%s4895_s19 + $0x10a8] sm:$0xff]  ;;  %v2822_v2 = vadd.f32 %v1798_v59, %v774_v58  ;;  %v1818_v55 = vld [vmem:[%s4902_s7 + $0x1140] sm:$0xff] }
 0x26c   : > { %3824 = vst [vmem:[%s4917_s20 + $0xff0] sm:$0xff] %v2800_v0  ;;  %v776_v0 = vld [vmem:[%s4895_s19 + $0x10b0] sm:$0xff]  ;;  %v2823_v5 = vadd.f32 %v1799_v62, %v775_v61  ;;  %v1819_v58 = vld [vmem:[%s4902_s7 + $0x1148] sm:$0xff] }
 0x26d   : > { %3825 = vst [vmem:[%s4917_s20 + $0xff8] sm:$0xff] %v2801_v3  ;;  %v777_v3 = vld [vmem:[%s4895_s19 + $0x10b8] sm:$0xff]  ;;  %v2824_v8 = vadd.f32 %v1800_v1, %v776_v0  ;;  %v1820_v61 = vld [vmem:[%s4902_s7 + $0x1150] sm:$0xff] }
 0x26e   : > { %3826 = vst [vmem:[%s4917_s20 + $0x1000] sm:$0xff] %v2802_v6  ;;  %v778_v6 = vld [vmem:[%s4895_s19 + $0x10c0] sm:$0xff]  ;;  %v2825_v11 = vadd.f32 %v1801_v4, %v777_v3  ;;  %v1821_v0 = vld [vmem:[%s4902_s7 + $0x1158] sm:$0xff] }
 0x26f   : > { %3827 = vst [vmem:[%s4917_s20 + $0x1008] sm:$0xff] %v2803_v9  ;;  %v779_v9 = vld [vmem:[%s4895_s19 + $0x10c8] sm:$0xff]  ;;  %v2826_v14 = vadd.f32 %v1802_v7, %v778_v6  ;;  %v1822_v3 = vld [vmem:[%s4902_s7 + $0x1160] sm:$0xff] }
 0x270   : > { %3828 = vst [vmem:[%s4917_s20 + $0x1010] sm:$0xff] %v2804_v12  ;;  %v780_v12 = vld [vmem:[%s4895_s19 + $0x10d0] sm:$0xff]  ;;  %v2827_v17 = vadd.f32 %v1803_v10, %v779_v9  ;;  %v1823_v6 = vld [vmem:[%s4902_s7 + $0x1168] sm:$0xff] }
 0x271   : > { %3829 = vst [vmem:[%s4917_s20 + $0x1018] sm:$0xff] %v2805_v15  ;;  %v781_v15 = vld [vmem:[%s4895_s19 + $0x10d8] sm:$0xff]  ;;  %v2828_v20 = vadd.f32 %v1804_v13, %v780_v12  ;;  %v1824_v9 = vld [vmem:[%s4902_s7 + $0x1170] sm:$0xff] }
 0x272   : > { %3830 = vst [vmem:[%s4917_s20 + $0x1020] sm:$0xff] %v2806_v18  ;;  %v782_v18 = vld [vmem:[%s4895_s19 + $0x10e0] sm:$0xff]  ;;  %v2829_v23 = vadd.f32 %v1805_v16, %v781_v15  ;;  %v1825_v12 = vld [vmem:[%s4902_s7 + $0x1178] sm:$0xff] }
 0x273   : > { %3831 = vst [vmem:[%s4917_s20 + $0x1028] sm:$0xff] %v2807_v21  ;;  %v783_v21 = vld [vmem:[%s4895_s19 + $0x10e8] sm:$0xff]  ;;  %v2830_v26 = vadd.f32 %v1806_v19, %v782_v18  ;;  %v1826_v15 = vld [vmem:[%s4902_s7 + $0x1180] sm:$0xff] }
 0x274   : > { %3832 = vst [vmem:[%s4917_s20 + $0x1030] sm:$0xff] %v2808_v24  ;;  %v784_v24 = vld [vmem:[%s4895_s19 + $0x10f0] sm:$0xff]  ;;  %v2831_v29 = vadd.f32 %v1807_v22, %v783_v21  ;;  %v1827_v18 = vld [vmem:[%s4902_s7 + $0x1188] sm:$0xff] }
 0x275   : > { %3833 = vst [vmem:[%s4917_s20 + $0x1038] sm:$0xff] %v2809_v27  ;;  %v785_v27 = vld [vmem:[%s4895_s19 + $0x10f8] sm:$0xff]  ;;  %v2832_v32 = vadd.f32 %v1808_v25, %v784_v24  ;;  %v1828_v21 = vld [vmem:[%s4902_s7 + $0x1190] sm:$0xff] }
 0x276   : > { %3834 = vst [vmem:[%s4917_s20 + $0x1040] sm:$0xff] %v2810_v30  ;;  %v786_v30 = vld [vmem:[%s4895_s19 + $0x1100] sm:$0xff]  ;;  %v2833_v35 = vadd.f32 %v1809_v28, %v785_v27  ;;  %v1829_v24 = vld [vmem:[%s4902_s7 + $0x1198] sm:$0xff] }
 0x277   : > { %3835 = vst [vmem:[%s4917_s20 + $0x1048] sm:$0xff] %v2811_v33  ;;  %v787_v33 = vld [vmem:[%s4895_s19 + $0x1108] sm:$0xff]  ;;  %v2834_v38 = vadd.f32 %v1810_v31, %v786_v30  ;;  %v1830_v27 = vld [vmem:[%s4902_s7 + $0x11a0] sm:$0xff] }
 0x278   : > { %3836 = vst [vmem:[%s4917_s20 + $0x1050] sm:$0xff] %v2812_v36  ;;  %v788_v36 = vld [vmem:[%s4895_s19 + $0x1110] sm:$0xff]  ;;  %v2835_v41 = vadd.f32 %v1811_v34, %v787_v33  ;;  %v1831_v30 = vld [vmem:[%s4902_s7 + $0x11a8] sm:$0xff] }
 0x279   : > { %3837 = vst [vmem:[%s4917_s20 + $0x1058] sm:$0xff] %v2813_v39  ;;  %v789_v39 = vld [vmem:[%s4895_s19 + $0x1118] sm:$0xff]  ;;  %v2836_v44 = vadd.f32 %v1812_v37, %v788_v36  ;;  %v1832_v33 = vld [vmem:[%s4902_s7 + $0x11b0] sm:$0xff] }
 0x27a   : > { %3838 = vst [vmem:[%s4917_s20 + $0x1060] sm:$0xff] %v2814_v42  ;;  %v790_v42 = vld [vmem:[%s4895_s19 + $0x1120] sm:$0xff]  ;;  %v2837_v47 = vadd.f32 %v1813_v40, %v789_v39  ;;  %v1833_v36 = vld [vmem:[%s4902_s7 + $0x11b8] sm:$0xff] }
 0x27b   : > { %3839 = vst [vmem:[%s4917_s20 + $0x1068] sm:$0xff] %v2815_v45  ;;  %v791_v45 = vld [vmem:[%s4895_s19 + $0x1128] sm:$0xff]  ;;  %v2838_v50 = vadd.f32 %v1814_v43, %v790_v42  ;;  %v1834_v39 = vld [vmem:[%s4902_s7 + $0x11c0] sm:$0xff] }
 0x27c   : > { %3840 = vst [vmem:[%s4917_s20 + $0x1070] sm:$0xff] %v2816_v48  ;;  %v792_v48 = vld [vmem:[%s4895_s19 + $0x1130] sm:$0xff]  ;;  %v2839_v53 = vadd.f32 %v1815_v46, %v791_v45  ;;  %v1835_v42 = vld [vmem:[%s4902_s7 + $0x11c8] sm:$0xff] }
 0x27d   : > { %3841 = vst [vmem:[%s4917_s20 + $0x1078] sm:$0xff] %v2817_v51  ;;  %v793_v51 = vld [vmem:[%s4895_s19 + $0x1138] sm:$0xff]  ;;  %v2840_v56 = vadd.f32 %v1816_v49, %v792_v48  ;;  %v1836_v45 = vld [vmem:[%s4902_s7 + $0x11d0] sm:$0xff] }
 0x27e   : > { %3842 = vst [vmem:[%s4917_s20 + $0x1080] sm:$0xff] %v2818_v54  ;;  %v794_v54 = vld [vmem:[%s4895_s19 + $0x1140] sm:$0xff]  ;;  %v2841_v59 = vadd.f32 %v1817_v52, %v793_v51  ;;  %v1837_v48 = vld [vmem:[%s4902_s7 + $0x11d8] sm:$0xff] }
 0x27f   : > { %3843 = vst [vmem:[%s4917_s20 + $0x1088] sm:$0xff] %v2819_v57  ;;  %v795_v57 = vld [vmem:[%s4895_s19 + $0x1148] sm:$0xff]  ;;  %v2842_v62 = vadd.f32 %v1818_v55, %v794_v54  ;;  %v1838_v51 = vld [vmem:[%s4902_s7 + $0x11e0] sm:$0xff] }
 0x280   : > { %3844 = vst [vmem:[%s4917_s20 + $0x1090] sm:$0xff] %v2820_v60  ;;  %v796_v60 = vld [vmem:[%s4895_s19 + $0x1150] sm:$0xff]  ;;  %v2843_v1 = vadd.f32 %v1819_v58, %v795_v57  ;;  %v1839_v54 = vld [vmem:[%s4902_s7 + $0x11e8] sm:$0xff] }
 0x281   : > { %3845 = vst [vmem:[%s4917_s20 + $0x1098] sm:$0xff] %v2821_v63  ;;  %v797_v63 = vld [vmem:[%s4895_s19 + $0x1158] sm:$0xff]  ;;  %v2844_v4 = vadd.f32 %v1820_v61, %v796_v60  ;;  %v1840_v57 = vld [vmem:[%s4902_s7 + $0x11f0] sm:$0xff] }
 0x282   : > { %3846 = vst [vmem:[%s4917_s20 + $0x10a0] sm:$0xff] %v2822_v2  ;;  %v798_v2 = vld [vmem:[%s4895_s19 + $0x1160] sm:$0xff]  ;;  %v2845_v7 = vadd.f32 %v1821_v0, %v797_v63  ;;  %v1841_v60 = vld [vmem:[%s4902_s7 + $0x11f8] sm:$0xff] }
 0x283   : > { %3847 = vst [vmem:[%s4917_s20 + $0x10a8] sm:$0xff] %v2823_v5  ;;  %v799_v5 = vld [vmem:[%s4895_s19 + $0x1168] sm:$0xff]  ;;  %v2846_v10 = vadd.f32 %v1822_v3, %v798_v2  ;;  %v1842_v63 = vld [vmem:[%s4902_s7 + $0x1200] sm:$0xff] }
 0x284   : > { %3848 = vst [vmem:[%s4917_s20 + $0x10b0] sm:$0xff] %v2824_v8  ;;  %v800_v8 = vld [vmem:[%s4895_s19 + $0x1170] sm:$0xff]  ;;  %v2847_v13 = vadd.f32 %v1823_v6, %v799_v5  ;;  %v1843_v2 = vld [vmem:[%s4902_s7 + $0x1208] sm:$0xff] }
 0x285   : > { %3849 = vst [vmem:[%s4917_s20 + $0x10b8] sm:$0xff] %v2825_v11  ;;  %v801_v11 = vld [vmem:[%s4895_s19 + $0x1178] sm:$0xff]  ;;  %v2848_v16 = vadd.f32 %v1824_v9, %v800_v8  ;;  %v1844_v5 = vld [vmem:[%s4902_s7 + $0x1210] sm:$0xff] }
 0x286   : > { %3850 = vst [vmem:[%s4917_s20 + $0x10c0] sm:$0xff] %v2826_v14  ;;  %v802_v14 = vld [vmem:[%s4895_s19 + $0x1180] sm:$0xff]  ;;  %v2849_v19 = vadd.f32 %v1825_v12, %v801_v11  ;;  %v1845_v8 = vld [vmem:[%s4902_s7 + $0x1218] sm:$0xff] }
 0x287   : > { %3851 = vst [vmem:[%s4917_s20 + $0x10c8] sm:$0xff] %v2827_v17  ;;  %v803_v17 = vld [vmem:[%s4895_s19 + $0x1188] sm:$0xff]  ;;  %v2850_v22 = vadd.f32 %v1826_v15, %v802_v14  ;;  %v1846_v11 = vld [vmem:[%s4902_s7 + $0x1220] sm:$0xff] }
 0x288   : > { %3852 = vst [vmem:[%s4917_s20 + $0x10d0] sm:$0xff] %v2828_v20  ;;  %v804_v20 = vld [vmem:[%s4895_s19 + $0x1190] sm:$0xff]  ;;  %v2851_v25 = vadd.f32 %v1827_v18, %v803_v17  ;;  %v1847_v14 = vld [vmem:[%s4902_s7 + $0x1228] sm:$0xff] }
 0x289   : > { %3853 = vst [vmem:[%s4917_s20 + $0x10d8] sm:$0xff] %v2829_v23  ;;  %v805_v23 = vld [vmem:[%s4895_s19 + $0x1198] sm:$0xff]  ;;  %v2852_v28 = vadd.f32 %v1828_v21, %v804_v20  ;;  %v1848_v17 = vld [vmem:[%s4902_s7 + $0x1230] sm:$0xff] }
 0x28a   : > { %3854 = vst [vmem:[%s4917_s20 + $0x10e0] sm:$0xff] %v2830_v26  ;;  %v806_v26 = vld [vmem:[%s4895_s19 + $0x11a0] sm:$0xff]  ;;  %v2853_v31 = vadd.f32 %v1829_v24, %v805_v23  ;;  %v1849_v20 = vld [vmem:[%s4902_s7 + $0x1238] sm:$0xff] }
 0x28b   : > { %3855 = vst [vmem:[%s4917_s20 + $0x10e8] sm:$0xff] %v2831_v29  ;;  %v807_v29 = vld [vmem:[%s4895_s19 + $0x11a8] sm:$0xff]  ;;  %v2854_v34 = vadd.f32 %v1830_v27, %v806_v26  ;;  %v1850_v23 = vld [vmem:[%s4902_s7 + $0x1240] sm:$0xff] }
 0x28c   : > { %3856 = vst [vmem:[%s4917_s20 + $0x10f0] sm:$0xff] %v2832_v32  ;;  %v808_v32 = vld [vmem:[%s4895_s19 + $0x11b0] sm:$0xff]  ;;  %v2855_v37 = vadd.f32 %v1831_v30, %v807_v29  ;;  %v1851_v26 = vld [vmem:[%s4902_s7 + $0x1248] sm:$0xff] }
 0x28d   : > { %3857 = vst [vmem:[%s4917_s20 + $0x10f8] sm:$0xff] %v2833_v35  ;;  %v809_v35 = vld [vmem:[%s4895_s19 + $0x11b8] sm:$0xff]  ;;  %v2856_v40 = vadd.f32 %v1832_v33, %v808_v32  ;;  %v1852_v29 = vld [vmem:[%s4902_s7 + $0x1250] sm:$0xff] }
 0x28e   : > { %3858 = vst [vmem:[%s4917_s20 + $0x1100] sm:$0xff] %v2834_v38  ;;  %v810_v38 = vld [vmem:[%s4895_s19 + $0x11c0] sm:$0xff]  ;;  %v2857_v43 = vadd.f32 %v1833_v36, %v809_v35  ;;  %v1853_v32 = vld [vmem:[%s4902_s7 + $0x1258] sm:$0xff] }
 0x28f   : > { %3859 = vst [vmem:[%s4917_s20 + $0x1108] sm:$0xff] %v2835_v41  ;;  %v811_v41 = vld [vmem:[%s4895_s19 + $0x11c8] sm:$0xff]  ;;  %v2858_v46 = vadd.f32 %v1834_v39, %v810_v38  ;;  %v1854_v35 = vld [vmem:[%s4902_s7 + $0x1260] sm:$0xff] }
 0x290   : > { %3860 = vst [vmem:[%s4917_s20 + $0x1110] sm:$0xff] %v2836_v44  ;;  %v812_v44 = vld [vmem:[%s4895_s19 + $0x11d0] sm:$0xff]  ;;  %v2859_v49 = vadd.f32 %v1835_v42, %v811_v41  ;;  %v1855_v38 = vld [vmem:[%s4902_s7 + $0x1268] sm:$0xff] }
 0x291   : > { %3861 = vst [vmem:[%s4917_s20 + $0x1118] sm:$0xff] %v2837_v47  ;;  %v813_v47 = vld [vmem:[%s4895_s19 + $0x11d8] sm:$0xff]  ;;  %v2860_v52 = vadd.f32 %v1836_v45, %v812_v44  ;;  %v1856_v41 = vld [vmem:[%s4902_s7 + $0x1270] sm:$0xff] }
 0x292   : > { %3862 = vst [vmem:[%s4917_s20 + $0x1120] sm:$0xff] %v2838_v50  ;;  %v814_v50 = vld [vmem:[%s4895_s19 + $0x11e0] sm:$0xff]  ;;  %v2861_v55 = vadd.f32 %v1837_v48, %v813_v47  ;;  %v1857_v44 = vld [vmem:[%s4902_s7 + $0x1278] sm:$0xff] }
 0x293   : > { %3863 = vst [vmem:[%s4917_s20 + $0x1128] sm:$0xff] %v2839_v53  ;;  %v815_v53 = vld [vmem:[%s4895_s19 + $0x11e8] sm:$0xff]  ;;  %v2862_v58 = vadd.f32 %v1838_v51, %v814_v50  ;;  %v1858_v47 = vld [vmem:[%s4902_s7 + $0x1280] sm:$0xff] }
 0x294   : > { %3864 = vst [vmem:[%s4917_s20 + $0x1130] sm:$0xff] %v2840_v56  ;;  %v816_v56 = vld [vmem:[%s4895_s19 + $0x11f0] sm:$0xff]  ;;  %v2863_v61 = vadd.f32 %v1839_v54, %v815_v53  ;;  %v1859_v50 = vld [vmem:[%s4902_s7 + $0x1288] sm:$0xff] }
 0x295   : > { %3865 = vst [vmem:[%s4917_s20 + $0x1138] sm:$0xff] %v2841_v59  ;;  %v817_v59 = vld [vmem:[%s4895_s19 + $0x11f8] sm:$0xff]  ;;  %v2864_v0 = vadd.f32 %v1840_v57, %v816_v56  ;;  %v1860_v53 = vld [vmem:[%s4902_s7 + $0x1290] sm:$0xff] }
 0x296   : > { %3866 = vst [vmem:[%s4917_s20 + $0x1140] sm:$0xff] %v2842_v62  ;;  %v818_v62 = vld [vmem:[%s4895_s19 + $0x1200] sm:$0xff]  ;;  %v2865_v3 = vadd.f32 %v1841_v60, %v817_v59  ;;  %v1861_v56 = vld [vmem:[%s4902_s7 + $0x1298] sm:$0xff] }
 0x297   : > { %3867 = vst [vmem:[%s4917_s20 + $0x1148] sm:$0xff] %v2843_v1  ;;  %v819_v1 = vld [vmem:[%s4895_s19 + $0x1208] sm:$0xff]  ;;  %v2866_v6 = vadd.f32 %v1842_v63, %v818_v62  ;;  %v1862_v59 = vld [vmem:[%s4902_s7 + $0x12a0] sm:$0xff] }
 0x298   : > { %3868 = vst [vmem:[%s4917_s20 + $0x1150] sm:$0xff] %v2844_v4  ;;  %v820_v4 = vld [vmem:[%s4895_s19 + $0x1210] sm:$0xff]  ;;  %v2867_v9 = vadd.f32 %v1843_v2, %v819_v1  ;;  %v1863_v62 = vld [vmem:[%s4902_s7 + $0x12a8] sm:$0xff] }
 0x299   : > { %3869 = vst [vmem:[%s4917_s20 + $0x1158] sm:$0xff] %v2845_v7  ;;  %v821_v7 = vld [vmem:[%s4895_s19 + $0x1218] sm:$0xff]  ;;  %v2868_v12 = vadd.f32 %v1844_v5, %v820_v4  ;;  %v1864_v1 = vld [vmem:[%s4902_s7 + $0x12b0] sm:$0xff] }
 0x29a   : > { %3870 = vst [vmem:[%s4917_s20 + $0x1160] sm:$0xff] %v2846_v10  ;;  %v822_v10 = vld [vmem:[%s4895_s19 + $0x1220] sm:$0xff]  ;;  %v2869_v15 = vadd.f32 %v1845_v8, %v821_v7  ;;  %v1865_v4 = vld [vmem:[%s4902_s7 + $0x12b8] sm:$0xff] }
 0x29b   : > { %3871 = vst [vmem:[%s4917_s20 + $0x1168] sm:$0xff] %v2847_v13  ;;  %v823_v13 = vld [vmem:[%s4895_s19 + $0x1228] sm:$0xff]  ;;  %v2870_v18 = vadd.f32 %v1846_v11, %v822_v10  ;;  %v1866_v7 = vld [vmem:[%s4902_s7 + $0x12c0] sm:$0xff] }
 0x29c   : > { %3872 = vst [vmem:[%s4917_s20 + $0x1170] sm:$0xff] %v2848_v16  ;;  %v824_v16 = vld [vmem:[%s4895_s19 + $0x1230] sm:$0xff]  ;;  %v2871_v21 = vadd.f32 %v1847_v14, %v823_v13  ;;  %v1867_v10 = vld [vmem:[%s4902_s7 + $0x12c8] sm:$0xff] }
 0x29d   : > { %3873 = vst [vmem:[%s4917_s20 + $0x1178] sm:$0xff] %v2849_v19  ;;  %v825_v19 = vld [vmem:[%s4895_s19 + $0x1238] sm:$0xff]  ;;  %v2872_v24 = vadd.f32 %v1848_v17, %v824_v16  ;;  %v1868_v13 = vld [vmem:[%s4902_s7 + $0x12d0] sm:$0xff] }
 0x29e   : > { %3874 = vst [vmem:[%s4917_s20 + $0x1180] sm:$0xff] %v2850_v22  ;;  %v826_v22 = vld [vmem:[%s4895_s19 + $0x1240] sm:$0xff]  ;;  %v2873_v27 = vadd.f32 %v1849_v20, %v825_v19  ;;  %v1869_v16 = vld [vmem:[%s4902_s7 + $0x12d8] sm:$0xff] }
 0x29f   : > { %3875 = vst [vmem:[%s4917_s20 + $0x1188] sm:$0xff] %v2851_v25  ;;  %v827_v25 = vld [vmem:[%s4895_s19 + $0x1248] sm:$0xff]  ;;  %v2874_v30 = vadd.f32 %v1850_v23, %v826_v22  ;;  %v1870_v19 = vld [vmem:[%s4902_s7 + $0x12e0] sm:$0xff] }
 0x2a0   : > { %3876 = vst [vmem:[%s4917_s20 + $0x1190] sm:$0xff] %v2852_v28  ;;  %v828_v28 = vld [vmem:[%s4895_s19 + $0x1250] sm:$0xff]  ;;  %v2875_v33 = vadd.f32 %v1851_v26, %v827_v25  ;;  %v1871_v22 = vld [vmem:[%s4902_s7 + $0x12e8] sm:$0xff] }
 0x2a1   : > { %3877 = vst [vmem:[%s4917_s20 + $0x1198] sm:$0xff] %v2853_v31  ;;  %v829_v31 = vld [vmem:[%s4895_s19 + $0x1258] sm:$0xff]  ;;  %v2876_v36 = vadd.f32 %v1852_v29, %v828_v28  ;;  %v1872_v25 = vld [vmem:[%s4902_s7 + $0x12f0] sm:$0xff] }
 0x2a2   : > { %3878 = vst [vmem:[%s4917_s20 + $0x11a0] sm:$0xff] %v2854_v34  ;;  %v830_v34 = vld [vmem:[%s4895_s19 + $0x1260] sm:$0xff]  ;;  %v2877_v39 = vadd.f32 %v1853_v32, %v829_v31  ;;  %v1873_v28 = vld [vmem:[%s4902_s7 + $0x12f8] sm:$0xff] }
 0x2a3   : > { %3879 = vst [vmem:[%s4917_s20 + $0x11a8] sm:$0xff] %v2855_v37  ;;  %v831_v37 = vld [vmem:[%s4895_s19 + $0x1268] sm:$0xff]  ;;  %v2878_v42 = vadd.f32 %v1854_v35, %v830_v34  ;;  %v1874_v31 = vld [vmem:[%s4902_s7 + $0x1300] sm:$0xff] }
 0x2a4   : > { %3880 = vst [vmem:[%s4917_s20 + $0x11b0] sm:$0xff] %v2856_v40  ;;  %v832_v40 = vld [vmem:[%s4895_s19 + $0x1270] sm:$0xff]  ;;  %v2879_v45 = vadd.f32 %v1855_v38, %v831_v37  ;;  %v1875_v34 = vld [vmem:[%s4902_s7 + $0x1308] sm:$0xff] }
 0x2a5   : > { %3881 = vst [vmem:[%s4917_s20 + $0x11b8] sm:$0xff] %v2857_v43  ;;  %v833_v43 = vld [vmem:[%s4895_s19 + $0x1278] sm:$0xff]  ;;  %v2880_v48 = vadd.f32 %v1856_v41, %v832_v40  ;;  %v1876_v37 = vld [vmem:[%s4902_s7 + $0x1310] sm:$0xff] }
 0x2a6   : > { %3882 = vst [vmem:[%s4917_s20 + $0x11c0] sm:$0xff] %v2858_v46  ;;  %v834_v46 = vld [vmem:[%s4895_s19 + $0x1280] sm:$0xff]  ;;  %v2881_v51 = vadd.f32 %v1857_v44, %v833_v43  ;;  %v1877_v40 = vld [vmem:[%s4902_s7 + $0x1318] sm:$0xff] }
 0x2a7   : > { %3883 = vst [vmem:[%s4917_s20 + $0x11c8] sm:$0xff] %v2859_v49  ;;  %v835_v49 = vld [vmem:[%s4895_s19 + $0x1288] sm:$0xff]  ;;  %v2882_v54 = vadd.f32 %v1858_v47, %v834_v46  ;;  %v1878_v43 = vld [vmem:[%s4902_s7 + $0x1320] sm:$0xff] }
 0x2a8   : > { %3884 = vst [vmem:[%s4917_s20 + $0x11d0] sm:$0xff] %v2860_v52  ;;  %v836_v52 = vld [vmem:[%s4895_s19 + $0x1290] sm:$0xff]  ;;  %v2883_v57 = vadd.f32 %v1859_v50, %v835_v49  ;;  %v1879_v46 = vld [vmem:[%s4902_s7 + $0x1328] sm:$0xff] }
 0x2a9   : > { %3885 = vst [vmem:[%s4917_s20 + $0x11d8] sm:$0xff] %v2861_v55  ;;  %v837_v55 = vld [vmem:[%s4895_s19 + $0x1298] sm:$0xff]  ;;  %v2884_v60 = vadd.f32 %v1860_v53, %v836_v52  ;;  %v1880_v49 = vld [vmem:[%s4902_s7 + $0x1330] sm:$0xff] }
 0x2aa   : > { %3886 = vst [vmem:[%s4917_s20 + $0x11e0] sm:$0xff] %v2862_v58  ;;  %v838_v58 = vld [vmem:[%s4895_s19 + $0x12a0] sm:$0xff]  ;;  %v2885_v63 = vadd.f32 %v1861_v56, %v837_v55  ;;  %v1881_v52 = vld [vmem:[%s4902_s7 + $0x1338] sm:$0xff] }
 0x2ab   : > { %3887 = vst [vmem:[%s4917_s20 + $0x11e8] sm:$0xff] %v2863_v61  ;;  %v839_v61 = vld [vmem:[%s4895_s19 + $0x12a8] sm:$0xff]  ;;  %v2886_v2 = vadd.f32 %v1862_v59, %v838_v58  ;;  %v1882_v55 = vld [vmem:[%s4902_s7 + $0x1340] sm:$0xff] }
 0x2ac   : > { %3888 = vst [vmem:[%s4917_s20 + $0x11f0] sm:$0xff] %v2864_v0  ;;  %v840_v0 = vld [vmem:[%s4895_s19 + $0x12b0] sm:$0xff]  ;;  %v2887_v5 = vadd.f32 %v1863_v62, %v839_v61  ;;  %v1883_v58 = vld [vmem:[%s4902_s7 + $0x1348] sm:$0xff] }
 0x2ad   : > { %3889 = vst [vmem:[%s4917_s20 + $0x11f8] sm:$0xff] %v2865_v3  ;;  %v841_v3 = vld [vmem:[%s4895_s19 + $0x12b8] sm:$0xff]  ;;  %v2888_v8 = vadd.f32 %v1864_v1, %v840_v0  ;;  %v1884_v61 = vld [vmem:[%s4902_s7 + $0x1350] sm:$0xff] }
 0x2ae   : > { %3890 = vst [vmem:[%s4917_s20 + $0x1200] sm:$0xff] %v2866_v6  ;;  %v842_v6 = vld [vmem:[%s4895_s19 + $0x12c0] sm:$0xff]  ;;  %v2889_v11 = vadd.f32 %v1865_v4, %v841_v3  ;;  %v1885_v0 = vld [vmem:[%s4902_s7 + $0x1358] sm:$0xff] }
 0x2af   : > { %3891 = vst [vmem:[%s4917_s20 + $0x1208] sm:$0xff] %v2867_v9  ;;  %v843_v9 = vld [vmem:[%s4895_s19 + $0x12c8] sm:$0xff]  ;;  %v2890_v14 = vadd.f32 %v1866_v7, %v842_v6  ;;  %v1886_v3 = vld [vmem:[%s4902_s7 + $0x1360] sm:$0xff] }
 0x2b0   : > { %3892 = vst [vmem:[%s4917_s20 + $0x1210] sm:$0xff] %v2868_v12  ;;  %v844_v12 = vld [vmem:[%s4895_s19 + $0x12d0] sm:$0xff]  ;;  %v2891_v17 = vadd.f32 %v1867_v10, %v843_v9  ;;  %v1887_v6 = vld [vmem:[%s4902_s7 + $0x1368] sm:$0xff] }
 0x2b1   : > { %3893 = vst [vmem:[%s4917_s20 + $0x1218] sm:$0xff] %v2869_v15  ;;  %v845_v15 = vld [vmem:[%s4895_s19 + $0x12d8] sm:$0xff]  ;;  %v2892_v20 = vadd.f32 %v1868_v13, %v844_v12  ;;  %v1888_v9 = vld [vmem:[%s4902_s7 + $0x1370] sm:$0xff] }
 0x2b2   : > { %3894 = vst [vmem:[%s4917_s20 + $0x1220] sm:$0xff] %v2870_v18  ;;  %v846_v18 = vld [vmem:[%s4895_s19 + $0x12e0] sm:$0xff]  ;;  %v2893_v23 = vadd.f32 %v1869_v16, %v845_v15  ;;  %v1889_v12 = vld [vmem:[%s4902_s7 + $0x1378] sm:$0xff] }
 0x2b3   : > { %3895 = vst [vmem:[%s4917_s20 + $0x1228] sm:$0xff] %v2871_v21  ;;  %v847_v21 = vld [vmem:[%s4895_s19 + $0x12e8] sm:$0xff]  ;;  %v2894_v26 = vadd.f32 %v1870_v19, %v846_v18  ;;  %v1890_v15 = vld [vmem:[%s4902_s7 + $0x1380] sm:$0xff] }
 0x2b4   : > { %3896 = vst [vmem:[%s4917_s20 + $0x1230] sm:$0xff] %v2872_v24  ;;  %v848_v24 = vld [vmem:[%s4895_s19 + $0x12f0] sm:$0xff]  ;;  %v2895_v29 = vadd.f32 %v1871_v22, %v847_v21  ;;  %v1891_v18 = vld [vmem:[%s4902_s7 + $0x1388] sm:$0xff] }
 0x2b5   : > { %3897 = vst [vmem:[%s4917_s20 + $0x1238] sm:$0xff] %v2873_v27  ;;  %v849_v27 = vld [vmem:[%s4895_s19 + $0x12f8] sm:$0xff]  ;;  %v2896_v32 = vadd.f32 %v1872_v25, %v848_v24  ;;  %v1892_v21 = vld [vmem:[%s4902_s7 + $0x1390] sm:$0xff] }
 0x2b6   : > { %3898 = vst [vmem:[%s4917_s20 + $0x1240] sm:$0xff] %v2874_v30  ;;  %v850_v30 = vld [vmem:[%s4895_s19 + $0x1300] sm:$0xff]  ;;  %v2897_v35 = vadd.f32 %v1873_v28, %v849_v27  ;;  %v1893_v24 = vld [vmem:[%s4902_s7 + $0x1398] sm:$0xff] }
 0x2b7   : > { %3899 = vst [vmem:[%s4917_s20 + $0x1248] sm:$0xff] %v2875_v33  ;;  %v851_v33 = vld [vmem:[%s4895_s19 + $0x1308] sm:$0xff]  ;;  %v2898_v38 = vadd.f32 %v1874_v31, %v850_v30  ;;  %v1894_v27 = vld [vmem:[%s4902_s7 + $0x13a0] sm:$0xff] }
 0x2b8   : > { %3900 = vst [vmem:[%s4917_s20 + $0x1250] sm:$0xff] %v2876_v36  ;;  %v852_v36 = vld [vmem:[%s4895_s19 + $0x1310] sm:$0xff]  ;;  %v2899_v41 = vadd.f32 %v1875_v34, %v851_v33  ;;  %v1895_v30 = vld [vmem:[%s4902_s7 + $0x13a8] sm:$0xff] }
 0x2b9   : > { %3901 = vst [vmem:[%s4917_s20 + $0x1258] sm:$0xff] %v2877_v39  ;;  %v853_v39 = vld [vmem:[%s4895_s19 + $0x1318] sm:$0xff]  ;;  %v2900_v44 = vadd.f32 %v1876_v37, %v852_v36  ;;  %v1896_v33 = vld [vmem:[%s4902_s7 + $0x13b0] sm:$0xff] }
 0x2ba   : > { %3902 = vst [vmem:[%s4917_s20 + $0x1260] sm:$0xff] %v2878_v42  ;;  %v854_v42 = vld [vmem:[%s4895_s19 + $0x1320] sm:$0xff]  ;;  %v2901_v47 = vadd.f32 %v1877_v40, %v853_v39  ;;  %v1897_v36 = vld [vmem:[%s4902_s7 + $0x13b8] sm:$0xff] }
 0x2bb   : > { %3903 = vst [vmem:[%s4917_s20 + $0x1268] sm:$0xff] %v2879_v45  ;;  %v855_v45 = vld [vmem:[%s4895_s19 + $0x1328] sm:$0xff]  ;;  %v2902_v50 = vadd.f32 %v1878_v43, %v854_v42  ;;  %v1898_v39 = vld [vmem:[%s4902_s7 + $0x13c0] sm:$0xff] }
 0x2bc   : > { %3904 = vst [vmem:[%s4917_s20 + $0x1270] sm:$0xff] %v2880_v48  ;;  %v856_v48 = vld [vmem:[%s4895_s19 + $0x1330] sm:$0xff]  ;;  %v2903_v53 = vadd.f32 %v1879_v46, %v855_v45  ;;  %v1899_v42 = vld [vmem:[%s4902_s7 + $0x13c8] sm:$0xff] }
 0x2bd   : > { %3905 = vst [vmem:[%s4917_s20 + $0x1278] sm:$0xff] %v2881_v51  ;;  %v857_v51 = vld [vmem:[%s4895_s19 + $0x1338] sm:$0xff]  ;;  %v2904_v56 = vadd.f32 %v1880_v49, %v856_v48  ;;  %v1900_v45 = vld [vmem:[%s4902_s7 + $0x13d0] sm:$0xff] }
 0x2be   : > { %3906 = vst [vmem:[%s4917_s20 + $0x1280] sm:$0xff] %v2882_v54  ;;  %v858_v54 = vld [vmem:[%s4895_s19 + $0x1340] sm:$0xff]  ;;  %v2905_v59 = vadd.f32 %v1881_v52, %v857_v51  ;;  %v1901_v48 = vld [vmem:[%s4902_s7 + $0x13d8] sm:$0xff] }
 0x2bf   : > { %3907 = vst [vmem:[%s4917_s20 + $0x1288] sm:$0xff] %v2883_v57  ;;  %v859_v57 = vld [vmem:[%s4895_s19 + $0x1348] sm:$0xff]  ;;  %v2906_v62 = vadd.f32 %v1882_v55, %v858_v54  ;;  %v1902_v51 = vld [vmem:[%s4902_s7 + $0x13e0] sm:$0xff] }
 0x2c0   : > { %3908 = vst [vmem:[%s4917_s20 + $0x1290] sm:$0xff] %v2884_v60  ;;  %v860_v60 = vld [vmem:[%s4895_s19 + $0x1350] sm:$0xff]  ;;  %v2907_v1 = vadd.f32 %v1883_v58, %v859_v57  ;;  %v1903_v54 = vld [vmem:[%s4902_s7 + $0x13e8] sm:$0xff] }
 0x2c1   : > { %3909 = vst [vmem:[%s4917_s20 + $0x1298] sm:$0xff] %v2885_v63  ;;  %v861_v63 = vld [vmem:[%s4895_s19 + $0x1358] sm:$0xff]  ;;  %v2908_v4 = vadd.f32 %v1884_v61, %v860_v60  ;;  %v1904_v57 = vld [vmem:[%s4902_s7 + $0x13f0] sm:$0xff] }
 0x2c2   : > { %3910 = vst [vmem:[%s4917_s20 + $0x12a0] sm:$0xff] %v2886_v2  ;;  %v862_v2 = vld [vmem:[%s4895_s19 + $0x1360] sm:$0xff]  ;;  %v2909_v7 = vadd.f32 %v1885_v0, %v861_v63  ;;  %v1905_v60 = vld [vmem:[%s4902_s7 + $0x13f8] sm:$0xff] }
 0x2c3   : > { %3911 = vst [vmem:[%s4917_s20 + $0x12a8] sm:$0xff] %v2887_v5  ;;  %v863_v5 = vld [vmem:[%s4895_s19 + $0x1368] sm:$0xff]  ;;  %v2910_v10 = vadd.f32 %v1886_v3, %v862_v2  ;;  %v1906_v63 = vld [vmem:[%s4902_s7 + $0x1400] sm:$0xff] }
 0x2c4   : > { %3912 = vst [vmem:[%s4917_s20 + $0x12b0] sm:$0xff] %v2888_v8  ;;  %v864_v8 = vld [vmem:[%s4895_s19 + $0x1370] sm:$0xff]  ;;  %v2911_v13 = vadd.f32 %v1887_v6, %v863_v5  ;;  %v1907_v2 = vld [vmem:[%s4902_s7 + $0x1408] sm:$0xff] }
 0x2c5   : > { %3913 = vst [vmem:[%s4917_s20 + $0x12b8] sm:$0xff] %v2889_v11  ;;  %v865_v11 = vld [vmem:[%s4895_s19 + $0x1378] sm:$0xff]  ;;  %v2912_v16 = vadd.f32 %v1888_v9, %v864_v8  ;;  %v1908_v5 = vld [vmem:[%s4902_s7 + $0x1410] sm:$0xff] }
 0x2c6   : > { %3914 = vst [vmem:[%s4917_s20 + $0x12c0] sm:$0xff] %v2890_v14  ;;  %v866_v14 = vld [vmem:[%s4895_s19 + $0x1380] sm:$0xff]  ;;  %v2913_v19 = vadd.f32 %v1889_v12, %v865_v11  ;;  %v1909_v8 = vld [vmem:[%s4902_s7 + $0x1418] sm:$0xff] }
 0x2c7   : > { %3915 = vst [vmem:[%s4917_s20 + $0x12c8] sm:$0xff] %v2891_v17  ;;  %v867_v17 = vld [vmem:[%s4895_s19 + $0x1388] sm:$0xff]  ;;  %v2914_v22 = vadd.f32 %v1890_v15, %v866_v14  ;;  %v1910_v11 = vld [vmem:[%s4902_s7 + $0x1420] sm:$0xff] }
 0x2c8   : > { %3916 = vst [vmem:[%s4917_s20 + $0x12d0] sm:$0xff] %v2892_v20  ;;  %v868_v20 = vld [vmem:[%s4895_s19 + $0x1390] sm:$0xff]  ;;  %v2915_v25 = vadd.f32 %v1891_v18, %v867_v17  ;;  %v1911_v14 = vld [vmem:[%s4902_s7 + $0x1428] sm:$0xff] }
 0x2c9   : > { %3917 = vst [vmem:[%s4917_s20 + $0x12d8] sm:$0xff] %v2893_v23  ;;  %v869_v23 = vld [vmem:[%s4895_s19 + $0x1398] sm:$0xff]  ;;  %v2916_v28 = vadd.f32 %v1892_v21, %v868_v20  ;;  %v1912_v17 = vld [vmem:[%s4902_s7 + $0x1430] sm:$0xff] }
 0x2ca   : > { %3918 = vst [vmem:[%s4917_s20 + $0x12e0] sm:$0xff] %v2894_v26  ;;  %v870_v26 = vld [vmem:[%s4895_s19 + $0x13a0] sm:$0xff]  ;;  %v2917_v31 = vadd.f32 %v1893_v24, %v869_v23  ;;  %v1913_v20 = vld [vmem:[%s4902_s7 + $0x1438] sm:$0xff] }
 0x2cb   : > { %3919 = vst [vmem:[%s4917_s20 + $0x12e8] sm:$0xff] %v2895_v29  ;;  %v871_v29 = vld [vmem:[%s4895_s19 + $0x13a8] sm:$0xff]  ;;  %v2918_v34 = vadd.f32 %v1894_v27, %v870_v26  ;;  %v1914_v23 = vld [vmem:[%s4902_s7 + $0x1440] sm:$0xff] }
 0x2cc   : > { %3920 = vst [vmem:[%s4917_s20 + $0x12f0] sm:$0xff] %v2896_v32  ;;  %v872_v32 = vld [vmem:[%s4895_s19 + $0x13b0] sm:$0xff]  ;;  %v2919_v37 = vadd.f32 %v1895_v30, %v871_v29  ;;  %v1915_v26 = vld [vmem:[%s4902_s7 + $0x1448] sm:$0xff] }
 0x2cd   : > { %3921 = vst [vmem:[%s4917_s20 + $0x12f8] sm:$0xff] %v2897_v35  ;;  %v873_v35 = vld [vmem:[%s4895_s19 + $0x13b8] sm:$0xff]  ;;  %v2920_v40 = vadd.f32 %v1896_v33, %v872_v32  ;;  %v1916_v29 = vld [vmem:[%s4902_s7 + $0x1450] sm:$0xff] }
 0x2ce   : > { %3922 = vst [vmem:[%s4917_s20 + $0x1300] sm:$0xff] %v2898_v38  ;;  %v874_v38 = vld [vmem:[%s4895_s19 + $0x13c0] sm:$0xff]  ;;  %v2921_v43 = vadd.f32 %v1897_v36, %v873_v35  ;;  %v1917_v32 = vld [vmem:[%s4902_s7 + $0x1458] sm:$0xff] }
 0x2cf   : > { %3923 = vst [vmem:[%s4917_s20 + $0x1308] sm:$0xff] %v2899_v41  ;;  %v875_v41 = vld [vmem:[%s4895_s19 + $0x13c8] sm:$0xff]  ;;  %v2922_v46 = vadd.f32 %v1898_v39, %v874_v38  ;;  %v1918_v35 = vld [vmem:[%s4902_s7 + $0x1460] sm:$0xff] }
 0x2d0   : > { %3924 = vst [vmem:[%s4917_s20 + $0x1310] sm:$0xff] %v2900_v44  ;;  %v876_v44 = vld [vmem:[%s4895_s19 + $0x13d0] sm:$0xff]  ;;  %v2923_v49 = vadd.f32 %v1899_v42, %v875_v41  ;;  %v1919_v38 = vld [vmem:[%s4902_s7 + $0x1468] sm:$0xff] }
 0x2d1   : > { %3925 = vst [vmem:[%s4917_s20 + $0x1318] sm:$0xff] %v2901_v47  ;;  %v877_v47 = vld [vmem:[%s4895_s19 + $0x13d8] sm:$0xff]  ;;  %v2924_v52 = vadd.f32 %v1900_v45, %v876_v44  ;;  %v1920_v41 = vld [vmem:[%s4902_s7 + $0x1470] sm:$0xff] }
 0x2d2   : > { %3926 = vst [vmem:[%s4917_s20 + $0x1320] sm:$0xff] %v2902_v50  ;;  %v878_v50 = vld [vmem:[%s4895_s19 + $0x13e0] sm:$0xff]  ;;  %v2925_v55 = vadd.f32 %v1901_v48, %v877_v47  ;;  %v1921_v44 = vld [vmem:[%s4902_s7 + $0x1478] sm:$0xff] }
 0x2d3   : > { %3927 = vst [vmem:[%s4917_s20 + $0x1328] sm:$0xff] %v2903_v53  ;;  %v879_v53 = vld [vmem:[%s4895_s19 + $0x13e8] sm:$0xff]  ;;  %v2926_v58 = vadd.f32 %v1902_v51, %v878_v50  ;;  %v1922_v47 = vld [vmem:[%s4902_s7 + $0x1480] sm:$0xff] }
 0x2d4   : > { %3928 = vst [vmem:[%s4917_s20 + $0x1330] sm:$0xff] %v2904_v56  ;;  %v880_v56 = vld [vmem:[%s4895_s19 + $0x13f0] sm:$0xff]  ;;  %v2927_v61 = vadd.f32 %v1903_v54, %v879_v53  ;;  %v1923_v50 = vld [vmem:[%s4902_s7 + $0x1488] sm:$0xff] }
 0x2d5   : > { %3929 = vst [vmem:[%s4917_s20 + $0x1338] sm:$0xff] %v2905_v59  ;;  %v881_v59 = vld [vmem:[%s4895_s19 + $0x13f8] sm:$0xff]  ;;  %v2928_v0 = vadd.f32 %v1904_v57, %v880_v56  ;;  %v1924_v53 = vld [vmem:[%s4902_s7 + $0x1490] sm:$0xff] }
 0x2d6   : > { %3930 = vst [vmem:[%s4917_s20 + $0x1340] sm:$0xff] %v2906_v62  ;;  %v882_v62 = vld [vmem:[%s4895_s19 + $0x1400] sm:$0xff]  ;;  %v2929_v3 = vadd.f32 %v1905_v60, %v881_v59  ;;  %v1925_v56 = vld [vmem:[%s4902_s7 + $0x1498] sm:$0xff] }
 0x2d7   : > { %3931 = vst [vmem:[%s4917_s20 + $0x1348] sm:$0xff] %v2907_v1  ;;  %v883_v1 = vld [vmem:[%s4895_s19 + $0x1408] sm:$0xff]  ;;  %v2930_v6 = vadd.f32 %v1906_v63, %v882_v62  ;;  %v1926_v59 = vld [vmem:[%s4902_s7 + $0x14a0] sm:$0xff] }
 0x2d8   : > { %3932 = vst [vmem:[%s4917_s20 + $0x1350] sm:$0xff] %v2908_v4  ;;  %v884_v4 = vld [vmem:[%s4895_s19 + $0x1410] sm:$0xff]  ;;  %v2931_v9 = vadd.f32 %v1907_v2, %v883_v1  ;;  %v1927_v62 = vld [vmem:[%s4902_s7 + $0x14a8] sm:$0xff] }
 0x2d9   : > { %3933 = vst [vmem:[%s4917_s20 + $0x1358] sm:$0xff] %v2909_v7  ;;  %v885_v7 = vld [vmem:[%s4895_s19 + $0x1418] sm:$0xff]  ;;  %v2932_v12 = vadd.f32 %v1908_v5, %v884_v4  ;;  %v1928_v1 = vld [vmem:[%s4902_s7 + $0x14b0] sm:$0xff] }
 0x2da   : > { %3934 = vst [vmem:[%s4917_s20 + $0x1360] sm:$0xff] %v2910_v10  ;;  %v886_v10 = vld [vmem:[%s4895_s19 + $0x1420] sm:$0xff]  ;;  %v2933_v15 = vadd.f32 %v1909_v8, %v885_v7  ;;  %v1929_v4 = vld [vmem:[%s4902_s7 + $0x14b8] sm:$0xff] }
 0x2db   : > { %3935 = vst [vmem:[%s4917_s20 + $0x1368] sm:$0xff] %v2911_v13  ;;  %v887_v13 = vld [vmem:[%s4895_s19 + $0x1428] sm:$0xff]  ;;  %v2934_v18 = vadd.f32 %v1910_v11, %v886_v10  ;;  %v1930_v7 = vld [vmem:[%s4902_s7 + $0x14c0] sm:$0xff] }
 0x2dc   : > { %3936 = vst [vmem:[%s4917_s20 + $0x1370] sm:$0xff] %v2912_v16  ;;  %v888_v16 = vld [vmem:[%s4895_s19 + $0x1430] sm:$0xff]  ;;  %v2935_v21 = vadd.f32 %v1911_v14, %v887_v13  ;;  %v1931_v10 = vld [vmem:[%s4902_s7 + $0x14c8] sm:$0xff] }
 0x2dd   : > { %3937 = vst [vmem:[%s4917_s20 + $0x1378] sm:$0xff] %v2913_v19  ;;  %v889_v19 = vld [vmem:[%s4895_s19 + $0x1438] sm:$0xff]  ;;  %v2936_v24 = vadd.f32 %v1912_v17, %v888_v16  ;;  %v1932_v13 = vld [vmem:[%s4902_s7 + $0x14d0] sm:$0xff] }
 0x2de   : > { %3938 = vst [vmem:[%s4917_s20 + $0x1380] sm:$0xff] %v2914_v22  ;;  %v890_v22 = vld [vmem:[%s4895_s19 + $0x1440] sm:$0xff]  ;;  %v2937_v27 = vadd.f32 %v1913_v20, %v889_v19  ;;  %v1933_v16 = vld [vmem:[%s4902_s7 + $0x14d8] sm:$0xff] }
 0x2df   : > { %3939 = vst [vmem:[%s4917_s20 + $0x1388] sm:$0xff] %v2915_v25  ;;  %v891_v25 = vld [vmem:[%s4895_s19 + $0x1448] sm:$0xff]  ;;  %v2938_v30 = vadd.f32 %v1914_v23, %v890_v22  ;;  %v1934_v19 = vld [vmem:[%s4902_s7 + $0x14e0] sm:$0xff] }
 0x2e0   : > { %3940 = vst [vmem:[%s4917_s20 + $0x1390] sm:$0xff] %v2916_v28  ;;  %v892_v28 = vld [vmem:[%s4895_s19 + $0x1450] sm:$0xff]  ;;  %v2939_v33 = vadd.f32 %v1915_v26, %v891_v25  ;;  %v1935_v22 = vld [vmem:[%s4902_s7 + $0x14e8] sm:$0xff] }
 0x2e1   : > { %3941 = vst [vmem:[%s4917_s20 + $0x1398] sm:$0xff] %v2917_v31  ;;  %v893_v31 = vld [vmem:[%s4895_s19 + $0x1458] sm:$0xff]  ;;  %v2940_v36 = vadd.f32 %v1916_v29, %v892_v28  ;;  %v1936_v25 = vld [vmem:[%s4902_s7 + $0x14f0] sm:$0xff] }
 0x2e2   : > { %3942 = vst [vmem:[%s4917_s20 + $0x13a0] sm:$0xff] %v2918_v34  ;;  %v894_v34 = vld [vmem:[%s4895_s19 + $0x1460] sm:$0xff]  ;;  %v2941_v39 = vadd.f32 %v1917_v32, %v893_v31  ;;  %v1937_v28 = vld [vmem:[%s4902_s7 + $0x14f8] sm:$0xff] }
 0x2e3   : > { %3943 = vst [vmem:[%s4917_s20 + $0x13a8] sm:$0xff] %v2919_v37  ;;  %v895_v37 = vld [vmem:[%s4895_s19 + $0x1468] sm:$0xff]  ;;  %v2942_v42 = vadd.f32 %v1918_v35, %v894_v34  ;;  %v1938_v31 = vld [vmem:[%s4902_s7 + $0x1500] sm:$0xff] }
 0x2e4   : > { %3944 = vst [vmem:[%s4917_s20 + $0x13b0] sm:$0xff] %v2920_v40  ;;  %v896_v40 = vld [vmem:[%s4895_s19 + $0x1470] sm:$0xff]  ;;  %v2943_v45 = vadd.f32 %v1919_v38, %v895_v37  ;;  %v1939_v34 = vld [vmem:[%s4902_s7 + $0x1508] sm:$0xff] }
 0x2e5   : > { %3945 = vst [vmem:[%s4917_s20 + $0x13b8] sm:$0xff] %v2921_v43  ;;  %v897_v43 = vld [vmem:[%s4895_s19 + $0x1478] sm:$0xff]  ;;  %v2944_v48 = vadd.f32 %v1920_v41, %v896_v40  ;;  %v1940_v37 = vld [vmem:[%s4902_s7 + $0x1510] sm:$0xff] }
 0x2e6   : > { %3946 = vst [vmem:[%s4917_s20 + $0x13c0] sm:$0xff] %v2922_v46  ;;  %v898_v46 = vld [vmem:[%s4895_s19 + $0x1480] sm:$0xff]  ;;  %v2945_v51 = vadd.f32 %v1921_v44, %v897_v43  ;;  %v1941_v40 = vld [vmem:[%s4902_s7 + $0x1518] sm:$0xff] }
 0x2e7   : > { %3947 = vst [vmem:[%s4917_s20 + $0x13c8] sm:$0xff] %v2923_v49  ;;  %v899_v49 = vld [vmem:[%s4895_s19 + $0x1488] sm:$0xff]  ;;  %v2946_v54 = vadd.f32 %v1922_v47, %v898_v46  ;;  %v1942_v43 = vld [vmem:[%s4902_s7 + $0x1520] sm:$0xff] }
 0x2e8   : > { %3948 = vst [vmem:[%s4917_s20 + $0x13d0] sm:$0xff] %v2924_v52  ;;  %v900_v52 = vld [vmem:[%s4895_s19 + $0x1490] sm:$0xff]  ;;  %v2947_v57 = vadd.f32 %v1923_v50, %v899_v49  ;;  %v1943_v46 = vld [vmem:[%s4902_s7 + $0x1528] sm:$0xff] }
 0x2e9   : > { %3949 = vst [vmem:[%s4917_s20 + $0x13d8] sm:$0xff] %v2925_v55  ;;  %v901_v55 = vld [vmem:[%s4895_s19 + $0x1498] sm:$0xff]  ;;  %v2948_v60 = vadd.f32 %v1924_v53, %v900_v52  ;;  %v1944_v49 = vld [vmem:[%s4902_s7 + $0x1530] sm:$0xff] }
 0x2ea   : > { %3950 = vst [vmem:[%s4917_s20 + $0x13e0] sm:$0xff] %v2926_v58  ;;  %v902_v58 = vld [vmem:[%s4895_s19 + $0x14a0] sm:$0xff]  ;;  %v2949_v63 = vadd.f32 %v1925_v56, %v901_v55  ;;  %v1945_v52 = vld [vmem:[%s4902_s7 + $0x1538] sm:$0xff] }
 0x2eb   : > { %3951 = vst [vmem:[%s4917_s20 + $0x13e8] sm:$0xff] %v2927_v61  ;;  %v903_v61 = vld [vmem:[%s4895_s19 + $0x14a8] sm:$0xff]  ;;  %v2950_v2 = vadd.f32 %v1926_v59, %v902_v58  ;;  %v1946_v55 = vld [vmem:[%s4902_s7 + $0x1540] sm:$0xff] }
 0x2ec   : > { %3952 = vst [vmem:[%s4917_s20 + $0x13f0] sm:$0xff] %v2928_v0  ;;  %v904_v0 = vld [vmem:[%s4895_s19 + $0x14b0] sm:$0xff]  ;;  %v2951_v5 = vadd.f32 %v1927_v62, %v903_v61  ;;  %v1947_v58 = vld [vmem:[%s4902_s7 + $0x1548] sm:$0xff] }
 0x2ed   : > { %3953 = vst [vmem:[%s4917_s20 + $0x13f8] sm:$0xff] %v2929_v3  ;;  %v905_v3 = vld [vmem:[%s4895_s19 + $0x14b8] sm:$0xff]  ;;  %v2952_v8 = vadd.f32 %v1928_v1, %v904_v0  ;;  %v1948_v61 = vld [vmem:[%s4902_s7 + $0x1550] sm:$0xff] }
 0x2ee   : > { %3954 = vst [vmem:[%s4917_s20 + $0x1400] sm:$0xff] %v2930_v6  ;;  %v906_v6 = vld [vmem:[%s4895_s19 + $0x14c0] sm:$0xff]  ;;  %v2953_v11 = vadd.f32 %v1929_v4, %v905_v3  ;;  %v1949_v0 = vld [vmem:[%s4902_s7 + $0x1558] sm:$0xff] }
 0x2ef   : > { %3955 = vst [vmem:[%s4917_s20 + $0x1408] sm:$0xff] %v2931_v9  ;;  %v907_v9 = vld [vmem:[%s4895_s19 + $0x14c8] sm:$0xff]  ;;  %v2954_v14 = vadd.f32 %v1930_v7, %v906_v6  ;;  %v1950_v3 = vld [vmem:[%s4902_s7 + $0x1560] sm:$0xff] }
 0x2f0   : > { %3956 = vst [vmem:[%s4917_s20 + $0x1410] sm:$0xff] %v2932_v12  ;;  %v908_v12 = vld [vmem:[%s4895_s19 + $0x14d0] sm:$0xff]  ;;  %v2955_v17 = vadd.f32 %v1931_v10, %v907_v9  ;;  %v1951_v6 = vld [vmem:[%s4902_s7 + $0x1568] sm:$0xff] }
 0x2f1   : > { %3957 = vst [vmem:[%s4917_s20 + $0x1418] sm:$0xff] %v2933_v15  ;;  %v909_v15 = vld [vmem:[%s4895_s19 + $0x14d8] sm:$0xff]  ;;  %v2956_v20 = vadd.f32 %v1932_v13, %v908_v12  ;;  %v1952_v9 = vld [vmem:[%s4902_s7 + $0x1570] sm:$0xff] }
 0x2f2   : > { %3958 = vst [vmem:[%s4917_s20 + $0x1420] sm:$0xff] %v2934_v18  ;;  %v910_v18 = vld [vmem:[%s4895_s19 + $0x14e0] sm:$0xff]  ;;  %v2957_v23 = vadd.f32 %v1933_v16, %v909_v15  ;;  %v1953_v12 = vld [vmem:[%s4902_s7 + $0x1578] sm:$0xff] }
 0x2f3   : > { %3959 = vst [vmem:[%s4917_s20 + $0x1428] sm:$0xff] %v2935_v21  ;;  %v911_v21 = vld [vmem:[%s4895_s19 + $0x14e8] sm:$0xff]  ;;  %v2958_v26 = vadd.f32 %v1934_v19, %v910_v18  ;;  %v1954_v15 = vld [vmem:[%s4902_s7 + $0x1580] sm:$0xff] }
 0x2f4   : > { %3960 = vst [vmem:[%s4917_s20 + $0x1430] sm:$0xff] %v2936_v24  ;;  %v912_v24 = vld [vmem:[%s4895_s19 + $0x14f0] sm:$0xff]  ;;  %v2959_v29 = vadd.f32 %v1935_v22, %v911_v21  ;;  %v1955_v18 = vld [vmem:[%s4902_s7 + $0x1588] sm:$0xff] }
 0x2f5   : > { %3961 = vst [vmem:[%s4917_s20 + $0x1438] sm:$0xff] %v2937_v27  ;;  %v913_v27 = vld [vmem:[%s4895_s19 + $0x14f8] sm:$0xff]  ;;  %v2960_v32 = vadd.f32 %v1936_v25, %v912_v24  ;;  %v1956_v21 = vld [vmem:[%s4902_s7 + $0x1590] sm:$0xff] }
 0x2f6   : > { %3962 = vst [vmem:[%s4917_s20 + $0x1440] sm:$0xff] %v2938_v30  ;;  %v914_v30 = vld [vmem:[%s4895_s19 + $0x1500] sm:$0xff]  ;;  %v2961_v35 = vadd.f32 %v1937_v28, %v913_v27  ;;  %v1957_v24 = vld [vmem:[%s4902_s7 + $0x1598] sm:$0xff] }
 0x2f7   : > { %3963 = vst [vmem:[%s4917_s20 + $0x1448] sm:$0xff] %v2939_v33  ;;  %v915_v33 = vld [vmem:[%s4895_s19 + $0x1508] sm:$0xff]  ;;  %v2962_v38 = vadd.f32 %v1938_v31, %v914_v30  ;;  %v1958_v27 = vld [vmem:[%s4902_s7 + $0x15a0] sm:$0xff] }
 0x2f8   : > { %3964 = vst [vmem:[%s4917_s20 + $0x1450] sm:$0xff] %v2940_v36  ;;  %v916_v36 = vld [vmem:[%s4895_s19 + $0x1510] sm:$0xff]  ;;  %v2963_v41 = vadd.f32 %v1939_v34, %v915_v33  ;;  %v1959_v30 = vld [vmem:[%s4902_s7 + $0x15a8] sm:$0xff] }
 0x2f9   : > { %3965 = vst [vmem:[%s4917_s20 + $0x1458] sm:$0xff] %v2941_v39  ;;  %v917_v39 = vld [vmem:[%s4895_s19 + $0x1518] sm:$0xff]  ;;  %v2964_v44 = vadd.f32 %v1940_v37, %v916_v36  ;;  %v1960_v33 = vld [vmem:[%s4902_s7 + $0x15b0] sm:$0xff] }
 0x2fa   : > { %3966 = vst [vmem:[%s4917_s20 + $0x1460] sm:$0xff] %v2942_v42  ;;  %v918_v42 = vld [vmem:[%s4895_s19 + $0x1520] sm:$0xff]  ;;  %v2965_v47 = vadd.f32 %v1941_v40, %v917_v39  ;;  %v1961_v36 = vld [vmem:[%s4902_s7 + $0x15b8] sm:$0xff] }
 0x2fb   : > { %3967 = vst [vmem:[%s4917_s20 + $0x1468] sm:$0xff] %v2943_v45  ;;  %v919_v45 = vld [vmem:[%s4895_s19 + $0x1528] sm:$0xff]  ;;  %v2966_v50 = vadd.f32 %v1942_v43, %v918_v42  ;;  %v1962_v39 = vld [vmem:[%s4902_s7 + $0x15c0] sm:$0xff] }
 0x2fc   : > { %3968 = vst [vmem:[%s4917_s20 + $0x1470] sm:$0xff] %v2944_v48  ;;  %v920_v48 = vld [vmem:[%s4895_s19 + $0x1530] sm:$0xff]  ;;  %v2967_v53 = vadd.f32 %v1943_v46, %v919_v45  ;;  %v1963_v42 = vld [vmem:[%s4902_s7 + $0x15c8] sm:$0xff] }
 0x2fd   : > { %3969 = vst [vmem:[%s4917_s20 + $0x1478] sm:$0xff] %v2945_v51  ;;  %v921_v51 = vld [vmem:[%s4895_s19 + $0x1538] sm:$0xff]  ;;  %v2968_v56 = vadd.f32 %v1944_v49, %v920_v48  ;;  %v1964_v45 = vld [vmem:[%s4902_s7 + $0x15d0] sm:$0xff] }
 0x2fe   : > { %3970 = vst [vmem:[%s4917_s20 + $0x1480] sm:$0xff] %v2946_v54  ;;  %v922_v54 = vld [vmem:[%s4895_s19 + $0x1540] sm:$0xff]  ;;  %v2969_v59 = vadd.f32 %v1945_v52, %v921_v51  ;;  %v1965_v48 = vld [vmem:[%s4902_s7 + $0x15d8] sm:$0xff] }
 0x2ff   : > { %3971 = vst [vmem:[%s4917_s20 + $0x1488] sm:$0xff] %v2947_v57  ;;  %v923_v57 = vld [vmem:[%s4895_s19 + $0x1548] sm:$0xff]  ;;  %v2970_v62 = vadd.f32 %v1946_v55, %v922_v54  ;;  %v1966_v51 = vld [vmem:[%s4902_s7 + $0x15e0] sm:$0xff] }
 0x300   : > { %3972 = vst [vmem:[%s4917_s20 + $0x1490] sm:$0xff] %v2948_v60  ;;  %v924_v60 = vld [vmem:[%s4895_s19 + $0x1550] sm:$0xff]  ;;  %v2971_v1 = vadd.f32 %v1947_v58, %v923_v57  ;;  %v1967_v54 = vld [vmem:[%s4902_s7 + $0x15e8] sm:$0xff] }
 0x301   : > { %3973 = vst [vmem:[%s4917_s20 + $0x1498] sm:$0xff] %v2949_v63  ;;  %v925_v63 = vld [vmem:[%s4895_s19 + $0x1558] sm:$0xff]  ;;  %v2972_v4 = vadd.f32 %v1948_v61, %v924_v60  ;;  %v1968_v57 = vld [vmem:[%s4902_s7 + $0x15f0] sm:$0xff] }
 0x302   : > { %3974 = vst [vmem:[%s4917_s20 + $0x14a0] sm:$0xff] %v2950_v2  ;;  %v926_v2 = vld [vmem:[%s4895_s19 + $0x1560] sm:$0xff]  ;;  %v2973_v7 = vadd.f32 %v1949_v0, %v925_v63  ;;  %v1969_v60 = vld [vmem:[%s4902_s7 + $0x15f8] sm:$0xff] }
 0x303   : > { %3975 = vst [vmem:[%s4917_s20 + $0x14a8] sm:$0xff] %v2951_v5  ;;  %v927_v5 = vld [vmem:[%s4895_s19 + $0x1568] sm:$0xff]  ;;  %v2974_v10 = vadd.f32 %v1950_v3, %v926_v2  ;;  %v1970_v63 = vld [vmem:[%s4902_s7 + $0x1600] sm:$0xff] }
 0x304   : > { %3976 = vst [vmem:[%s4917_s20 + $0x14b0] sm:$0xff] %v2952_v8  ;;  %v928_v8 = vld [vmem:[%s4895_s19 + $0x1570] sm:$0xff]  ;;  %v2975_v13 = vadd.f32 %v1951_v6, %v927_v5  ;;  %v1971_v2 = vld [vmem:[%s4902_s7 + $0x1608] sm:$0xff] }
 0x305   : > { %3977 = vst [vmem:[%s4917_s20 + $0x14b8] sm:$0xff] %v2953_v11  ;;  %v929_v11 = vld [vmem:[%s4895_s19 + $0x1578] sm:$0xff]  ;;  %v2976_v16 = vadd.f32 %v1952_v9, %v928_v8  ;;  %v1972_v5 = vld [vmem:[%s4902_s7 + $0x1610] sm:$0xff] }
 0x306   : > { %3978 = vst [vmem:[%s4917_s20 + $0x14c0] sm:$0xff] %v2954_v14  ;;  %v930_v14 = vld [vmem:[%s4895_s19 + $0x1580] sm:$0xff]  ;;  %v2977_v19 = vadd.f32 %v1953_v12, %v929_v11  ;;  %v1973_v8 = vld [vmem:[%s4902_s7 + $0x1618] sm:$0xff] }
 0x307   : > { %3979 = vst [vmem:[%s4917_s20 + $0x14c8] sm:$0xff] %v2955_v17  ;;  %v931_v17 = vld [vmem:[%s4895_s19 + $0x1588] sm:$0xff]  ;;  %v2978_v22 = vadd.f32 %v1954_v15, %v930_v14  ;;  %v1974_v11 = vld [vmem:[%s4902_s7 + $0x1620] sm:$0xff] }
 0x308   : > { %3980 = vst [vmem:[%s4917_s20 + $0x14d0] sm:$0xff] %v2956_v20  ;;  %v932_v20 = vld [vmem:[%s4895_s19 + $0x1590] sm:$0xff]  ;;  %v2979_v25 = vadd.f32 %v1955_v18, %v931_v17  ;;  %v1975_v14 = vld [vmem:[%s4902_s7 + $0x1628] sm:$0xff] }
 0x309   : > { %3981 = vst [vmem:[%s4917_s20 + $0x14d8] sm:$0xff] %v2957_v23  ;;  %v933_v23 = vld [vmem:[%s4895_s19 + $0x1598] sm:$0xff]  ;;  %v2980_v28 = vadd.f32 %v1956_v21, %v932_v20  ;;  %v1976_v17 = vld [vmem:[%s4902_s7 + $0x1630] sm:$0xff] }
 0x30a   : > { %3982 = vst [vmem:[%s4917_s20 + $0x14e0] sm:$0xff] %v2958_v26  ;;  %v934_v26 = vld [vmem:[%s4895_s19 + $0x15a0] sm:$0xff]  ;;  %v2981_v31 = vadd.f32 %v1957_v24, %v933_v23  ;;  %v1977_v20 = vld [vmem:[%s4902_s7 + $0x1638] sm:$0xff] }
 0x30b   : > { %3983 = vst [vmem:[%s4917_s20 + $0x14e8] sm:$0xff] %v2959_v29  ;;  %v935_v29 = vld [vmem:[%s4895_s19 + $0x15a8] sm:$0xff]  ;;  %v2982_v34 = vadd.f32 %v1958_v27, %v934_v26  ;;  %v1978_v23 = vld [vmem:[%s4902_s7 + $0x1640] sm:$0xff] }
 0x30c   : > { %3984 = vst [vmem:[%s4917_s20 + $0x14f0] sm:$0xff] %v2960_v32  ;;  %v936_v32 = vld [vmem:[%s4895_s19 + $0x15b0] sm:$0xff]  ;;  %v2983_v37 = vadd.f32 %v1959_v30, %v935_v29  ;;  %v1979_v26 = vld [vmem:[%s4902_s7 + $0x1648] sm:$0xff] }
 0x30d   : > { %3985 = vst [vmem:[%s4917_s20 + $0x14f8] sm:$0xff] %v2961_v35  ;;  %v937_v35 = vld [vmem:[%s4895_s19 + $0x15b8] sm:$0xff]  ;;  %v2984_v40 = vadd.f32 %v1960_v33, %v936_v32  ;;  %v1980_v29 = vld [vmem:[%s4902_s7 + $0x1650] sm:$0xff] }
 0x30e   : > { %3986 = vst [vmem:[%s4917_s20 + $0x1500] sm:$0xff] %v2962_v38  ;;  %v938_v38 = vld [vmem:[%s4895_s19 + $0x15c0] sm:$0xff]  ;;  %v2985_v43 = vadd.f32 %v1961_v36, %v937_v35  ;;  %v1981_v32 = vld [vmem:[%s4902_s7 + $0x1658] sm:$0xff] }
 0x30f   : > { %3987 = vst [vmem:[%s4917_s20 + $0x1508] sm:$0xff] %v2963_v41  ;;  %v939_v41 = vld [vmem:[%s4895_s19 + $0x15c8] sm:$0xff]  ;;  %v2986_v46 = vadd.f32 %v1962_v39, %v938_v38  ;;  %v1982_v35 = vld [vmem:[%s4902_s7 + $0x1660] sm:$0xff] }
 0x310   : > { %3988 = vst [vmem:[%s4917_s20 + $0x1510] sm:$0xff] %v2964_v44  ;;  %v940_v44 = vld [vmem:[%s4895_s19 + $0x15d0] sm:$0xff]  ;;  %v2987_v49 = vadd.f32 %v1963_v42, %v939_v41  ;;  %v1983_v38 = vld [vmem:[%s4902_s7 + $0x1668] sm:$0xff] }
 0x311   : > { %3989 = vst [vmem:[%s4917_s20 + $0x1518] sm:$0xff] %v2965_v47  ;;  %v941_v47 = vld [vmem:[%s4895_s19 + $0x15d8] sm:$0xff]  ;;  %v2988_v52 = vadd.f32 %v1964_v45, %v940_v44  ;;  %v1984_v41 = vld [vmem:[%s4902_s7 + $0x1670] sm:$0xff] }
 0x312   : > { %3990 = vst [vmem:[%s4917_s20 + $0x1520] sm:$0xff] %v2966_v50  ;;  %v942_v50 = vld [vmem:[%s4895_s19 + $0x15e0] sm:$0xff]  ;;  %v2989_v55 = vadd.f32 %v1965_v48, %v941_v47  ;;  %v1985_v44 = vld [vmem:[%s4902_s7 + $0x1678] sm:$0xff] }
 0x313   : > { %3991 = vst [vmem:[%s4917_s20 + $0x1528] sm:$0xff] %v2967_v53  ;;  %v943_v53 = vld [vmem:[%s4895_s19 + $0x15e8] sm:$0xff]  ;;  %v2990_v58 = vadd.f32 %v1966_v51, %v942_v50  ;;  %v1986_v47 = vld [vmem:[%s4902_s7 + $0x1680] sm:$0xff] }
 0x314   : > { %3992 = vst [vmem:[%s4917_s20 + $0x1530] sm:$0xff] %v2968_v56  ;;  %v944_v56 = vld [vmem:[%s4895_s19 + $0x15f0] sm:$0xff]  ;;  %v2991_v61 = vadd.f32 %v1967_v54, %v943_v53  ;;  %v1987_v50 = vld [vmem:[%s4902_s7 + $0x1688] sm:$0xff] }
 0x315   : > { %3993 = vst [vmem:[%s4917_s20 + $0x1538] sm:$0xff] %v2969_v59  ;;  %v945_v59 = vld [vmem:[%s4895_s19 + $0x15f8] sm:$0xff]  ;;  %v2992_v0 = vadd.f32 %v1968_v57, %v944_v56  ;;  %v1988_v53 = vld [vmem:[%s4902_s7 + $0x1690] sm:$0xff] }
 0x316   : > { %3994 = vst [vmem:[%s4917_s20 + $0x1540] sm:$0xff] %v2970_v62  ;;  %v946_v62 = vld [vmem:[%s4895_s19 + $0x1600] sm:$0xff]  ;;  %v2993_v3 = vadd.f32 %v1969_v60, %v945_v59  ;;  %v1989_v56 = vld [vmem:[%s4902_s7 + $0x1698] sm:$0xff] }
 0x317   : > { %3995 = vst [vmem:[%s4917_s20 + $0x1548] sm:$0xff] %v2971_v1  ;;  %v947_v1 = vld [vmem:[%s4895_s19 + $0x1608] sm:$0xff]  ;;  %v2994_v6 = vadd.f32 %v1970_v63, %v946_v62  ;;  %v1990_v59 = vld [vmem:[%s4902_s7 + $0x16a0] sm:$0xff] }
 0x318   : > { %3996 = vst [vmem:[%s4917_s20 + $0x1550] sm:$0xff] %v2972_v4  ;;  %v948_v4 = vld [vmem:[%s4895_s19 + $0x1610] sm:$0xff]  ;;  %v2995_v9 = vadd.f32 %v1971_v2, %v947_v1  ;;  %v1991_v62 = vld [vmem:[%s4902_s7 + $0x16a8] sm:$0xff] }
 0x319   : > { %3997 = vst [vmem:[%s4917_s20 + $0x1558] sm:$0xff] %v2973_v7  ;;  %v949_v7 = vld [vmem:[%s4895_s19 + $0x1618] sm:$0xff]  ;;  %v2996_v12 = vadd.f32 %v1972_v5, %v948_v4  ;;  %v1992_v1 = vld [vmem:[%s4902_s7 + $0x16b0] sm:$0xff] }
 0x31a   : > { %3998 = vst [vmem:[%s4917_s20 + $0x1560] sm:$0xff] %v2974_v10  ;;  %v950_v10 = vld [vmem:[%s4895_s19 + $0x1620] sm:$0xff]  ;;  %v2997_v15 = vadd.f32 %v1973_v8, %v949_v7  ;;  %v1993_v4 = vld [vmem:[%s4902_s7 + $0x16b8] sm:$0xff] }
 0x31b   : > { %3999 = vst [vmem:[%s4917_s20 + $0x1568] sm:$0xff] %v2975_v13  ;;  %v951_v13 = vld [vmem:[%s4895_s19 + $0x1628] sm:$0xff]  ;;  %v2998_v18 = vadd.f32 %v1974_v11, %v950_v10  ;;  %v1994_v7 = vld [vmem:[%s4902_s7 + $0x16c0] sm:$0xff] }
 0x31c   : > { %4000 = vst [vmem:[%s4917_s20 + $0x1570] sm:$0xff] %v2976_v16  ;;  %v952_v16 = vld [vmem:[%s4895_s19 + $0x1630] sm:$0xff]  ;;  %v2999_v21 = vadd.f32 %v1975_v14, %v951_v13  ;;  %v1995_v10 = vld [vmem:[%s4902_s7 + $0x16c8] sm:$0xff] }
 0x31d   : > { %4001 = vst [vmem:[%s4917_s20 + $0x1578] sm:$0xff] %v2977_v19  ;;  %v953_v19 = vld [vmem:[%s4895_s19 + $0x1638] sm:$0xff]  ;;  %v3000_v24 = vadd.f32 %v1976_v17, %v952_v16  ;;  %v1996_v13 = vld [vmem:[%s4902_s7 + $0x16d0] sm:$0xff] }
 0x31e   : > { %4002 = vst [vmem:[%s4917_s20 + $0x1580] sm:$0xff] %v2978_v22  ;;  %v954_v22 = vld [vmem:[%s4895_s19 + $0x1640] sm:$0xff]  ;;  %v3001_v27 = vadd.f32 %v1977_v20, %v953_v19  ;;  %v1997_v16 = vld [vmem:[%s4902_s7 + $0x16d8] sm:$0xff] }
 0x31f   : > { %4003 = vst [vmem:[%s4917_s20 + $0x1588] sm:$0xff] %v2979_v25  ;;  %v955_v25 = vld [vmem:[%s4895_s19 + $0x1648] sm:$0xff]  ;;  %v3002_v30 = vadd.f32 %v1978_v23, %v954_v22  ;;  %v1998_v19 = vld [vmem:[%s4902_s7 + $0x16e0] sm:$0xff] }
 0x320   : > { %4004 = vst [vmem:[%s4917_s20 + $0x1590] sm:$0xff] %v2980_v28  ;;  %v956_v28 = vld [vmem:[%s4895_s19 + $0x1650] sm:$0xff]  ;;  %v3003_v33 = vadd.f32 %v1979_v26, %v955_v25  ;;  %v1999_v22 = vld [vmem:[%s4902_s7 + $0x16e8] sm:$0xff] }
 0x321   : > { %4005 = vst [vmem:[%s4917_s20 + $0x1598] sm:$0xff] %v2981_v31  ;;  %v957_v31 = vld [vmem:[%s4895_s19 + $0x1658] sm:$0xff]  ;;  %v3004_v36 = vadd.f32 %v1980_v29, %v956_v28  ;;  %v2000_v25 = vld [vmem:[%s4902_s7 + $0x16f0] sm:$0xff] }
 0x322   : > { %4006 = vst [vmem:[%s4917_s20 + $0x15a0] sm:$0xff] %v2982_v34  ;;  %v958_v34 = vld [vmem:[%s4895_s19 + $0x1660] sm:$0xff]  ;;  %v3005_v39 = vadd.f32 %v1981_v32, %v957_v31  ;;  %v2001_v28 = vld [vmem:[%s4902_s7 + $0x16f8] sm:$0xff] }
 0x323   : > { %4007 = vst [vmem:[%s4917_s20 + $0x15a8] sm:$0xff] %v2983_v37  ;;  %v959_v37 = vld [vmem:[%s4895_s19 + $0x1668] sm:$0xff]  ;;  %v3006_v42 = vadd.f32 %v1982_v35, %v958_v34  ;;  %v2002_v31 = vld [vmem:[%s4902_s7 + $0x1700] sm:$0xff] }
 0x324   : > { %4008 = vst [vmem:[%s4917_s20 + $0x15b0] sm:$0xff] %v2984_v40  ;;  %v960_v40 = vld [vmem:[%s4895_s19 + $0x1670] sm:$0xff]  ;;  %v3007_v45 = vadd.f32 %v1983_v38, %v959_v37  ;;  %v2003_v34 = vld [vmem:[%s4902_s7 + $0x1708] sm:$0xff] }
 0x325   : > { %4009 = vst [vmem:[%s4917_s20 + $0x15b8] sm:$0xff] %v2985_v43  ;;  %v961_v43 = vld [vmem:[%s4895_s19 + $0x1678] sm:$0xff]  ;;  %v3008_v48 = vadd.f32 %v1984_v41, %v960_v40  ;;  %v2004_v37 = vld [vmem:[%s4902_s7 + $0x1710] sm:$0xff] }
 0x326   : > { %4010 = vst [vmem:[%s4917_s20 + $0x15c0] sm:$0xff] %v2986_v46  ;;  %v962_v46 = vld [vmem:[%s4895_s19 + $0x1680] sm:$0xff]  ;;  %v3009_v51 = vadd.f32 %v1985_v44, %v961_v43  ;;  %v2005_v40 = vld [vmem:[%s4902_s7 + $0x1718] sm:$0xff] }
 0x327   : > { %4011 = vst [vmem:[%s4917_s20 + $0x15c8] sm:$0xff] %v2987_v49  ;;  %v963_v49 = vld [vmem:[%s4895_s19 + $0x1688] sm:$0xff]  ;;  %v3010_v54 = vadd.f32 %v1986_v47, %v962_v46  ;;  %v2006_v43 = vld [vmem:[%s4902_s7 + $0x1720] sm:$0xff] }
 0x328   : > { %4012 = vst [vmem:[%s4917_s20 + $0x15d0] sm:$0xff] %v2988_v52  ;;  %v964_v52 = vld [vmem:[%s4895_s19 + $0x1690] sm:$0xff]  ;;  %v3011_v57 = vadd.f32 %v1987_v50, %v963_v49  ;;  %v2007_v46 = vld [vmem:[%s4902_s7 + $0x1728] sm:$0xff] }
 0x329   : > { %4013 = vst [vmem:[%s4917_s20 + $0x15d8] sm:$0xff] %v2989_v55  ;;  %v965_v55 = vld [vmem:[%s4895_s19 + $0x1698] sm:$0xff]  ;;  %v3012_v60 = vadd.f32 %v1988_v53, %v964_v52  ;;  %v2008_v49 = vld [vmem:[%s4902_s7 + $0x1730] sm:$0xff] }
 0x32a   : > { %4014 = vst [vmem:[%s4917_s20 + $0x15e0] sm:$0xff] %v2990_v58  ;;  %v966_v58 = vld [vmem:[%s4895_s19 + $0x16a0] sm:$0xff]  ;;  %v3013_v63 = vadd.f32 %v1989_v56, %v965_v55  ;;  %v2009_v52 = vld [vmem:[%s4902_s7 + $0x1738] sm:$0xff] }
 0x32b   : > { %4015 = vst [vmem:[%s4917_s20 + $0x15e8] sm:$0xff] %v2991_v61  ;;  %v967_v61 = vld [vmem:[%s4895_s19 + $0x16a8] sm:$0xff]  ;;  %v3014_v2 = vadd.f32 %v1990_v59, %v966_v58  ;;  %v2010_v55 = vld [vmem:[%s4902_s7 + $0x1740] sm:$0xff] }
 0x32c   : > { %4016 = vst [vmem:[%s4917_s20 + $0x15f0] sm:$0xff] %v2992_v0  ;;  %v968_v0 = vld [vmem:[%s4895_s19 + $0x16b0] sm:$0xff]  ;;  %v3015_v5 = vadd.f32 %v1991_v62, %v967_v61  ;;  %v2011_v58 = vld [vmem:[%s4902_s7 + $0x1748] sm:$0xff] }
 0x32d   : > { %4017 = vst [vmem:[%s4917_s20 + $0x15f8] sm:$0xff] %v2993_v3  ;;  %v969_v3 = vld [vmem:[%s4895_s19 + $0x16b8] sm:$0xff]  ;;  %v3016_v8 = vadd.f32 %v1992_v1, %v968_v0  ;;  %v2012_v61 = vld [vmem:[%s4902_s7 + $0x1750] sm:$0xff] }
 0x32e   : > { %4018 = vst [vmem:[%s4917_s20 + $0x1600] sm:$0xff] %v2994_v6  ;;  %v970_v6 = vld [vmem:[%s4895_s19 + $0x16c0] sm:$0xff]  ;;  %v3017_v11 = vadd.f32 %v1993_v4, %v969_v3  ;;  %v2013_v0 = vld [vmem:[%s4902_s7 + $0x1758] sm:$0xff] }
 0x32f   : > { %4019 = vst [vmem:[%s4917_s20 + $0x1608] sm:$0xff] %v2995_v9  ;;  %v971_v9 = vld [vmem:[%s4895_s19 + $0x16c8] sm:$0xff]  ;;  %v3018_v14 = vadd.f32 %v1994_v7, %v970_v6  ;;  %v2014_v3 = vld [vmem:[%s4902_s7 + $0x1760] sm:$0xff] }
 0x330   : > { %4020 = vst [vmem:[%s4917_s20 + $0x1610] sm:$0xff] %v2996_v12  ;;  %v972_v12 = vld [vmem:[%s4895_s19 + $0x16d0] sm:$0xff]  ;;  %v3019_v17 = vadd.f32 %v1995_v10, %v971_v9  ;;  %v2015_v6 = vld [vmem:[%s4902_s7 + $0x1768] sm:$0xff] }
 0x331   : > { %4021 = vst [vmem:[%s4917_s20 + $0x1618] sm:$0xff] %v2997_v15  ;;  %v973_v15 = vld [vmem:[%s4895_s19 + $0x16d8] sm:$0xff]  ;;  %v3020_v20 = vadd.f32 %v1996_v13, %v972_v12  ;;  %v2016_v9 = vld [vmem:[%s4902_s7 + $0x1770] sm:$0xff] }
 0x332   : > { %4022 = vst [vmem:[%s4917_s20 + $0x1620] sm:$0xff] %v2998_v18  ;;  %v974_v18 = vld [vmem:[%s4895_s19 + $0x16e0] sm:$0xff]  ;;  %v3021_v23 = vadd.f32 %v1997_v16, %v973_v15  ;;  %v2017_v12 = vld [vmem:[%s4902_s7 + $0x1778] sm:$0xff] }
 0x333   : > { %4023 = vst [vmem:[%s4917_s20 + $0x1628] sm:$0xff] %v2999_v21  ;;  %v975_v21 = vld [vmem:[%s4895_s19 + $0x16e8] sm:$0xff]  ;;  %v3022_v26 = vadd.f32 %v1998_v19, %v974_v18  ;;  %v2018_v15 = vld [vmem:[%s4902_s7 + $0x1780] sm:$0xff] }
 0x334   : > { %4024 = vst [vmem:[%s4917_s20 + $0x1630] sm:$0xff] %v3000_v24  ;;  %v976_v24 = vld [vmem:[%s4895_s19 + $0x16f0] sm:$0xff]  ;;  %v3023_v29 = vadd.f32 %v1999_v22, %v975_v21  ;;  %v2019_v18 = vld [vmem:[%s4902_s7 + $0x1788] sm:$0xff] }
 0x335   : > { %4025 = vst [vmem:[%s4917_s20 + $0x1638] sm:$0xff] %v3001_v27  ;;  %v977_v27 = vld [vmem:[%s4895_s19 + $0x16f8] sm:$0xff]  ;;  %v3024_v32 = vadd.f32 %v2000_v25, %v976_v24  ;;  %v2020_v21 = vld [vmem:[%s4902_s7 + $0x1790] sm:$0xff] }
 0x336   : > { %4026 = vst [vmem:[%s4917_s20 + $0x1640] sm:$0xff] %v3002_v30  ;;  %v978_v30 = vld [vmem:[%s4895_s19 + $0x1700] sm:$0xff]  ;;  %v3025_v35 = vadd.f32 %v2001_v28, %v977_v27  ;;  %v2021_v24 = vld [vmem:[%s4902_s7 + $0x1798] sm:$0xff] }
 0x337   : > { %4027 = vst [vmem:[%s4917_s20 + $0x1648] sm:$0xff] %v3003_v33  ;;  %v979_v33 = vld [vmem:[%s4895_s19 + $0x1708] sm:$0xff]  ;;  %v3026_v38 = vadd.f32 %v2002_v31, %v978_v30  ;;  %v2022_v27 = vld [vmem:[%s4902_s7 + $0x17a0] sm:$0xff] }
 0x338   : > { %4028 = vst [vmem:[%s4917_s20 + $0x1650] sm:$0xff] %v3004_v36  ;;  %v980_v36 = vld [vmem:[%s4895_s19 + $0x1710] sm:$0xff]  ;;  %v3027_v41 = vadd.f32 %v2003_v34, %v979_v33  ;;  %v2023_v30 = vld [vmem:[%s4902_s7 + $0x17a8] sm:$0xff] }
 0x339   : > { %4029 = vst [vmem:[%s4917_s20 + $0x1658] sm:$0xff] %v3005_v39  ;;  %v981_v39 = vld [vmem:[%s4895_s19 + $0x1718] sm:$0xff]  ;;  %v3028_v44 = vadd.f32 %v2004_v37, %v980_v36  ;;  %v2024_v33 = vld [vmem:[%s4902_s7 + $0x17b0] sm:$0xff] }
 0x33a   : > { %4030 = vst [vmem:[%s4917_s20 + $0x1660] sm:$0xff] %v3006_v42  ;;  %v982_v42 = vld [vmem:[%s4895_s19 + $0x1720] sm:$0xff]  ;;  %v3029_v47 = vadd.f32 %v2005_v40, %v981_v39  ;;  %v2025_v36 = vld [vmem:[%s4902_s7 + $0x17b8] sm:$0xff] }
 0x33b   : > { %4031 = vst [vmem:[%s4917_s20 + $0x1668] sm:$0xff] %v3007_v45  ;;  %v983_v45 = vld [vmem:[%s4895_s19 + $0x1728] sm:$0xff]  ;;  %v3030_v50 = vadd.f32 %v2006_v43, %v982_v42  ;;  %v2026_v39 = vld [vmem:[%s4902_s7 + $0x17c0] sm:$0xff] }
 0x33c   : > { %4032 = vst [vmem:[%s4917_s20 + $0x1670] sm:$0xff] %v3008_v48  ;;  %v984_v48 = vld [vmem:[%s4895_s19 + $0x1730] sm:$0xff]  ;;  %v3031_v53 = vadd.f32 %v2007_v46, %v983_v45  ;;  %v2027_v42 = vld [vmem:[%s4902_s7 + $0x17c8] sm:$0xff] }
 0x33d   : > { %4033 = vst [vmem:[%s4917_s20 + $0x1678] sm:$0xff] %v3009_v51  ;;  %v985_v51 = vld [vmem:[%s4895_s19 + $0x1738] sm:$0xff]  ;;  %v3032_v56 = vadd.f32 %v2008_v49, %v984_v48  ;;  %v2028_v45 = vld [vmem:[%s4902_s7 + $0x17d0] sm:$0xff] }
 0x33e   : > { %4034 = vst [vmem:[%s4917_s20 + $0x1680] sm:$0xff] %v3010_v54  ;;  %v986_v54 = vld [vmem:[%s4895_s19 + $0x1740] sm:$0xff]  ;;  %v3033_v59 = vadd.f32 %v2009_v52, %v985_v51  ;;  %v2029_v48 = vld [vmem:[%s4902_s7 + $0x17d8] sm:$0xff] }
 0x33f   : > { %4035 = vst [vmem:[%s4917_s20 + $0x1688] sm:$0xff] %v3011_v57  ;;  %v987_v57 = vld [vmem:[%s4895_s19 + $0x1748] sm:$0xff]  ;;  %v3034_v62 = vadd.f32 %v2010_v55, %v986_v54  ;;  %v2030_v51 = vld [vmem:[%s4902_s7 + $0x17e0] sm:$0xff] }
 0x340   : > { %4036 = vst [vmem:[%s4917_s20 + $0x1690] sm:$0xff] %v3012_v60  ;;  %v988_v60 = vld [vmem:[%s4895_s19 + $0x1750] sm:$0xff]  ;;  %v3035_v1 = vadd.f32 %v2011_v58, %v987_v57  ;;  %v2031_v54 = vld [vmem:[%s4902_s7 + $0x17e8] sm:$0xff] }
 0x341   : > { %4037 = vst [vmem:[%s4917_s20 + $0x1698] sm:$0xff] %v3013_v63  ;;  %v989_v63 = vld [vmem:[%s4895_s19 + $0x1758] sm:$0xff]  ;;  %v3036_v4 = vadd.f32 %v2012_v61, %v988_v60  ;;  %v2032_v57 = vld [vmem:[%s4902_s7 + $0x17f0] sm:$0xff] }
 0x342   : > { %4038 = vst [vmem:[%s4917_s20 + $0x16a0] sm:$0xff] %v3014_v2  ;;  %v990_v2 = vld [vmem:[%s4895_s19 + $0x1760] sm:$0xff]  ;;  %v3037_v7 = vadd.f32 %v2013_v0, %v989_v63  ;;  %v2033_v60 = vld [vmem:[%s4902_s7 + $0x17f8] sm:$0xff] }
 0x343   : > { %4039 = vst [vmem:[%s4917_s20 + $0x16a8] sm:$0xff] %v3015_v5  ;;  %v991_v5 = vld [vmem:[%s4895_s19 + $0x1768] sm:$0xff]  ;;  %v3038_v10 = vadd.f32 %v2014_v3, %v990_v2  ;;  %v2034_v63 = vld [vmem:[%s4902_s7 + $0x1800] sm:$0xff] }
 0x344   : > { %4040 = vst [vmem:[%s4917_s20 + $0x16b0] sm:$0xff] %v3016_v8  ;;  %v992_v8 = vld [vmem:[%s4895_s19 + $0x1770] sm:$0xff]  ;;  %v3039_v13 = vadd.f32 %v2015_v6, %v991_v5  ;;  %v2035_v2 = vld [vmem:[%s4902_s7 + $0x1808] sm:$0xff] }
 0x345   : > { %4041 = vst [vmem:[%s4917_s20 + $0x16b8] sm:$0xff] %v3017_v11  ;;  %v993_v11 = vld [vmem:[%s4895_s19 + $0x1778] sm:$0xff]  ;;  %v3040_v16 = vadd.f32 %v2016_v9, %v992_v8  ;;  %v2036_v5 = vld [vmem:[%s4902_s7 + $0x1810] sm:$0xff] }
 0x346   : > { %4042 = vst [vmem:[%s4917_s20 + $0x16c0] sm:$0xff] %v3018_v14  ;;  %v994_v14 = vld [vmem:[%s4895_s19 + $0x1780] sm:$0xff]  ;;  %v3041_v19 = vadd.f32 %v2017_v12, %v993_v11  ;;  %v2037_v8 = vld [vmem:[%s4902_s7 + $0x1818] sm:$0xff] }
 0x347   : > { %4043 = vst [vmem:[%s4917_s20 + $0x16c8] sm:$0xff] %v3019_v17  ;;  %v995_v17 = vld [vmem:[%s4895_s19 + $0x1788] sm:$0xff]  ;;  %v3042_v22 = vadd.f32 %v2018_v15, %v994_v14  ;;  %v2038_v11 = vld [vmem:[%s4902_s7 + $0x1820] sm:$0xff] }
 0x348   : > { %4044 = vst [vmem:[%s4917_s20 + $0x16d0] sm:$0xff] %v3020_v20  ;;  %v996_v20 = vld [vmem:[%s4895_s19 + $0x1790] sm:$0xff]  ;;  %v3043_v25 = vadd.f32 %v2019_v18, %v995_v17  ;;  %v2039_v14 = vld [vmem:[%s4902_s7 + $0x1828] sm:$0xff] }
 0x349   : > { %4045 = vst [vmem:[%s4917_s20 + $0x16d8] sm:$0xff] %v3021_v23  ;;  %v997_v23 = vld [vmem:[%s4895_s19 + $0x1798] sm:$0xff]  ;;  %v3044_v28 = vadd.f32 %v2020_v21, %v996_v20  ;;  %v2040_v17 = vld [vmem:[%s4902_s7 + $0x1830] sm:$0xff] }
 0x34a   : > { %4046 = vst [vmem:[%s4917_s20 + $0x16e0] sm:$0xff] %v3022_v26  ;;  %v998_v26 = vld [vmem:[%s4895_s19 + $0x17a0] sm:$0xff]  ;;  %v3045_v31 = vadd.f32 %v2021_v24, %v997_v23  ;;  %v2041_v20 = vld [vmem:[%s4902_s7 + $0x1838] sm:$0xff] }
 0x34b   : > { %4047 = vst [vmem:[%s4917_s20 + $0x16e8] sm:$0xff] %v3023_v29  ;;  %v999_v29 = vld [vmem:[%s4895_s19 + $0x17a8] sm:$0xff]  ;;  %v3046_v34 = vadd.f32 %v2022_v27, %v998_v26  ;;  %v2042_v23 = vld [vmem:[%s4902_s7 + $0x1840] sm:$0xff] }
 0x34c   : > { %4048 = vst [vmem:[%s4917_s20 + $0x16f0] sm:$0xff] %v3024_v32  ;;  %v1000_v32 = vld [vmem:[%s4895_s19 + $0x17b0] sm:$0xff]  ;;  %v3047_v37 = vadd.f32 %v2023_v30, %v999_v29  ;;  %v2043_v26 = vld [vmem:[%s4902_s7 + $0x1848] sm:$0xff] }
 0x34d   : > { %4049 = vst [vmem:[%s4917_s20 + $0x16f8] sm:$0xff] %v3025_v35  ;;  %v1001_v35 = vld [vmem:[%s4895_s19 + $0x17b8] sm:$0xff]  ;;  %v3048_v40 = vadd.f32 %v2024_v33, %v1000_v32  ;;  %v2044_v29 = vld [vmem:[%s4902_s7 + $0x1850] sm:$0xff] }
 0x34e   : > { %4050 = vst [vmem:[%s4917_s20 + $0x1700] sm:$0xff] %v3026_v38  ;;  %v1002_v38 = vld [vmem:[%s4895_s19 + $0x17c0] sm:$0xff]  ;;  %v3049_v43 = vadd.f32 %v2025_v36, %v1001_v35  ;;  %v2045_v32 = vld [vmem:[%s4902_s7 + $0x1858] sm:$0xff] }
 0x34f   : > { %4051 = vst [vmem:[%s4917_s20 + $0x1708] sm:$0xff] %v3027_v41  ;;  %v1003_v41 = vld [vmem:[%s4895_s19 + $0x17c8] sm:$0xff]  ;;  %v3050_v46 = vadd.f32 %v2026_v39, %v1002_v38  ;;  %v2046_v35 = vld [vmem:[%s4902_s7 + $0x1860] sm:$0xff] }
 0x350   : > { %4052 = vst [vmem:[%s4917_s20 + $0x1710] sm:$0xff] %v3028_v44  ;;  %v1004_v44 = vld [vmem:[%s4895_s19 + $0x17d0] sm:$0xff]  ;;  %v3051_v49 = vadd.f32 %v2027_v42, %v1003_v41  ;;  %v2047_v38 = vld [vmem:[%s4902_s7 + $0x1868] sm:$0xff] }
 0x351   : > { %4053 = vst [vmem:[%s4917_s20 + $0x1718] sm:$0xff] %v3029_v47  ;;  %v1005_v47 = vld [vmem:[%s4895_s19 + $0x17d8] sm:$0xff]  ;;  %v3052_v52 = vadd.f32 %v2028_v45, %v1004_v44  ;;  %v2048_v41 = vld [vmem:[%s4902_s7 + $0x1870] sm:$0xff] }
 0x352   : > { %4054 = vst [vmem:[%s4917_s20 + $0x1720] sm:$0xff] %v3030_v50  ;;  %v1006_v50 = vld [vmem:[%s4895_s19 + $0x17e0] sm:$0xff]  ;;  %v3053_v55 = vadd.f32 %v2029_v48, %v1005_v47  ;;  %v2049_v44 = vld [vmem:[%s4902_s7 + $0x1878] sm:$0xff] }
 0x353   : > { %4055 = vst [vmem:[%s4917_s20 + $0x1728] sm:$0xff] %v3031_v53  ;;  %v1007_v53 = vld [vmem:[%s4895_s19 + $0x17e8] sm:$0xff]  ;;  %v3054_v58 = vadd.f32 %v2030_v51, %v1006_v50  ;;  %v2050_v47 = vld [vmem:[%s4902_s7 + $0x1880] sm:$0xff] }
 0x354   : > { %4056 = vst [vmem:[%s4917_s20 + $0x1730] sm:$0xff] %v3032_v56  ;;  %v1008_v56 = vld [vmem:[%s4895_s19 + $0x17f0] sm:$0xff]  ;;  %v3055_v61 = vadd.f32 %v2031_v54, %v1007_v53  ;;  %v2051_v50 = vld [vmem:[%s4902_s7 + $0x1888] sm:$0xff] }
 0x355   : > { %4057 = vst [vmem:[%s4917_s20 + $0x1738] sm:$0xff] %v3033_v59  ;;  %v1009_v59 = vld [vmem:[%s4895_s19 + $0x17f8] sm:$0xff]  ;;  %v3056_v0 = vadd.f32 %v2032_v57, %v1008_v56  ;;  %v2052_v53 = vld [vmem:[%s4902_s7 + $0x1890] sm:$0xff] }
 0x356   : > { %4058 = vst [vmem:[%s4917_s20 + $0x1740] sm:$0xff] %v3034_v62  ;;  %v1010_v62 = vld [vmem:[%s4895_s19 + $0x1800] sm:$0xff]  ;;  %v3057_v3 = vadd.f32 %v2033_v60, %v1009_v59  ;;  %v2053_v56 = vld [vmem:[%s4902_s7 + $0x1898] sm:$0xff] }
 0x357   : > { %4059 = vst [vmem:[%s4917_s20 + $0x1748] sm:$0xff] %v3035_v1  ;;  %v1011_v1 = vld [vmem:[%s4895_s19 + $0x1808] sm:$0xff]  ;;  %v3058_v6 = vadd.f32 %v2034_v63, %v1010_v62  ;;  %v2054_v59 = vld [vmem:[%s4902_s7 + $0x18a0] sm:$0xff] }
 0x358   : > { %4060 = vst [vmem:[%s4917_s20 + $0x1750] sm:$0xff] %v3036_v4  ;;  %v1012_v4 = vld [vmem:[%s4895_s19 + $0x1810] sm:$0xff]  ;;  %v3059_v9 = vadd.f32 %v2035_v2, %v1011_v1  ;;  %v2055_v62 = vld [vmem:[%s4902_s7 + $0x18a8] sm:$0xff] }
 0x359   : > { %4061 = vst [vmem:[%s4917_s20 + $0x1758] sm:$0xff] %v3037_v7  ;;  %v1013_v7 = vld [vmem:[%s4895_s19 + $0x1818] sm:$0xff]  ;;  %v3060_v12 = vadd.f32 %v2036_v5, %v1012_v4  ;;  %v2056_v1 = vld [vmem:[%s4902_s7 + $0x18b0] sm:$0xff] }
 0x35a   : > { %4062 = vst [vmem:[%s4917_s20 + $0x1760] sm:$0xff] %v3038_v10  ;;  %v1014_v10 = vld [vmem:[%s4895_s19 + $0x1820] sm:$0xff]  ;;  %v3061_v15 = vadd.f32 %v2037_v8, %v1013_v7  ;;  %v2057_v4 = vld [vmem:[%s4902_s7 + $0x18b8] sm:$0xff] }
 0x35b   : > { %4063 = vst [vmem:[%s4917_s20 + $0x1768] sm:$0xff] %v3039_v13  ;;  %v1015_v13 = vld [vmem:[%s4895_s19 + $0x1828] sm:$0xff]  ;;  %v3062_v18 = vadd.f32 %v2038_v11, %v1014_v10  ;;  %v2058_v7 = vld [vmem:[%s4902_s7 + $0x18c0] sm:$0xff] }
 0x35c   : > { %4064 = vst [vmem:[%s4917_s20 + $0x1770] sm:$0xff] %v3040_v16  ;;  %v1016_v16 = vld [vmem:[%s4895_s19 + $0x1830] sm:$0xff]  ;;  %v3063_v21 = vadd.f32 %v2039_v14, %v1015_v13  ;;  %v2059_v10 = vld [vmem:[%s4902_s7 + $0x18c8] sm:$0xff] }
 0x35d   : > { %4065 = vst [vmem:[%s4917_s20 + $0x1778] sm:$0xff] %v3041_v19  ;;  %v1017_v19 = vld [vmem:[%s4895_s19 + $0x1838] sm:$0xff]  ;;  %v3064_v24 = vadd.f32 %v2040_v17, %v1016_v16  ;;  %v2060_v13 = vld [vmem:[%s4902_s7 + $0x18d0] sm:$0xff] }
 0x35e   : > { %4066 = vst [vmem:[%s4917_s20 + $0x1780] sm:$0xff] %v3042_v22  ;;  %v1018_v22 = vld [vmem:[%s4895_s19 + $0x1840] sm:$0xff]  ;;  %v3065_v27 = vadd.f32 %v2041_v20, %v1017_v19  ;;  %v2061_v16 = vld [vmem:[%s4902_s7 + $0x18d8] sm:$0xff] }
 0x35f   : > { %4067 = vst [vmem:[%s4917_s20 + $0x1788] sm:$0xff] %v3043_v25  ;;  %v1019_v25 = vld [vmem:[%s4895_s19 + $0x1848] sm:$0xff]  ;;  %v3066_v30 = vadd.f32 %v2042_v23, %v1018_v22  ;;  %v2062_v19 = vld [vmem:[%s4902_s7 + $0x18e0] sm:$0xff] }
 0x360   : > { %4068 = vst [vmem:[%s4917_s20 + $0x1790] sm:$0xff] %v3044_v28  ;;  %v1020_v28 = vld [vmem:[%s4895_s19 + $0x1850] sm:$0xff]  ;;  %v3067_v33 = vadd.f32 %v2043_v26, %v1019_v25  ;;  %v2063_v22 = vld [vmem:[%s4902_s7 + $0x18e8] sm:$0xff] }
 0x361   : > { %4069 = vst [vmem:[%s4917_s20 + $0x1798] sm:$0xff] %v3045_v31  ;;  %v1021_v31 = vld [vmem:[%s4895_s19 + $0x1858] sm:$0xff]  ;;  %v3068_v36 = vadd.f32 %v2044_v29, %v1020_v28  ;;  %v2064_v25 = vld [vmem:[%s4902_s7 + $0x18f0] sm:$0xff] }
 0x362   : > { %4070 = vst [vmem:[%s4917_s20 + $0x17a0] sm:$0xff] %v3046_v34  ;;  %v1022_v34 = vld [vmem:[%s4895_s19 + $0x1860] sm:$0xff]  ;;  %v3069_v39 = vadd.f32 %v2045_v32, %v1021_v31  ;;  %v2065_v28 = vld [vmem:[%s4902_s7 + $0x18f8] sm:$0xff] }
 0x363   : > { %4071 = vst [vmem:[%s4917_s20 + $0x17a8] sm:$0xff] %v3047_v37  ;;  %v1023_v37 = vld [vmem:[%s4895_s19 + $0x1868] sm:$0xff]  ;;  %v3070_v42 = vadd.f32 %v2046_v35, %v1022_v34  ;;  %v2066_v31 = vld [vmem:[%s4902_s7 + $0x1900] sm:$0xff] }
 0x364   : > { %4072 = vst [vmem:[%s4917_s20 + $0x17b0] sm:$0xff] %v3048_v40  ;;  %v1024_v40 = vld [vmem:[%s4895_s19 + $0x1870] sm:$0xff]  ;;  %v3071_v45 = vadd.f32 %v2047_v38, %v1023_v37  ;;  %v2067_v34 = vld [vmem:[%s4902_s7 + $0x1908] sm:$0xff] }
 0x365   : > { %4073 = vst [vmem:[%s4917_s20 + $0x17b8] sm:$0xff] %v3049_v43  ;;  %v1025_v43 = vld [vmem:[%s4895_s19 + $0x1878] sm:$0xff]  ;;  %v3072_v48 = vadd.f32 %v2048_v41, %v1024_v40  ;;  %v2068_v37 = vld [vmem:[%s4902_s7 + $0x1910] sm:$0xff] }
 0x366   : > { %4074 = vst [vmem:[%s4917_s20 + $0x17c0] sm:$0xff] %v3050_v46  ;;  %v1026_v46 = vld [vmem:[%s4895_s19 + $0x1880] sm:$0xff]  ;;  %v3073_v51 = vadd.f32 %v2049_v44, %v1025_v43  ;;  %v2069_v40 = vld [vmem:[%s4902_s7 + $0x1918] sm:$0xff] }
 0x367   : > { %4075 = vst [vmem:[%s4917_s20 + $0x17c8] sm:$0xff] %v3051_v49  ;;  %v1027_v49 = vld [vmem:[%s4895_s19 + $0x1888] sm:$0xff]  ;;  %v3074_v54 = vadd.f32 %v2050_v47, %v1026_v46  ;;  %v2070_v43 = vld [vmem:[%s4902_s7 + $0x1920] sm:$0xff] }
 0x368   : > { %4076 = vst [vmem:[%s4917_s20 + $0x17d0] sm:$0xff] %v3052_v52  ;;  %v1028_v52 = vld [vmem:[%s4895_s19 + $0x1890] sm:$0xff]  ;;  %v3075_v57 = vadd.f32 %v2051_v50, %v1027_v49  ;;  %v2071_v46 = vld [vmem:[%s4902_s7 + $0x1928] sm:$0xff] }
 0x369   : > { %4077 = vst [vmem:[%s4917_s20 + $0x17d8] sm:$0xff] %v3053_v55  ;;  %v1029_v55 = vld [vmem:[%s4895_s19 + $0x1898] sm:$0xff]  ;;  %v3076_v60 = vadd.f32 %v2052_v53, %v1028_v52  ;;  %v2072_v49 = vld [vmem:[%s4902_s7 + $0x1930] sm:$0xff] }
 0x36a   : > { %4078 = vst [vmem:[%s4917_s20 + $0x17e0] sm:$0xff] %v3054_v58  ;;  %v1030_v58 = vld [vmem:[%s4895_s19 + $0x18a0] sm:$0xff]  ;;  %v3077_v63 = vadd.f32 %v2053_v56, %v1029_v55  ;;  %v2073_v52 = vld [vmem:[%s4902_s7 + $0x1938] sm:$0xff] }
 0x36b   : > { %4079 = vst [vmem:[%s4917_s20 + $0x17e8] sm:$0xff] %v3055_v61  ;;  %v1031_v61 = vld [vmem:[%s4895_s19 + $0x18a8] sm:$0xff]  ;;  %v3078_v2 = vadd.f32 %v2054_v59, %v1030_v58  ;;  %v2074_v55 = vld [vmem:[%s4902_s7 + $0x1940] sm:$0xff] }
 0x36c   : > { %4080 = vst [vmem:[%s4917_s20 + $0x17f0] sm:$0xff] %v3056_v0  ;;  %v1032_v0 = vld [vmem:[%s4895_s19 + $0x18b0] sm:$0xff]  ;;  %v3079_v5 = vadd.f32 %v2055_v62, %v1031_v61  ;;  %v2075_v58 = vld [vmem:[%s4902_s7 + $0x1948] sm:$0xff] }
 0x36d   : > { %4081 = vst [vmem:[%s4917_s20 + $0x17f8] sm:$0xff] %v3057_v3  ;;  %v1033_v3 = vld [vmem:[%s4895_s19 + $0x18b8] sm:$0xff]  ;;  %v3080_v8 = vadd.f32 %v2056_v1, %v1032_v0  ;;  %v2076_v61 = vld [vmem:[%s4902_s7 + $0x1950] sm:$0xff] }
 0x36e   : > { %4082 = vst [vmem:[%s4917_s20 + $0x1800] sm:$0xff] %v3058_v6  ;;  %v1034_v6 = vld [vmem:[%s4895_s19 + $0x18c0] sm:$0xff]  ;;  %v3081_v11 = vadd.f32 %v2057_v4, %v1033_v3  ;;  %v2077_v0 = vld [vmem:[%s4902_s7 + $0x1958] sm:$0xff] }
 0x36f   : > { %4083 = vst [vmem:[%s4917_s20 + $0x1808] sm:$0xff] %v3059_v9  ;;  %v1035_v9 = vld [vmem:[%s4895_s19 + $0x18c8] sm:$0xff]  ;;  %v3082_v14 = vadd.f32 %v2058_v7, %v1034_v6  ;;  %v2078_v3 = vld [vmem:[%s4902_s7 + $0x1960] sm:$0xff] }
 0x370   : > { %4084 = vst [vmem:[%s4917_s20 + $0x1810] sm:$0xff] %v3060_v12  ;;  %v1036_v12 = vld [vmem:[%s4895_s19 + $0x18d0] sm:$0xff]  ;;  %v3083_v17 = vadd.f32 %v2059_v10, %v1035_v9  ;;  %v2079_v6 = vld [vmem:[%s4902_s7 + $0x1968] sm:$0xff] }
 0x371   : > { %4085 = vst [vmem:[%s4917_s20 + $0x1818] sm:$0xff] %v3061_v15  ;;  %v1037_v15 = vld [vmem:[%s4895_s19 + $0x18d8] sm:$0xff]  ;;  %v3084_v20 = vadd.f32 %v2060_v13, %v1036_v12  ;;  %v2080_v9 = vld [vmem:[%s4902_s7 + $0x1970] sm:$0xff] }
 0x372   : > { %4086 = vst [vmem:[%s4917_s20 + $0x1820] sm:$0xff] %v3062_v18  ;;  %v1038_v18 = vld [vmem:[%s4895_s19 + $0x18e0] sm:$0xff]  ;;  %v3085_v23 = vadd.f32 %v2061_v16, %v1037_v15  ;;  %v2081_v12 = vld [vmem:[%s4902_s7 + $0x1978] sm:$0xff] }
 0x373   : > { %4087 = vst [vmem:[%s4917_s20 + $0x1828] sm:$0xff] %v3063_v21  ;;  %v1039_v21 = vld [vmem:[%s4895_s19 + $0x18e8] sm:$0xff]  ;;  %v3086_v26 = vadd.f32 %v2062_v19, %v1038_v18  ;;  %v2082_v15 = vld [vmem:[%s4902_s7 + $0x1980] sm:$0xff] }
 0x374   : > { %4088 = vst [vmem:[%s4917_s20 + $0x1830] sm:$0xff] %v3064_v24  ;;  %v1040_v24 = vld [vmem:[%s4895_s19 + $0x18f0] sm:$0xff]  ;;  %v3087_v29 = vadd.f32 %v2063_v22, %v1039_v21  ;;  %v2083_v18 = vld [vmem:[%s4902_s7 + $0x1988] sm:$0xff] }
 0x375   : > { %4089 = vst [vmem:[%s4917_s20 + $0x1838] sm:$0xff] %v3065_v27  ;;  %v1041_v27 = vld [vmem:[%s4895_s19 + $0x18f8] sm:$0xff]  ;;  %v3088_v32 = vadd.f32 %v2064_v25, %v1040_v24  ;;  %v2084_v21 = vld [vmem:[%s4902_s7 + $0x1990] sm:$0xff] }
 0x376   : > { %4090 = vst [vmem:[%s4917_s20 + $0x1840] sm:$0xff] %v3066_v30  ;;  %v1042_v30 = vld [vmem:[%s4895_s19 + $0x1900] sm:$0xff]  ;;  %v3089_v35 = vadd.f32 %v2065_v28, %v1041_v27  ;;  %v2085_v24 = vld [vmem:[%s4902_s7 + $0x1998] sm:$0xff] }
 0x377   : > { %4091 = vst [vmem:[%s4917_s20 + $0x1848] sm:$0xff] %v3067_v33  ;;  %v1043_v33 = vld [vmem:[%s4895_s19 + $0x1908] sm:$0xff]  ;;  %v3090_v38 = vadd.f32 %v2066_v31, %v1042_v30  ;;  %v2086_v27 = vld [vmem:[%s4902_s7 + $0x19a0] sm:$0xff] }
 0x378   : > { %4092 = vst [vmem:[%s4917_s20 + $0x1850] sm:$0xff] %v3068_v36  ;;  %v1044_v36 = vld [vmem:[%s4895_s19 + $0x1910] sm:$0xff]  ;;  %v3091_v41 = vadd.f32 %v2067_v34, %v1043_v33  ;;  %v2087_v30 = vld [vmem:[%s4902_s7 + $0x19a8] sm:$0xff] }
 0x379   : > { %4093 = vst [vmem:[%s4917_s20 + $0x1858] sm:$0xff] %v3069_v39  ;;  %v1045_v39 = vld [vmem:[%s4895_s19 + $0x1918] sm:$0xff]  ;;  %v3092_v44 = vadd.f32 %v2068_v37, %v1044_v36  ;;  %v2088_v33 = vld [vmem:[%s4902_s7 + $0x19b0] sm:$0xff] }
 0x37a   : > { %4094 = vst [vmem:[%s4917_s20 + $0x1860] sm:$0xff] %v3070_v42  ;;  %v1046_v42 = vld [vmem:[%s4895_s19 + $0x1920] sm:$0xff]  ;;  %v3093_v47 = vadd.f32 %v2069_v40, %v1045_v39  ;;  %v2089_v36 = vld [vmem:[%s4902_s7 + $0x19b8] sm:$0xff] }
 0x37b   : > { %4095 = vst [vmem:[%s4917_s20 + $0x1868] sm:$0xff] %v3071_v45  ;;  %v1047_v45 = vld [vmem:[%s4895_s19 + $0x1928] sm:$0xff]  ;;  %v3094_v50 = vadd.f32 %v2070_v43, %v1046_v42  ;;  %v2090_v39 = vld [vmem:[%s4902_s7 + $0x19c0] sm:$0xff] }
 0x37c   : > { %4096 = vst [vmem:[%s4917_s20 + $0x1870] sm:$0xff] %v3072_v48  ;;  %v1048_v48 = vld [vmem:[%s4895_s19 + $0x1930] sm:$0xff]  ;;  %v3095_v53 = vadd.f32 %v2071_v46, %v1047_v45  ;;  %v2091_v42 = vld [vmem:[%s4902_s7 + $0x19c8] sm:$0xff] }
 0x37d   : > { %4097 = vst [vmem:[%s4917_s20 + $0x1878] sm:$0xff] %v3073_v51  ;;  %v1049_v51 = vld [vmem:[%s4895_s19 + $0x1938] sm:$0xff]  ;;  %v3096_v56 = vadd.f32 %v2072_v49, %v1048_v48  ;;  %v2092_v45 = vld [vmem:[%s4902_s7 + $0x19d0] sm:$0xff] }
 0x37e   : > { %4098 = vst [vmem:[%s4917_s20 + $0x1880] sm:$0xff] %v3074_v54  ;;  %v1050_v54 = vld [vmem:[%s4895_s19 + $0x1940] sm:$0xff]  ;;  %v3097_v59 = vadd.f32 %v2073_v52, %v1049_v51  ;;  %v2093_v48 = vld [vmem:[%s4902_s7 + $0x19d8] sm:$0xff] }
 0x37f   : > { %4099 = vst [vmem:[%s4917_s20 + $0x1888] sm:$0xff] %v3075_v57  ;;  %v1051_v57 = vld [vmem:[%s4895_s19 + $0x1948] sm:$0xff]  ;;  %v3098_v62 = vadd.f32 %v2074_v55, %v1050_v54  ;;  %v2094_v51 = vld [vmem:[%s4902_s7 + $0x19e0] sm:$0xff] }
 0x380   : > { %4100 = vst [vmem:[%s4917_s20 + $0x1890] sm:$0xff] %v3076_v60  ;;  %v1052_v60 = vld [vmem:[%s4895_s19 + $0x1950] sm:$0xff]  ;;  %v3099_v1 = vadd.f32 %v2075_v58, %v1051_v57  ;;  %v2095_v54 = vld [vmem:[%s4902_s7 + $0x19e8] sm:$0xff] }
 0x381   : > { %4101 = vst [vmem:[%s4917_s20 + $0x1898] sm:$0xff] %v3077_v63  ;;  %v1053_v63 = vld [vmem:[%s4895_s19 + $0x1958] sm:$0xff]  ;;  %v3100_v4 = vadd.f32 %v2076_v61, %v1052_v60  ;;  %v2096_v57 = vld [vmem:[%s4902_s7 + $0x19f0] sm:$0xff] }
 0x382   : > { %4102 = vst [vmem:[%s4917_s20 + $0x18a0] sm:$0xff] %v3078_v2  ;;  %v1054_v2 = vld [vmem:[%s4895_s19 + $0x1960] sm:$0xff]  ;;  %v3101_v7 = vadd.f32 %v2077_v0, %v1053_v63  ;;  %v2097_v60 = vld [vmem:[%s4902_s7 + $0x19f8] sm:$0xff] }
 0x383   : > { %4103 = vst [vmem:[%s4917_s20 + $0x18a8] sm:$0xff] %v3079_v5  ;;  %v1055_v5 = vld [vmem:[%s4895_s19 + $0x1968] sm:$0xff]  ;;  %v3102_v10 = vadd.f32 %v2078_v3, %v1054_v2  ;;  %v2098_v63 = vld [vmem:[%s4902_s7 + $0x1a00] sm:$0xff] }
 0x384   : > { %4104 = vst [vmem:[%s4917_s20 + $0x18b0] sm:$0xff] %v3080_v8  ;;  %v1056_v8 = vld [vmem:[%s4895_s19 + $0x1970] sm:$0xff]  ;;  %v3103_v13 = vadd.f32 %v2079_v6, %v1055_v5  ;;  %v2099_v2 = vld [vmem:[%s4902_s7 + $0x1a08] sm:$0xff] }
 0x385   : > { %4105 = vst [vmem:[%s4917_s20 + $0x18b8] sm:$0xff] %v3081_v11  ;;  %v1057_v11 = vld [vmem:[%s4895_s19 + $0x1978] sm:$0xff]  ;;  %v3104_v16 = vadd.f32 %v2080_v9, %v1056_v8  ;;  %v2100_v5 = vld [vmem:[%s4902_s7 + $0x1a10] sm:$0xff] }
 0x386   : > { %4106 = vst [vmem:[%s4917_s20 + $0x18c0] sm:$0xff] %v3082_v14  ;;  %v1058_v14 = vld [vmem:[%s4895_s19 + $0x1980] sm:$0xff]  ;;  %v3105_v19 = vadd.f32 %v2081_v12, %v1057_v11  ;;  %v2101_v8 = vld [vmem:[%s4902_s7 + $0x1a18] sm:$0xff] }
 0x387   : > { %4107 = vst [vmem:[%s4917_s20 + $0x18c8] sm:$0xff] %v3083_v17  ;;  %v1059_v17 = vld [vmem:[%s4895_s19 + $0x1988] sm:$0xff]  ;;  %v3106_v22 = vadd.f32 %v2082_v15, %v1058_v14  ;;  %v2102_v11 = vld [vmem:[%s4902_s7 + $0x1a20] sm:$0xff] }
 0x388   : > { %4108 = vst [vmem:[%s4917_s20 + $0x18d0] sm:$0xff] %v3084_v20  ;;  %v1060_v20 = vld [vmem:[%s4895_s19 + $0x1990] sm:$0xff]  ;;  %v3107_v25 = vadd.f32 %v2083_v18, %v1059_v17  ;;  %v2103_v14 = vld [vmem:[%s4902_s7 + $0x1a28] sm:$0xff] }
 0x389   : > { %4109 = vst [vmem:[%s4917_s20 + $0x18d8] sm:$0xff] %v3085_v23  ;;  %v1061_v23 = vld [vmem:[%s4895_s19 + $0x1998] sm:$0xff]  ;;  %v3108_v28 = vadd.f32 %v2084_v21, %v1060_v20  ;;  %v2104_v17 = vld [vmem:[%s4902_s7 + $0x1a30] sm:$0xff] }
 0x38a   : > { %4110 = vst [vmem:[%s4917_s20 + $0x18e0] sm:$0xff] %v3086_v26  ;;  %v1062_v26 = vld [vmem:[%s4895_s19 + $0x19a0] sm:$0xff]  ;;  %v3109_v31 = vadd.f32 %v2085_v24, %v1061_v23  ;;  %v2105_v20 = vld [vmem:[%s4902_s7 + $0x1a38] sm:$0xff] }
 0x38b   : > { %4111 = vst [vmem:[%s4917_s20 + $0x18e8] sm:$0xff] %v3087_v29  ;;  %v1063_v29 = vld [vmem:[%s4895_s19 + $0x19a8] sm:$0xff]  ;;  %v3110_v34 = vadd.f32 %v2086_v27, %v1062_v26  ;;  %v2106_v23 = vld [vmem:[%s4902_s7 + $0x1a40] sm:$0xff] }
 0x38c   : > { %4112 = vst [vmem:[%s4917_s20 + $0x18f0] sm:$0xff] %v3088_v32  ;;  %v1064_v32 = vld [vmem:[%s4895_s19 + $0x19b0] sm:$0xff]  ;;  %v3111_v37 = vadd.f32 %v2087_v30, %v1063_v29  ;;  %v2107_v26 = vld [vmem:[%s4902_s7 + $0x1a48] sm:$0xff] }
 0x38d   : > { %4113 = vst [vmem:[%s4917_s20 + $0x18f8] sm:$0xff] %v3089_v35  ;;  %v1065_v35 = vld [vmem:[%s4895_s19 + $0x19b8] sm:$0xff]  ;;  %v3112_v40 = vadd.f32 %v2088_v33, %v1064_v32  ;;  %v2108_v29 = vld [vmem:[%s4902_s7 + $0x1a50] sm:$0xff] }
 0x38e   : > { %4114 = vst [vmem:[%s4917_s20 + $0x1900] sm:$0xff] %v3090_v38  ;;  %v1066_v38 = vld [vmem:[%s4895_s19 + $0x19c0] sm:$0xff]  ;;  %v3113_v43 = vadd.f32 %v2089_v36, %v1065_v35  ;;  %v2109_v32 = vld [vmem:[%s4902_s7 + $0x1a58] sm:$0xff] }
 0x38f   : > { %4115 = vst [vmem:[%s4917_s20 + $0x1908] sm:$0xff] %v3091_v41  ;;  %v1067_v41 = vld [vmem:[%s4895_s19 + $0x19c8] sm:$0xff]  ;;  %v3114_v46 = vadd.f32 %v2090_v39, %v1066_v38  ;;  %v2110_v35 = vld [vmem:[%s4902_s7 + $0x1a60] sm:$0xff] }
 0x390   : > { %4116 = vst [vmem:[%s4917_s20 + $0x1910] sm:$0xff] %v3092_v44  ;;  %v1068_v44 = vld [vmem:[%s4895_s19 + $0x19d0] sm:$0xff]  ;;  %v3115_v49 = vadd.f32 %v2091_v42, %v1067_v41  ;;  %v2111_v38 = vld [vmem:[%s4902_s7 + $0x1a68] sm:$0xff] }
 0x391   : > { %4117 = vst [vmem:[%s4917_s20 + $0x1918] sm:$0xff] %v3093_v47  ;;  %v1069_v47 = vld [vmem:[%s4895_s19 + $0x19d8] sm:$0xff]  ;;  %v3116_v52 = vadd.f32 %v2092_v45, %v1068_v44  ;;  %v2112_v41 = vld [vmem:[%s4902_s7 + $0x1a70] sm:$0xff] }
 0x392   : > { %4118 = vst [vmem:[%s4917_s20 + $0x1920] sm:$0xff] %v3094_v50  ;;  %v1070_v50 = vld [vmem:[%s4895_s19 + $0x19e0] sm:$0xff]  ;;  %v3117_v55 = vadd.f32 %v2093_v48, %v1069_v47  ;;  %v2113_v44 = vld [vmem:[%s4902_s7 + $0x1a78] sm:$0xff] }
 0x393   : > { %4119 = vst [vmem:[%s4917_s20 + $0x1928] sm:$0xff] %v3095_v53  ;;  %v1071_v53 = vld [vmem:[%s4895_s19 + $0x19e8] sm:$0xff]  ;;  %v3118_v58 = vadd.f32 %v2094_v51, %v1070_v50  ;;  %v2114_v47 = vld [vmem:[%s4902_s7 + $0x1a80] sm:$0xff] }
 0x394   : > { %4120 = vst [vmem:[%s4917_s20 + $0x1930] sm:$0xff] %v3096_v56  ;;  %v1072_v56 = vld [vmem:[%s4895_s19 + $0x19f0] sm:$0xff]  ;;  %v3119_v61 = vadd.f32 %v2095_v54, %v1071_v53  ;;  %v2115_v50 = vld [vmem:[%s4902_s7 + $0x1a88] sm:$0xff] }
 0x395   : > { %4121 = vst [vmem:[%s4917_s20 + $0x1938] sm:$0xff] %v3097_v59  ;;  %v1073_v59 = vld [vmem:[%s4895_s19 + $0x19f8] sm:$0xff]  ;;  %v3120_v0 = vadd.f32 %v2096_v57, %v1072_v56  ;;  %v2116_v53 = vld [vmem:[%s4902_s7 + $0x1a90] sm:$0xff] }
 0x396   : > { %4122 = vst [vmem:[%s4917_s20 + $0x1940] sm:$0xff] %v3098_v62  ;;  %v1074_v62 = vld [vmem:[%s4895_s19 + $0x1a00] sm:$0xff]  ;;  %v3121_v3 = vadd.f32 %v2097_v60, %v1073_v59  ;;  %v2117_v56 = vld [vmem:[%s4902_s7 + $0x1a98] sm:$0xff] }
 0x397   : > { %4123 = vst [vmem:[%s4917_s20 + $0x1948] sm:$0xff] %v3099_v1  ;;  %v1075_v1 = vld [vmem:[%s4895_s19 + $0x1a08] sm:$0xff]  ;;  %v3122_v6 = vadd.f32 %v2098_v63, %v1074_v62  ;;  %v2118_v59 = vld [vmem:[%s4902_s7 + $0x1aa0] sm:$0xff] }
 0x398   : > { %4124 = vst [vmem:[%s4917_s20 + $0x1950] sm:$0xff] %v3100_v4  ;;  %v1076_v4 = vld [vmem:[%s4895_s19 + $0x1a10] sm:$0xff]  ;;  %v3123_v9 = vadd.f32 %v2099_v2, %v1075_v1  ;;  %v2119_v62 = vld [vmem:[%s4902_s7 + $0x1aa8] sm:$0xff] }
 0x399   : > { %4125 = vst [vmem:[%s4917_s20 + $0x1958] sm:$0xff] %v3101_v7  ;;  %v1077_v7 = vld [vmem:[%s4895_s19 + $0x1a18] sm:$0xff]  ;;  %v3124_v12 = vadd.f32 %v2100_v5, %v1076_v4  ;;  %v2120_v1 = vld [vmem:[%s4902_s7 + $0x1ab0] sm:$0xff] }
 0x39a   : > { %4126 = vst [vmem:[%s4917_s20 + $0x1960] sm:$0xff] %v3102_v10  ;;  %v1078_v10 = vld [vmem:[%s4895_s19 + $0x1a20] sm:$0xff]  ;;  %v3125_v15 = vadd.f32 %v2101_v8, %v1077_v7  ;;  %v2121_v4 = vld [vmem:[%s4902_s7 + $0x1ab8] sm:$0xff] }
 0x39b   : > { %4127 = vst [vmem:[%s4917_s20 + $0x1968] sm:$0xff] %v3103_v13  ;;  %v1079_v13 = vld [vmem:[%s4895_s19 + $0x1a28] sm:$0xff]  ;;  %v3126_v18 = vadd.f32 %v2102_v11, %v1078_v10  ;;  %v2122_v7 = vld [vmem:[%s4902_s7 + $0x1ac0] sm:$0xff] }
 0x39c   : > { %4128 = vst [vmem:[%s4917_s20 + $0x1970] sm:$0xff] %v3104_v16  ;;  %v1080_v16 = vld [vmem:[%s4895_s19 + $0x1a30] sm:$0xff]  ;;  %v3127_v21 = vadd.f32 %v2103_v14, %v1079_v13  ;;  %v2123_v10 = vld [vmem:[%s4902_s7 + $0x1ac8] sm:$0xff] }
 0x39d   : > { %4129 = vst [vmem:[%s4917_s20 + $0x1978] sm:$0xff] %v3105_v19  ;;  %v1081_v19 = vld [vmem:[%s4895_s19 + $0x1a38] sm:$0xff]  ;;  %v3128_v24 = vadd.f32 %v2104_v17, %v1080_v16  ;;  %v2124_v13 = vld [vmem:[%s4902_s7 + $0x1ad0] sm:$0xff] }
 0x39e   : > { %4130 = vst [vmem:[%s4917_s20 + $0x1980] sm:$0xff] %v3106_v22  ;;  %v1082_v22 = vld [vmem:[%s4895_s19 + $0x1a40] sm:$0xff]  ;;  %v3129_v27 = vadd.f32 %v2105_v20, %v1081_v19  ;;  %v2125_v16 = vld [vmem:[%s4902_s7 + $0x1ad8] sm:$0xff] }
 0x39f   : > { %4131 = vst [vmem:[%s4917_s20 + $0x1988] sm:$0xff] %v3107_v25  ;;  %v1083_v25 = vld [vmem:[%s4895_s19 + $0x1a48] sm:$0xff]  ;;  %v3130_v30 = vadd.f32 %v2106_v23, %v1082_v22  ;;  %v2126_v19 = vld [vmem:[%s4902_s7 + $0x1ae0] sm:$0xff] }
 0x3a0   : > { %4132 = vst [vmem:[%s4917_s20 + $0x1990] sm:$0xff] %v3108_v28  ;;  %v1084_v28 = vld [vmem:[%s4895_s19 + $0x1a50] sm:$0xff]  ;;  %v3131_v33 = vadd.f32 %v2107_v26, %v1083_v25  ;;  %v2127_v22 = vld [vmem:[%s4902_s7 + $0x1ae8] sm:$0xff] }
 0x3a1   : > { %4133 = vst [vmem:[%s4917_s20 + $0x1998] sm:$0xff] %v3109_v31  ;;  %v1085_v31 = vld [vmem:[%s4895_s19 + $0x1a58] sm:$0xff]  ;;  %v3132_v36 = vadd.f32 %v2108_v29, %v1084_v28  ;;  %v2128_v25 = vld [vmem:[%s4902_s7 + $0x1af0] sm:$0xff] }
 0x3a2   : > { %4134 = vst [vmem:[%s4917_s20 + $0x19a0] sm:$0xff] %v3110_v34  ;;  %v1086_v34 = vld [vmem:[%s4895_s19 + $0x1a60] sm:$0xff]  ;;  %v3133_v39 = vadd.f32 %v2109_v32, %v1085_v31  ;;  %v2129_v28 = vld [vmem:[%s4902_s7 + $0x1af8] sm:$0xff] }
 0x3a3   : > { %4135 = vst [vmem:[%s4917_s20 + $0x19a8] sm:$0xff] %v3111_v37  ;;  %v1087_v37 = vld [vmem:[%s4895_s19 + $0x1a68] sm:$0xff]  ;;  %v3134_v42 = vadd.f32 %v2110_v35, %v1086_v34  ;;  %v2130_v31 = vld [vmem:[%s4902_s7 + $0x1b00] sm:$0xff] }
 0x3a4   : > { %4136 = vst [vmem:[%s4917_s20 + $0x19b0] sm:$0xff] %v3112_v40  ;;  %v1088_v40 = vld [vmem:[%s4895_s19 + $0x1a70] sm:$0xff]  ;;  %v3135_v45 = vadd.f32 %v2111_v38, %v1087_v37  ;;  %v2131_v34 = vld [vmem:[%s4902_s7 + $0x1b08] sm:$0xff] }
 0x3a5   : > { %4137 = vst [vmem:[%s4917_s20 + $0x19b8] sm:$0xff] %v3113_v43  ;;  %v1089_v43 = vld [vmem:[%s4895_s19 + $0x1a78] sm:$0xff]  ;;  %v3136_v48 = vadd.f32 %v2112_v41, %v1088_v40  ;;  %v2132_v37 = vld [vmem:[%s4902_s7 + $0x1b10] sm:$0xff] }
 0x3a6   : > { %4138 = vst [vmem:[%s4917_s20 + $0x19c0] sm:$0xff] %v3114_v46  ;;  %v1090_v46 = vld [vmem:[%s4895_s19 + $0x1a80] sm:$0xff]  ;;  %v3137_v51 = vadd.f32 %v2113_v44, %v1089_v43  ;;  %v2133_v40 = vld [vmem:[%s4902_s7 + $0x1b18] sm:$0xff] }
 0x3a7   : > { %4139 = vst [vmem:[%s4917_s20 + $0x19c8] sm:$0xff] %v3115_v49  ;;  %v1091_v49 = vld [vmem:[%s4895_s19 + $0x1a88] sm:$0xff]  ;;  %v3138_v54 = vadd.f32 %v2114_v47, %v1090_v46  ;;  %v2134_v43 = vld [vmem:[%s4902_s7 + $0x1b20] sm:$0xff] }
 0x3a8   : > { %4140 = vst [vmem:[%s4917_s20 + $0x19d0] sm:$0xff] %v3116_v52  ;;  %v1092_v52 = vld [vmem:[%s4895_s19 + $0x1a90] sm:$0xff]  ;;  %v3139_v57 = vadd.f32 %v2115_v50, %v1091_v49  ;;  %v2135_v46 = vld [vmem:[%s4902_s7 + $0x1b28] sm:$0xff] }
 0x3a9   : > { %4141 = vst [vmem:[%s4917_s20 + $0x19d8] sm:$0xff] %v3117_v55  ;;  %v1093_v55 = vld [vmem:[%s4895_s19 + $0x1a98] sm:$0xff]  ;;  %v3140_v60 = vadd.f32 %v2116_v53, %v1092_v52  ;;  %v2136_v49 = vld [vmem:[%s4902_s7 + $0x1b30] sm:$0xff] }
 0x3aa   : > { %4142 = vst [vmem:[%s4917_s20 + $0x19e0] sm:$0xff] %v3118_v58  ;;  %v1094_v58 = vld [vmem:[%s4895_s19 + $0x1aa0] sm:$0xff]  ;;  %v3141_v63 = vadd.f32 %v2117_v56, %v1093_v55  ;;  %v2137_v52 = vld [vmem:[%s4902_s7 + $0x1b38] sm:$0xff] }
 0x3ab   : > { %4143 = vst [vmem:[%s4917_s20 + $0x19e8] sm:$0xff] %v3119_v61  ;;  %v1095_v61 = vld [vmem:[%s4895_s19 + $0x1aa8] sm:$0xff]  ;;  %v3142_v2 = vadd.f32 %v2118_v59, %v1094_v58  ;;  %v2138_v55 = vld [vmem:[%s4902_s7 + $0x1b40] sm:$0xff] }
 0x3ac   : > { %4144 = vst [vmem:[%s4917_s20 + $0x19f0] sm:$0xff] %v3120_v0  ;;  %v1096_v0 = vld [vmem:[%s4895_s19 + $0x1ab0] sm:$0xff]  ;;  %v3143_v5 = vadd.f32 %v2119_v62, %v1095_v61  ;;  %v2139_v58 = vld [vmem:[%s4902_s7 + $0x1b48] sm:$0xff] }
 0x3ad   : > { %4145 = vst [vmem:[%s4917_s20 + $0x19f8] sm:$0xff] %v3121_v3  ;;  %v1097_v3 = vld [vmem:[%s4895_s19 + $0x1ab8] sm:$0xff]  ;;  %v3144_v8 = vadd.f32 %v2120_v1, %v1096_v0  ;;  %v2140_v61 = vld [vmem:[%s4902_s7 + $0x1b50] sm:$0xff] }
 0x3ae   : > { %4146 = vst [vmem:[%s4917_s20 + $0x1a00] sm:$0xff] %v3122_v6  ;;  %v1098_v6 = vld [vmem:[%s4895_s19 + $0x1ac0] sm:$0xff]  ;;  %v3145_v11 = vadd.f32 %v2121_v4, %v1097_v3  ;;  %v2141_v0 = vld [vmem:[%s4902_s7 + $0x1b58] sm:$0xff] }
 0x3af   : > { %4147 = vst [vmem:[%s4917_s20 + $0x1a08] sm:$0xff] %v3123_v9  ;;  %v1099_v9 = vld [vmem:[%s4895_s19 + $0x1ac8] sm:$0xff]  ;;  %v3146_v14 = vadd.f32 %v2122_v7, %v1098_v6  ;;  %v2142_v3 = vld [vmem:[%s4902_s7 + $0x1b60] sm:$0xff] }
 0x3b0   : > { %4148 = vst [vmem:[%s4917_s20 + $0x1a10] sm:$0xff] %v3124_v12  ;;  %v1100_v12 = vld [vmem:[%s4895_s19 + $0x1ad0] sm:$0xff]  ;;  %v3147_v17 = vadd.f32 %v2123_v10, %v1099_v9  ;;  %v2143_v6 = vld [vmem:[%s4902_s7 + $0x1b68] sm:$0xff] }
 0x3b1   : > { %4149 = vst [vmem:[%s4917_s20 + $0x1a18] sm:$0xff] %v3125_v15  ;;  %v1101_v15 = vld [vmem:[%s4895_s19 + $0x1ad8] sm:$0xff]  ;;  %v3148_v20 = vadd.f32 %v2124_v13, %v1100_v12  ;;  %v2144_v9 = vld [vmem:[%s4902_s7 + $0x1b70] sm:$0xff] }
 0x3b2   : > { %4150 = vst [vmem:[%s4917_s20 + $0x1a20] sm:$0xff] %v3126_v18  ;;  %v1102_v18 = vld [vmem:[%s4895_s19 + $0x1ae0] sm:$0xff]  ;;  %v3149_v23 = vadd.f32 %v2125_v16, %v1101_v15  ;;  %v2145_v12 = vld [vmem:[%s4902_s7 + $0x1b78] sm:$0xff] }
 0x3b3   : > { %4151 = vst [vmem:[%s4917_s20 + $0x1a28] sm:$0xff] %v3127_v21  ;;  %v1103_v21 = vld [vmem:[%s4895_s19 + $0x1ae8] sm:$0xff]  ;;  %v3150_v26 = vadd.f32 %v2126_v19, %v1102_v18  ;;  %v2146_v15 = vld [vmem:[%s4902_s7 + $0x1b80] sm:$0xff] }
 0x3b4   : > { %4152 = vst [vmem:[%s4917_s20 + $0x1a30] sm:$0xff] %v3128_v24  ;;  %v1104_v24 = vld [vmem:[%s4895_s19 + $0x1af0] sm:$0xff]  ;;  %v3151_v29 = vadd.f32 %v2127_v22, %v1103_v21  ;;  %v2147_v18 = vld [vmem:[%s4902_s7 + $0x1b88] sm:$0xff] }
 0x3b5   : > { %4153 = vst [vmem:[%s4917_s20 + $0x1a38] sm:$0xff] %v3129_v27  ;;  %v1105_v27 = vld [vmem:[%s4895_s19 + $0x1af8] sm:$0xff]  ;;  %v3152_v32 = vadd.f32 %v2128_v25, %v1104_v24  ;;  %v2148_v21 = vld [vmem:[%s4902_s7 + $0x1b90] sm:$0xff] }
 0x3b6   : > { %4154 = vst [vmem:[%s4917_s20 + $0x1a40] sm:$0xff] %v3130_v30  ;;  %v1106_v30 = vld [vmem:[%s4895_s19 + $0x1b00] sm:$0xff]  ;;  %v3153_v35 = vadd.f32 %v2129_v28, %v1105_v27  ;;  %v2149_v24 = vld [vmem:[%s4902_s7 + $0x1b98] sm:$0xff] }
 0x3b7   : > { %4155 = vst [vmem:[%s4917_s20 + $0x1a48] sm:$0xff] %v3131_v33  ;;  %v1107_v33 = vld [vmem:[%s4895_s19 + $0x1b08] sm:$0xff]  ;;  %v3154_v38 = vadd.f32 %v2130_v31, %v1106_v30  ;;  %v2150_v27 = vld [vmem:[%s4902_s7 + $0x1ba0] sm:$0xff] }
 0x3b8   : > { %4156 = vst [vmem:[%s4917_s20 + $0x1a50] sm:$0xff] %v3132_v36  ;;  %v1108_v36 = vld [vmem:[%s4895_s19 + $0x1b10] sm:$0xff]  ;;  %v3155_v41 = vadd.f32 %v2131_v34, %v1107_v33  ;;  %v2151_v30 = vld [vmem:[%s4902_s7 + $0x1ba8] sm:$0xff] }
 0x3b9   : > { %4157 = vst [vmem:[%s4917_s20 + $0x1a58] sm:$0xff] %v3133_v39  ;;  %v1109_v39 = vld [vmem:[%s4895_s19 + $0x1b18] sm:$0xff]  ;;  %v3156_v44 = vadd.f32 %v2132_v37, %v1108_v36  ;;  %v2152_v33 = vld [vmem:[%s4902_s7 + $0x1bb0] sm:$0xff] }
 0x3ba   : > { %4158 = vst [vmem:[%s4917_s20 + $0x1a60] sm:$0xff] %v3134_v42  ;;  %v1110_v42 = vld [vmem:[%s4895_s19 + $0x1b20] sm:$0xff]  ;;  %v3157_v47 = vadd.f32 %v2133_v40, %v1109_v39  ;;  %v2153_v36 = vld [vmem:[%s4902_s7 + $0x1bb8] sm:$0xff] }
 0x3bb   : > { %4159 = vst [vmem:[%s4917_s20 + $0x1a68] sm:$0xff] %v3135_v45  ;;  %v1111_v45 = vld [vmem:[%s4895_s19 + $0x1b28] sm:$0xff]  ;;  %v3158_v50 = vadd.f32 %v2134_v43, %v1110_v42  ;;  %v2154_v39 = vld [vmem:[%s4902_s7 + $0x1bc0] sm:$0xff] }
 0x3bc   : > { %4160 = vst [vmem:[%s4917_s20 + $0x1a70] sm:$0xff] %v3136_v48  ;;  %v1112_v48 = vld [vmem:[%s4895_s19 + $0x1b30] sm:$0xff]  ;;  %v3159_v53 = vadd.f32 %v2135_v46, %v1111_v45  ;;  %v2155_v42 = vld [vmem:[%s4902_s7 + $0x1bc8] sm:$0xff] }
 0x3bd   : > { %4161 = vst [vmem:[%s4917_s20 + $0x1a78] sm:$0xff] %v3137_v51  ;;  %v1113_v51 = vld [vmem:[%s4895_s19 + $0x1b38] sm:$0xff]  ;;  %v3160_v56 = vadd.f32 %v2136_v49, %v1112_v48  ;;  %v2156_v45 = vld [vmem:[%s4902_s7 + $0x1bd0] sm:$0xff] }
 0x3be   : > { %4162 = vst [vmem:[%s4917_s20 + $0x1a80] sm:$0xff] %v3138_v54  ;;  %v1114_v54 = vld [vmem:[%s4895_s19 + $0x1b40] sm:$0xff]  ;;  %v3161_v59 = vadd.f32 %v2137_v52, %v1113_v51  ;;  %v2157_v48 = vld [vmem:[%s4902_s7 + $0x1bd8] sm:$0xff] }
 0x3bf   : > { %4163 = vst [vmem:[%s4917_s20 + $0x1a88] sm:$0xff] %v3139_v57  ;;  %v1115_v57 = vld [vmem:[%s4895_s19 + $0x1b48] sm:$0xff]  ;;  %v3162_v62 = vadd.f32 %v2138_v55, %v1114_v54  ;;  %v2158_v51 = vld [vmem:[%s4902_s7 + $0x1be0] sm:$0xff] }
 0x3c0   : > { %4164 = vst [vmem:[%s4917_s20 + $0x1a90] sm:$0xff] %v3140_v60  ;;  %v1116_v60 = vld [vmem:[%s4895_s19 + $0x1b50] sm:$0xff]  ;;  %v3163_v1 = vadd.f32 %v2139_v58, %v1115_v57  ;;  %v2159_v54 = vld [vmem:[%s4902_s7 + $0x1be8] sm:$0xff] }
 0x3c1   : > { %4165 = vst [vmem:[%s4917_s20 + $0x1a98] sm:$0xff] %v3141_v63  ;;  %v1117_v63 = vld [vmem:[%s4895_s19 + $0x1b58] sm:$0xff]  ;;  %v3164_v4 = vadd.f32 %v2140_v61, %v1116_v60  ;;  %v2160_v57 = vld [vmem:[%s4902_s7 + $0x1bf0] sm:$0xff] }
 0x3c2   : > { %4166 = vst [vmem:[%s4917_s20 + $0x1aa0] sm:$0xff] %v3142_v2  ;;  %v1118_v2 = vld [vmem:[%s4895_s19 + $0x1b60] sm:$0xff]  ;;  %v3165_v7 = vadd.f32 %v2141_v0, %v1117_v63  ;;  %v2161_v60 = vld [vmem:[%s4902_s7 + $0x1bf8] sm:$0xff] }
 0x3c3   : > { %4167 = vst [vmem:[%s4917_s20 + $0x1aa8] sm:$0xff] %v3143_v5  ;;  %v1119_v5 = vld [vmem:[%s4895_s19 + $0x1b68] sm:$0xff]  ;;  %v3166_v10 = vadd.f32 %v2142_v3, %v1118_v2  ;;  %v2162_v63 = vld [vmem:[%s4902_s7 + $0x1c00] sm:$0xff] }
 0x3c4   : > { %4168 = vst [vmem:[%s4917_s20 + $0x1ab0] sm:$0xff] %v3144_v8  ;;  %v1120_v8 = vld [vmem:[%s4895_s19 + $0x1b70] sm:$0xff]  ;;  %v3167_v13 = vadd.f32 %v2143_v6, %v1119_v5  ;;  %v2163_v2 = vld [vmem:[%s4902_s7 + $0x1c08] sm:$0xff] }
 0x3c5   : > { %4169 = vst [vmem:[%s4917_s20 + $0x1ab8] sm:$0xff] %v3145_v11  ;;  %v1121_v11 = vld [vmem:[%s4895_s19 + $0x1b78] sm:$0xff]  ;;  %v3168_v16 = vadd.f32 %v2144_v9, %v1120_v8  ;;  %v2164_v5 = vld [vmem:[%s4902_s7 + $0x1c10] sm:$0xff] }
 0x3c6   : > { %4170 = vst [vmem:[%s4917_s20 + $0x1ac0] sm:$0xff] %v3146_v14  ;;  %v1122_v14 = vld [vmem:[%s4895_s19 + $0x1b80] sm:$0xff]  ;;  %v3169_v19 = vadd.f32 %v2145_v12, %v1121_v11  ;;  %v2165_v8 = vld [vmem:[%s4902_s7 + $0x1c18] sm:$0xff] }
 0x3c7   : > { %4171 = vst [vmem:[%s4917_s20 + $0x1ac8] sm:$0xff] %v3147_v17  ;;  %v1123_v17 = vld [vmem:[%s4895_s19 + $0x1b88] sm:$0xff]  ;;  %v3170_v22 = vadd.f32 %v2146_v15, %v1122_v14  ;;  %v2166_v11 = vld [vmem:[%s4902_s7 + $0x1c20] sm:$0xff] }
 0x3c8   : > { %4172 = vst [vmem:[%s4917_s20 + $0x1ad0] sm:$0xff] %v3148_v20  ;;  %v1124_v20 = vld [vmem:[%s4895_s19 + $0x1b90] sm:$0xff]  ;;  %v3171_v25 = vadd.f32 %v2147_v18, %v1123_v17  ;;  %v2167_v14 = vld [vmem:[%s4902_s7 + $0x1c28] sm:$0xff] }
 0x3c9   : > { %4173 = vst [vmem:[%s4917_s20 + $0x1ad8] sm:$0xff] %v3149_v23  ;;  %v1125_v23 = vld [vmem:[%s4895_s19 + $0x1b98] sm:$0xff]  ;;  %v3172_v28 = vadd.f32 %v2148_v21, %v1124_v20  ;;  %v2168_v17 = vld [vmem:[%s4902_s7 + $0x1c30] sm:$0xff] }
 0x3ca   : > { %4174 = vst [vmem:[%s4917_s20 + $0x1ae0] sm:$0xff] %v3150_v26  ;;  %v1126_v26 = vld [vmem:[%s4895_s19 + $0x1ba0] sm:$0xff]  ;;  %v3173_v31 = vadd.f32 %v2149_v24, %v1125_v23  ;;  %v2169_v20 = vld [vmem:[%s4902_s7 + $0x1c38] sm:$0xff] }
 0x3cb   : > { %4175 = vst [vmem:[%s4917_s20 + $0x1ae8] sm:$0xff] %v3151_v29  ;;  %v1127_v29 = vld [vmem:[%s4895_s19 + $0x1ba8] sm:$0xff]  ;;  %v3174_v34 = vadd.f32 %v2150_v27, %v1126_v26  ;;  %v2170_v23 = vld [vmem:[%s4902_s7 + $0x1c40] sm:$0xff] }
 0x3cc   : > { %4176 = vst [vmem:[%s4917_s20 + $0x1af0] sm:$0xff] %v3152_v32  ;;  %v1128_v32 = vld [vmem:[%s4895_s19 + $0x1bb0] sm:$0xff]  ;;  %v3175_v37 = vadd.f32 %v2151_v30, %v1127_v29  ;;  %v2171_v26 = vld [vmem:[%s4902_s7 + $0x1c48] sm:$0xff] }
 0x3cd   : > { %4177 = vst [vmem:[%s4917_s20 + $0x1af8] sm:$0xff] %v3153_v35  ;;  %v1129_v35 = vld [vmem:[%s4895_s19 + $0x1bb8] sm:$0xff]  ;;  %v3176_v40 = vadd.f32 %v2152_v33, %v1128_v32  ;;  %v2172_v29 = vld [vmem:[%s4902_s7 + $0x1c50] sm:$0xff] }
 0x3ce   : > { %4178 = vst [vmem:[%s4917_s20 + $0x1b00] sm:$0xff] %v3154_v38  ;;  %v1130_v38 = vld [vmem:[%s4895_s19 + $0x1bc0] sm:$0xff]  ;;  %v3177_v43 = vadd.f32 %v2153_v36, %v1129_v35  ;;  %v2173_v32 = vld [vmem:[%s4902_s7 + $0x1c58] sm:$0xff] }
 0x3cf   : > { %4179 = vst [vmem:[%s4917_s20 + $0x1b08] sm:$0xff] %v3155_v41  ;;  %v1131_v41 = vld [vmem:[%s4895_s19 + $0x1bc8] sm:$0xff]  ;;  %v3178_v46 = vadd.f32 %v2154_v39, %v1130_v38  ;;  %v2174_v35 = vld [vmem:[%s4902_s7 + $0x1c60] sm:$0xff] }
 0x3d0   : > { %4180 = vst [vmem:[%s4917_s20 + $0x1b10] sm:$0xff] %v3156_v44  ;;  %v1132_v44 = vld [vmem:[%s4895_s19 + $0x1bd0] sm:$0xff]  ;;  %v3179_v49 = vadd.f32 %v2155_v42, %v1131_v41  ;;  %v2175_v38 = vld [vmem:[%s4902_s7 + $0x1c68] sm:$0xff] }
 0x3d1   : > { %4181 = vst [vmem:[%s4917_s20 + $0x1b18] sm:$0xff] %v3157_v47  ;;  %v1133_v47 = vld [vmem:[%s4895_s19 + $0x1bd8] sm:$0xff]  ;;  %v3180_v52 = vadd.f32 %v2156_v45, %v1132_v44  ;;  %v2176_v41 = vld [vmem:[%s4902_s7 + $0x1c70] sm:$0xff] }
 0x3d2   : > { %4182 = vst [vmem:[%s4917_s20 + $0x1b20] sm:$0xff] %v3158_v50  ;;  %v1134_v50 = vld [vmem:[%s4895_s19 + $0x1be0] sm:$0xff]  ;;  %v3181_v55 = vadd.f32 %v2157_v48, %v1133_v47  ;;  %v2177_v44 = vld [vmem:[%s4902_s7 + $0x1c78] sm:$0xff] }
 0x3d3   : > { %4183 = vst [vmem:[%s4917_s20 + $0x1b28] sm:$0xff] %v3159_v53  ;;  %v1135_v53 = vld [vmem:[%s4895_s19 + $0x1be8] sm:$0xff]  ;;  %v3182_v58 = vadd.f32 %v2158_v51, %v1134_v50  ;;  %v2178_v47 = vld [vmem:[%s4902_s7 + $0x1c80] sm:$0xff] }
 0x3d4   : > { %4184 = vst [vmem:[%s4917_s20 + $0x1b30] sm:$0xff] %v3160_v56  ;;  %v1136_v56 = vld [vmem:[%s4895_s19 + $0x1bf0] sm:$0xff]  ;;  %v3183_v61 = vadd.f32 %v2159_v54, %v1135_v53  ;;  %v2179_v50 = vld [vmem:[%s4902_s7 + $0x1c88] sm:$0xff] }
 0x3d5   : > { %4185 = vst [vmem:[%s4917_s20 + $0x1b38] sm:$0xff] %v3161_v59  ;;  %v1137_v59 = vld [vmem:[%s4895_s19 + $0x1bf8] sm:$0xff]  ;;  %v3184_v0 = vadd.f32 %v2160_v57, %v1136_v56  ;;  %v2180_v53 = vld [vmem:[%s4902_s7 + $0x1c90] sm:$0xff] }
 0x3d6   : > { %4186 = vst [vmem:[%s4917_s20 + $0x1b40] sm:$0xff] %v3162_v62  ;;  %v1138_v62 = vld [vmem:[%s4895_s19 + $0x1c00] sm:$0xff]  ;;  %v3185_v3 = vadd.f32 %v2161_v60, %v1137_v59  ;;  %v2181_v56 = vld [vmem:[%s4902_s7 + $0x1c98] sm:$0xff] }
 0x3d7   : > { %4187 = vst [vmem:[%s4917_s20 + $0x1b48] sm:$0xff] %v3163_v1  ;;  %v1139_v1 = vld [vmem:[%s4895_s19 + $0x1c08] sm:$0xff]  ;;  %v3186_v6 = vadd.f32 %v2162_v63, %v1138_v62  ;;  %v2182_v59 = vld [vmem:[%s4902_s7 + $0x1ca0] sm:$0xff] }
 0x3d8   : > { %4188 = vst [vmem:[%s4917_s20 + $0x1b50] sm:$0xff] %v3164_v4  ;;  %v1140_v4 = vld [vmem:[%s4895_s19 + $0x1c10] sm:$0xff]  ;;  %v3187_v9 = vadd.f32 %v2163_v2, %v1139_v1  ;;  %v2183_v62 = vld [vmem:[%s4902_s7 + $0x1ca8] sm:$0xff] }
 0x3d9   : > { %4189 = vst [vmem:[%s4917_s20 + $0x1b58] sm:$0xff] %v3165_v7  ;;  %v1141_v7 = vld [vmem:[%s4895_s19 + $0x1c18] sm:$0xff]  ;;  %v3188_v12 = vadd.f32 %v2164_v5, %v1140_v4  ;;  %v2184_v1 = vld [vmem:[%s4902_s7 + $0x1cb0] sm:$0xff] }
 0x3da   : > { %4190 = vst [vmem:[%s4917_s20 + $0x1b60] sm:$0xff] %v3166_v10  ;;  %v1142_v10 = vld [vmem:[%s4895_s19 + $0x1c20] sm:$0xff]  ;;  %v3189_v15 = vadd.f32 %v2165_v8, %v1141_v7  ;;  %v2185_v4 = vld [vmem:[%s4902_s7 + $0x1cb8] sm:$0xff] }
 0x3db   : > { %4191 = vst [vmem:[%s4917_s20 + $0x1b68] sm:$0xff] %v3167_v13  ;;  %v1143_v13 = vld [vmem:[%s4895_s19 + $0x1c28] sm:$0xff]  ;;  %v3190_v18 = vadd.f32 %v2166_v11, %v1142_v10  ;;  %v2186_v7 = vld [vmem:[%s4902_s7 + $0x1cc0] sm:$0xff] }
 0x3dc   : > { %4192 = vst [vmem:[%s4917_s20 + $0x1b70] sm:$0xff] %v3168_v16  ;;  %v1144_v16 = vld [vmem:[%s4895_s19 + $0x1c30] sm:$0xff]  ;;  %v3191_v21 = vadd.f32 %v2167_v14, %v1143_v13  ;;  %v2187_v10 = vld [vmem:[%s4902_s7 + $0x1cc8] sm:$0xff] }
 0x3dd   : > { %4193 = vst [vmem:[%s4917_s20 + $0x1b78] sm:$0xff] %v3169_v19  ;;  %v1145_v19 = vld [vmem:[%s4895_s19 + $0x1c38] sm:$0xff]  ;;  %v3192_v24 = vadd.f32 %v2168_v17, %v1144_v16  ;;  %v2188_v13 = vld [vmem:[%s4902_s7 + $0x1cd0] sm:$0xff] }
 0x3de   : > { %4194 = vst [vmem:[%s4917_s20 + $0x1b80] sm:$0xff] %v3170_v22  ;;  %v1146_v22 = vld [vmem:[%s4895_s19 + $0x1c40] sm:$0xff]  ;;  %v3193_v27 = vadd.f32 %v2169_v20, %v1145_v19  ;;  %v2189_v16 = vld [vmem:[%s4902_s7 + $0x1cd8] sm:$0xff] }
 0x3df   : > { %4195 = vst [vmem:[%s4917_s20 + $0x1b88] sm:$0xff] %v3171_v25  ;;  %v1147_v25 = vld [vmem:[%s4895_s19 + $0x1c48] sm:$0xff]  ;;  %v3194_v30 = vadd.f32 %v2170_v23, %v1146_v22  ;;  %v2190_v19 = vld [vmem:[%s4902_s7 + $0x1ce0] sm:$0xff] }
 0x3e0   : > { %4196 = vst [vmem:[%s4917_s20 + $0x1b90] sm:$0xff] %v3172_v28  ;;  %v1148_v28 = vld [vmem:[%s4895_s19 + $0x1c50] sm:$0xff]  ;;  %v3195_v33 = vadd.f32 %v2171_v26, %v1147_v25  ;;  %v2191_v22 = vld [vmem:[%s4902_s7 + $0x1ce8] sm:$0xff] }
 0x3e1   : > { %4197 = vst [vmem:[%s4917_s20 + $0x1b98] sm:$0xff] %v3173_v31  ;;  %v1149_v31 = vld [vmem:[%s4895_s19 + $0x1c58] sm:$0xff]  ;;  %v3196_v36 = vadd.f32 %v2172_v29, %v1148_v28  ;;  %v2192_v25 = vld [vmem:[%s4902_s7 + $0x1cf0] sm:$0xff] }
 0x3e2   : > { %4198 = vst [vmem:[%s4917_s20 + $0x1ba0] sm:$0xff] %v3174_v34  ;;  %v1150_v34 = vld [vmem:[%s4895_s19 + $0x1c60] sm:$0xff]  ;;  %v3197_v39 = vadd.f32 %v2173_v32, %v1149_v31  ;;  %v2193_v28 = vld [vmem:[%s4902_s7 + $0x1cf8] sm:$0xff] }
 0x3e3   : > { %4199 = vst [vmem:[%s4917_s20 + $0x1ba8] sm:$0xff] %v3175_v37  ;;  %v1151_v37 = vld [vmem:[%s4895_s19 + $0x1c68] sm:$0xff]  ;;  %v3198_v42 = vadd.f32 %v2174_v35, %v1150_v34  ;;  %v2194_v31 = vld [vmem:[%s4902_s7 + $0x1d00] sm:$0xff] }
 0x3e4   : > { %4200 = vst [vmem:[%s4917_s20 + $0x1bb0] sm:$0xff] %v3176_v40  ;;  %v1152_v40 = vld [vmem:[%s4895_s19 + $0x1c70] sm:$0xff]  ;;  %v3199_v45 = vadd.f32 %v2175_v38, %v1151_v37  ;;  %v2195_v34 = vld [vmem:[%s4902_s7 + $0x1d08] sm:$0xff] }
 0x3e5   : > { %4201 = vst [vmem:[%s4917_s20 + $0x1bb8] sm:$0xff] %v3177_v43  ;;  %v1153_v43 = vld [vmem:[%s4895_s19 + $0x1c78] sm:$0xff]  ;;  %v3200_v48 = vadd.f32 %v2176_v41, %v1152_v40  ;;  %v2196_v37 = vld [vmem:[%s4902_s7 + $0x1d10] sm:$0xff] }
 0x3e6   : > { %4202 = vst [vmem:[%s4917_s20 + $0x1bc0] sm:$0xff] %v3178_v46  ;;  %v1154_v46 = vld [vmem:[%s4895_s19 + $0x1c80] sm:$0xff]  ;;  %v3201_v51 = vadd.f32 %v2177_v44, %v1153_v43  ;;  %v2197_v40 = vld [vmem:[%s4902_s7 + $0x1d18] sm:$0xff] }
 0x3e7   : > { %4203 = vst [vmem:[%s4917_s20 + $0x1bc8] sm:$0xff] %v3179_v49  ;;  %v1155_v49 = vld [vmem:[%s4895_s19 + $0x1c88] sm:$0xff]  ;;  %v3202_v54 = vadd.f32 %v2178_v47, %v1154_v46  ;;  %v2198_v43 = vld [vmem:[%s4902_s7 + $0x1d20] sm:$0xff] }
 0x3e8   : > { %4204 = vst [vmem:[%s4917_s20 + $0x1bd0] sm:$0xff] %v3180_v52  ;;  %v1156_v52 = vld [vmem:[%s4895_s19 + $0x1c90] sm:$0xff]  ;;  %v3203_v57 = vadd.f32 %v2179_v50, %v1155_v49  ;;  %v2199_v46 = vld [vmem:[%s4902_s7 + $0x1d28] sm:$0xff] }
 0x3e9   : > { %4205 = vst [vmem:[%s4917_s20 + $0x1bd8] sm:$0xff] %v3181_v55  ;;  %v1157_v55 = vld [vmem:[%s4895_s19 + $0x1c98] sm:$0xff]  ;;  %v3204_v60 = vadd.f32 %v2180_v53, %v1156_v52  ;;  %v2200_v49 = vld [vmem:[%s4902_s7 + $0x1d30] sm:$0xff] }
 0x3ea   : > { %4206 = vst [vmem:[%s4917_s20 + $0x1be0] sm:$0xff] %v3182_v58  ;;  %v1158_v58 = vld [vmem:[%s4895_s19 + $0x1ca0] sm:$0xff]  ;;  %v3205_v63 = vadd.f32 %v2181_v56, %v1157_v55  ;;  %v2201_v52 = vld [vmem:[%s4902_s7 + $0x1d38] sm:$0xff] }
 0x3eb   : > { %4207 = vst [vmem:[%s4917_s20 + $0x1be8] sm:$0xff] %v3183_v61  ;;  %v1159_v61 = vld [vmem:[%s4895_s19 + $0x1ca8] sm:$0xff]  ;;  %v3206_v2 = vadd.f32 %v2182_v59, %v1158_v58  ;;  %v2202_v55 = vld [vmem:[%s4902_s7 + $0x1d40] sm:$0xff] }
 0x3ec   : > { %4208 = vst [vmem:[%s4917_s20 + $0x1bf0] sm:$0xff] %v3184_v0  ;;  %v1160_v0 = vld [vmem:[%s4895_s19 + $0x1cb0] sm:$0xff]  ;;  %v3207_v5 = vadd.f32 %v2183_v62, %v1159_v61  ;;  %v2203_v58 = vld [vmem:[%s4902_s7 + $0x1d48] sm:$0xff] }
 0x3ed   : > { %4209 = vst [vmem:[%s4917_s20 + $0x1bf8] sm:$0xff] %v3185_v3  ;;  %v1161_v3 = vld [vmem:[%s4895_s19 + $0x1cb8] sm:$0xff]  ;;  %v3208_v8 = vadd.f32 %v2184_v1, %v1160_v0  ;;  %v2204_v61 = vld [vmem:[%s4902_s7 + $0x1d50] sm:$0xff] }
 0x3ee   : > { %4210 = vst [vmem:[%s4917_s20 + $0x1c00] sm:$0xff] %v3186_v6  ;;  %v1162_v6 = vld [vmem:[%s4895_s19 + $0x1cc0] sm:$0xff]  ;;  %v3209_v11 = vadd.f32 %v2185_v4, %v1161_v3  ;;  %v2205_v0 = vld [vmem:[%s4902_s7 + $0x1d58] sm:$0xff] }
 0x3ef   : > { %4211 = vst [vmem:[%s4917_s20 + $0x1c08] sm:$0xff] %v3187_v9  ;;  %v1163_v9 = vld [vmem:[%s4895_s19 + $0x1cc8] sm:$0xff]  ;;  %v3210_v14 = vadd.f32 %v2186_v7, %v1162_v6  ;;  %v2206_v3 = vld [vmem:[%s4902_s7 + $0x1d60] sm:$0xff] }
 0x3f0   : > { %4212 = vst [vmem:[%s4917_s20 + $0x1c10] sm:$0xff] %v3188_v12  ;;  %v1164_v12 = vld [vmem:[%s4895_s19 + $0x1cd0] sm:$0xff]  ;;  %v3211_v17 = vadd.f32 %v2187_v10, %v1163_v9  ;;  %v2207_v6 = vld [vmem:[%s4902_s7 + $0x1d68] sm:$0xff] }
 0x3f1   : > { %4213 = vst [vmem:[%s4917_s20 + $0x1c18] sm:$0xff] %v3189_v15  ;;  %v1165_v15 = vld [vmem:[%s4895_s19 + $0x1cd8] sm:$0xff]  ;;  %v3212_v20 = vadd.f32 %v2188_v13, %v1164_v12  ;;  %v2208_v9 = vld [vmem:[%s4902_s7 + $0x1d70] sm:$0xff] }
 0x3f2   : > { %4214 = vst [vmem:[%s4917_s20 + $0x1c20] sm:$0xff] %v3190_v18  ;;  %v1166_v18 = vld [vmem:[%s4895_s19 + $0x1ce0] sm:$0xff]  ;;  %v3213_v23 = vadd.f32 %v2189_v16, %v1165_v15  ;;  %v2209_v12 = vld [vmem:[%s4902_s7 + $0x1d78] sm:$0xff] }
 0x3f3   : > { %4215 = vst [vmem:[%s4917_s20 + $0x1c28] sm:$0xff] %v3191_v21  ;;  %v1167_v21 = vld [vmem:[%s4895_s19 + $0x1ce8] sm:$0xff]  ;;  %v3214_v26 = vadd.f32 %v2190_v19, %v1166_v18  ;;  %v2210_v15 = vld [vmem:[%s4902_s7 + $0x1d80] sm:$0xff] }
 0x3f4   : > { %4216 = vst [vmem:[%s4917_s20 + $0x1c30] sm:$0xff] %v3192_v24  ;;  %v1168_v24 = vld [vmem:[%s4895_s19 + $0x1cf0] sm:$0xff]  ;;  %v3215_v29 = vadd.f32 %v2191_v22, %v1167_v21  ;;  %v2211_v18 = vld [vmem:[%s4902_s7 + $0x1d88] sm:$0xff] }
 0x3f5   : > { %4217 = vst [vmem:[%s4917_s20 + $0x1c38] sm:$0xff] %v3193_v27  ;;  %v1169_v27 = vld [vmem:[%s4895_s19 + $0x1cf8] sm:$0xff]  ;;  %v3216_v32 = vadd.f32 %v2192_v25, %v1168_v24  ;;  %v2212_v21 = vld [vmem:[%s4902_s7 + $0x1d90] sm:$0xff] }
 0x3f6   : > { %4218 = vst [vmem:[%s4917_s20 + $0x1c40] sm:$0xff] %v3194_v30  ;;  %v1170_v30 = vld [vmem:[%s4895_s19 + $0x1d00] sm:$0xff]  ;;  %v3217_v35 = vadd.f32 %v2193_v28, %v1169_v27  ;;  %v2213_v24 = vld [vmem:[%s4902_s7 + $0x1d98] sm:$0xff] }
 0x3f7   : > { %4219 = vst [vmem:[%s4917_s20 + $0x1c48] sm:$0xff] %v3195_v33  ;;  %v1171_v33 = vld [vmem:[%s4895_s19 + $0x1d08] sm:$0xff]  ;;  %v3218_v38 = vadd.f32 %v2194_v31, %v1170_v30  ;;  %v2214_v27 = vld [vmem:[%s4902_s7 + $0x1da0] sm:$0xff] }
 0x3f8   : > { %4220 = vst [vmem:[%s4917_s20 + $0x1c50] sm:$0xff] %v3196_v36  ;;  %v1172_v36 = vld [vmem:[%s4895_s19 + $0x1d10] sm:$0xff]  ;;  %v3219_v41 = vadd.f32 %v2195_v34, %v1171_v33  ;;  %v2215_v30 = vld [vmem:[%s4902_s7 + $0x1da8] sm:$0xff] }
 0x3f9   : > { %4221 = vst [vmem:[%s4917_s20 + $0x1c58] sm:$0xff] %v3197_v39  ;;  %v1173_v39 = vld [vmem:[%s4895_s19 + $0x1d18] sm:$0xff]  ;;  %v3220_v44 = vadd.f32 %v2196_v37, %v1172_v36  ;;  %v2216_v33 = vld [vmem:[%s4902_s7 + $0x1db0] sm:$0xff] }
 0x3fa   : > { %4222 = vst [vmem:[%s4917_s20 + $0x1c60] sm:$0xff] %v3198_v42  ;;  %v1174_v42 = vld [vmem:[%s4895_s19 + $0x1d20] sm:$0xff]  ;;  %v3221_v47 = vadd.f32 %v2197_v40, %v1173_v39  ;;  %v2217_v36 = vld [vmem:[%s4902_s7 + $0x1db8] sm:$0xff] }
 0x3fb   : > { %4223 = vst [vmem:[%s4917_s20 + $0x1c68] sm:$0xff] %v3199_v45  ;;  %v1175_v45 = vld [vmem:[%s4895_s19 + $0x1d28] sm:$0xff]  ;;  %v3222_v50 = vadd.f32 %v2198_v43, %v1174_v42  ;;  %v2218_v39 = vld [vmem:[%s4902_s7 + $0x1dc0] sm:$0xff] }
 0x3fc   : > { %4224 = vst [vmem:[%s4917_s20 + $0x1c70] sm:$0xff] %v3200_v48  ;;  %v1176_v48 = vld [vmem:[%s4895_s19 + $0x1d30] sm:$0xff]  ;;  %v3223_v53 = vadd.f32 %v2199_v46, %v1175_v45  ;;  %v2219_v42 = vld [vmem:[%s4902_s7 + $0x1dc8] sm:$0xff] }
 0x3fd   : > { %4225 = vst [vmem:[%s4917_s20 + $0x1c78] sm:$0xff] %v3201_v51  ;;  %v1177_v51 = vld [vmem:[%s4895_s19 + $0x1d38] sm:$0xff]  ;;  %v3224_v56 = vadd.f32 %v2200_v49, %v1176_v48  ;;  %v2220_v45 = vld [vmem:[%s4902_s7 + $0x1dd0] sm:$0xff] }
 0x3fe   : > { %4226 = vst [vmem:[%s4917_s20 + $0x1c80] sm:$0xff] %v3202_v54  ;;  %v1178_v54 = vld [vmem:[%s4895_s19 + $0x1d40] sm:$0xff]  ;;  %v3225_v59 = vadd.f32 %v2201_v52, %v1177_v51  ;;  %v2221_v48 = vld [vmem:[%s4902_s7 + $0x1dd8] sm:$0xff] }
 0x3ff   : > { %4227 = vst [vmem:[%s4917_s20 + $0x1c88] sm:$0xff] %v3203_v57  ;;  %v1179_v57 = vld [vmem:[%s4895_s19 + $0x1d48] sm:$0xff]  ;;  %v3226_v62 = vadd.f32 %v2202_v55, %v1178_v54  ;;  %v2222_v51 = vld [vmem:[%s4902_s7 + $0x1de0] sm:$0xff] }
 0x400   : > { %4228 = vst [vmem:[%s4917_s20 + $0x1c90] sm:$0xff] %v3204_v60  ;;  %v1180_v60 = vld [vmem:[%s4895_s19 + $0x1d50] sm:$0xff]  ;;  %v3227_v1 = vadd.f32 %v2203_v58, %v1179_v57  ;;  %v2223_v54 = vld [vmem:[%s4902_s7 + $0x1de8] sm:$0xff] }
 0x401   : > { %4229 = vst [vmem:[%s4917_s20 + $0x1c98] sm:$0xff] %v3205_v63  ;;  %v1181_v63 = vld [vmem:[%s4895_s19 + $0x1d58] sm:$0xff]  ;;  %v3228_v4 = vadd.f32 %v2204_v61, %v1180_v60  ;;  %v2224_v57 = vld [vmem:[%s4902_s7 + $0x1df0] sm:$0xff] }
 0x402   : > { %4230 = vst [vmem:[%s4917_s20 + $0x1ca0] sm:$0xff] %v3206_v2  ;;  %v1182_v2 = vld [vmem:[%s4895_s19 + $0x1d60] sm:$0xff]  ;;  %v3229_v7 = vadd.f32 %v2205_v0, %v1181_v63  ;;  %v2225_v60 = vld [vmem:[%s4902_s7 + $0x1df8] sm:$0xff] }
 0x403   : > { %4231 = vst [vmem:[%s4917_s20 + $0x1ca8] sm:$0xff] %v3207_v5  ;;  %v1183_v5 = vld [vmem:[%s4895_s19 + $0x1d68] sm:$0xff]  ;;  %v3230_v10 = vadd.f32 %v2206_v3, %v1182_v2  ;;  %v2226_v63 = vld [vmem:[%s4902_s7 + $0x1e00] sm:$0xff] }
 0x404   : > { %4232 = vst [vmem:[%s4917_s20 + $0x1cb0] sm:$0xff] %v3208_v8  ;;  %v1184_v8 = vld [vmem:[%s4895_s19 + $0x1d70] sm:$0xff]  ;;  %v3231_v13 = vadd.f32 %v2207_v6, %v1183_v5  ;;  %v2227_v2 = vld [vmem:[%s4902_s7 + $0x1e08] sm:$0xff] }
 0x405   : > { %4233 = vst [vmem:[%s4917_s20 + $0x1cb8] sm:$0xff] %v3209_v11  ;;  %v1185_v11 = vld [vmem:[%s4895_s19 + $0x1d78] sm:$0xff]  ;;  %v3232_v16 = vadd.f32 %v2208_v9, %v1184_v8  ;;  %v2228_v5 = vld [vmem:[%s4902_s7 + $0x1e10] sm:$0xff] }
 0x406   : > { %4234 = vst [vmem:[%s4917_s20 + $0x1cc0] sm:$0xff] %v3210_v14  ;;  %v1186_v14 = vld [vmem:[%s4895_s19 + $0x1d80] sm:$0xff]  ;;  %v3233_v19 = vadd.f32 %v2209_v12, %v1185_v11  ;;  %v2229_v8 = vld [vmem:[%s4902_s7 + $0x1e18] sm:$0xff] }
 0x407   : > { %4235 = vst [vmem:[%s4917_s20 + $0x1cc8] sm:$0xff] %v3211_v17  ;;  %v1187_v17 = vld [vmem:[%s4895_s19 + $0x1d88] sm:$0xff]  ;;  %v3234_v22 = vadd.f32 %v2210_v15, %v1186_v14  ;;  %v2230_v11 = vld [vmem:[%s4902_s7 + $0x1e20] sm:$0xff] }
 0x408   : > { %4236 = vst [vmem:[%s4917_s20 + $0x1cd0] sm:$0xff] %v3212_v20  ;;  %v1188_v20 = vld [vmem:[%s4895_s19 + $0x1d90] sm:$0xff]  ;;  %v3235_v25 = vadd.f32 %v2211_v18, %v1187_v17  ;;  %v2231_v14 = vld [vmem:[%s4902_s7 + $0x1e28] sm:$0xff] }
 0x409   : > { %4237 = vst [vmem:[%s4917_s20 + $0x1cd8] sm:$0xff] %v3213_v23  ;;  %v1189_v23 = vld [vmem:[%s4895_s19 + $0x1d98] sm:$0xff]  ;;  %v3236_v28 = vadd.f32 %v2212_v21, %v1188_v20  ;;  %v2232_v17 = vld [vmem:[%s4902_s7 + $0x1e30] sm:$0xff] }
 0x40a   : > { %4238 = vst [vmem:[%s4917_s20 + $0x1ce0] sm:$0xff] %v3214_v26  ;;  %v1190_v26 = vld [vmem:[%s4895_s19 + $0x1da0] sm:$0xff]  ;;  %v3237_v31 = vadd.f32 %v2213_v24, %v1189_v23  ;;  %v2233_v20 = vld [vmem:[%s4902_s7 + $0x1e38] sm:$0xff] }
 0x40b   : > { %4239 = vst [vmem:[%s4917_s20 + $0x1ce8] sm:$0xff] %v3215_v29  ;;  %v1191_v29 = vld [vmem:[%s4895_s19 + $0x1da8] sm:$0xff]  ;;  %v3238_v34 = vadd.f32 %v2214_v27, %v1190_v26  ;;  %v2234_v23 = vld [vmem:[%s4902_s7 + $0x1e40] sm:$0xff] }
 0x40c   : > { %4240 = vst [vmem:[%s4917_s20 + $0x1cf0] sm:$0xff] %v3216_v32  ;;  %v1192_v32 = vld [vmem:[%s4895_s19 + $0x1db0] sm:$0xff]  ;;  %v3239_v37 = vadd.f32 %v2215_v30, %v1191_v29  ;;  %v2235_v26 = vld [vmem:[%s4902_s7 + $0x1e48] sm:$0xff] }
 0x40d   : > { %4241 = vst [vmem:[%s4917_s20 + $0x1cf8] sm:$0xff] %v3217_v35  ;;  %v1193_v35 = vld [vmem:[%s4895_s19 + $0x1db8] sm:$0xff]  ;;  %v3240_v40 = vadd.f32 %v2216_v33, %v1192_v32  ;;  %v2236_v29 = vld [vmem:[%s4902_s7 + $0x1e50] sm:$0xff] }
 0x40e   : > { %4242 = vst [vmem:[%s4917_s20 + $0x1d00] sm:$0xff] %v3218_v38  ;;  %v1194_v38 = vld [vmem:[%s4895_s19 + $0x1dc0] sm:$0xff]  ;;  %v3241_v43 = vadd.f32 %v2217_v36, %v1193_v35  ;;  %v2237_v32 = vld [vmem:[%s4902_s7 + $0x1e58] sm:$0xff] }
 0x40f   : > { %4243 = vst [vmem:[%s4917_s20 + $0x1d08] sm:$0xff] %v3219_v41  ;;  %v1195_v41 = vld [vmem:[%s4895_s19 + $0x1dc8] sm:$0xff]  ;;  %v3242_v46 = vadd.f32 %v2218_v39, %v1194_v38  ;;  %v2238_v35 = vld [vmem:[%s4902_s7 + $0x1e60] sm:$0xff] }
 0x410   : > { %4244 = vst [vmem:[%s4917_s20 + $0x1d10] sm:$0xff] %v3220_v44  ;;  %v1196_v44 = vld [vmem:[%s4895_s19 + $0x1dd0] sm:$0xff]  ;;  %v3243_v49 = vadd.f32 %v2219_v42, %v1195_v41  ;;  %v2239_v38 = vld [vmem:[%s4902_s7 + $0x1e68] sm:$0xff] }
 0x411   : > { %4245 = vst [vmem:[%s4917_s20 + $0x1d18] sm:$0xff] %v3221_v47  ;;  %v1197_v47 = vld [vmem:[%s4895_s19 + $0x1dd8] sm:$0xff]  ;;  %v3244_v52 = vadd.f32 %v2220_v45, %v1196_v44  ;;  %v2240_v41 = vld [vmem:[%s4902_s7 + $0x1e70] sm:$0xff] }
 0x412   : > { %4246 = vst [vmem:[%s4917_s20 + $0x1d20] sm:$0xff] %v3222_v50  ;;  %v1198_v50 = vld [vmem:[%s4895_s19 + $0x1de0] sm:$0xff]  ;;  %v3245_v55 = vadd.f32 %v2221_v48, %v1197_v47  ;;  %v2241_v44 = vld [vmem:[%s4902_s7 + $0x1e78] sm:$0xff] }
 0x413   : > { %4247 = vst [vmem:[%s4917_s20 + $0x1d28] sm:$0xff] %v3223_v53  ;;  %v1199_v53 = vld [vmem:[%s4895_s19 + $0x1de8] sm:$0xff]  ;;  %v3246_v58 = vadd.f32 %v2222_v51, %v1198_v50  ;;  %v2242_v47 = vld [vmem:[%s4902_s7 + $0x1e80] sm:$0xff] }
 0x414   : > { %4248 = vst [vmem:[%s4917_s20 + $0x1d30] sm:$0xff] %v3224_v56  ;;  %v1200_v56 = vld [vmem:[%s4895_s19 + $0x1df0] sm:$0xff]  ;;  %v3247_v61 = vadd.f32 %v2223_v54, %v1199_v53  ;;  %v2243_v50 = vld [vmem:[%s4902_s7 + $0x1e88] sm:$0xff] }
 0x415   : > { %4249 = vst [vmem:[%s4917_s20 + $0x1d38] sm:$0xff] %v3225_v59  ;;  %v1201_v59 = vld [vmem:[%s4895_s19 + $0x1df8] sm:$0xff]  ;;  %v3248_v0 = vadd.f32 %v2224_v57, %v1200_v56  ;;  %v2244_v53 = vld [vmem:[%s4902_s7 + $0x1e90] sm:$0xff] }
 0x416   : > { %4250 = vst [vmem:[%s4917_s20 + $0x1d40] sm:$0xff] %v3226_v62  ;;  %v1202_v62 = vld [vmem:[%s4895_s19 + $0x1e00] sm:$0xff]  ;;  %v3249_v3 = vadd.f32 %v2225_v60, %v1201_v59  ;;  %v2245_v56 = vld [vmem:[%s4902_s7 + $0x1e98] sm:$0xff] }
 0x417   : > { %4251 = vst [vmem:[%s4917_s20 + $0x1d48] sm:$0xff] %v3227_v1  ;;  %v1203_v1 = vld [vmem:[%s4895_s19 + $0x1e08] sm:$0xff]  ;;  %v3250_v6 = vadd.f32 %v2226_v63, %v1202_v62  ;;  %v2246_v59 = vld [vmem:[%s4902_s7 + $0x1ea0] sm:$0xff] }
 0x418   : > { %4252 = vst [vmem:[%s4917_s20 + $0x1d50] sm:$0xff] %v3228_v4  ;;  %v1204_v4 = vld [vmem:[%s4895_s19 + $0x1e10] sm:$0xff]  ;;  %v3251_v9 = vadd.f32 %v2227_v2, %v1203_v1  ;;  %v2247_v62 = vld [vmem:[%s4902_s7 + $0x1ea8] sm:$0xff] }
 0x419   : > { %4253 = vst [vmem:[%s4917_s20 + $0x1d58] sm:$0xff] %v3229_v7  ;;  %v1205_v7 = vld [vmem:[%s4895_s19 + $0x1e18] sm:$0xff]  ;;  %v3252_v12 = vadd.f32 %v2228_v5, %v1204_v4  ;;  %v2248_v1 = vld [vmem:[%s4902_s7 + $0x1eb0] sm:$0xff] }
 0x41a   : > { %4254 = vst [vmem:[%s4917_s20 + $0x1d60] sm:$0xff] %v3230_v10  ;;  %v1206_v10 = vld [vmem:[%s4895_s19 + $0x1e20] sm:$0xff]  ;;  %v3253_v15 = vadd.f32 %v2229_v8, %v1205_v7  ;;  %v2249_v4 = vld [vmem:[%s4902_s7 + $0x1eb8] sm:$0xff] }
 0x41b   : > { %4255 = vst [vmem:[%s4917_s20 + $0x1d68] sm:$0xff] %v3231_v13  ;;  %v1207_v13 = vld [vmem:[%s4895_s19 + $0x1e28] sm:$0xff]  ;;  %v3254_v18 = vadd.f32 %v2230_v11, %v1206_v10  ;;  %v2250_v7 = vld [vmem:[%s4902_s7 + $0x1ec0] sm:$0xff] }
 0x41c   : > { %4256 = vst [vmem:[%s4917_s20 + $0x1d70] sm:$0xff] %v3232_v16  ;;  %v1208_v16 = vld [vmem:[%s4895_s19 + $0x1e30] sm:$0xff]  ;;  %v3255_v21 = vadd.f32 %v2231_v14, %v1207_v13  ;;  %v2251_v10 = vld [vmem:[%s4902_s7 + $0x1ec8] sm:$0xff] }
 0x41d   : > { %4257 = vst [vmem:[%s4917_s20 + $0x1d78] sm:$0xff] %v3233_v19  ;;  %v1209_v19 = vld [vmem:[%s4895_s19 + $0x1e38] sm:$0xff]  ;;  %v3256_v24 = vadd.f32 %v2232_v17, %v1208_v16  ;;  %v2252_v13 = vld [vmem:[%s4902_s7 + $0x1ed0] sm:$0xff] }
 0x41e   : > { %4258 = vst [vmem:[%s4917_s20 + $0x1d80] sm:$0xff] %v3234_v22  ;;  %v1210_v22 = vld [vmem:[%s4895_s19 + $0x1e40] sm:$0xff]  ;;  %v3257_v27 = vadd.f32 %v2233_v20, %v1209_v19  ;;  %v2253_v16 = vld [vmem:[%s4902_s7 + $0x1ed8] sm:$0xff] }
 0x41f   : > { %4259 = vst [vmem:[%s4917_s20 + $0x1d88] sm:$0xff] %v3235_v25  ;;  %v1211_v25 = vld [vmem:[%s4895_s19 + $0x1e48] sm:$0xff]  ;;  %v3258_v30 = vadd.f32 %v2234_v23, %v1210_v22  ;;  %v2254_v19 = vld [vmem:[%s4902_s7 + $0x1ee0] sm:$0xff] }
 0x420   : > { %4260 = vst [vmem:[%s4917_s20 + $0x1d90] sm:$0xff] %v3236_v28  ;;  %v1212_v28 = vld [vmem:[%s4895_s19 + $0x1e50] sm:$0xff]  ;;  %v3259_v33 = vadd.f32 %v2235_v26, %v1211_v25  ;;  %v2255_v22 = vld [vmem:[%s4902_s7 + $0x1ee8] sm:$0xff] }
 0x421   : > { %4261 = vst [vmem:[%s4917_s20 + $0x1d98] sm:$0xff] %v3237_v31  ;;  %v1213_v31 = vld [vmem:[%s4895_s19 + $0x1e58] sm:$0xff]  ;;  %v3260_v36 = vadd.f32 %v2236_v29, %v1212_v28  ;;  %v2256_v25 = vld [vmem:[%s4902_s7 + $0x1ef0] sm:$0xff] }
 0x422   : > { %4262 = vst [vmem:[%s4917_s20 + $0x1da0] sm:$0xff] %v3238_v34  ;;  %v1214_v34 = vld [vmem:[%s4895_s19 + $0x1e60] sm:$0xff]  ;;  %v3261_v39 = vadd.f32 %v2237_v32, %v1213_v31  ;;  %v2257_v28 = vld [vmem:[%s4902_s7 + $0x1ef8] sm:$0xff] }
 0x423   : > { %4263 = vst [vmem:[%s4917_s20 + $0x1da8] sm:$0xff] %v3239_v37  ;;  %v1215_v37 = vld [vmem:[%s4895_s19 + $0x1e68] sm:$0xff]  ;;  %v3262_v42 = vadd.f32 %v2238_v35, %v1214_v34  ;;  %v2258_v31 = vld [vmem:[%s4902_s7 + $0x1f00] sm:$0xff] }
 0x424   : > { %4264 = vst [vmem:[%s4917_s20 + $0x1db0] sm:$0xff] %v3240_v40  ;;  %v1216_v40 = vld [vmem:[%s4895_s19 + $0x1e70] sm:$0xff]  ;;  %v3263_v45 = vadd.f32 %v2239_v38, %v1215_v37  ;;  %v2259_v34 = vld [vmem:[%s4902_s7 + $0x1f08] sm:$0xff] }
 0x425   : > { %4265 = vst [vmem:[%s4917_s20 + $0x1db8] sm:$0xff] %v3241_v43  ;;  %v1217_v43 = vld [vmem:[%s4895_s19 + $0x1e78] sm:$0xff]  ;;  %v3264_v48 = vadd.f32 %v2240_v41, %v1216_v40  ;;  %v2260_v37 = vld [vmem:[%s4902_s7 + $0x1f10] sm:$0xff] }
 0x426   : > { %4266 = vst [vmem:[%s4917_s20 + $0x1dc0] sm:$0xff] %v3242_v46  ;;  %v1218_v46 = vld [vmem:[%s4895_s19 + $0x1e80] sm:$0xff]  ;;  %v3265_v51 = vadd.f32 %v2241_v44, %v1217_v43  ;;  %v2261_v40 = vld [vmem:[%s4902_s7 + $0x1f18] sm:$0xff] }
 0x427   : > { %4267 = vst [vmem:[%s4917_s20 + $0x1dc8] sm:$0xff] %v3243_v49  ;;  %v1219_v49 = vld [vmem:[%s4895_s19 + $0x1e88] sm:$0xff]  ;;  %v3266_v54 = vadd.f32 %v2242_v47, %v1218_v46  ;;  %v2262_v43 = vld [vmem:[%s4902_s7 + $0x1f20] sm:$0xff] }
 0x428   : > { %4268 = vst [vmem:[%s4917_s20 + $0x1dd0] sm:$0xff] %v3244_v52  ;;  %v1220_v52 = vld [vmem:[%s4895_s19 + $0x1e90] sm:$0xff]  ;;  %v3267_v57 = vadd.f32 %v2243_v50, %v1219_v49  ;;  %v2263_v46 = vld [vmem:[%s4902_s7 + $0x1f28] sm:$0xff] }
 0x429   : > { %4269 = vst [vmem:[%s4917_s20 + $0x1dd8] sm:$0xff] %v3245_v55  ;;  %v1221_v55 = vld [vmem:[%s4895_s19 + $0x1e98] sm:$0xff]  ;;  %v3268_v60 = vadd.f32 %v2244_v53, %v1220_v52  ;;  %v2264_v49 = vld [vmem:[%s4902_s7 + $0x1f30] sm:$0xff] }
 0x42a   : > { %4270 = vst [vmem:[%s4917_s20 + $0x1de0] sm:$0xff] %v3246_v58  ;;  %v1222_v58 = vld [vmem:[%s4895_s19 + $0x1ea0] sm:$0xff]  ;;  %v3269_v63 = vadd.f32 %v2245_v56, %v1221_v55  ;;  %v2265_v52 = vld [vmem:[%s4902_s7 + $0x1f38] sm:$0xff] }
 0x42b   : > { %4271 = vst [vmem:[%s4917_s20 + $0x1de8] sm:$0xff] %v3247_v61  ;;  %v1223_v61 = vld [vmem:[%s4895_s19 + $0x1ea8] sm:$0xff]  ;;  %v3270_v2 = vadd.f32 %v2246_v59, %v1222_v58  ;;  %v2266_v55 = vld [vmem:[%s4902_s7 + $0x1f40] sm:$0xff] }
 0x42c   : > { %4272 = vst [vmem:[%s4917_s20 + $0x1df0] sm:$0xff] %v3248_v0  ;;  %v1224_v0 = vld [vmem:[%s4895_s19 + $0x1eb0] sm:$0xff]  ;;  %v3271_v5 = vadd.f32 %v2247_v62, %v1223_v61  ;;  %v2267_v58 = vld [vmem:[%s4902_s7 + $0x1f48] sm:$0xff] }
 0x42d   : > { %4273 = vst [vmem:[%s4917_s20 + $0x1df8] sm:$0xff] %v3249_v3  ;;  %v1225_v3 = vld [vmem:[%s4895_s19 + $0x1eb8] sm:$0xff]  ;;  %v3272_v8 = vadd.f32 %v2248_v1, %v1224_v0  ;;  %v2268_v61 = vld [vmem:[%s4902_s7 + $0x1f50] sm:$0xff] }
 0x42e   : > { %4274 = vst [vmem:[%s4917_s20 + $0x1e00] sm:$0xff] %v3250_v6  ;;  %v1226_v6 = vld [vmem:[%s4895_s19 + $0x1ec0] sm:$0xff]  ;;  %v3273_v11 = vadd.f32 %v2249_v4, %v1225_v3  ;;  %v2269_v0 = vld [vmem:[%s4902_s7 + $0x1f58] sm:$0xff] }
 0x42f   : > { %4275 = vst [vmem:[%s4917_s20 + $0x1e08] sm:$0xff] %v3251_v9  ;;  %v1227_v9 = vld [vmem:[%s4895_s19 + $0x1ec8] sm:$0xff]  ;;  %v3274_v14 = vadd.f32 %v2250_v7, %v1226_v6  ;;  %v2270_v3 = vld [vmem:[%s4902_s7 + $0x1f60] sm:$0xff] }
 0x430   : > { %4276 = vst [vmem:[%s4917_s20 + $0x1e10] sm:$0xff] %v3252_v12  ;;  %v1228_v12 = vld [vmem:[%s4895_s19 + $0x1ed0] sm:$0xff]  ;;  %v3275_v17 = vadd.f32 %v2251_v10, %v1227_v9  ;;  %v2271_v6 = vld [vmem:[%s4902_s7 + $0x1f68] sm:$0xff] }
 0x431   : > { %4277 = vst [vmem:[%s4917_s20 + $0x1e18] sm:$0xff] %v3253_v15  ;;  %v1229_v15 = vld [vmem:[%s4895_s19 + $0x1ed8] sm:$0xff]  ;;  %v3276_v20 = vadd.f32 %v2252_v13, %v1228_v12  ;;  %v2272_v9 = vld [vmem:[%s4902_s7 + $0x1f70] sm:$0xff] }
 0x432   : > { %4278 = vst [vmem:[%s4917_s20 + $0x1e20] sm:$0xff] %v3254_v18  ;;  %v1230_v18 = vld [vmem:[%s4895_s19 + $0x1ee0] sm:$0xff]  ;;  %v3277_v23 = vadd.f32 %v2253_v16, %v1229_v15  ;;  %v2273_v12 = vld [vmem:[%s4902_s7 + $0x1f78] sm:$0xff] }
 0x433   : > { %4279 = vst [vmem:[%s4917_s20 + $0x1e28] sm:$0xff] %v3255_v21  ;;  %v1231_v21 = vld [vmem:[%s4895_s19 + $0x1ee8] sm:$0xff]  ;;  %v3278_v26 = vadd.f32 %v2254_v19, %v1230_v18  ;;  %v2274_v15 = vld [vmem:[%s4902_s7 + $0x1f80] sm:$0xff] }
 0x434   : > { %4280 = vst [vmem:[%s4917_s20 + $0x1e30] sm:$0xff] %v3256_v24  ;;  %v1232_v24 = vld [vmem:[%s4895_s19 + $0x1ef0] sm:$0xff]  ;;  %v3279_v29 = vadd.f32 %v2255_v22, %v1231_v21  ;;  %v2275_v18 = vld [vmem:[%s4902_s7 + $0x1f88] sm:$0xff] }
 0x435   : > { %4281 = vst [vmem:[%s4917_s20 + $0x1e38] sm:$0xff] %v3257_v27  ;;  %v1233_v27 = vld [vmem:[%s4895_s19 + $0x1ef8] sm:$0xff]  ;;  %v3280_v32 = vadd.f32 %v2256_v25, %v1232_v24  ;;  %v2276_v21 = vld [vmem:[%s4902_s7 + $0x1f90] sm:$0xff] }
 0x436   : > { %4282 = vst [vmem:[%s4917_s20 + $0x1e40] sm:$0xff] %v3258_v30  ;;  %v1234_v30 = vld [vmem:[%s4895_s19 + $0x1f00] sm:$0xff]  ;;  %v3281_v35 = vadd.f32 %v2257_v28, %v1233_v27  ;;  %v2277_v24 = vld [vmem:[%s4902_s7 + $0x1f98] sm:$0xff] }
 0x437   : > { %4283 = vst [vmem:[%s4917_s20 + $0x1e48] sm:$0xff] %v3259_v33  ;;  %v1235_v33 = vld [vmem:[%s4895_s19 + $0x1f08] sm:$0xff]  ;;  %v3282_v38 = vadd.f32 %v2258_v31, %v1234_v30  ;;  %v2278_v27 = vld [vmem:[%s4902_s7 + $0x1fa0] sm:$0xff] }
 0x438   : > { %4284 = vst [vmem:[%s4917_s20 + $0x1e50] sm:$0xff] %v3260_v36  ;;  %v1236_v36 = vld [vmem:[%s4895_s19 + $0x1f10] sm:$0xff]  ;;  %v3283_v41 = vadd.f32 %v2259_v34, %v1235_v33  ;;  %v2279_v30 = vld [vmem:[%s4902_s7 + $0x1fa8] sm:$0xff] }
 0x439   : > { %4285 = vst [vmem:[%s4917_s20 + $0x1e58] sm:$0xff] %v3261_v39  ;;  %v1237_v39 = vld [vmem:[%s4895_s19 + $0x1f18] sm:$0xff]  ;;  %v3284_v44 = vadd.f32 %v2260_v37, %v1236_v36  ;;  %v2280_v33 = vld [vmem:[%s4902_s7 + $0x1fb0] sm:$0xff] }
 0x43a   : > { %4286 = vst [vmem:[%s4917_s20 + $0x1e60] sm:$0xff] %v3262_v42  ;;  %v1238_v42 = vld [vmem:[%s4895_s19 + $0x1f20] sm:$0xff]  ;;  %v3285_v47 = vadd.f32 %v2261_v40, %v1237_v39  ;;  %v2281_v36 = vld [vmem:[%s4902_s7 + $0x1fb8] sm:$0xff] }
 0x43b   : > { %4287 = vst [vmem:[%s4917_s20 + $0x1e68] sm:$0xff] %v3263_v45  ;;  %v1239_v45 = vld [vmem:[%s4895_s19 + $0x1f28] sm:$0xff]  ;;  %v3286_v50 = vadd.f32 %v2262_v43, %v1238_v42  ;;  %v2282_v39 = vld [vmem:[%s4902_s7 + $0x1fc0] sm:$0xff] }
 0x43c   : > { %4288 = vst [vmem:[%s4917_s20 + $0x1e70] sm:$0xff] %v3264_v48  ;;  %v1240_v48 = vld [vmem:[%s4895_s19 + $0x1f30] sm:$0xff]  ;;  %v3287_v53 = vadd.f32 %v2263_v46, %v1239_v45  ;;  %v2283_v42 = vld [vmem:[%s4902_s7 + $0x1fc8] sm:$0xff] }
 0x43d   : > { %4289 = vst [vmem:[%s4917_s20 + $0x1e78] sm:$0xff] %v3265_v51  ;;  %v1241_v51 = vld [vmem:[%s4895_s19 + $0x1f38] sm:$0xff]  ;;  %v3288_v56 = vadd.f32 %v2264_v49, %v1240_v48  ;;  %v2284_v45 = vld [vmem:[%s4902_s7 + $0x1fd0] sm:$0xff] }
 0x43e   : > { %4290 = vst [vmem:[%s4917_s20 + $0x1e80] sm:$0xff] %v3266_v54  ;;  %v1242_v54 = vld [vmem:[%s4895_s19 + $0x1f40] sm:$0xff]  ;;  %v3289_v59 = vadd.f32 %v2265_v52, %v1241_v51  ;;  %v2285_v48 = vld [vmem:[%s4902_s7 + $0x1fd8] sm:$0xff] }
 0x43f   : > { %4291 = vst [vmem:[%s4917_s20 + $0x1e88] sm:$0xff] %v3267_v57  ;;  %v1243_v57 = vld [vmem:[%s4895_s19 + $0x1f48] sm:$0xff]  ;;  %v3290_v62 = vadd.f32 %v2266_v55, %v1242_v54  ;;  %v2286_v51 = vld [vmem:[%s4902_s7 + $0x1fe0] sm:$0xff] }
 0x440   : > { %4292 = vst [vmem:[%s4917_s20 + $0x1e90] sm:$0xff] %v3268_v60  ;;  %v1244_v60 = vld [vmem:[%s4895_s19 + $0x1f50] sm:$0xff]  ;;  %v3291_v1 = vadd.f32 %v2267_v58, %v1243_v57  ;;  %v2287_v54 = vld [vmem:[%s4902_s7 + $0x1fe8] sm:$0xff] }
 0x441   : > { %4293 = vst [vmem:[%s4917_s20 + $0x1e98] sm:$0xff] %v3269_v63  ;;  %v1245_v63 = vld [vmem:[%s4895_s19 + $0x1f58] sm:$0xff]  ;;  %v3292_v4 = vadd.f32 %v2268_v61, %v1244_v60  ;;  %v2288_v57 = vld [vmem:[%s4902_s7 + $0x1ff0] sm:$0xff] }
 0x442   : > { %4294 = vst [vmem:[%s4917_s20 + $0x1ea0] sm:$0xff] %v3270_v2  ;;  %v1246_v2 = vld [vmem:[%s4895_s19 + $0x1f60] sm:$0xff]  ;;  %v3293_v7 = vadd.f32 %v2269_v0, %v1245_v63  ;;  %v2289_v60 = vld [vmem:[%s4902_s7 + $0x1ff8] sm:$0xff] }
 0x443   : > { %4295 = vst [vmem:[%s4917_s20 + $0x1ea8] sm:$0xff] %v3271_v5  ;;  %v1247_v5 = vld [vmem:[%s4895_s19 + $0x1f68] sm:$0xff]  ;;  %v3294_v10 = vadd.f32 %v2270_v3, %v1246_v2 }
 0x444   : > { %4296 = vst [vmem:[%s4917_s20 + $0x1eb0] sm:$0xff] %v3272_v8  ;;  %v1248_v8 = vld [vmem:[%s4895_s19 + $0x1f70] sm:$0xff]  ;;  %v3295_v13 = vadd.f32 %v2271_v6, %v1247_v5 }
 0x445   : > { %4297 = vst [vmem:[%s4917_s20 + $0x1eb8] sm:$0xff] %v3273_v11  ;;  %v1249_v11 = vld [vmem:[%s4895_s19 + $0x1f78] sm:$0xff]  ;;  %v3296_v16 = vadd.f32 %v2272_v9, %v1248_v8 }
 0x446   : > { %4298 = vst [vmem:[%s4917_s20 + $0x1ec0] sm:$0xff] %v3274_v14  ;;  %v1250_v14 = vld [vmem:[%s4895_s19 + $0x1f80] sm:$0xff]  ;;  %v3297_v19 = vadd.f32 %v2273_v12, %v1249_v11 }
 0x447   : > { %4299 = vst [vmem:[%s4917_s20 + $0x1ec8] sm:$0xff] %v3275_v17  ;;  %v1251_v17 = vld [vmem:[%s4895_s19 + $0x1f88] sm:$0xff]  ;;  %v3298_v22 = vadd.f32 %v2274_v15, %v1250_v14 }
 0x448   : > { %4300 = vst [vmem:[%s4917_s20 + $0x1ed0] sm:$0xff] %v3276_v20  ;;  %v1252_v20 = vld [vmem:[%s4895_s19 + $0x1f90] sm:$0xff]  ;;  %v3299_v25 = vadd.f32 %v2275_v18, %v1251_v17 }
 0x449   : > { %4301 = vst [vmem:[%s4917_s20 + $0x1ed8] sm:$0xff] %v3277_v23  ;;  %v1253_v23 = vld [vmem:[%s4895_s19 + $0x1f98] sm:$0xff]  ;;  %v3300_v28 = vadd.f32 %v2276_v21, %v1252_v20 }
 0x44a   : > { %4302 = vst [vmem:[%s4917_s20 + $0x1ee0] sm:$0xff] %v3278_v26  ;;  %v1254_v26 = vld [vmem:[%s4895_s19 + $0x1fa0] sm:$0xff]  ;;  %v3301_v31 = vadd.f32 %v2277_v24, %v1253_v23 }
 0x44b   : > { %4303 = vst [vmem:[%s4917_s20 + $0x1ee8] sm:$0xff] %v3279_v29  ;;  %v1255_v29 = vld [vmem:[%s4895_s19 + $0x1fa8] sm:$0xff]  ;;  %v3302_v34 = vadd.f32 %v2278_v27, %v1254_v26 }
 0x44c   : > { %4304 = vst [vmem:[%s4917_s20 + $0x1ef0] sm:$0xff] %v3280_v32  ;;  %v1256_v32 = vld [vmem:[%s4895_s19 + $0x1fb0] sm:$0xff]  ;;  %v3303_v37 = vadd.f32 %v2279_v30, %v1255_v29 }
 0x44d   : > { %4305 = vst [vmem:[%s4917_s20 + $0x1ef8] sm:$0xff] %v3281_v35  ;;  %v1257_v35 = vld [vmem:[%s4895_s19 + $0x1fb8] sm:$0xff]  ;;  %v3304_v40 = vadd.f32 %v2280_v33, %v1256_v32 }
 0x44e   : > { %4306 = vst [vmem:[%s4917_s20 + $0x1f00] sm:$0xff] %v3282_v38  ;;  %v1258_v38 = vld [vmem:[%s4895_s19 + $0x1fc0] sm:$0xff]  ;;  %v3305_v43 = vadd.f32 %v2281_v36, %v1257_v35 }
 0x44f   : > { %4307 = vst [vmem:[%s4917_s20 + $0x1f08] sm:$0xff] %v3283_v41  ;;  %v1259_v41 = vld [vmem:[%s4895_s19 + $0x1fc8] sm:$0xff]  ;;  %v3306_v46 = vadd.f32 %v2282_v39, %v1258_v38 }
 0x450   : > { %4308 = vst [vmem:[%s4917_s20 + $0x1f10] sm:$0xff] %v3284_v44  ;;  %v1260_v44 = vld [vmem:[%s4895_s19 + $0x1fd0] sm:$0xff]  ;;  %v3307_v49 = vadd.f32 %v2283_v42, %v1259_v41 }
 0x451   : > { %4309 = vst [vmem:[%s4917_s20 + $0x1f18] sm:$0xff] %v3285_v47  ;;  %v1261_v47 = vld [vmem:[%s4895_s19 + $0x1fd8] sm:$0xff]  ;;  %v3308_v52 = vadd.f32 %v2284_v45, %v1260_v44 }
 0x452   : > { %4310 = vst [vmem:[%s4917_s20 + $0x1f20] sm:$0xff] %v3286_v50  ;;  %v1262_v50 = vld [vmem:[%s4895_s19 + $0x1fe0] sm:$0xff]  ;;  %v3309_v55 = vadd.f32 %v2285_v48, %v1261_v47 }
 0x453   : > { %4311 = vst [vmem:[%s4917_s20 + $0x1f28] sm:$0xff] %v3287_v53  ;;  %v1263_v53 = vld [vmem:[%s4895_s19 + $0x1fe8] sm:$0xff]  ;;  %v3310_v58 = vadd.f32 %v2286_v51, %v1262_v50 }
 0x454   : > { %4312 = vst [vmem:[%s4917_s20 + $0x1f30] sm:$0xff] %v3288_v56  ;;  %v1264_v56 = vld [vmem:[%s4895_s19 + $0x1ff0] sm:$0xff]  ;;  %v3311_v61 = vadd.f32 %v2287_v54, %v1263_v53 }
 0x455   : > { %4313 = vst [vmem:[%s4917_s20 + $0x1f38] sm:$0xff] %v3289_v59  ;;  %v1265_v59 = vld [vmem:[%s4895_s19 + $0x1ff8] sm:$0xff] }
 0x456   : > { %4314 = vst [vmem:[%s4917_s20 + $0x1f40] sm:$0xff] %v3290_v62  ;;  %v3312_v62 = vadd.f32 %v2288_v57, %v1264_v56  ;;  %v3313_v63 = vadd.f32 %v2289_v60, %v1265_v59 }
 0x457   : > { %4315 = vst [vmem:[%s4917_s20 + $0x1f48] sm:$0xff] %v3291_v1 }
 0x458   : > { %4316 = vst [vmem:[%s4917_s20 + $0x1f50] sm:$0xff] %v3292_v4 }
 0x459   : > { %4317 = vst [vmem:[%s4917_s20 + $0x1f58] sm:$0xff] %v3293_v7 }
 0x45a   : > { %4318 = vst [vmem:[%s4917_s20 + $0x1f60] sm:$0xff] %v3294_v10 }
 0x45b   : > { %4319 = vst [vmem:[%s4917_s20 + $0x1f68] sm:$0xff] %v3295_v13 }
 0x45c   : > { %4320 = vst [vmem:[%s4917_s20 + $0x1f70] sm:$0xff] %v3296_v16 }
 0x45d   : > { %4321 = vst [vmem:[%s4917_s20 + $0x1f78] sm:$0xff] %v3297_v19 }
 0x45e   : > { %4322 = vst [vmem:[%s4917_s20 + $0x1f80] sm:$0xff] %v3298_v22 }
 0x45f   : > { %4323 = vst [vmem:[%s4917_s20 + $0x1f88] sm:$0xff] %v3299_v25 }
 0x460   : > { %4324 = vst [vmem:[%s4917_s20 + $0x1f90] sm:$0xff] %v3300_v28 }
 0x461   : > { %4325 = vst [vmem:[%s4917_s20 + $0x1f98] sm:$0xff] %v3301_v31 }
 0x462   : > { %4326 = vst [vmem:[%s4917_s20 + $0x1fa0] sm:$0xff] %v3302_v34 }
 0x463   : > { %4327 = vst [vmem:[%s4917_s20 + $0x1fa8] sm:$0xff] %v3303_v37 }
 0x464   : > { %4328 = vst [vmem:[%s4917_s20 + $0x1fb0] sm:$0xff] %v3304_v40 }
 0x465   : > { %4329 = vst [vmem:[%s4917_s20 + $0x1fb8] sm:$0xff] %v3305_v43 }
 0x466   : > { %4330 = vst [vmem:[%s4917_s20 + $0x1fc0] sm:$0xff] %v3306_v46 }
 0x467   : > { %4331 = vst [vmem:[%s4917_s20 + $0x1fc8] sm:$0xff] %v3307_v49 }
 0x468   : > { %4332 = vst [vmem:[%s4917_s20 + $0x1fd0] sm:$0xff] %v3308_v52 }
 0x469   : > { %4333 = vst [vmem:[%s4917_s20 + $0x1fd8] sm:$0xff] %v3309_v55  ;;  %4345 = sbr.rel (!%p4783_p9) target bundleno = 1165 (0x48d), region = 40 }
 0x46a   : > { %4334 = vst [vmem:[%s4917_s20 + $0x1fe0] sm:$0xff] %v3310_v58 }
 0x46b   : > { %4335 = vst [vmem:[%s4917_s20 + $0x1fe8] sm:$0xff] %v3311_v61 }
 0x46c   : > { %4336 = vst [vmem:[%s4917_s20 + $0x1ff0] sm:$0xff] %v3312_v62 }
 0x46d   : > { %4337 = vst [vmem:[%s4917_s20 + $0x1ff8] sm:$0xff] %v3313_v63 }
 0x46e   : > { %s8067_s23 = smov (!%p4348_p6, %s4347_s23), 256 }
 0x46f   : > { %s4501_s6 = sshll.u32 %s8067_s23, 5 }
 0x470   : > { %s4352_s4 = ssub.s32 8192, %s4501_s6 }
 0x471   : > { %s4353_s26 = sshll.u32 %s4352_s4, 4 }
 0x472   : > { %4354 = vsyncadd %s4339_s8, %s4353_s26  ;;  %p7991_p5 = scmp.ne.s32.totalorder %s4501_s6, 0  ;;  %s4503_s30 = sshll.u32 %s4756_s13, 13 }
 0x473   : > { %s4358_s17 = scalar_lea.hbm %s8047_s2, %s4503_s30  ;;  %s4360_s25 = sshll.u32 %s4917_s20, 4  ;;  %s8000_s25 = int_to_ptr.vmem [resolvable:$true] %s4360_s25 }
 0x474   : > { %s4362_s28 = sshll.u32 %s4358_s17, 4  ;;  %s4492_s29 = sshll.u32 %s8067_s23, 9  ;;  %s8002_s28 = int_to_ptr.hbm [resolvable:$true] %s4362_s28 }
 0x475   : > { %s4628_s5 = sshra.s32 %s8000_s25, 4  ;;  %s4630_s19 = sshrl.u32 %s4492_s29, 4  ;;  %s4629_s5 = int_to_ptr.vmem [resolvable:$true] %s4628_s5 }
 0x476   : > { %s4635_s3 = scalar_lea.vmem %s4629_s5, %s4630_s19  ;;  %s4717_s13 = smov [#allocation7]  }
 0x477   : > { %p4636_p9 = scmp.ne.s32.totalorder %s4629_s5, %s4635_s3  ;;  %s4639_s7 = scalar_lea.vmem %s4717_s13, 16384 }
 0x478   : > { %p4641_p8 = scmp.lt.s32.totalorder %s4639_s7, %s4635_s3 }
 0x479   : > { %p4637_p4 = pnand %p4636_p9, %p7991_p5 }
 0x47b   : > { %p4638_p7 = pneg %p4637_p4 }
 0x47d   : > { %p4643_p12 = pnand %p4641_p8, %p4638_p7 }
 0x47f   : > { %4646 = shalt.err (!%p4643_p12)
}
 0x480   : > { %s4647_s20 = sshra.s32 %s8002_s28, 4  ;;  %s4658_s26 = scalar_lea.hbm %s8047_s2, 8352  ;;  %s4648_s20 = int_to_ptr.hbm [resolvable:$true] %s4647_s20 }
 0x481   : > { %s4654_s27 = scalar_lea.hbm %s4648_s20, %s4630_s19  ;;  %p4659_p11 = scmp.lt.s32.totalorder %s4648_s20, %s8047_s2 }
 0x482   : > { %p4655_p0 = scmp.ne.s32.totalorder %s4648_s20, %s4654_s27  ;;  %p4660_p13 = scmp.lt.s32.totalorder %s4658_s26, %s4654_s27 }
 0x484   : > { %p4656_p1 = pnand %p4655_p0, %p7991_p5  ;;  %p4661_p2 = por %p4660_p13, %p4659_p11 }
 0x486   : > { %p4657_p10 = pneg %p4656_p1 }
 0x488   : > { %p4662_p3 = pnand %p4661_p2, %p4657_p10 }
 0x48a   : > { %4665 = shalt.err (!%p4662_p3)
}
 0x48b   : > { %s4718_s16 = smov 512   ;;  %s4719_s17 = smov 32  }
 0x48c   : > { %4368 = dma.vmem_to_hbm [thread:$0]  (%p7991_p5), %s8000_s25, %s4492_s29, %s8002_s28, %s4339_s8, %s4718_s16, %s4718_s16, %s4719_s17  }
 0x48d PF: > { %s4377_s5 = sand.u32 1, %s4697_s9   ;;  %p8056_p6 = scmp.ne.s32.totalorder %s8052_s22, 0 }
 0x48e   : > { %p8057_p9 = scmp.ge.s32.totalorder %s4709_s12, 2  ;;  %s4378_s19 = scalar_lea.sflag [#allocation4], %s4377_s5 }
 0x490   : > { %p4508_p4 = pnand %p8057_p9, %p8056_p6 }
 0x492   : > { %p4509_p7 = pneg %p4508_p4 }
 0x494   : > { %4692 = dma.done.wait (%p4509_p7), %s4378_s19, 131072  }
 0x495   : > { %4694 = vsyncadd (%p4509_p7), %s4378_s19, 4294836224  ;;  %p18_p8 = scmp.ge.s32.totalorder %s4760_s15, 4   ;;  %s8058_s9 = smov %s4701_s10 }
 0x496   : > { %s8059_s10 = smov %s4705_s11  ;;  %s8060_s11 = smov %s4772_s18 }
 0x497   : > { %s8061_s12 = smov %s4760_s15  ;;  %20 = sbr.rel (!%p18_p8) target bundleno = 7 (0x7), region = 86 }
 0x49c   :  { %4384 = vsyncpa [#allocation3], 1 }
 0x49d   :  { %4386 = vsyncpa [#allocation3 + $0x1], 1 }
 0x49e   :  { %4387 = vsyncpa [#allocation6], 1 }
 0x49f   :  { %4389 = vsyncpa [#allocation6 + $0x1], 1 }
 0x4a0   :  { %4390 = vsyncpa [#allocation4], 1 }
 0x4a1   :  { %4392 = vsyncpa [#allocation4 + $0x1], 1 }

</bundles_post_ra>
